<compile_context>
chip_gen: v7x
topology: tpu7x:2x2x1
jax: 0.10.0
libtpu: 0.0.40
codegen_flags: <defaults>
</compile_context>

<pallas_src>
import functools

import jax
import jax.numpy as jnp
from jax.experimental import pallas as pl
from jax.experimental.pallas import tpu as pltpu

LANE = 128  # lane width / output-channel padding target


# ---------------------------------------------------------------------------
# Pallas kernels
# ---------------------------------------------------------------------------
def _mm_kernel(a_ref, w_ref, s_ref, b_ref, o_ref, *, act):
    """Fused GEMM (bf16 operands, f32 acc) + per-column scale/bias + act."""
    y = jnp.dot(a_ref[...], w_ref[...], preferred_element_type=jnp.float32)
    y = y * s_ref[...] + b_ref[...]
    if act == "relu":
        y = jnp.maximum(y, 0.0)
    o_ref[...] = y.astype(o_ref.dtype)


def _mm_gate_kernel(a_ref, w_ref, s_ref, b_ref, g_ref, o_ref):
    """Fused GEMM + scale/bias + sigmoid gating:  o = g * sigmoid(a@w*s+b)."""
    y = jnp.dot(a_ref[...], w_ref[...], preferred_element_type=jnp.float32)
    y = y * s_ref[...] + b_ref[...]
    o_ref[...] = (g_ref[...].astype(jnp.float32) * jax.nn.sigmoid(y)).astype(o_ref.dtype)


def _conv_pool_fc_kernel(a_ref, w_ref, s_ref, b_ref, fcw_ref, fcb_ref, o_ref):
    """conv3 GEMM + folded BN + ReLU + adaptive avg-pool + fc, all fused.

    Since pooling and the fc matmul are both linear:
        pool(relu_conv) @ W^T + b == pool(relu_conv @ W^T) + b
    so the fc matmul runs on the full (M, 128) activation (M >= 8) and the
    pool is a cheap per-batch sublane mean afterwards.
    """
    y = jnp.dot(a_ref[...], w_ref[...], preferred_element_type=jnp.float32)
    y = jnp.maximum(y * s_ref[...] + b_ref[...], 0.0)                    # (M, 128) f32
    z = jnp.dot(y, fcw_ref[...], preferred_element_type=jnp.float32)     # (M, 128) f32
    nb = o_ref.shape[0]
    s_cnt = z.shape[0] // nb                                             # spatial positions / batch
    for n in range(nb):                                                  # tiny static loop
        pooled = jnp.mean(z[n * s_cnt:(n + 1) * s_cnt, :], axis=0, keepdims=True)
        o_ref[n:n + 1, :] = (pooled + fcb_ref[...]).astype(o_ref.dtype)


# ---------------------------------------------------------------------------
# Fused GEMM wrapper
# ---------------------------------------------------------------------------
def _pick_tm(m):
    """Largest tile <= 512 that divides m while keeping >= 2 grid steps
    (two+ parallel steps let v7x's two TensorCores split the work)."""
    for tm in (512, 256, 128, 64, 32, 16, 8):
        if tm <= m // 2 and m % tm == 0:
            return tm
    return m


def fused_gemm(a, w, scale, bias, act="none", gate=None, out_dtype=jnp.bfloat16):
    """a: (M, K), w: (K, N), scale/bias: (N,).  Optional gate: (M, N).
    Requires K % 128 == 0, N % 128 == 0, M % 8 == 0 (arranged by callers)."""
    M, K = a.shape
    Kw, Nout = w.shape
    assert K == Kw and K % LANE == 0 and Nout % LANE == 0 and M % 8 == 0, (M, K, Nout)

    tm = _pick_tm(M)
    grid = (M // tm,)

    a = a.astype(jnp.bfloat16)      # MXU operands in bf16, f32 accumulation
    w = w.astype(jnp.bfloat16)
    s2 = scale.reshape(1, Nout).astype(jnp.float32)
    b2 = bias.reshape(1, Nout).astype(jnp.float32)

    in_specs = [
        pl.BlockSpec((tm, K), lambda i: (i, 0)),
        pl.BlockSpec((K, Nout), lambda i: (0, 0)),
        pl.BlockSpec((1, Nout), lambda i: (0, 0)),
        pl.BlockSpec((1, Nout), lambda i: (0, 0)),
    ]
    args = [a, w, s2, b2]
    if gate is not None:
        assert gate.shape == (M, Nout)
        in_specs.append(pl.BlockSpec((tm, Nout), lambda i: (i, 0)))
        args.append(gate.astype(jnp.bfloat16))
        kernel = _mm_gate_kernel
    else:
        kernel = functools.partial(_mm_kernel, act=act)

    return pl.pallas_call(
        kernel,
        out_shape=jax.ShapeDtypeStruct((M, Nout), out_dtype),
        grid_spec=pltpu.PrefetchScalarGridSpec(
            num_scalar_prefetch=0,
            grid=grid,
            in_specs=in_specs,
            out_specs=pl.BlockSpec((tm, Nout), lambda i: (i, 0)),
        ),
        compiler_params=pltpu.CompilerParams(
            dimension_semantics=("parallel",),
            vmem_limit_bytes=32 * 1024 * 1024,
        ),
    )(*args)


# ---------------------------------------------------------------------------
# Plain-JAX glue: im2col patch extraction (pad + strided slices + concat)
# ---------------------------------------------------------------------------
def im2col3d(x, stride, k_pad_to=None):
    """x: (N, D, H, W, C) -> patches (N*Do*Ho*Wo, 27*C [zero-padded to k_pad_to]).

    kernel=3, padding=1.  Built with 27 strided slices concatenated along the
    channel (lane) axis -- no stack(-2)+reshape relayout; K padding is a zero
    block appended inside the same concatenate (no extra jnp.pad pass)."""
    N, D, H, W, C = x.shape
    k, pad = 3, 1
    Do = (D + 2 * pad - k) // stride + 1
    Ho = (H + 2 * pad - k) // stride + 1
    Wo = (W + 2 * pad - k) // stride + 1
    xp = jnp.pad(x, ((0, 0), (pad, pad), (pad, pad), (pad, pad), (0, 0)))
    cols = []
    for kd in range(k):
        for kh in range(k):
            for kw in range(k):
                cols.append(xp[:, kd:kd + stride * Do:stride,
                                  kh:kh + stride * Ho:stride,
                                  kw:kw + stride * Wo:stride, :])
    k_real = 27 * C
    if k_pad_to is not None and k_pad_to > k_real:
        cols.append(jnp.zeros((N, Do, Ho, Wo, k_pad_to - k_real), x.dtype))
    p = jnp.concatenate(cols, axis=-1)
    return p.reshape(N * Do * Ho * Wo, p.shape[-1]), (Do, Ho, Wo)


def _fold_bn(conv, bn, cout, cout_pad):
    """Fold eval-mode BatchNorm into per-channel scale/bias; pad so that the
    zero-padded output channels evaluate to exactly 0 (scale=1, bias=0)."""
    if bn is not None:
        s = bn["gamma"] / jnp.sqrt(bn["var"] + 1e-5)
        eff_scale = s
        eff_bias = (conv["b"] - bn["mean"]) * s + bn["beta"]
    else:
        eff_scale = jnp.ones((cout,), jnp.float32)
        eff_bias = conv["b"]
    eff_scale = jnp.pad(eff_scale, (0, cout_pad - cout), constant_values=1.0)
    eff_bias = jnp.pad(eff_bias, (0, cout_pad - cout))
    return eff_scale, eff_bias


def _conv_weight_matrix(w, c_in_act, cout_pad):
    """(Cout, Cin, 3,3,3) -> (27*C_act [padded to %128], cout_pad), matching
    the tap-major / channel-minor im2col column order."""
    cout, cin = w.shape[0], w.shape[1]
    wp = jnp.pad(w, ((0, cout_pad - cout), (0, c_in_act - cin), (0, 0), (0, 0), (0, 0)))
    wt = jnp.transpose(wp, (2, 3, 4, 1, 0)).reshape(27 * c_in_act, cout_pad)
    k_real = 27 * c_in_act
    k_pad = ((k_real + LANE - 1) // LANE) * LANE
    if k_pad > k_real:
        wt = jnp.pad(wt, ((0, k_pad - k_real), (0, 0)))
    return wt, k_pad


def conv_block(x, conv, bn=None, stride=1, act="relu", gate=False):
    """Conv3d(k=3,pad=1) + folded BN + activation (or sigmoid gate) via the
    fused Pallas GEMM; output channels zero-padded to 128 (lane-dense)."""
    N, D, H, W, C = x.shape
    Cout = conv["w"].shape[0]
    cout_pad = ((Cout + LANE - 1) // LANE) * LANE
    wt, k_pad = _conv_weight_matrix(conv["w"], C, cout_pad)
    patches, (Do, Ho, Wo) = im2col3d(x, stride, k_pad_to=k_pad)
    eff_scale, eff_bias = _fold_bn(conv, bn, Cout, cout_pad)

    gate_arr = None
    if gate:
        assert stride == 1 and cout_pad == C
        gate_arr = x.reshape(N * D * H * W, C)

    y = fused_gemm(patches, wt, eff_scale, eff_bias, act=act, gate=gate_arr)
    return y.reshape(N, Do, Ho, Wo, cout_pad)


def conv3_pool_fc(x, conv, bn, fc_w, fc_b):
    """Fused final stage: conv3(k=3,s=2,p=1)+bn3+relu + avg-pool + fc."""
    N = x.shape[0]
    C = x.shape[-1]
    Cout = conv["w"].shape[0]                       # 128, already lane-dense
    assert Cout % LANE == 0
    wt, _ = _conv_weight_matrix(conv["w"], C, Cout)
    patches, _ = im2col3d(x, stride=2)
    M, K = patches.shape
    assert M % (8 * N) == 0 or M % N == 0
    eff_scale, eff_bias = _fold_bn(conv, bn, Cout, Cout)
    n_out = fc_w.shape[0]
    fcw_t = fc_w.T.astype(jnp.float32)              # (128, 128): y @ fc_w.T
    fcb = fc_b.reshape(1, n_out).astype(jnp.float32)

    return pl.pallas_call(
        _conv_pool_fc_kernel,
        out_shape=jax.ShapeDtypeStruct((N, n_out), jnp.float32),
        grid_spec=pltpu.PrefetchScalarGridSpec(
            num_scalar_prefetch=0,
            grid=(1,),
            in_specs=[
                pl.BlockSpec((M, K), lambda i: (0, 0)),
                pl.BlockSpec((K, Cout), lambda i: (0, 0)),
                pl.BlockSpec((1, Cout), lambda i: (0, 0)),
                pl.BlockSpec((1, Cout), lambda i: (0, 0)),
                pl.BlockSpec((Cout, n_out), lambda i: (0, 0)),
                pl.BlockSpec((1, n_out), lambda i: (0, 0)),
            ],
            out_specs=pl.BlockSpec((N, n_out), lambda i: (0, 0)),
        ),
        compiler_params=pltpu.CompilerParams(
            dimension_semantics=("arbitrary",),
            vmem_limit_bytes=32 * 1024 * 1024,
        ),
    )(patches.astype(jnp.bfloat16), wt.astype(jnp.bfloat16),
      eff_scale.reshape(1, Cout).astype(jnp.float32),
      eff_bias.reshape(1, Cout).astype(jnp.float32), fcw_t, fcb)


# ---------------------------------------------------------------------------
# Deterministic parameter initialization (shapes from the module __init__)
# ---------------------------------------------------------------------------
def init_params():
    key = jax.random.PRNGKey(42)
    ks = iter(jax.random.split(key, 32))

    def conv_p(cout, cin):
        return {
            "w": 0.05 * jax.random.normal(next(ks), (cout, cin, 3, 3, 3), jnp.float32),
            "b": 0.05 * jax.random.normal(next(ks), (cout,), jnp.float32),
        }

    def bn_p(c):
        return {
            "gamma": 1.0 + 0.1 * jax.random.normal(next(ks), (c,), jnp.float32),
            "beta": 0.1 * jax.random.normal(next(ks), (c,), jnp.float32),
            "mean": 0.1 * jax.random.normal(next(ks), (c,), jnp.float32),
            "var": jax.random.uniform(next(ks), (c,), jnp.float32, 0.5, 1.5),
        }

    return {
        "conv1": conv_p(32, 16), "bn1": bn_p(32),
        "conv2": conv_p(64, 32), "bn2": bn_p(64),
        "attn_conv": conv_p(64, 64),
        "conv3": conv_p(128, 64), "bn3": bn_p(128),
        "fc_w": 0.05 * jax.random.normal(next(ks), (128, 128), jnp.float32),
        "fc_b": 0.05 * jax.random.normal(next(ks), (128,), jnp.float32),
    }


# ---------------------------------------------------------------------------
# Full forward pass
# ---------------------------------------------------------------------------
def fid3dcnn_forward(x_ncdhw, p):
    # NCDHW -> NDHWC, activations carried in bf16 (MXU operand dtype)
    x = jnp.transpose(x_ncdhw, (0, 2, 3, 4, 1)).astype(jnp.bfloat16)

    # conv1 -> bn1 -> relu        (stride 1)   out channels padded 32 -> 128
    x = conv_block(x, p["conv1"], p["bn1"], stride=1, act="relu")
    # conv2 -> bn2 -> relu        (stride 2)   out channels padded 64 -> 128
    x = conv_block(x, p["conv2"], p["bn2"], stride=2, act="relu")
    # localized attention: x * sigmoid(conv3d_3x3x3(x))   (see TODO above)
    x = conv_block(x, p["attn_conv"], bn=None, stride=1, act="none", gate=True)
    # conv3 -> bn3 -> relu -> AdaptiveAvgPool3d(1) -> fc, fused in one kernel
    return conv3_pool_fc(x, p["conv3"], p["bn3"], p["fc_w"], p["fc_b"])  # (N, 128)


# ---------------------------------------------------------------------------
if __name__ == "__main__":
    params = init_params()
    x = jax.random.normal(jax.random.PRNGKey(0), (2, 16, 8, 8, 8), jnp.float32)

    fwd = jax.jit(fid3dcnn_forward)
    out = jax.block_until_ready(fwd(x, params))

    assert out.shape == (2, 128), out.shape
    assert bool(jnp.all(jnp.isfinite(out)))
    print("KERNEL_OK")
</pallas_src>

<mosaic_0001>
module attributes {stable_mosaic.version = 11 : i64} {
  func.func @_mm_kernel(%arg0: i32, %arg1: memref<512x512xbf16, #tpu.memory_space<vmem>>, %arg2: memref<512x128xbf16, #tpu.memory_space<vmem>>, %arg3: memref<1x128xf32, #tpu.memory_space<vmem>>, %arg4: memref<1x128xf32, #tpu.memory_space<vmem>>, %arg5: memref<512x128xbf16, #tpu.memory_space<vmem>>) attributes {dimension_semantics = [#tpu.dimension_semantics<parallel>], iteration_bounds = array<i64: 2>, scalar_prefetch = 0 : i64, scratch_operands = 0 : i64, tpu.core_type = #tpu.core_type<tc>, window_params = [{transform_indices = @transform_0, window_bounds = array<i64: 512, 512>}, {pipeline_mode = #tpu.pipeline_mode<synchronous>, transform_indices = @transform_1, window_bounds = array<i64: 512, 128>}, {pipeline_mode = #tpu.pipeline_mode<synchronous>, transform_indices = @transform_2, window_bounds = array<i64: 1, 128>}, {pipeline_mode = #tpu.pipeline_mode<synchronous>, transform_indices = @transform_3, window_bounds = array<i64: 1, 128>}, {transform_indices = @transform_4, window_bounds = array<i64: 512, 128>}]} {
    %c0 = arith.constant 0 : index
    %c0_0 = arith.constant 0 : index
    %0 = vector.load %arg1[%c0, %c0_0] : memref<512x512xbf16, #tpu.memory_space<vmem>>, vector<512x512xbf16>
    %c0_1 = arith.constant 0 : index
    %c0_2 = arith.constant 0 : index
    %1 = vector.load %arg2[%c0_1, %c0_2] : memref<512x128xbf16, #tpu.memory_space<vmem>>, vector<512x128xbf16>
    %cst = arith.constant dense<0.000000e+00> : vector<512x128xf32>
    %2 = tpu.matmul %0, %1, %cst {dimension_numbers = #tpu.dot_dimension_numbers<[1], [0], [0], [1], [0, 0, 1, 1], [], []>} : vector<512x512xbf16>, vector<512x128xbf16>, vector<512x128xf32> -> vector<512x128xf32>
    %c0_3 = arith.constant 0 : index
    %c0_4 = arith.constant 0 : index
    %3 = vector.load %arg3[%c0_3, %c0_4] : memref<1x128xf32, #tpu.memory_space<vmem>>, vector<1x128xf32>
    %4 = vector.broadcast %3 : vector<1x128xf32> to vector<512x128xf32>
    %5 = arith.mulf %2, %4 : vector<512x128xf32>
    %c0_5 = arith.constant 0 : index
    %c0_6 = arith.constant 0 : index
    %6 = vector.load %arg4[%c0_5, %c0_6] : memref<1x128xf32, #tpu.memory_space<vmem>>, vector<1x128xf32>
    %7 = vector.broadcast %6 : vector<1x128xf32> to vector<512x128xf32>
    %8 = arith.addf %5, %7 : vector<512x128xf32>
    %cst_7 = arith.constant 0.000000e+00 : f32
    %9 = vector.broadcast %cst_7 : f32 to vector<512x128xf32>
    %10 = arith.maximumf %8, %9 : vector<512x128xf32>
    %11 = arith.truncf %10 : vector<512x128xf32> to vector<512x128xbf16>
    %c0_8 = arith.constant 0 : index
    %c0_9 = arith.constant 0 : index
    %12 = vector.load %arg5[%c0_8, %c0_9] : memref<512x128xbf16, #tpu.memory_space<vmem>>, vector<512x128xbf16>
    tpu.vector_store %arg5[%c0_8, %c0_9], %11 {strides = array<i32>} : memref<512x128xbf16, #tpu.memory_space<vmem>>, vector<512x128xbf16>,
    return
  }
  func.func @transform_0(%arg0: i32) -> (i32, i32) {
    %c0_i32 = arith.constant 0 : i32
    %c0_i32_0 = arith.constant 0 : i32
    return %arg0, %c0_i32 : i32, i32
  }
  func.func @transform_1(%arg0: i32) -> (i32, i32) {
    %c0_i32 = arith.constant 0 : i32
    %c0_i32_0 = arith.constant 0 : i32
    %c0_i32_1 = arith.constant 0 : i32
    return %c0_i32, %c0_i32_0 : i32, i32
  }
  func.func @transform_2(%arg0: i32) -> (i32, i32) {
    %c0_i32 = arith.constant 0 : i32
    %c0_i32_0 = arith.constant 0 : i32
    %c0_i32_1 = arith.constant 0 : i32
    return %c0_i32, %c0_i32_0 : i32, i32
  }
  func.func @transform_3(%arg0: i32) -> (i32, i32) {
    %c0_i32 = arith.constant 0 : i32
    %c0_i32_0 = arith.constant 0 : i32
    %c0_i32_1 = arith.constant 0 : i32
    return %c0_i32, %c0_i32_0 : i32, i32
  }
  func.func @transform_4(%arg0: i32) -> (i32, i32) {
    %c0_i32 = arith.constant 0 : i32
    %c0_i32_0 = arith.constant 0 : i32
    return %arg0, %c0_i32 : i32, i32
  }
}

module attributes {stable_mosaic.version = 11 : i64} {
  func.func @_mm_kernel(%arg0: i32, %arg1: memref<64x3456xbf16, #tpu.memory_space<vmem>>, %arg2: memref<3456x128xbf16, #tpu.memory_space<vmem>>, %arg3: memref<1x128xf32, #tpu.memory_space<vmem>>, %arg4: memref<1x128xf32, #tpu.memory_space<vmem>>, %arg5: memref<64x128xbf16, #tpu.memory_space<vmem>>) attributes {dimension_semantics = [#tpu.dimension_semantics<parallel>], iteration_bounds = array<i64: 2>, scalar_prefetch = 0 : i64, scratch_operands = 0 : i64, tpu.core_type = #tpu.core_type<tc>, window_params = [{transform_indices = @transform_0, window_bounds = array<i64: 64, 3456>}, {pipeline_mode = #tpu.pipeline_mode<synchronous>, transform_indices = @transform_1, window_bounds = array<i64: 3456, 128>}, {pipeline_mode = #tpu.pipeline_mode<synchronous>, transform_indices = @transform_2, window_bounds = array<i64: 1, 128>}, {pipeline_mode = #tpu.pipeline_mode<synchronous>, transform_indices = @transform_3, window_bounds = array<i64: 1, 128>}, {transform_indices = @transform_4, window_bounds = array<i64: 64, 128>}]} {
    %c0 = arith.constant 0 : index
    %c0_0 = arith.constant 0 : index
    %0 = vector.load %arg1[%c0, %c0_0] : memref<64x3456xbf16, #tpu.memory_space<vmem>>, vector<64x3456xbf16>
    %c0_1 = arith.constant 0 : index
    %c0_2 = arith.constant 0 : index
    %1 = vector.load %arg2[%c0_1, %c0_2] : memref<3456x128xbf16, #tpu.memory_space<vmem>>, vector<3456x128xbf16>
    %cst = arith.constant dense<0.000000e+00> : vector<64x128xf32>
    %2 = tpu.matmul %0, %1, %cst {dimension_numbers = #tpu.dot_dimension_numbers<[1], [0], [0], [1], [0, 0, 1, 1], [], []>} : vector<64x3456xbf16>, vector<3456x128xbf16>, vector<64x128xf32> -> vector<64x128xf32>
    %c0_3 = arith.constant 0 : index
    %c0_4 = arith.constant 0 : index
    %3 = vector.load %arg3[%c0_3, %c0_4] : memref<1x128xf32, #tpu.memory_space<vmem>>, vector<1x128xf32>
    %4 = vector.broadcast %3 : vector<1x128xf32> to vector<64x128xf32>
    %5 = arith.mulf %2, %4 : vector<64x128xf32>
    %c0_5 = arith.constant 0 : index
    %c0_6 = arith.constant 0 : index
    %6 = vector.load %arg4[%c0_5, %c0_6] : memref<1x128xf32, #tpu.memory_space<vmem>>, vector<1x128xf32>
    %7 = vector.broadcast %6 : vector<1x128xf32> to vector<64x128xf32>
    %8 = arith.addf %5, %7 : vector<64x128xf32>
    %cst_7 = arith.constant 0.000000e+00 : f32
    %9 = vector.broadcast %cst_7 : f32 to vector<64x128xf32>
    %10 = arith.maximumf %8, %9 : vector<64x128xf32>
    %11 = arith.truncf %10 : vector<64x128xf32> to vector<64x128xbf16>
    %c0_8 = arith.constant 0 : index
    %c0_9 = arith.constant 0 : index
    %12 = vector.load %arg5[%c0_8, %c0_9] : memref<64x128xbf16, #tpu.memory_space<vmem>>, vector<64x128xbf16>
    tpu.vector_store %arg5[%c0_8, %c0_9], %11 {strides = array<i32>} : memref<64x128xbf16, #tpu.memory_space<vmem>>, vector<64x128xbf16>,
    return
  }
  func.func @transform_0(%arg0: i32) -> (i32, i32) {
    %c0_i32 = arith.constant 0 : i32
    %c0_i32_0 = arith.constant 0 : i32
    return %arg0, %c0_i32 : i32, i32
  }
  func.func @transform_1(%arg0: i32) -> (i32, i32) {
    %c0_i32 = arith.constant 0 : i32
    %c0_i32_0 = arith.constant 0 : i32
    %c0_i32_1 = arith.constant 0 : i32
    return %c0_i32, %c0_i32_0 : i32, i32
  }
  func.func @transform_2(%arg0: i32) -> (i32, i32) {
    %c0_i32 = arith.constant 0 : i32
    %c0_i32_0 = arith.constant 0 : i32
    %c0_i32_1 = arith.constant 0 : i32
    return %c0_i32, %c0_i32_0 : i32, i32
  }
  func.func @transform_3(%arg0: i32) -> (i32, i32) {
    %c0_i32 = arith.constant 0 : i32
    %c0_i32_0 = arith.constant 0 : i32
    %c0_i32_1 = arith.constant 0 : i32
    return %c0_i32, %c0_i32_0 : i32, i32
  }
  func.func @transform_4(%arg0: i32) -> (i32, i32) {
    %c0_i32 = arith.constant 0 : i32
    %c0_i32_0 = arith.constant 0 : i32
    return %arg0, %c0_i32 : i32, i32
  }
}

module attributes {stable_mosaic.version = 11 : i64} {
  func.func @_mm_gate_kernel(%arg0: i32, %arg1: memref<64x3456xbf16, #tpu.memory_space<vmem>>, %arg2: memref<3456x128xbf16, #tpu.memory_space<vmem>>, %arg3: memref<1x128xf32, #tpu.memory_space<vmem>>, %arg4: memref<1x128xf32, #tpu.memory_space<vmem>>, %arg5: memref<64x128xbf16, #tpu.memory_space<vmem>>, %arg6: memref<64x128xbf16, #tpu.memory_space<vmem>>) attributes {dimension_semantics = [#tpu.dimension_semantics<parallel>], iteration_bounds = array<i64: 2>, scalar_prefetch = 0 : i64, scratch_operands = 0 : i64, tpu.core_type = #tpu.core_type<tc>, window_params = [{transform_indices = @transform_0, window_bounds = array<i64: 64, 3456>}, {pipeline_mode = #tpu.pipeline_mode<synchronous>, transform_indices = @transform_1, window_bounds = array<i64: 3456, 128>}, {pipeline_mode = #tpu.pipeline_mode<synchronous>, transform_indices = @transform_2, window_bounds = array<i64: 1, 128>}, {pipeline_mode = #tpu.pipeline_mode<synchronous>, transform_indices = @transform_3, window_bounds = array<i64: 1, 128>}, {transform_indices = @transform_4, window_bounds = array<i64: 64, 128>}, {transform_indices = @transform_5, window_bounds = array<i64: 64, 128>}]} {
    %c0 = arith.constant 0 : index
    %c0_0 = arith.constant 0 : index
    %0 = vector.load %arg1[%c0, %c0_0] : memref<64x3456xbf16, #tpu.memory_space<vmem>>, vector<64x3456xbf16>
    %c0_1 = arith.constant 0 : index
    %c0_2 = arith.constant 0 : index
    %1 = vector.load %arg2[%c0_1, %c0_2] : memref<3456x128xbf16, #tpu.memory_space<vmem>>, vector<3456x128xbf16>
    %cst = arith.constant dense<0.000000e+00> : vector<64x128xf32>
    %2 = tpu.matmul %0, %1, %cst {dimension_numbers = #tpu.dot_dimension_numbers<[1], [0], [0], [1], [0, 0, 1, 1], [], []>} : vector<64x3456xbf16>, vector<3456x128xbf16>, vector<64x128xf32> -> vector<64x128xf32>
    %c0_3 = arith.constant 0 : index
    %c0_4 = arith.constant 0 : index
    %3 = vector.load %arg3[%c0_3, %c0_4] : memref<1x128xf32, #tpu.memory_space<vmem>>, vector<1x128xf32>
    %4 = vector.broadcast %3 : vector<1x128xf32> to vector<64x128xf32>
    %5 = arith.mulf %2, %4 : vector<64x128xf32>
    %c0_5 = arith.constant 0 : index
    %c0_6 = arith.constant 0 : index
    %6 = vector.load %arg4[%c0_5, %c0_6] : memref<1x128xf32, #tpu.memory_space<vmem>>, vector<1x128xf32>
    %7 = vector.broadcast %6 : vector<1x128xf32> to vector<64x128xf32>
    %8 = arith.addf %5, %7 : vector<64x128xf32>
    %c0_7 = arith.constant 0 : index
    %c0_8 = arith.constant 0 : index
    %9 = vector.load %arg5[%c0_7, %c0_8] : memref<64x128xbf16, #tpu.memory_space<vmem>>, vector<64x128xbf16>
    %10 = arith.extf %9 : vector<64x128xbf16> to vector<64x128xf32>
    %11 = arith.negf %8 : vector<64x128xf32>
    %12 = math.exp %11 : vector<64x128xf32>
    %cst_9 = arith.constant 1.000000e+00 : f32
    %13 = vector.broadcast %cst_9 : f32 to vector<64x128xf32>
    %14 = arith.addf %13, %12 : vector<64x128xf32>
    %15 = arith.divf %13, %14 : vector<64x128xf32>
    %16 = arith.mulf %10, %15 : vector<64x128xf32>
    %17 = arith.truncf %16 : vector<64x128xf32> to vector<64x128xbf16>
    %c0_10 = arith.constant 0 : index
    %c0_11 = arith.constant 0 : index
    %18 = vector.load %arg6[%c0_10, %c0_11] : memref<64x128xbf16, #tpu.memory_space<vmem>>, vector<64x128xbf16>
    tpu.vector_store %arg6[%c0_10, %c0_11], %17 {strides = array<i32>} : memref<64x128xbf16, #tpu.memory_space<vmem>>, vector<64x128xbf16>,
    return
  }
  func.func @transform_0(%arg0: i32) -> (i32, i32) {
    %c0_i32 = arith.constant 0 : i32
    %c0_i32_0 = arith.constant 0 : i32
    return %arg0, %c0_i32 : i32, i32
  }
  func.func @transform_1(%arg0: i32) -> (i32, i32) {
    %c0_i32 = arith.constant 0 : i32
    %c0_i32_0 = arith.constant 0 : i32
    %c0_i32_1 = arith.constant 0 : i32
    return %c0_i32, %c0_i32_0 : i32, i32
  }
  func.func @transform_2(%arg0: i32) -> (i32, i32) {
    %c0_i32 = arith.constant 0 : i32
    %c0_i32_0 = arith.constant 0 : i32
    %c0_i32_1 = arith.constant 0 : i32
    return %c0_i32, %c0_i32_0 : i32, i32
  }
  func.func @transform_3(%arg0: i32) -> (i32, i32) {
    %c0_i32 = arith.constant 0 : i32
    %c0_i32_0 = arith.constant 0 : i32
    %c0_i32_1 = arith.constant 0 : i32
    return %c0_i32, %c0_i32_0 : i32, i32
  }
  func.func @transform_4(%arg0: i32) -> (i32, i32) {
    %c0_i32 = arith.constant 0 : i32
    %c0_i32_0 = arith.constant 0 : i32
    return %arg0, %c0_i32 : i32, i32
  }
  func.func @transform_5(%arg0: i32) -> (i32, i32) {
    %c0_i32 = arith.constant 0 : i32
    %c0_i32_0 = arith.constant 0 : i32
    return %arg0, %c0_i32 : i32, i32
  }
}

module attributes {stable_mosaic.version = 11 : i64} {
  func.func @_conv_pool_fc_kernel(%arg0: i32, %arg1: memref<16x3456xbf16, #tpu.memory_space<vmem>>, %arg2: memref<3456x128xbf16, #tpu.memory_space<vmem>>, %arg3: memref<1x128xf32, #tpu.memory_space<vmem>>, %arg4: memref<1x128xf32, #tpu.memory_space<vmem>>, %arg5: memref<128x128xf32, #tpu.memory_space<vmem>>, %arg6: memref<1x128xf32, #tpu.memory_space<vmem>>, %arg7: memref<2x128xf32, #tpu.memory_space<vmem>>) attributes {dimension_semantics = [#tpu.dimension_semantics<arbitrary>], iteration_bounds = array<i64: 1>, scalar_prefetch = 0 : i64, scratch_operands = 0 : i64, tpu.core_type = #tpu.core_type<tc>, window_params = [{pipeline_mode = #tpu.pipeline_mode<synchronous>, transform_indices = @transform_0, window_bounds = array<i64: 16, 3456>}, {pipeline_mode = #tpu.pipeline_mode<synchronous>, transform_indices = @transform_1, window_bounds = array<i64: 3456, 128>}, {pipeline_mode = #tpu.pipeline_mode<synchronous>, transform_indices = @transform_2, window_bounds = array<i64: 1, 128>}, {pipeline_mode = #tpu.pipeline_mode<synchronous>, transform_indices = @transform_3, window_bounds = array<i64: 1, 128>}, {pipeline_mode = #tpu.pipeline_mode<synchronous>, transform_indices = @transform_4, window_bounds = array<i64: 128, 128>}, {pipeline_mode = #tpu.pipeline_mode<synchronous>, transform_indices = @transform_5, window_bounds = array<i64: 1, 128>}, {pipeline_mode = #tpu.pipeline_mode<synchronous>, transform_indices = @transform_6, window_bounds = array<i64: 2, 128>}]} {
    %c0 = arith.constant 0 : index
    %c0_0 = arith.constant 0 : index
    %0 = vector.load %arg1[%c0, %c0_0] : memref<16x3456xbf16, #tpu.memory_space<vmem>>, vector<16x3456xbf16>
    %c0_1 = arith.constant 0 : index
    %c0_2 = arith.constant 0 : index
    %1 = vector.load %arg2[%c0_1, %c0_2] : memref<3456x128xbf16, #tpu.memory_space<vmem>>, vector<3456x128xbf16>
    %cst = arith.constant dense<0.000000e+00> : vector<16x128xf32>
    %2 = tpu.matmul %0, %1, %cst {dimension_numbers = #tpu.dot_dimension_numbers<[1], [0], [0], [1], [0, 0, 1, 1], [], []>} : vector<16x3456xbf16>, vector<3456x128xbf16>, vector<16x128xf32> -> vector<16x128xf32>
    %c0_3 = arith.constant 0 : index
    %c0_4 = arith.constant 0 : index
    %3 = vector.load %arg3[%c0_3, %c0_4] : memref<1x128xf32, #tpu.memory_space<vmem>>, vector<1x128xf32>
    %4 = vector.broadcast %3 : vector<1x128xf32> to vector<16x128xf32>
    %5 = arith.mulf %2, %4 : vector<16x128xf32>
    %c0_5 = arith.constant 0 : index
    %c0_6 = arith.constant 0 : index
    %6 = vector.load %arg4[%c0_5, %c0_6] : memref<1x128xf32, #tpu.memory_space<vmem>>, vector<1x128xf32>
    %7 = vector.broadcast %6 : vector<1x128xf32> to vector<16x128xf32>
    %8 = arith.addf %5, %7 : vector<16x128xf32>
    %cst_7 = arith.constant 0.000000e+00 : f32
    %9 = vector.broadcast %cst_7 : f32 to vector<16x128xf32>
    %10 = arith.maximumf %8, %9 : vector<16x128xf32>
    %c0_8 = arith.constant 0 : index
    %c0_9 = arith.constant 0 : index
    %11 = vector.load %arg5[%c0_8, %c0_9] : memref<128x128xf32, #tpu.memory_space<vmem>>, vector<128x128xf32>
    %cst_10 = arith.constant dense<0.000000e+00> : vector<16x128xf32>
    %12 = tpu.matmul %10, %11, %cst_10 {dimension_numbers = #tpu.dot_dimension_numbers<[1], [0], [0], [1], [0, 0, 1, 1], [], []>} : vector<16x128xf32>, vector<128x128xf32>, vector<16x128xf32> -> vector<16x128xf32>
    %13 = vector.extract_strided_slice %12 {offsets = [0, 0], sizes = [8, 128], strides = [1, 1]} : vector<16x128xf32> to vector<8x128xf32>
    %cst_11 = arith.constant dense<0.000000e+00> : vector<128xf32>
    %14 = vector.multi_reduction <add>, %13, %cst_11 [0] : vector<8x128xf32> to vector<128xf32>
    %15 = vector.shape_cast %14 : vector<128xf32> to vector<1x128xf32>
    %cst_12 = arith.constant 8.000000e+00 : f32
    %16 = vector.broadcast %cst_12 : f32 to vector<1x128xf32>
    %17 = arith.divf %15, %16 : vector<1x128xf32>
    %c0_13 = arith.constant 0 : index
    %c0_14 = arith.constant 0 : index
    %18 = vector.load %arg6[%c0_13, %c0_14] : memref<1x128xf32, #tpu.memory_space<vmem>>, vector<1x128xf32>
    %19 = arith.addf %17, %18 : vector<1x128xf32>
    %c0_15 = arith.constant 0 : index
    %c0_16 = arith.constant 0 : index
    %20 = vector.load %arg7[%c0_15, %c0_16] : memref<2x128xf32, #tpu.memory_space<vmem>>, vector<1x128xf32>
    tpu.vector_store %arg7[%c0_15, %c0_16], %19 {strides = array<i32>} : memref<2x128xf32, #tpu.memory_space<vmem>>, vector<1x128xf32>,
    %21 = vector.extract_strided_slice %12 {offsets = [8, 0], sizes = [8, 128], strides = [1, 1]} : vector<16x128xf32> to vector<8x128xf32>
    %cst_17 = arith.constant dense<0.000000e+00> : vector<128xf32>
    %22 = vector.multi_reduction <add>, %21, %cst_17 [0] : vector<8x128xf32> to vector<128xf32>
    %23 = vector.shape_cast %22 : vector<128xf32> to vector<1x128xf32>
    %cst_18 = arith.constant 8.000000e+00 : f32
    %24 = vector.broadcast %cst_18 : f32 to vector<1x128xf32>
    %25 = arith.divf %23, %24 : vector<1x128xf32>
    %c0_19 = arith.constant 0 : index
    %c0_20 = arith.constant 0 : index
    %26 = vector.load %arg6[%c0_19, %c0_20] : memref<1x128xf32, #tpu.memory_space<vmem>>, vector<1x128xf32>
    %27 = arith.addf %25, %26 : vector<1x128xf32>
    %c1 = arith.constant 1 : index
    %c0_21 = arith.constant 0 : index
    %28 = vector.load %arg7[%c1, %c0_21] : memref<2x128xf32, #tpu.memory_space<vmem>>, vector<1x128xf32>
    tpu.vector_store %arg7[%c1, %c0_21], %27 {strides = array<i32>} : memref<2x128xf32, #tpu.memory_space<vmem>>, vector<1x128xf32>,
    return
  }
  func.func @transform_0(%arg0: i32) -> (i32, i32) {
    %c0_i32 = arith.constant 0 : i32
    %c0_i32_0 = arith.constant 0 : i32
    %c0_i32_1 = arith.constant 0 : i32
    return %c0_i32, %c0_i32_0 : i32, i32
  }
  func.func @transform_1(%arg0: i32) -> (i32, i32) {
    %c0_i32 = arith.constant 0 : i32
    %c0_i32_0 = arith.constant 0 : i32
    %c0_i32_1 = arith.constant 0 : i32
    return %c0_i32, %c0_i32_0 : i32, i32
  }
  func.func @transform_2(%arg0: i32) -> (i32, i32) {
    %c0_i32 = arith.constant 0 : i32
    %c0_i32_0 = arith.constant 0 : i32
    %c0_i32_1 = arith.constant 0 : i32
    return %c0_i32, %c0_i32_0 : i32, i32
  }
  func.func @transform_3(%arg0: i32) -> (i32, i32) {
    %c0_i32 = arith.constant 0 : i32
    %c0_i32_0 = arith.constant 0 : i32
    %c0_i32_1 = arith.constant 0 : i32
    return %c0_i32, %c0_i32_0 : i32, i32
  }
  func.func @transform_4(%arg0: i32) -> (i32, i32) {
    %c0_i32 = arith.constant 0 : i32
    %c0_i32_0 = arith.constant 0 : i32
    %c0_i32_1 = arith.constant 0 : i32
    return %c0_i32, %c0_i32_0 : i32, i32
  }
  func.func @transform_5(%arg0: i32) -> (i32, i32) {
    %c0_i32 = arith.constant 0 : i32
    %c0_i32_0 = arith.constant 0 : i32
    %c0_i32_1 = arith.constant 0 : i32
    return %c0_i32, %c0_i32_0 : i32, i32
  }
  func.func @transform_6(%arg0: i32) -> (i32, i32) {
    %c0_i32 = arith.constant 0 : i32
    %c0_i32_0 = arith.constant 0 : i32
    %c0_i32_1 = arith.constant 0 : i32
    return %c0_i32, %c0_i32_0 : i32, i32
  }
}

</mosaic_0001>

<bundles_post_ra>
// kernel: fid3dcnn_forward.4
= control target key start
LH: loop header
LB: loop body
LE: loop exit
PB: predicated region body
PF: predicated region fallthrough
CT: control target
= control target key end

     0   :  { %s3216_s15 = smov 0   ;;  %s3679_s0 = inlined_call_operand.vmem [shape: bf16[1024,512], index: 0, kind: input, shape index: {}]   ;;  %s3680_s1 = inlined_call_operand.vmem [shape: bf16[512,128], index: 1, kind: input, shape index: {}]   ;;  %s3681_s2 = inlined_call_operand.vmem [shape: f32[1,128], index: 2, kind: input, shape index: {}]   ;;  %s3682_s3 = inlined_call_operand.vmem [shape: f32[1,128], index: 3, kind: input, shape index: {}]   ;;  %s3683_s4 = inlined_call_operand.vmem [shape: bf16[1024,128], index: 4, kind: output, shape index: {}]  }
   0x1 LB: > { %s2389_s16 = sadd.s32 4294967295, %s3188_s15   ;;  %p2393_p0 = scmp.ge.s32.totalorder %s3188_s15, 1  ;;  %s3188_s15 = sphi %s3216_s15, %s14_s15  }
   0x2   : > { %p164_p1 = scmp.lt.s32.totalorder %s3188_s15, 3 }
   0x4   : > { %p165_p2 = pnand %p2393_p0, %p164_p1 }
   0x5   : > { %v2956_v0 = vld [vmem:[%s3680_s1] sm:$0xff] (!%p165_p2)   ;;  %v3190_v1 = vmov (!%p165_p2), 0   ;;  %v2958_v3 = vld [vmem:[%s3680_s1 + $0x8] sm:$0xff] (!%p165_p2)   ;;  %v2960_v5 = vld [vmem:[%s3680_s1 + $0x10] sm:$0xff] (!%p165_p2)   ;;  %s2394_s11 = sshll.u32 (!%p165_p2), %s2389_s16, 6 }
   0x6   : > { %168 = sbr.rel (%p165_p2) target bundleno = 543 (0x21f), region = 36  ;;  %1229 = vmatprep.subr.bf16.mxu1 (!%p165_p2), %v3190_v1  ;;  %1518 = vmatprep.subr.bf16.mxu0 (!%p165_p2), %v3190_v1  ;;  %v2957_v2 = vld [vmem:[%s3680_s1 + $0x80] sm:$0xff] (!%p165_p2)   ;;  %v2959_v4 = vld [vmem:[%s3680_s1 + $0x88] sm:$0xff] (!%p165_p2)   ;;  %v2961_v6 = vld [vmem:[%s3680_s1 + $0x90] sm:$0xff] (!%p165_p2)   ;;  %p192_p3 = scmp.lt.s32.totalorder (!%p165_p2), %s2394_s11, 127 }
   0x7   : > { %1230 = vmatpush1.bf16.msra.mxu1 (!%p165_p2), %v2956_v0  ;;  %1519 = vmatpush1.bf16.msra.mxu0 (!%p165_p2), %v2957_v2  ;;  %v2962_v7 = vld [vmem:[%s3680_s1 + $0x18] sm:$0xff] (!%p165_p2)   ;;  %v2964_v9 = vld [vmem:[%s3680_s1 + $0x20] sm:$0xff] (!%p165_p2)   ;;  %v2966_v11 = vld [vmem:[%s3680_s1 + $0x28] sm:$0xff] (!%p165_p2)  }
   0x8   : > { %1231 = vmatprep.subr.bf16.mxu1 (!%p165_p2), %v3190_v1  ;;  %1520 = vmatprep.subr.bf16.mxu0 (!%p165_p2), %v3190_v1  ;;  %v2963_v8 = vld [vmem:[%s3680_s1 + $0x98] sm:$0xff] (!%p165_p2)   ;;  %v2965_v10 = vld [vmem:[%s3680_s1 + $0xa0] sm:$0xff] (!%p165_p2)   ;;  %v2967_v12 = vld [vmem:[%s3680_s1 + $0xa8] sm:$0xff] (!%p165_p2)  }
   0x9   : > { %v2968_v13 = vld [vmem:[%s3680_s1 + $0x30] sm:$0xff] (!%p165_p2)   ;;  %v2970_v15 = vld [vmem:[%s3680_s1 + $0x38] sm:$0xff] (!%p165_p2)   ;;  %v2972_v17 = vld [vmem:[%s3680_s1 + $0x40] sm:$0xff] (!%p165_p2)  }
   0xa   : > { %v2969_v14 = vld [vmem:[%s3680_s1 + $0xb0] sm:$0xff] (!%p165_p2)   ;;  %v2971_v16 = vld [vmem:[%s3680_s1 + $0xb8] sm:$0xff] (!%p165_p2)   ;;  %v2973_v18 = vld [vmem:[%s3680_s1 + $0xc0] sm:$0xff] (!%p165_p2)  }
   0xb   : > { %1232 = vmatpush1.bf16.msra.mxu1 (!%p165_p2), %v2958_v3  ;;  %1521 = vmatpush1.bf16.msra.mxu0 (!%p165_p2), %v2959_v4  ;;  %v2974_v20 = vld [vmem:[%s3680_s1 + $0x48] sm:$0xff] (!%p165_p2)   ;;  %v2976_v23 = vld [vmem:[%s3680_s1 + $0x50] sm:$0xff] (!%p165_p2)   ;;  %v2978_v25 = vld [vmem:[%s3680_s1 + $0x58] sm:$0xff] (!%p165_p2)  }
   0xc   : > { %1233 = vmatprep.subr.bf16.mxu1 (!%p165_p2), %v3190_v1  ;;  %1522 = vmatprep.subr.bf16.mxu0 (!%p165_p2), %v3190_v1  ;;  %v2975_v22 = vld [vmem:[%s3680_s1 + $0xc8] sm:$0xff] (!%p165_p2)   ;;  %v2977_v24 = vld [vmem:[%s3680_s1 + $0xd0] sm:$0xff] (!%p165_p2)   ;;  %v2979_v26 = vld [vmem:[%s3680_s1 + $0xd8] sm:$0xff] (!%p165_p2)  }
   0xd   : > { %s3685_s11 = smov (!%p192_p3, %s2394_s11), 127  ;;  %v2980_v27 = vld [vmem:[%s3680_s1 + $0x60] sm:$0xff]   ;;  %v2982_v29 = vld [vmem:[%s3680_s1 + $0x68] sm:$0xff]   ;;  %v2984_v31 = vld [vmem:[%s3680_s1 + $0x70] sm:$0xff]  }
   0xe   : > { %s2627_s25 = sshll.u32 %s3685_s11, 4  ;;  %v2981_v28 = vld [vmem:[%s3680_s1 + $0xe0] sm:$0xff]   ;;  %v2983_v30 = vld [vmem:[%s3680_s1 + $0xe8] sm:$0xff]   ;;  %v2985_v32 = vld [vmem:[%s3680_s1 + $0xf0] sm:$0xff]   ;;  %s2398_s19 = sshll.u32 %s3685_s11, 2 }
   0xf   : > { %1234 = vmatpush1.bf16.msra.mxu1 %v2960_v5  ;;  %1523 = vmatpush1.bf16.msra.mxu0 %v2961_v6  ;;  %s3299_s30 = scalar_lea.vmem %s3679_s0, %s2627_s25  ;;  %v2986_v33 = vld [vmem:[%s3680_s1 + $0x78] sm:$0xff]   ;;  %s3497_s21 = scalar_lea.vmem %s3683_s4, %s2398_s19 }
  0x10   : > { %1235 = vmatprep.subr.bf16.mxu1 %v3190_v1  ;;  %1524 = vmatprep.subr.bf16.mxu0 %v3190_v1  ;;  %v2990_v19 = vld [vmem:[%s3299_s30 + $0x4] ss:$16 sps:$4 sm:$0xff]   ;;  %v2993_v21 = vld [vmem:[%s3299_s30 + $0xc] ss:$16 sps:$4 sm:$0xff]   ;;  %v2988_v35 = vld [vmem:[%s3299_s30] ss:$16 sps:$4 sm:$0xff]  }
  0x11   : > { %1261 = vmatprep.mubr.bf16.mxu1 %v2990_v19  ;;  %1550 = vmatprep.mubr.bf16.mxu0 %v2993_v21  ;;  %v2987_v34 = vld [vmem:[%s3680_s1 + $0xf8] sm:$0xff]   ;;  %v2994_v37 = vld [vmem:[%s3299_s30 + $0x24] ss:$16 sps:$4 sm:$0xff]   ;;  %v2998_v39 = vld [vmem:[%s3299_s30 + $0x20] ss:$16 sps:$4 sm:$0xff]  }
  0x12   : > { %v2991_v36 = vld [vmem:[%s3299_s30 + $0x8] ss:$16 sps:$4 sm:$0xff]   ;;  %v2996_v38 = vld [vmem:[%s3299_s30 + $0x2c] ss:$16 sps:$4 sm:$0xff]   ;;  %v3000_v41 = vld [vmem:[%s3299_s30 + $0x44] ss:$16 sps:$4 sm:$0xff]  }
  0x13   : > { %1236 = vmatpush1.bf16.msra.mxu1 %v2962_v7  ;;  %1525 = vmatpush1.bf16.msra.mxu0 %v2963_v8  ;;  %v2999_v40 = vld [vmem:[%s3299_s30 + $0x28] ss:$16 sps:$4 sm:$0xff]   ;;  %v3002_v42 = vld [vmem:[%s3299_s30 + $0x4c] ss:$16 sps:$4 sm:$0xff]   ;;  %v3004_v43 = vld [vmem:[%s3299_s30 + $0x40] ss:$16 sps:$4 sm:$0xff]  }
  0x14   : > { %1237 = vmatprep.subr.bf16.mxu1 %v3190_v1  ;;  %1526 = vmatprep.subr.bf16.mxu0 %v3190_v1  ;;  %v3005_v44 = vld [vmem:[%s3299_s30 + $0x48] ss:$16 sps:$4 sm:$0xff]   ;;  %v3006_v45 = vld [vmem:[%s3299_s30 + $0x64] ss:$16 sps:$4 sm:$0xff]   ;;  %v3008_v46 = vld [vmem:[%s3299_s30 + $0x6c] ss:$16 sps:$4 sm:$0xff]  }
  0x15   : > { %v3010_v47 = vld [vmem:[%s3299_s30 + $0x60] ss:$16 sps:$4 sm:$0xff]   ;;  %v3011_v48 = vld [vmem:[%s3299_s30 + $0x68] ss:$16 sps:$4 sm:$0xff]   ;;  %v3012_v49 = vld [vmem:[%s3299_s30 + $0x84] ss:$16 sps:$4 sm:$0xff]  }
  0x16   : > { %v3014_v50 = vld [vmem:[%s3299_s30 + $0x8c] ss:$16 sps:$4 sm:$0xff]   ;;  %v3016_v51 = vld [vmem:[%s3299_s30 + $0x80] ss:$16 sps:$4 sm:$0xff]   ;;  %v3017_v52 = vld [vmem:[%s3299_s30 + $0x88] ss:$16 sps:$4 sm:$0xff]  }
  0x17   : > { %1238 = vmatpush1.bf16.msra.mxu1 %v2964_v9  ;;  %1527 = vmatpush1.bf16.msra.mxu0 %v2965_v10  ;;  %v3018_v53 = vld [vmem:[%s3299_s30 + $0xa4] ss:$16 sps:$4 sm:$0xff]   ;;  %v3020_v54 = vld [vmem:[%s3299_s30 + $0xac] ss:$16 sps:$4 sm:$0xff]   ;;  %v3022_v55 = vld [vmem:[%s3299_s30 + $0xa0] ss:$16 sps:$4 sm:$0xff]  }
  0x18   : > { %1239 = vmatprep.subr.bf16.mxu1 %v3190_v1  ;;  %1528 = vmatprep.subr.bf16.mxu0 %v3190_v1  ;;  %v3023_v56 = vld [vmem:[%s3299_s30 + $0xa8] ss:$16 sps:$4 sm:$0xff]   ;;  %v3024_v57 = vld [vmem:[%s3299_s30 + $0xc4] ss:$16 sps:$4 sm:$0xff]   ;;  %v3026_v58 = vld [vmem:[%s3299_s30 + $0xcc] ss:$16 sps:$4 sm:$0xff]  }
  0x19   : > { %v3028_v59 = vld [vmem:[%s3299_s30 + $0xc0] ss:$16 sps:$4 sm:$0xff]   ;;  %v3029_v60 = vld [vmem:[%s3299_s30 + $0xc8] ss:$16 sps:$4 sm:$0xff]   ;;  %v3030_v61 = vld [vmem:[%s3299_s30 + $0xe4] ss:$16 sps:$4 sm:$0xff]  }
  0x1a   : > { %v3032_v62 = vld [vmem:[%s3299_s30 + $0xec] ss:$16 sps:$4 sm:$0xff]   ;;  %v3034_v63 = vld [vmem:[%s3299_s30 + $0xe0] ss:$16 sps:$4 sm:$0xff]   ;;  %v3035_v0 = vld [vmem:[%s3299_s30 + $0xe8] ss:$16 sps:$4 sm:$0xff]  }
  0x1b   : > { %1240 = vmatpush1.bf16.msra.mxu1 %v2966_v11  ;;  %1529 = vmatpush1.bf16.msra.mxu0 %v2967_v12  ;;  %v3038_v2 = vld [vmem:[%s3299_s30 + $0x10c] ss:$16 sps:$4 sm:$0xff]   ;;  %v3040_v3 = vld [vmem:[%s3299_s30 + $0x100] ss:$16 sps:$4 sm:$0xff]   ;;  %v3041_v4 = vld [vmem:[%s3299_s30 + $0x108] ss:$16 sps:$4 sm:$0xff]  }
  0x1c   : > { %1241 = vmatprep.subr.bf16.mxu1 %v3190_v1  ;;  %1530 = vmatprep.subr.bf16.mxu0 %v3190_v1  ;;  %v3042_v5 = vld [vmem:[%s3299_s30 + $0x124] ss:$16 sps:$4 sm:$0xff]   ;;  %v3044_v6 = vld [vmem:[%s3299_s30 + $0x12c] ss:$16 sps:$4 sm:$0xff]   ;;  %v3046_v7 = vld [vmem:[%s3299_s30 + $0x120] ss:$16 sps:$4 sm:$0xff]  }
  0x1d   : > { %v3047_v8 = vld [vmem:[%s3299_s30 + $0x128] ss:$16 sps:$4 sm:$0xff]   ;;  %v3048_v9 = vld [vmem:[%s3299_s30 + $0x144] ss:$16 sps:$4 sm:$0xff]   ;;  %v3050_v10 = vld [vmem:[%s3299_s30 + $0x14c] ss:$16 sps:$4 sm:$0xff]  }
  0x1e   : > { %v3052_v11 = vld [vmem:[%s3299_s30 + $0x140] ss:$16 sps:$4 sm:$0xff]   ;;  %v3053_v12 = vld [vmem:[%s3299_s30 + $0x148] ss:$16 sps:$4 sm:$0xff]   ;;  %v3066_v21 = vld [vmem:[%s3299_s30 + $0x1a4] ss:$16 sps:$4 sm:$0xff]  }
  0x1f   : > { %1242 = vmatpush1.bf16.msra.mxu1 %v2968_v13  ;;  %1531 = vmatpush1.bf16.msra.mxu0 %v2969_v14  ;;  %v3054_v13 = vld [vmem:[%s3299_s30 + $0x164] ss:$16 sps:$4 sm:$0xff]   ;;  %v3056_v14 = vld [vmem:[%s3299_s30 + $0x16c] ss:$16 sps:$4 sm:$0xff]   ;;  %v3064_v19 = vld [vmem:[%s3299_s30 + $0x180] ss:$16 sps:$4 sm:$0xff]  }
  0x20   : > { %1243 = vmatprep.subr.bf16.mxu1 %v3190_v1  ;;  %1532 = vmatprep.subr.bf16.mxu0 %v3190_v1 }
  0x23   : > { %1244 = vmatpush1.bf16.msra.mxu1 %v2970_v15  ;;  %1533 = vmatpush1.bf16.msra.mxu0 %v2971_v16  ;;  %v3058_v15 = vld [vmem:[%s3299_s30 + $0x160] ss:$16 sps:$4 sm:$0xff]   ;;  %v3059_v16 = vld [vmem:[%s3299_s30 + $0x168] ss:$16 sps:$4 sm:$0xff]  }
  0x24   : > { %1245 = vmatprep.subr.bf16.mxu1 %v3190_v1  ;;  %1534 = vmatprep.subr.bf16.mxu0 %v3190_v1 }
  0x27   : > { %1246 = vmatpush1.bf16.msra.mxu1 %v2972_v17  ;;  %1535 = vmatpush1.bf16.msra.mxu0 %v2973_v18  ;;  %v3060_v17 = vld [vmem:[%s3299_s30 + $0x184] ss:$16 sps:$4 sm:$0xff]   ;;  %v3062_v18 = vld [vmem:[%s3299_s30 + $0x18c] ss:$16 sps:$4 sm:$0xff]  }
  0x28   : > { %1247 = vmatprep.subr.bf16.mxu1 %v3190_v1  ;;  %1536 = vmatprep.subr.bf16.mxu0 %v3190_v1 }
  0x2b   : > { %1248 = vmatpush1.bf16.msra.mxu1 %v2974_v20  ;;  %1537 = vmatpush1.bf16.msra.mxu0 %v2975_v22  ;;  %v3065_v20 = vld [vmem:[%s3299_s30 + $0x188] ss:$16 sps:$4 sm:$0xff]   ;;  %v3068_v22 = vld [vmem:[%s3299_s30 + $0x1ac] ss:$16 sps:$4 sm:$0xff]  }
  0x2c   : > { %1249 = vmatprep.subr.bf16.mxu1 %v3190_v1  ;;  %1538 = vmatprep.subr.bf16.mxu0 %v3190_v1 }
  0x2f   : > { %1250 = vmatpush1.bf16.msra.mxu1 %v2976_v23  ;;  %1539 = vmatpush1.bf16.msra.mxu0 %v2977_v24  ;;  %v3070_v23 = vld [vmem:[%s3299_s30 + $0x1a0] ss:$16 sps:$4 sm:$0xff]   ;;  %v3071_v24 = vld [vmem:[%s3299_s30 + $0x1a8] ss:$16 sps:$4 sm:$0xff]  }
  0x30   : > { %1251 = vmatprep.subr.bf16.mxu1 %v3190_v1  ;;  %1540 = vmatprep.subr.bf16.mxu0 %v3190_v1 }
  0x33   : > { %1252 = vmatpush1.bf16.msra.mxu1 %v2978_v25  ;;  %1541 = vmatpush1.bf16.msra.mxu0 %v2979_v26  ;;  %v3072_v25 = vld [vmem:[%s3299_s30 + $0x1c4] ss:$16 sps:$4 sm:$0xff]   ;;  %v3074_v26 = vld [vmem:[%s3299_s30 + $0x1cc] ss:$16 sps:$4 sm:$0xff]  }
  0x34   : > { %1253 = vmatprep.subr.bf16.mxu1 %v3190_v1  ;;  %1542 = vmatprep.subr.bf16.mxu0 %v3190_v1 }
  0x37   : > { %1254 = vmatpush1.bf16.msra.mxu1 %v2980_v27  ;;  %1543 = vmatpush1.bf16.msra.mxu0 %v2981_v28  ;;  %v3076_v27 = vld [vmem:[%s3299_s30 + $0x1c0] ss:$16 sps:$4 sm:$0xff]   ;;  %v3077_v28 = vld [vmem:[%s3299_s30 + $0x1c8] ss:$16 sps:$4 sm:$0xff]  }
  0x38   : > { %1255 = vmatprep.subr.bf16.mxu1 %v3190_v1  ;;  %1544 = vmatprep.subr.bf16.mxu0 %v3190_v1 }
  0x3b   : > { %1256 = vmatpush1.bf16.msra.mxu1 %v2982_v29  ;;  %1545 = vmatpush1.bf16.msra.mxu0 %v2983_v30  ;;  %v3078_v29 = vld [vmem:[%s3299_s30 + $0x1e4] ss:$16 sps:$4 sm:$0xff]   ;;  %v3080_v30 = vld [vmem:[%s3299_s30 + $0x1ec] ss:$16 sps:$4 sm:$0xff]  }
  0x3c   : > { %1257 = vmatprep.subr.bf16.mxu1 %v3190_v1  ;;  %1546 = vmatprep.subr.bf16.mxu0 %v3190_v1 }
  0x3f   : > { %1258 = vmatpush1.bf16.msra.mxu1 %v2984_v31  ;;  %1547 = vmatpush1.bf16.msra.mxu0 %v2985_v32  ;;  %v3082_v31 = vld [vmem:[%s3299_s30 + $0x1e0] ss:$16 sps:$4 sm:$0xff]   ;;  %v3083_v32 = vld [vmem:[%s3299_s30 + $0x1e8] ss:$16 sps:$4 sm:$0xff]  }
  0x40   : > { %1259 = vmatprep.subr.bf16.mxu1 %v3190_v1  ;;  %1548 = vmatprep.subr.bf16.mxu0 %v3190_v1  ;;  %v3036_v1 = vld [vmem:[%s3299_s30 + $0x104] ss:$16 sps:$4 sm:$0xff]  }
  0x43   : > { %1260 = vmatpush1.bf16.msra.mxu1 %v2986_v33  ;;  %1549 = vmatpush1.bf16.msra.mxu0 %v2987_v34  ;;  %v3084_v33 = vld [vmem:[%s3299_s30 + $0x204] ss:$16 sps:$4 sm:$0xff]   ;;  %v3086_v34 = vld [vmem:[%s3299_s30 + $0x20c] ss:$16 sps:$4 sm:$0xff]  }
  0x46   : > { %1262 = vmatmul.mubr.bf16.vlgmr.msra.gmra.mrb[0].mxu1 %v2988_v35  ;;  %1551 = vmatmul.mubr.bf16.vlgmr.msra.gmra.mrb[0].mxu0 %v2991_v36  ;;  %v3088_v35 = vld [vmem:[%s3299_s30 + $0x200] ss:$16 sps:$4 sm:$0xff]   ;;  %v3089_v36 = vld [vmem:[%s3299_s30 + $0x208] ss:$16 sps:$4 sm:$0xff]  }
  0x47   : > { %1269 = vmatprep.mubr.bf16.mxu1 %v2994_v37  ;;  %1558 = vmatprep.mubr.bf16.mxu0 %v2996_v38  ;;  %v3090_v37 = vld [vmem:[%s3299_s30 + $0x224] ss:$16 sps:$4 sm:$0xff]   ;;  %v3092_v38 = vld [vmem:[%s3299_s30 + $0x22c] ss:$16 sps:$4 sm:$0xff]  }
  0x4e   : > { %1270 = vmatmul.mubr.bf16.gmra.mrb[4].mxu1 %v2998_v39  ;;  %1559 = vmatmul.mubr.bf16.gmra.mrb[4].mxu0 %v2999_v40  ;;  %v3094_v39 = vld [vmem:[%s3299_s30 + $0x220] ss:$16 sps:$4 sm:$0xff]   ;;  %v3095_v40 = vld [vmem:[%s3299_s30 + $0x228] ss:$16 sps:$4 sm:$0xff]  }
  0x4f   : > { %1277 = vmatprep.mubr.bf16.mxu1 %v3000_v41  ;;  %1566 = vmatprep.mubr.bf16.mxu0 %v3002_v42  ;;  %v3096_v41 = vld [vmem:[%s3299_s30 + $0x244] ss:$16 sps:$4 sm:$0xff]   ;;  %v3098_v42 = vld [vmem:[%s3299_s30 + $0x24c] ss:$16 sps:$4 sm:$0xff]  }
  0x56   : > { %1278 = vmatmul.mubr.bf16.gmra.mrb[8].mxu1 %v3004_v43  ;;  %1567 = vmatmul.mubr.bf16.gmra.mrb[8].mxu0 %v3005_v44  ;;  %v3100_v43 = vld [vmem:[%s3299_s30 + $0x240] ss:$16 sps:$4 sm:$0xff]   ;;  %v3101_v44 = vld [vmem:[%s3299_s30 + $0x248] ss:$16 sps:$4 sm:$0xff]  }
  0x57   : > { %1285 = vmatprep.mubr.bf16.mxu1 %v3006_v45  ;;  %1574 = vmatprep.mubr.bf16.mxu0 %v3008_v46  ;;  %v3102_v45 = vld [vmem:[%s3299_s30 + $0x264] ss:$16 sps:$4 sm:$0xff]   ;;  %v3104_v46 = vld [vmem:[%s3299_s30 + $0x26c] ss:$16 sps:$4 sm:$0xff]  }
  0x5e   : > { %1286 = vmatmul.mubr.bf16.gmra.mrb[12].mxu1 %v3010_v47  ;;  %1575 = vmatmul.mubr.bf16.gmra.mrb[12].mxu0 %v3011_v48  ;;  %v3106_v47 = vld [vmem:[%s3299_s30 + $0x260] ss:$16 sps:$4 sm:$0xff]   ;;  %v3107_v48 = vld [vmem:[%s3299_s30 + $0x268] ss:$16 sps:$4 sm:$0xff]  }
  0x5f   : > { %1293 = vmatprep.mubr.bf16.mxu1 %v3012_v49  ;;  %1582 = vmatprep.mubr.bf16.mxu0 %v3014_v50  ;;  %v3108_v49 = vld [vmem:[%s3299_s30 + $0x284] ss:$16 sps:$4 sm:$0xff]   ;;  %v3110_v50 = vld [vmem:[%s3299_s30 + $0x28c] ss:$16 sps:$4 sm:$0xff]  }
  0x66   : > { %1294 = vmatmul.mubr.bf16.gmra.mrb[16].mxu1 %v3016_v51  ;;  %1583 = vmatmul.mubr.bf16.gmra.mrb[16].mxu0 %v3017_v52  ;;  %v3112_v51 = vld [vmem:[%s3299_s30 + $0x280] ss:$16 sps:$4 sm:$0xff]   ;;  %v3113_v52 = vld [vmem:[%s3299_s30 + $0x288] ss:$16 sps:$4 sm:$0xff]  }
  0x67   : > { %1301 = vmatprep.mubr.bf16.mxu1 %v3018_v53  ;;  %1590 = vmatprep.mubr.bf16.mxu0 %v3020_v54  ;;  %v3114_v53 = vld [vmem:[%s3299_s30 + $0x2a4] ss:$16 sps:$4 sm:$0xff]   ;;  %v3116_v54 = vld [vmem:[%s3299_s30 + $0x2ac] ss:$16 sps:$4 sm:$0xff]  }
  0x6e   : > { %1302 = vmatmul.mubr.bf16.gmra.mrb[20].mxu1 %v3022_v55  ;;  %1591 = vmatmul.mubr.bf16.gmra.mrb[20].mxu0 %v3023_v56  ;;  %v3118_v55 = vld [vmem:[%s3299_s30 + $0x2a0] ss:$16 sps:$4 sm:$0xff]   ;;  %v3119_v56 = vld [vmem:[%s3299_s30 + $0x2a8] ss:$16 sps:$4 sm:$0xff]  }
  0x6f   : > { %1309 = vmatprep.mubr.bf16.mxu1 %v3024_v57  ;;  %1598 = vmatprep.mubr.bf16.mxu0 %v3026_v58  ;;  %v3120_v57 = vld [vmem:[%s3299_s30 + $0x2c4] ss:$16 sps:$4 sm:$0xff]   ;;  %v3122_v58 = vld [vmem:[%s3299_s30 + $0x2cc] ss:$16 sps:$4 sm:$0xff]  }
  0x76   : > { %1310 = vmatmul.mubr.bf16.gmra.mrb[24].mxu1 %v3028_v59  ;;  %1599 = vmatmul.mubr.bf16.gmra.mrb[24].mxu0 %v3029_v60  ;;  %v3124_v59 = vld [vmem:[%s3299_s30 + $0x2c0] ss:$16 sps:$4 sm:$0xff]   ;;  %v3125_v60 = vld [vmem:[%s3299_s30 + $0x2c8] ss:$16 sps:$4 sm:$0xff]  }
  0x77   : > { %1317 = vmatprep.mubr.bf16.mxu1 %v3030_v61  ;;  %1606 = vmatprep.mubr.bf16.mxu0 %v3032_v62  ;;  %v3126_v61 = vld [vmem:[%s3299_s30 + $0x2e4] ss:$16 sps:$4 sm:$0xff]   ;;  %v3128_v62 = vld [vmem:[%s3299_s30 + $0x2ec] ss:$16 sps:$4 sm:$0xff]  }
  0x7e   : > { %1318 = vmatmul.mubr.bf16.gmra.mrb[28].mxu1 %v3034_v63  ;;  %1607 = vmatmul.mubr.bf16.gmra.mrb[28].mxu0 %v3035_v0  ;;  %v3130_v63 = vld [vmem:[%s3299_s30 + $0x2e0] ss:$16 sps:$4 sm:$0xff]   ;;  %v3131_v0 = vld [vmem:[%s3299_s30 + $0x2e8] ss:$16 sps:$4 sm:$0xff]  }
  0x7f   : > { %1325 = vmatprep.mubr.bf16.mxu1 %v3036_v1  ;;  %1614 = vmatprep.mubr.bf16.mxu0 %v3038_v2  ;;  %v3132_v1 = vld [vmem:[%s3299_s30 + $0x304] ss:$16 sps:$4 sm:$0xff]   ;;  %v3134_v2 = vld [vmem:[%s3299_s30 + $0x30c] ss:$16 sps:$4 sm:$0xff]  }
  0x86   : > { %1326 = vmatmul.mubr.bf16.gmra.mrb[32].mxu1 %v3040_v3  ;;  %1615 = vmatmul.mubr.bf16.gmra.mrb[32].mxu0 %v3041_v4  ;;  %v3136_v3 = vld [vmem:[%s3299_s30 + $0x300] ss:$16 sps:$4 sm:$0xff]   ;;  %v3137_v4 = vld [vmem:[%s3299_s30 + $0x308] ss:$16 sps:$4 sm:$0xff]  }
  0x87   : > { %1333 = vmatprep.mubr.bf16.mxu1 %v3042_v5  ;;  %1622 = vmatprep.mubr.bf16.mxu0 %v3044_v6  ;;  %v3138_v5 = vld [vmem:[%s3299_s30 + $0x324] ss:$16 sps:$4 sm:$0xff]   ;;  %v3140_v6 = vld [vmem:[%s3299_s30 + $0x32c] ss:$16 sps:$4 sm:$0xff]  }
  0x8e   : > { %1334 = vmatmul.mubr.bf16.gmra.mrb[36].mxu1 %v3046_v7  ;;  %1623 = vmatmul.mubr.bf16.gmra.mrb[36].mxu0 %v3047_v8  ;;  %v3142_v7 = vld [vmem:[%s3299_s30 + $0x320] ss:$16 sps:$4 sm:$0xff]   ;;  %v3143_v8 = vld [vmem:[%s3299_s30 + $0x328] ss:$16 sps:$4 sm:$0xff]  }
  0x8f   : > { %1341 = vmatprep.mubr.bf16.mxu1 %v3048_v9  ;;  %1630 = vmatprep.mubr.bf16.mxu0 %v3050_v10  ;;  %v3144_v9 = vld [vmem:[%s3299_s30 + $0x344] ss:$16 sps:$4 sm:$0xff]   ;;  %v3146_v10 = vld [vmem:[%s3299_s30 + $0x34c] ss:$16 sps:$4 sm:$0xff]  }
  0x96   : > { %1342 = vmatmul.mubr.bf16.gmra.mrb[40].mxu1 %v3052_v11  ;;  %1631 = vmatmul.mubr.bf16.gmra.mrb[40].mxu0 %v3053_v12  ;;  %v3148_v11 = vld [vmem:[%s3299_s30 + $0x340] ss:$16 sps:$4 sm:$0xff]   ;;  %v3149_v12 = vld [vmem:[%s3299_s30 + $0x348] ss:$16 sps:$4 sm:$0xff]  }
  0x97   : > { %1349 = vmatprep.mubr.bf16.mxu1 %v3054_v13  ;;  %1638 = vmatprep.mubr.bf16.mxu0 %v3056_v14  ;;  %v3150_v13 = vld [vmem:[%s3299_s30 + $0x364] ss:$16 sps:$4 sm:$0xff]   ;;  %v3152_v14 = vld [vmem:[%s3299_s30 + $0x36c] ss:$16 sps:$4 sm:$0xff]  }
  0x9e   : > { %1350 = vmatmul.mubr.bf16.gmra.mrb[44].mxu1 %v3058_v15  ;;  %1639 = vmatmul.mubr.bf16.gmra.mrb[44].mxu0 %v3059_v16 }
  0x9f   : > { %1357 = vmatprep.mubr.bf16.mxu1 %v3060_v17  ;;  %1646 = vmatprep.mubr.bf16.mxu0 %v3062_v18  ;;  %v3475_v17 = vld [vmem:[%s3681_s2] ss:$0 sm:$0xff] }
  0xa6   : > { %1358 = vmatmul.mubr.bf16.gmra.mrb[48].mxu1 %v3064_v19  ;;  %1647 = vmatmul.mubr.bf16.gmra.mrb[48].mxu0 %v3065_v20  ;;  %v3154_v19 = vld [vmem:[%s3299_s30 + $0x360] ss:$16 sps:$4 sm:$0xff]  }
  0xa7   : > { %1365 = vmatprep.mubr.bf16.mxu1 %v3066_v21  ;;  %1654 = vmatprep.mubr.bf16.mxu0 %v3068_v22 }
  0xae   : > { %1366 = vmatmul.mubr.bf16.gmra.mrb[52].mxu1 %v3070_v23  ;;  %1655 = vmatmul.mubr.bf16.gmra.mrb[52].mxu0 %v3071_v24  ;;  %v3155_v23 = vld [vmem:[%s3299_s30 + $0x368] ss:$16 sps:$4 sm:$0xff]   ;;  %v3156_v24 = vld [vmem:[%s3299_s30 + $0x384] ss:$16 sps:$4 sm:$0xff]  }
  0xaf   : > { %1373 = vmatprep.mubr.bf16.mxu1 %v3072_v25  ;;  %1662 = vmatprep.mubr.bf16.mxu0 %v3074_v26  ;;  %v3483_v25 = vld [vmem:[%s3682_s3] ss:$0 sm:$0xff] }
  0xb6   : > { %1374 = vmatmul.mubr.bf16.gmra.mrb[56].mxu1 %v3076_v27  ;;  %1663 = vmatmul.mubr.bf16.gmra.mrb[56].mxu0 %v3077_v28  ;;  %v3158_v28 = vld [vmem:[%s3299_s30 + $0x38c] ss:$16 sps:$4 sm:$0xff]  }
  0xb7   : > { %1381 = vmatprep.mubr.bf16.mxu1 %v3078_v29  ;;  %1670 = vmatprep.mubr.bf16.mxu0 %v3080_v30 }
  0xbe   : > { %1382 = vmatmul.mubr.bf16.gmra.mrb[60].mxu1 %v3082_v31  ;;  %1671 = vmatmul.mubr.bf16.gmra.mrb[60].mxu0 %v3083_v32 }
  0xbf   : > { %1389 = vmatprep.mubr.bf16.mxu1 %v3084_v33  ;;  %1678 = vmatprep.mubr.bf16.mxu0 %v3086_v34 }
  0xc6   : > { %1390 = vmatmul.mubr.bf16.gmra.mrb[64].mxu1 %v3088_v35  ;;  %1679 = vmatmul.mubr.bf16.gmra.mrb[64].mxu0 %v3089_v36 }
  0xc7   : > { %1397 = vmatprep.mubr.bf16.mxu1 %v3090_v37  ;;  %1686 = vmatprep.mubr.bf16.mxu0 %v3092_v38  ;;  %v3160_v38 = vld [vmem:[%s3299_s30 + $0x380] ss:$16 sps:$4 sm:$0xff]  }
  0xce   : > { %1398 = vmatmul.mubr.bf16.gmra.mrb[68].mxu1 %v3094_v39  ;;  %1687 = vmatmul.mubr.bf16.gmra.mrb[68].mxu0 %v3095_v40  ;;  %v3161_v39 = vld [vmem:[%s3299_s30 + $0x388] ss:$16 sps:$4 sm:$0xff]  }
  0xcf   : > { %1405 = vmatprep.mubr.bf16.mxu1 %v3096_v41  ;;  %1694 = vmatprep.mubr.bf16.mxu0 %v3098_v42 }
  0xd6   : > { %1406 = vmatmul.mubr.bf16.gmra.mrb[72].mxu1 %v3100_v43  ;;  %1695 = vmatmul.mubr.bf16.gmra.mrb[72].mxu0 %v3101_v44 }
  0xd7   : > { %1413 = vmatprep.mubr.bf16.mxu1 %v3102_v45  ;;  %1702 = vmatprep.mubr.bf16.mxu0 %v3104_v46  ;;  %v3162_v45 = vld [vmem:[%s3299_s30 + $0x3a4] ss:$16 sps:$4 sm:$0xff]  }
  0xde   : > { %1414 = vmatmul.mubr.bf16.gmra.mrb[76].mxu1 %v3106_v47  ;;  %1703 = vmatmul.mubr.bf16.gmra.mrb[76].mxu0 %v3107_v48  ;;  %v3164_v48 = vld [vmem:[%s3299_s30 + $0x3ac] ss:$16 sps:$4 sm:$0xff]  }
  0xdf   : > { %1421 = vmatprep.mubr.bf16.mxu1 %v3108_v49  ;;  %1710 = vmatprep.mubr.bf16.mxu0 %v3110_v50 }
  0xe6   : > { %1422 = vmatmul.mubr.bf16.gmra.mrb[80].mxu1 %v3112_v51  ;;  %1711 = vmatmul.mubr.bf16.gmra.mrb[80].mxu0 %v3113_v52 }
  0xe7   : > { %1429 = vmatprep.mubr.bf16.mxu1 %v3114_v53  ;;  %1718 = vmatprep.mubr.bf16.mxu0 %v3116_v54 }
  0xee   : > { %1430 = vmatmul.mubr.bf16.gmra.mrb[84].mxu1 %v3118_v55  ;;  %1719 = vmatmul.mubr.bf16.gmra.mrb[84].mxu0 %v3119_v56 }
  0xef   : > { %1437 = vmatprep.mubr.bf16.mxu1 %v3120_v57  ;;  %1726 = vmatprep.mubr.bf16.mxu0 %v3122_v58 }
  0xf6   : > { %1438 = vmatmul.mubr.bf16.gmra.mrb[88].mxu1 %v3124_v59  ;;  %1727 = vmatmul.mubr.bf16.gmra.mrb[88].mxu0 %v3125_v60  ;;  %v3166_v59 = vld [vmem:[%s3299_s30 + $0x3a0] ss:$16 sps:$4 sm:$0xff]   ;;  %v3167_v60 = vld [vmem:[%s3299_s30 + $0x3a8] ss:$16 sps:$4 sm:$0xff]  }
  0xf7   : > { %1445 = vmatprep.mubr.bf16.mxu1 %v3126_v61  ;;  %1734 = vmatprep.mubr.bf16.mxu0 %v3128_v62 }
  0xfe   : > { %1446 = vmatmul.mubr.bf16.gmra.mrb[92].mxu1 %v3130_v63  ;;  %1735 = vmatmul.mubr.bf16.gmra.mrb[92].mxu0 %v3131_v0 }
  0xff   : > { %1453 = vmatprep.mubr.bf16.mxu1 %v3132_v1  ;;  %1742 = vmatprep.mubr.bf16.mxu0 %v3134_v2  ;;  %v3168_v2 = vld [vmem:[%s3299_s30 + $0x3c4] ss:$16 sps:$4 sm:$0xff]  }
 0x106   : > { %1454 = vmatmul.mubr.bf16.gmra.mrb[96].mxu1 %v3136_v3  ;;  %1743 = vmatmul.mubr.bf16.gmra.mrb[96].mxu0 %v3137_v4 }
 0x107   : > { %1461 = vmatprep.mubr.bf16.mxu1 %v3138_v5  ;;  %1750 = vmatprep.mubr.bf16.mxu0 %v3140_v6  ;;  %v3170_v5 = vld [vmem:[%s3299_s30 + $0x3cc] ss:$16 sps:$4 sm:$0xff]  }
 0x10e   : > { %1462 = vmatmul.mubr.bf16.gmra.mrb[100].mxu1 %v3142_v7  ;;  %1751 = vmatmul.mubr.bf16.gmra.mrb[100].mxu0 %v3143_v8 }
 0x10f   : > { %1469 = vmatprep.mubr.bf16.mxu1 %v3144_v9  ;;  %1758 = vmatprep.mubr.bf16.mxu0 %v3146_v10 }
 0x116   : > { %1470 = vmatmul.mubr.bf16.gmra.mrb[104].mxu1 %v3148_v11  ;;  %1759 = vmatmul.mubr.bf16.gmra.mrb[104].mxu0 %v3149_v12 }
 0x117   : > { %1477 = vmatprep.mubr.bf16.mxu1 %v3150_v13  ;;  %1766 = vmatprep.mubr.bf16.mxu0 %v3152_v14 }
 0x119   : > { %v1263_v15 = vpop.f32.mrb[0].mxu1  ;;  %v1552_v16 = vpop.f32.mrb[0].mxu0 }
 0x11a   : > { %v1265_v18 = vpop.f32.mrb[1].mxu1  ;;  %v1553_v20 = vadd.f32 %v1552_v16, %v1263_v15  ;;  %v1554_v21 = vpop.f32.mrb[1].mxu0  ;;  %v3172_v16 = vld [vmem:[%s3299_s30 + $0x3c0] ss:$16 sps:$4 sm:$0xff]  }
 0x11b   : > { %v1266_v22 = vpop.f32.mrb[2].mxu1  ;;  %v1555_v26 = vpop.f32.mrb[2].mxu0  ;;  %v3173_v18 = vld [vmem:[%s3299_s30 + $0x3c8] ss:$16 sps:$4 sm:$0xff]  }
 0x11c   : > { %v1268_v27 = vpop.f32.mrb[3].mxu1  ;;  %v1814_v29 = vmul.f32 %v3475_v17, %v1553_v20  ;;  %v1556_v30 = vadd.f32 %v1555_v26, %v1266_v22  ;;  %v1557_v31 = vpop.f32.mrb[3].mxu0 }
 0x11e   : > { %1478 = vmatmul.mubr.bf16.gmra.mrb[108].mxu1 %v3154_v19  ;;  %v1885_v32 = vadd.f32 %v3483_v25, %v1814_v29  ;;  %v1815_v33 = vmul.f32 %v3475_v17, %v1556_v30  ;;  %1767 = vmatmul.mubr.bf16.gmra.mrb[108].mxu0 %v3155_v23 }
 0x11f   : > { %1485 = vmatprep.mubr.bf16.mxu1 %v3156_v24  ;;  %1774 = vmatprep.mubr.bf16.mxu0 %v3158_v28  ;;  %v3174_v24 = vld [vmem:[%s3299_s30 + $0x3e4] ss:$16 sps:$4 sm:$0xff]   ;;  %v3176_v28 = vld [vmem:[%s3299_s30 + $0x3ec] ss:$16 sps:$4 sm:$0xff]  }
 0x120   : > { %v1886_v34 = vadd.f32 %v3483_v25, %v1815_v33  ;;  %v1949_v40 = vmax.f32 %v1885_v32, 0.0 }
 0x121   : > { %v1271_v35 = vpop.f32.mrb[4].mxu1  ;;  %v1560_v36 = vpop.f32.mrb[4].mxu0 }
 0x122   : > { %v1273_v37 = vpop.f32.mrb[5].mxu1  ;;  %v1950_v41 = vmax.f32 %v1886_v34, 0.0  ;;  %v1561_v42 = vadd.f32 %v1560_v36, %v1271_v35  ;;  %v1562_v43 = vpop.f32.mrb[5].mxu0 }
 0x123   : > { %v1274_v44 = vpop.f32.mrb[6].mxu1  ;;  %v1563_v46 = vpop.f32.mrb[6].mxu0 }
 0x124   : > { %v1276_v47 = vpop.f32.mrb[7].mxu1  ;;  %v2695_v49 = vpack.c.bf16 %v1950_v41, %v1949_v40  ;;  %v1816_v50 = vmul.f32 %v3475_v17, %v1561_v42  ;;  %v1564_v51 = vadd.f32 %v1563_v46, %v1274_v44  ;;  %v1565_v52 = vpop.f32.mrb[7].mxu0 }
 0x126   : > { %1486 = vmatmul.mubr.bf16.gmra.mrb[112].mxu1 %v3160_v38  ;;  %2696 = vst [vmem:[%s3497_s21] sm:$0xff] %v2695_v49   ;;  %v1887_v53 = vadd.f32 %v3483_v25, %v1816_v50  ;;  %v1817_v54 = vmul.f32 %v3475_v17, %v1564_v51  ;;  %1775 = vmatmul.mubr.bf16.gmra.mrb[112].mxu0 %v3161_v39  ;;  %v3178_v39 = vld [vmem:[%s3299_s30 + $0x3e0] ss:$16 sps:$4 sm:$0xff]  }
 0x127   : > { %1493 = vmatprep.mubr.bf16.mxu1 %v3162_v45  ;;  %1782 = vmatprep.mubr.bf16.mxu0 %v3164_v48  ;;  %v3179_v45 = vld [vmem:[%s3299_s30 + $0x3e8] ss:$16 sps:$4 sm:$0xff]  }
 0x128   : > { %v1888_v55 = vadd.f32 %v3483_v25, %v1817_v54  ;;  %v1951_v61 = vmax.f32 %v1887_v53, 0.0 }
 0x129   : > { %v1279_v56 = vpop.f32.mrb[8].mxu1  ;;  %v1568_v57 = vpop.f32.mrb[8].mxu0 }
 0x12a   : > { %v1281_v58 = vpop.f32.mrb[9].mxu1  ;;  %v1952_v62 = vmax.f32 %v1888_v55, 0.0  ;;  %v1569_v63 = vadd.f32 %v1568_v57, %v1279_v56  ;;  %v1570_v0 = vpop.f32.mrb[9].mxu0 }
 0x12b   : > { %v1282_v1 = vpop.f32.mrb[10].mxu1  ;;  %v1571_v3 = vpop.f32.mrb[10].mxu0 }
 0x12c   : > { %v1284_v4 = vpop.f32.mrb[11].mxu1  ;;  %v2700_v6 = vpack.c.bf16 %v1952_v62, %v1951_v61  ;;  %v1818_v7 = vmul.f32 %v3475_v17, %v1569_v63  ;;  %v1572_v8 = vadd.f32 %v1571_v3, %v1282_v1  ;;  %v1573_v9 = vpop.f32.mrb[11].mxu0 }
 0x12e   : > { %1494 = vmatmul.mubr.bf16.gmra.mrb[116].mxu1 %v3166_v59  ;;  %2852 = vst [vmem:[%s3497_s21 + $0x8] sm:$0xff] %v2700_v6   ;;  %v1889_v10 = vadd.f32 %v3483_v25, %v1818_v7  ;;  %v1819_v11 = vmul.f32 %v3475_v17, %v1572_v8  ;;  %1783 = vmatmul.mubr.bf16.gmra.mrb[116].mxu0 %v3167_v60 }
 0x12f   : > { %1501 = vmatprep.mubr.bf16.mxu1 %v3168_v2  ;;  %1790 = vmatprep.mubr.bf16.mxu0 %v3170_v5 }
 0x130   : > { %v1890_v12 = vadd.f32 %v3483_v25, %v1819_v11  ;;  %v1953_v19 = vmax.f32 %v1889_v10, 0.0 }
 0x131   : > { %v1287_v13 = vpop.f32.mrb[12].mxu1  ;;  %v1576_v14 = vpop.f32.mrb[12].mxu0 }
 0x132   : > { %v1289_v15 = vpop.f32.mrb[13].mxu1  ;;  %v1954_v20 = vmax.f32 %v1890_v12, 0.0  ;;  %v1577_v21 = vadd.f32 %v1576_v14, %v1287_v13  ;;  %v1578_v22 = vpop.f32.mrb[13].mxu0 }
 0x133   : > { %v1290_v23 = vpop.f32.mrb[14].mxu1  ;;  %v1579_v26 = vpop.f32.mrb[14].mxu0 }
 0x134   : > { %v1292_v27 = vpop.f32.mrb[15].mxu1  ;;  %v2705_v29 = vpack.c.bf16 %v1954_v20, %v1953_v19  ;;  %v1820_v30 = vmul.f32 %v3475_v17, %v1577_v21  ;;  %v1580_v31 = vadd.f32 %v1579_v26, %v1290_v23  ;;  %v1581_v32 = vpop.f32.mrb[15].mxu0 }
 0x136   : > { %1502 = vmatmul.mubr.bf16.gmra.mrb[120].mxu1 %v3172_v16  ;;  %2853 = vst [vmem:[%s3497_s21 + $0x10] sm:$0xff] %v2705_v29   ;;  %v1891_v33 = vadd.f32 %v3483_v25, %v1820_v30  ;;  %v1821_v34 = vmul.f32 %v3475_v17, %v1580_v31  ;;  %1791 = vmatmul.mubr.bf16.gmra.mrb[120].mxu0 %v3173_v18 }
 0x137   : > { %1509 = vmatprep.mubr.bf16.mxu1 %v3174_v24  ;;  %1798 = vmatprep.mubr.bf16.mxu0 %v3176_v28 }
 0x138   : > { %v1892_v35 = vadd.f32 %v3483_v25, %v1821_v34  ;;  %v1955_v40 = vmax.f32 %v1891_v33, 0.0 }
 0x139   : > { %v1295_v36 = vpop.f32.mrb[16].mxu1  ;;  %v1584_v37 = vpop.f32.mrb[16].mxu0 }
 0x13a   : > { %v1297_v38 = vpop.f32.mrb[17].mxu1  ;;  %v1956_v41 = vmax.f32 %v1892_v35, 0.0  ;;  %v1585_v42 = vadd.f32 %v1584_v37, %v1295_v36  ;;  %v1586_v43 = vpop.f32.mrb[17].mxu0 }
 0x13b   : > { %v1298_v44 = vpop.f32.mrb[18].mxu1  ;;  %v1587_v46 = vpop.f32.mrb[18].mxu0 }
 0x13c   : > { %v1300_v47 = vpop.f32.mrb[19].mxu1  ;;  %v2710_v48 = vpack.c.bf16 %v1956_v41, %v1955_v40  ;;  %v1822_v49 = vmul.f32 %v3475_v17, %v1585_v42  ;;  %v1588_v50 = vadd.f32 %v1587_v46, %v1298_v44  ;;  %v1589_v51 = vpop.f32.mrb[19].mxu0 }
 0x13e   : > { %1510 = vmatmul.mubr.bf16.gmra.mrb[124].mxu1 %v3178_v39  ;;  %2854 = vst [vmem:[%s3497_s21 + $0x18] sm:$0xff] %v2710_v48   ;;  %v1893_v52 = vadd.f32 %v3483_v25, %v1822_v49  ;;  %v1823_v53 = vmul.f32 %v3475_v17, %v1588_v50  ;;  %1799 = vmatmul.mubr.bf16.gmra.mrb[124].mxu0 %v3179_v45 }
 0x140   : > { %v1894_v54 = vadd.f32 %v3483_v25, %v1823_v53  ;;  %v1957_v58 = vmax.f32 %v1893_v52, 0.0 }
 0x141   : > { %v1303_v55 = vpop.f32.mrb[20].mxu1  ;;  %v1592_v56 = vpop.f32.mrb[20].mxu0 }
 0x142   : > { %v1305_v57 = vpop.f32.mrb[21].mxu1  ;;  %v1958_v59 = vmax.f32 %v1894_v54, 0.0  ;;  %v1593_v60 = vadd.f32 %v1592_v56, %v1303_v55  ;;  %v1594_v61 = vpop.f32.mrb[21].mxu0 }
 0x143   : > { %v1306_v62 = vpop.f32.mrb[22].mxu1  ;;  %v1595_v63 = vpop.f32.mrb[22].mxu0 }
 0x144   : > { %v1308_v0 = vpop.f32.mrb[23].mxu1  ;;  %v2715_v1 = vpack.c.bf16 %v1958_v59, %v1957_v58  ;;  %v1824_v2 = vmul.f32 %v3475_v17, %v1593_v60  ;;  %v1596_v3 = vadd.f32 %v1595_v63, %v1306_v62  ;;  %v1597_v4 = vpop.f32.mrb[23].mxu0 }
 0x146   : > { %2855 = vst [vmem:[%s3497_s21 + $0x20] sm:$0xff] %v2715_v1   ;;  %v1895_v5 = vadd.f32 %v3483_v25, %v1824_v2  ;;  %v1825_v6 = vmul.f32 %v3475_v17, %v1596_v3 }
 0x148   : > { %v1896_v7 = vadd.f32 %v3483_v25, %v1825_v6  ;;  %v1959_v11 = vmax.f32 %v1895_v5, 0.0 }
 0x149   : > { %v1311_v8 = vpop.f32.mrb[24].mxu1  ;;  %v1600_v9 = vpop.f32.mrb[24].mxu0 }
 0x14a   : > { %v1313_v10 = vpop.f32.mrb[25].mxu1  ;;  %v1960_v12 = vmax.f32 %v1896_v7, 0.0  ;;  %v1601_v13 = vadd.f32 %v1600_v9, %v1311_v8  ;;  %v1602_v14 = vpop.f32.mrb[25].mxu0 }
 0x14b   : > { %v1314_v15 = vpop.f32.mrb[26].mxu1  ;;  %v1603_v16 = vpop.f32.mrb[26].mxu0 }
 0x14c   : > { %v1316_v18 = vpop.f32.mrb[27].mxu1  ;;  %v2720_v19 = vpack.c.bf16 %v1960_v12, %v1959_v11  ;;  %v1826_v20 = vmul.f32 %v3475_v17, %v1601_v13  ;;  %v1604_v21 = vadd.f32 %v1603_v16, %v1314_v15  ;;  %v1605_v22 = vpop.f32.mrb[27].mxu0 }
 0x14e   : > { %2856 = vst [vmem:[%s3497_s21 + $0x28] sm:$0xff] %v2720_v19   ;;  %v1897_v23 = vadd.f32 %v3483_v25, %v1826_v20  ;;  %v1827_v24 = vmul.f32 %v3475_v17, %v1604_v21 }
 0x150   : > { %v1898_v26 = vadd.f32 %v3483_v25, %v1827_v24  ;;  %v1961_v30 = vmax.f32 %v1897_v23, 0.0 }
 0x151   : > { %v1319_v27 = vpop.f32.mrb[28].mxu1  ;;  %v1608_v28 = vpop.f32.mrb[28].mxu0 }
 0x152   : > { %v1321_v29 = vpop.f32.mrb[29].mxu1  ;;  %v1962_v31 = vmax.f32 %v1898_v26, 0.0  ;;  %v1609_v32 = vadd.f32 %v1608_v28, %v1319_v27  ;;  %v1610_v33 = vpop.f32.mrb[29].mxu0 }
 0x153   : > { %v1322_v34 = vpop.f32.mrb[30].mxu1  ;;  %v1611_v35 = vpop.f32.mrb[30].mxu0 }
 0x154   : > { %v1324_v36 = vpop.f32.mrb[31].mxu1  ;;  %v2725_v37 = vpack.c.bf16 %v1962_v31, %v1961_v30  ;;  %v1828_v38 = vmul.f32 %v3475_v17, %v1609_v32  ;;  %v1612_v39 = vadd.f32 %v1611_v35, %v1322_v34  ;;  %v1613_v40 = vpop.f32.mrb[31].mxu0 }
 0x156   : > { %2857 = vst [vmem:[%s3497_s21 + $0x30] sm:$0xff] %v2725_v37   ;;  %v1899_v41 = vadd.f32 %v3483_v25, %v1828_v38  ;;  %v1829_v42 = vmul.f32 %v3475_v17, %v1612_v39 }
 0x158   : > { %v1900_v43 = vadd.f32 %v3483_v25, %v1829_v42  ;;  %v1963_v47 = vmax.f32 %v1899_v41, 0.0 }
 0x159   : > { %v1327_v44 = vpop.f32.mrb[32].mxu1  ;;  %v1616_v45 = vpop.f32.mrb[32].mxu0 }
 0x15a   : > { %v1329_v46 = vpop.f32.mrb[33].mxu1  ;;  %v1964_v48 = vmax.f32 %v1900_v43, 0.0  ;;  %v1617_v49 = vadd.f32 %v1616_v45, %v1327_v44  ;;  %v1618_v50 = vpop.f32.mrb[33].mxu0 }
 0x15b   : > { %v1330_v51 = vpop.f32.mrb[34].mxu1  ;;  %v1619_v52 = vpop.f32.mrb[34].mxu0 }
 0x15c   : > { %v1332_v53 = vpop.f32.mrb[35].mxu1  ;;  %v2730_v54 = vpack.c.bf16 %v1964_v48, %v1963_v47  ;;  %v1830_v55 = vmul.f32 %v3475_v17, %v1617_v49  ;;  %v1620_v56 = vadd.f32 %v1619_v52, %v1330_v51  ;;  %v1621_v57 = vpop.f32.mrb[35].mxu0 }
 0x15e   : > { %2858 = vst [vmem:[%s3497_s21 + $0x38] sm:$0xff] %v2730_v54   ;;  %v1901_v58 = vadd.f32 %v3483_v25, %v1830_v55  ;;  %v1831_v59 = vmul.f32 %v3475_v17, %v1620_v56 }
 0x160   : > { %v1902_v60 = vadd.f32 %v3483_v25, %v1831_v59  ;;  %v1965_v0 = vmax.f32 %v1901_v58, 0.0 }
 0x161   : > { %v1335_v61 = vpop.f32.mrb[36].mxu1  ;;  %v1624_v62 = vpop.f32.mrb[36].mxu0 }
 0x162   : > { %v1337_v63 = vpop.f32.mrb[37].mxu1  ;;  %v1966_v1 = vmax.f32 %v1902_v60, 0.0  ;;  %v1625_v2 = vadd.f32 %v1624_v62, %v1335_v61  ;;  %v1626_v3 = vpop.f32.mrb[37].mxu0 }
 0x163   : > { %v1338_v4 = vpop.f32.mrb[38].mxu1  ;;  %v1627_v5 = vpop.f32.mrb[38].mxu0 }
 0x164   : > { %v1340_v6 = vpop.f32.mrb[39].mxu1  ;;  %v2735_v7 = vpack.c.bf16 %v1966_v1, %v1965_v0  ;;  %v1832_v8 = vmul.f32 %v3475_v17, %v1625_v2  ;;  %v1628_v9 = vadd.f32 %v1627_v5, %v1338_v4  ;;  %v1629_v10 = vpop.f32.mrb[39].mxu0 }
 0x166   : > { %2859 = vst [vmem:[%s3497_s21 + $0x40] sm:$0xff] %v2735_v7   ;;  %v1903_v11 = vadd.f32 %v3483_v25, %v1832_v8  ;;  %v1833_v12 = vmul.f32 %v3475_v17, %v1628_v9 }
 0x168   : > { %v1904_v13 = vadd.f32 %v3483_v25, %v1833_v12  ;;  %v1967_v18 = vmax.f32 %v1903_v11, 0.0 }
 0x169   : > { %v1343_v14 = vpop.f32.mrb[40].mxu1  ;;  %v1632_v15 = vpop.f32.mrb[40].mxu0 }
 0x16a   : > { %v1345_v16 = vpop.f32.mrb[41].mxu1  ;;  %v1968_v19 = vmax.f32 %v1904_v13, 0.0  ;;  %v1633_v20 = vadd.f32 %v1632_v15, %v1343_v14  ;;  %v1634_v21 = vpop.f32.mrb[41].mxu0 }
 0x16b   : > { %v1346_v22 = vpop.f32.mrb[42].mxu1  ;;  %v1635_v23 = vpop.f32.mrb[42].mxu0 }
 0x16c   : > { %v1348_v24 = vpop.f32.mrb[43].mxu1  ;;  %v2740_v26 = vpack.c.bf16 %v1968_v19, %v1967_v18  ;;  %v1834_v27 = vmul.f32 %v3475_v17, %v1633_v20  ;;  %v1636_v28 = vadd.f32 %v1635_v23, %v1346_v22  ;;  %v1637_v29 = vpop.f32.mrb[43].mxu0 }
 0x16e   : > { %2860 = vst [vmem:[%s3497_s21 + $0x48] sm:$0xff] %v2740_v26   ;;  %v1905_v30 = vadd.f32 %v3483_v25, %v1834_v27  ;;  %v1835_v31 = vmul.f32 %v3475_v17, %v1636_v28 }
 0x170   : > { %v1906_v32 = vadd.f32 %v3483_v25, %v1835_v31  ;;  %v1969_v36 = vmax.f32 %v1905_v30, 0.0 }
 0x171   : > { %v1351_v33 = vpop.f32.mrb[44].mxu1  ;;  %v1640_v34 = vpop.f32.mrb[44].mxu0 }
 0x172   : > { %v1353_v35 = vpop.f32.mrb[45].mxu1  ;;  %v1970_v37 = vmax.f32 %v1906_v32, 0.0  ;;  %v1641_v38 = vadd.f32 %v1640_v34, %v1351_v33  ;;  %v1642_v39 = vpop.f32.mrb[45].mxu0 }
 0x173   : > { %v1354_v40 = vpop.f32.mrb[46].mxu1  ;;  %v1643_v41 = vpop.f32.mrb[46].mxu0 }
 0x174   : > { %v1356_v42 = vpop.f32.mrb[47].mxu1  ;;  %v2745_v43 = vpack.c.bf16 %v1970_v37, %v1969_v36  ;;  %v1836_v44 = vmul.f32 %v3475_v17, %v1641_v38  ;;  %v1644_v45 = vadd.f32 %v1643_v41, %v1354_v40  ;;  %v1645_v46 = vpop.f32.mrb[47].mxu0 }
 0x176   : > { %2861 = vst [vmem:[%s3497_s21 + $0x50] sm:$0xff] %v2745_v43   ;;  %v1907_v47 = vadd.f32 %v3483_v25, %v1836_v44  ;;  %v1837_v48 = vmul.f32 %v3475_v17, %v1644_v45 }
 0x178   : > { %v1908_v49 = vadd.f32 %v3483_v25, %v1837_v48  ;;  %v1971_v53 = vmax.f32 %v1907_v47, 0.0 }
 0x179   : > { %v1359_v50 = vpop.f32.mrb[48].mxu1  ;;  %v1648_v51 = vpop.f32.mrb[48].mxu0 }
 0x17a   : > { %v1361_v52 = vpop.f32.mrb[49].mxu1  ;;  %v1972_v54 = vmax.f32 %v1908_v49, 0.0  ;;  %v1649_v55 = vadd.f32 %v1648_v51, %v1359_v50  ;;  %v1650_v56 = vpop.f32.mrb[49].mxu0 }
 0x17b   : > { %v1362_v57 = vpop.f32.mrb[50].mxu1  ;;  %v1651_v58 = vpop.f32.mrb[50].mxu0 }
 0x17c   : > { %v1364_v59 = vpop.f32.mrb[51].mxu1  ;;  %v2750_v60 = vpack.c.bf16 %v1972_v54, %v1971_v53  ;;  %v1838_v61 = vmul.f32 %v3475_v17, %v1649_v55  ;;  %v1652_v62 = vadd.f32 %v1651_v58, %v1362_v57  ;;  %v1653_v63 = vpop.f32.mrb[51].mxu0 }
 0x17e   : > { %2862 = vst [vmem:[%s3497_s21 + $0x58] sm:$0xff] %v2750_v60   ;;  %v1909_v0 = vadd.f32 %v3483_v25, %v1838_v61  ;;  %v1839_v1 = vmul.f32 %v3475_v17, %v1652_v62 }
 0x180   : > { %v1910_v2 = vadd.f32 %v3483_v25, %v1839_v1  ;;  %v1973_v6 = vmax.f32 %v1909_v0, 0.0 }
 0x181   : > { %v1367_v3 = vpop.f32.mrb[52].mxu1  ;;  %v1656_v4 = vpop.f32.mrb[52].mxu0 }
 0x182   : > { %v1369_v5 = vpop.f32.mrb[53].mxu1  ;;  %v1974_v7 = vmax.f32 %v1910_v2, 0.0  ;;  %v1657_v8 = vadd.f32 %v1656_v4, %v1367_v3  ;;  %v1658_v9 = vpop.f32.mrb[53].mxu0 }
 0x183   : > { %v1370_v10 = vpop.f32.mrb[54].mxu1  ;;  %v1659_v11 = vpop.f32.mrb[54].mxu0 }
 0x184   : > { %v1372_v12 = vpop.f32.mrb[55].mxu1  ;;  %v2755_v13 = vpack.c.bf16 %v1974_v7, %v1973_v6  ;;  %v1840_v14 = vmul.f32 %v3475_v17, %v1657_v8  ;;  %v1660_v15 = vadd.f32 %v1659_v11, %v1370_v10  ;;  %v1661_v16 = vpop.f32.mrb[55].mxu0 }
 0x186   : > { %2863 = vst [vmem:[%s3497_s21 + $0x60] sm:$0xff] %v2755_v13   ;;  %v1911_v18 = vadd.f32 %v3483_v25, %v1840_v14  ;;  %v1841_v19 = vmul.f32 %v3475_v17, %v1660_v15 }
 0x188   : > { %v1912_v20 = vadd.f32 %v3483_v25, %v1841_v19  ;;  %v1975_v24 = vmax.f32 %v1911_v18, 0.0 }
 0x189   : > { %v1375_v21 = vpop.f32.mrb[56].mxu1  ;;  %v1664_v22 = vpop.f32.mrb[56].mxu0 }
 0x18a   : > { %v1377_v23 = vpop.f32.mrb[57].mxu1  ;;  %v1976_v26 = vmax.f32 %v1912_v20, 0.0  ;;  %v1665_v27 = vadd.f32 %v1664_v22, %v1375_v21  ;;  %v1666_v28 = vpop.f32.mrb[57].mxu0 }
 0x18b   : > { %v1378_v29 = vpop.f32.mrb[58].mxu1  ;;  %v1667_v30 = vpop.f32.mrb[58].mxu0 }
 0x18c   : > { %v1380_v31 = vpop.f32.mrb[59].mxu1  ;;  %v2760_v32 = vpack.c.bf16 %v1976_v26, %v1975_v24  ;;  %v1842_v33 = vmul.f32 %v3475_v17, %v1665_v27  ;;  %v1668_v34 = vadd.f32 %v1667_v30, %v1378_v29  ;;  %v1669_v35 = vpop.f32.mrb[59].mxu0 }
 0x18e   : > { %2864 = vst [vmem:[%s3497_s21 + $0x68] sm:$0xff] %v2760_v32   ;;  %v1913_v36 = vadd.f32 %v3483_v25, %v1842_v33  ;;  %v1843_v37 = vmul.f32 %v3475_v17, %v1668_v34 }
 0x190   : > { %v1914_v38 = vadd.f32 %v3483_v25, %v1843_v37  ;;  %v1977_v42 = vmax.f32 %v1913_v36, 0.0 }
 0x191   : > { %v1383_v39 = vpop.f32.mrb[60].mxu1  ;;  %v1672_v40 = vpop.f32.mrb[60].mxu0 }
 0x192   : > { %v1385_v41 = vpop.f32.mrb[61].mxu1  ;;  %v1978_v43 = vmax.f32 %v1914_v38, 0.0  ;;  %v1673_v44 = vadd.f32 %v1672_v40, %v1383_v39  ;;  %v1674_v45 = vpop.f32.mrb[61].mxu0 }
 0x193   : > { %v1386_v46 = vpop.f32.mrb[62].mxu1  ;;  %v1675_v47 = vpop.f32.mrb[62].mxu0 }
 0x194   : > { %v1388_v48 = vpop.f32.mrb[63].mxu1  ;;  %v2765_v49 = vpack.c.bf16 %v1978_v43, %v1977_v42  ;;  %v1844_v50 = vmul.f32 %v3475_v17, %v1673_v44  ;;  %v1676_v51 = vadd.f32 %v1675_v47, %v1386_v46  ;;  %v1677_v52 = vpop.f32.mrb[63].mxu0 }
 0x196   : > { %2865 = vst [vmem:[%s3497_s21 + $0x70] sm:$0xff] %v2765_v49   ;;  %v1915_v53 = vadd.f32 %v3483_v25, %v1844_v50  ;;  %v1845_v54 = vmul.f32 %v3475_v17, %v1676_v51 }
 0x198   : > { %v1916_v55 = vadd.f32 %v3483_v25, %v1845_v54  ;;  %v1979_v59 = vmax.f32 %v1915_v53, 0.0 }
 0x199   : > { %v1391_v56 = vpop.f32.mrb[64].mxu1  ;;  %v1680_v57 = vpop.f32.mrb[64].mxu0 }
 0x19a   : > { %v1393_v58 = vpop.f32.mrb[65].mxu1  ;;  %v1980_v60 = vmax.f32 %v1916_v55, 0.0  ;;  %v1681_v61 = vadd.f32 %v1680_v57, %v1391_v56  ;;  %v1682_v62 = vpop.f32.mrb[65].mxu0 }
 0x19b   : > { %v1394_v63 = vpop.f32.mrb[66].mxu1  ;;  %v1683_v0 = vpop.f32.mrb[66].mxu0 }
 0x19c   : > { %v1396_v1 = vpop.f32.mrb[67].mxu1  ;;  %v2770_v2 = vpack.c.bf16 %v1980_v60, %v1979_v59  ;;  %v1846_v3 = vmul.f32 %v3475_v17, %v1681_v61  ;;  %v1684_v4 = vadd.f32 %v1683_v0, %v1394_v63  ;;  %v1685_v5 = vpop.f32.mrb[67].mxu0 }
 0x19e   : > { %2866 = vst [vmem:[%s3497_s21 + $0x78] sm:$0xff] %v2770_v2   ;;  %v1917_v6 = vadd.f32 %v3483_v25, %v1846_v3  ;;  %v1847_v7 = vmul.f32 %v3475_v17, %v1684_v4 }
 0x1a0   : > { %v1918_v8 = vadd.f32 %v3483_v25, %v1847_v7  ;;  %v1981_v12 = vmax.f32 %v1917_v6, 0.0 }
 0x1a1   : > { %v1399_v9 = vpop.f32.mrb[68].mxu1  ;;  %v1688_v10 = vpop.f32.mrb[68].mxu0 }
 0x1a2   : > { %v1401_v11 = vpop.f32.mrb[69].mxu1  ;;  %v1982_v13 = vmax.f32 %v1918_v8, 0.0  ;;  %v1689_v14 = vadd.f32 %v1688_v10, %v1399_v9  ;;  %v1690_v15 = vpop.f32.mrb[69].mxu0 }
 0x1a3   : > { %v1402_v16 = vpop.f32.mrb[70].mxu1  ;;  %v1691_v18 = vpop.f32.mrb[70].mxu0 }
 0x1a4   : > { %v1404_v19 = vpop.f32.mrb[71].mxu1  ;;  %v2775_v20 = vpack.c.bf16 %v1982_v13, %v1981_v12  ;;  %v1848_v21 = vmul.f32 %v3475_v17, %v1689_v14  ;;  %v1692_v22 = vadd.f32 %v1691_v18, %v1402_v16  ;;  %v1693_v23 = vpop.f32.mrb[71].mxu0 }
 0x1a6   : > { %2867 = vst [vmem:[%s3497_s21 + $0x80] sm:$0xff] %v2775_v20   ;;  %v1919_v24 = vadd.f32 %v3483_v25, %v1848_v21  ;;  %v1849_v26 = vmul.f32 %v3475_v17, %v1692_v22 }
 0x1a8   : > { %v1920_v27 = vadd.f32 %v3483_v25, %v1849_v26  ;;  %v1983_v31 = vmax.f32 %v1919_v24, 0.0 }
 0x1a9   : > { %v1407_v28 = vpop.f32.mrb[72].mxu1  ;;  %v1696_v29 = vpop.f32.mrb[72].mxu0 }
 0x1aa   : > { %v1409_v30 = vpop.f32.mrb[73].mxu1  ;;  %v1984_v32 = vmax.f32 %v1920_v27, 0.0  ;;  %v1697_v33 = vadd.f32 %v1696_v29, %v1407_v28  ;;  %v1698_v34 = vpop.f32.mrb[73].mxu0 }
 0x1ab   : > { %v1410_v35 = vpop.f32.mrb[74].mxu1  ;;  %v1699_v36 = vpop.f32.mrb[74].mxu0 }
 0x1ac   : > { %v1412_v37 = vpop.f32.mrb[75].mxu1  ;;  %v2780_v38 = vpack.c.bf16 %v1984_v32, %v1983_v31  ;;  %v1850_v39 = vmul.f32 %v3475_v17, %v1697_v33  ;;  %v1700_v40 = vadd.f32 %v1699_v36, %v1410_v35  ;;  %v1701_v41 = vpop.f32.mrb[75].mxu0 }
 0x1ae   : > { %2868 = vst [vmem:[%s3497_s21 + $0x88] sm:$0xff] %v2780_v38   ;;  %v1921_v42 = vadd.f32 %v3483_v25, %v1850_v39  ;;  %v1851_v43 = vmul.f32 %v3475_v17, %v1700_v40 }
 0x1b0   : > { %v1922_v44 = vadd.f32 %v3483_v25, %v1851_v43  ;;  %v1985_v48 = vmax.f32 %v1921_v42, 0.0 }
 0x1b1   : > { %v1415_v45 = vpop.f32.mrb[76].mxu1  ;;  %v1704_v46 = vpop.f32.mrb[76].mxu0 }
 0x1b2   : > { %v1417_v47 = vpop.f32.mrb[77].mxu1  ;;  %v1986_v49 = vmax.f32 %v1922_v44, 0.0  ;;  %v1705_v50 = vadd.f32 %v1704_v46, %v1415_v45  ;;  %v1706_v51 = vpop.f32.mrb[77].mxu0 }
 0x1b3   : > { %v1418_v52 = vpop.f32.mrb[78].mxu1  ;;  %v1707_v53 = vpop.f32.mrb[78].mxu0 }
 0x1b4   : > { %v1420_v54 = vpop.f32.mrb[79].mxu1  ;;  %v2785_v55 = vpack.c.bf16 %v1986_v49, %v1985_v48  ;;  %v1852_v56 = vmul.f32 %v3475_v17, %v1705_v50  ;;  %v1708_v57 = vadd.f32 %v1707_v53, %v1418_v52  ;;  %v1709_v58 = vpop.f32.mrb[79].mxu0 }
 0x1b6   : > { %2869 = vst [vmem:[%s3497_s21 + $0x90] sm:$0xff] %v2785_v55   ;;  %v1923_v59 = vadd.f32 %v3483_v25, %v1852_v56  ;;  %v1853_v60 = vmul.f32 %v3475_v17, %v1708_v57 }
 0x1b8   : > { %v1924_v61 = vadd.f32 %v3483_v25, %v1853_v60  ;;  %v1987_v1 = vmax.f32 %v1923_v59, 0.0 }
 0x1b9   : > { %v1423_v62 = vpop.f32.mrb[80].mxu1  ;;  %v1712_v63 = vpop.f32.mrb[80].mxu0 }
 0x1ba   : > { %v1425_v0 = vpop.f32.mrb[81].mxu1  ;;  %v1988_v2 = vmax.f32 %v1924_v61, 0.0  ;;  %v1713_v3 = vadd.f32 %v1712_v63, %v1423_v62  ;;  %v1714_v4 = vpop.f32.mrb[81].mxu0 }
 0x1bb   : > { %v1426_v5 = vpop.f32.mrb[82].mxu1  ;;  %v1715_v6 = vpop.f32.mrb[82].mxu0 }
 0x1bc   : > { %v1428_v7 = vpop.f32.mrb[83].mxu1  ;;  %v2790_v8 = vpack.c.bf16 %v1988_v2, %v1987_v1  ;;  %v1854_v9 = vmul.f32 %v3475_v17, %v1713_v3  ;;  %v1716_v10 = vadd.f32 %v1715_v6, %v1426_v5  ;;  %v1717_v11 = vpop.f32.mrb[83].mxu0 }
 0x1be   : > { %2870 = vst [vmem:[%s3497_s21 + $0x98] sm:$0xff] %v2790_v8   ;;  %v1925_v12 = vadd.f32 %v3483_v25, %v1854_v9  ;;  %v1855_v13 = vmul.f32 %v3475_v17, %v1716_v10 }
 0x1c0   : > { %v1926_v14 = vadd.f32 %v3483_v25, %v1855_v13  ;;  %v1989_v19 = vmax.f32 %v1925_v12, 0.0 }
 0x1c1   : > { %v1431_v15 = vpop.f32.mrb[84].mxu1  ;;  %v1720_v16 = vpop.f32.mrb[84].mxu0 }
 0x1c2   : > { %v1433_v18 = vpop.f32.mrb[85].mxu1  ;;  %v1990_v20 = vmax.f32 %v1926_v14, 0.0  ;;  %v1721_v21 = vadd.f32 %v1720_v16, %v1431_v15  ;;  %v1722_v22 = vpop.f32.mrb[85].mxu0 }
 0x1c3   : > { %v1434_v23 = vpop.f32.mrb[86].mxu1  ;;  %v1723_v24 = vpop.f32.mrb[86].mxu0 }
 0x1c4   : > { %v1436_v26 = vpop.f32.mrb[87].mxu1  ;;  %v2795_v27 = vpack.c.bf16 %v1990_v20, %v1989_v19  ;;  %v1856_v28 = vmul.f32 %v3475_v17, %v1721_v21  ;;  %v1724_v29 = vadd.f32 %v1723_v24, %v1434_v23  ;;  %v1725_v30 = vpop.f32.mrb[87].mxu0 }
 0x1c6   : > { %2871 = vst [vmem:[%s3497_s21 + $0xa0] sm:$0xff] %v2795_v27   ;;  %v1927_v31 = vadd.f32 %v3483_v25, %v1856_v28  ;;  %v1857_v32 = vmul.f32 %v3475_v17, %v1724_v29 }
 0x1c8   : > { %v1928_v33 = vadd.f32 %v3483_v25, %v1857_v32  ;;  %v1991_v37 = vmax.f32 %v1927_v31, 0.0 }
 0x1c9   : > { %v1439_v34 = vpop.f32.mrb[88].mxu1  ;;  %v1728_v35 = vpop.f32.mrb[88].mxu0 }
 0x1ca   : > { %v1441_v36 = vpop.f32.mrb[89].mxu1  ;;  %v1992_v38 = vmax.f32 %v1928_v33, 0.0  ;;  %v1729_v39 = vadd.f32 %v1728_v35, %v1439_v34  ;;  %v1730_v40 = vpop.f32.mrb[89].mxu0 }
 0x1cb   : > { %v1442_v41 = vpop.f32.mrb[90].mxu1  ;;  %v1731_v42 = vpop.f32.mrb[90].mxu0 }
 0x1cc   : > { %v1444_v43 = vpop.f32.mrb[91].mxu1  ;;  %v2800_v44 = vpack.c.bf16 %v1992_v38, %v1991_v37  ;;  %v1858_v45 = vmul.f32 %v3475_v17, %v1729_v39  ;;  %v1732_v46 = vadd.f32 %v1731_v42, %v1442_v41  ;;  %v1733_v47 = vpop.f32.mrb[91].mxu0 }
 0x1ce   : > { %2872 = vst [vmem:[%s3497_s21 + $0xa8] sm:$0xff] %v2800_v44   ;;  %v1929_v48 = vadd.f32 %v3483_v25, %v1858_v45  ;;  %v1859_v49 = vmul.f32 %v3475_v17, %v1732_v46 }
 0x1d0   : > { %v1930_v50 = vadd.f32 %v3483_v25, %v1859_v49  ;;  %v1993_v54 = vmax.f32 %v1929_v48, 0.0 }
 0x1d1   : > { %v1447_v51 = vpop.f32.mrb[92].mxu1  ;;  %v1736_v52 = vpop.f32.mrb[92].mxu0 }
 0x1d2   : > { %v1449_v53 = vpop.f32.mrb[93].mxu1  ;;  %v1994_v55 = vmax.f32 %v1930_v50, 0.0  ;;  %v1737_v56 = vadd.f32 %v1736_v52, %v1447_v51  ;;  %v1738_v57 = vpop.f32.mrb[93].mxu0  ;;  %v3638_v51 = vld [vmem:[%s3681_s2] ss:$0 sm:$0xff] }
 0x1d3   : > { %v1450_v58 = vpop.f32.mrb[94].mxu1  ;;  %v1739_v59 = vpop.f32.mrb[94].mxu0 }
 0x1d4   : > { %v1452_v60 = vpop.f32.mrb[95].mxu1  ;;  %v2805_v61 = vpack.c.bf16 %v1994_v55, %v1993_v54  ;;  %v1860_v62 = vmul.f32 %v3475_v17, %v1737_v56  ;;  %v1740_v63 = vadd.f32 %v1739_v59, %v1450_v58  ;;  %v1741_v0 = vpop.f32.mrb[95].mxu0 }
 0x1d6   : > { %2873 = vst [vmem:[%s3497_s21 + $0xb0] sm:$0xff] %v2805_v61   ;;  %v1931_v1 = vadd.f32 %v3483_v25, %v1860_v62  ;;  %v1861_v2 = vmul.f32 %v3475_v17, %v1740_v63 }
 0x1d8   : > { %v1932_v3 = vadd.f32 %v3483_v25, %v1861_v2  ;;  %v1995_v7 = vmax.f32 %v1931_v1, 0.0 }
 0x1d9   : > { %v1455_v4 = vpop.f32.mrb[96].mxu1  ;;  %v1744_v5 = vpop.f32.mrb[96].mxu0 }
 0x1da   : > { %v1457_v6 = vpop.f32.mrb[97].mxu1  ;;  %v1996_v8 = vmax.f32 %v1932_v3, 0.0  ;;  %v1745_v9 = vadd.f32 %v1744_v5, %v1455_v4  ;;  %v1746_v10 = vpop.f32.mrb[97].mxu0 }
 0x1db   : > { %v1458_v11 = vpop.f32.mrb[98].mxu1  ;;  %v1747_v12 = vpop.f32.mrb[98].mxu0 }
 0x1dc   : > { %v1460_v13 = vpop.f32.mrb[99].mxu1  ;;  %v2810_v14 = vpack.c.bf16 %v1996_v8, %v1995_v7  ;;  %v1862_v15 = vmul.f32 %v3475_v17, %v1745_v9  ;;  %v1748_v16 = vadd.f32 %v1747_v12, %v1458_v11  ;;  %v1749_v18 = vpop.f32.mrb[99].mxu0 }
 0x1de   : > { %2874 = vst [vmem:[%s3497_s21 + $0xb8] sm:$0xff] %v2810_v14   ;;  %v1933_v19 = vadd.f32 %v3483_v25, %v1862_v15  ;;  %v1863_v20 = vmul.f32 %v3475_v17, %v1748_v16 }
 0x1e0   : > { %v1934_v21 = vadd.f32 %v3483_v25, %v1863_v20  ;;  %v1997_v26 = vmax.f32 %v1933_v19, 0.0 }
 0x1e1   : > { %v1463_v22 = vpop.f32.mrb[100].mxu1  ;;  %v1752_v23 = vpop.f32.mrb[100].mxu0 }
 0x1e2   : > { %v1465_v24 = vpop.f32.mrb[101].mxu1  ;;  %v1998_v27 = vmax.f32 %v1934_v21, 0.0  ;;  %v1753_v28 = vadd.f32 %v1752_v23, %v1463_v22  ;;  %v1754_v29 = vpop.f32.mrb[101].mxu0 }
 0x1e3   : > { %v1466_v30 = vpop.f32.mrb[102].mxu1  ;;  %v1755_v31 = vpop.f32.mrb[102].mxu0 }
 0x1e4   : > { %v1468_v32 = vpop.f32.mrb[103].mxu1  ;;  %v2815_v33 = vpack.c.bf16 %v1998_v27, %v1997_v26  ;;  %v1864_v34 = vmul.f32 %v3475_v17, %v1753_v28  ;;  %v1756_v35 = vadd.f32 %v1755_v31, %v1466_v30  ;;  %v1757_v36 = vpop.f32.mrb[103].mxu0 }
 0x1e6   : > { %2875 = vst [vmem:[%s3497_s21 + $0xc0] sm:$0xff] %v2815_v33   ;;  %v1935_v37 = vadd.f32 %v3483_v25, %v1864_v34  ;;  %v1865_v38 = vmul.f32 %v3475_v17, %v1756_v35 }
 0x1e8   : > { %v1936_v39 = vadd.f32 %v3483_v25, %v1865_v38  ;;  %v1999_v43 = vmax.f32 %v1935_v37, 0.0 }
 0x1e9   : > { %v1471_v40 = vpop.f32.mrb[104].mxu1  ;;  %v1760_v41 = vpop.f32.mrb[104].mxu0 }
 0x1ea   : > { %v1473_v42 = vpop.f32.mrb[105].mxu1  ;;  %v2000_v44 = vmax.f32 %v1936_v39, 0.0  ;;  %v1761_v45 = vadd.f32 %v1760_v41, %v1471_v40  ;;  %v1762_v46 = vpop.f32.mrb[105].mxu0 }
 0x1eb   : > { %v1474_v47 = vpop.f32.mrb[106].mxu1  ;;  %v1763_v48 = vpop.f32.mrb[106].mxu0 }
 0x1ec   : > { %v1476_v49 = vpop.f32.mrb[107].mxu1  ;;  %v2820_v50 = vpack.c.bf16 %v2000_v44, %v1999_v43  ;;  %v1866_v17 = vmul.f32 %v3638_v51, %v1761_v45  ;;  %v1764_v52 = vadd.f32 %v1763_v48, %v1474_v47  ;;  %v1765_v53 = vpop.f32.mrb[107].mxu0 }
 0x1ee   : > { %2876 = vst [vmem:[%s3497_s21 + $0xc8] sm:$0xff] %v2820_v50   ;;  %v1937_v54 = vadd.f32 %v3483_v25, %v1866_v17  ;;  %v1867_v55 = vmul.f32 %v3638_v51, %v1764_v52 }
 0x1f0   : > { %v1938_v56 = vadd.f32 %v3483_v25, %v1867_v55  ;;  %v2001_v60 = vmax.f32 %v1937_v54, 0.0  ;;  %v3650_v25 = vld [vmem:[%s3682_s3] ss:$0 sm:$0xff] }
 0x1f1   : > { %v1479_v57 = vpop.f32.mrb[108].mxu1  ;;  %v1768_v58 = vpop.f32.mrb[108].mxu0 }
 0x1f2   : > { %v1481_v59 = vpop.f32.mrb[109].mxu1  ;;  %v2002_v61 = vmax.f32 %v1938_v56, 0.0  ;;  %v1769_v62 = vadd.f32 %v1768_v58, %v1479_v57  ;;  %v1770_v63 = vpop.f32.mrb[109].mxu0 }
 0x1f3   : > { %v1482_v0 = vpop.f32.mrb[110].mxu1  ;;  %v1771_v1 = vpop.f32.mrb[110].mxu0 }
 0x1f4   : > { %v1484_v2 = vpop.f32.mrb[111].mxu1  ;;  %v2825_v3 = vpack.c.bf16 %v2002_v61, %v2001_v60  ;;  %v1868_v4 = vmul.f32 %v3638_v51, %v1769_v62  ;;  %v1772_v5 = vadd.f32 %v1771_v1, %v1482_v0  ;;  %v1773_v6 = vpop.f32.mrb[111].mxu0 }
 0x1f6   : > { %2877 = vst [vmem:[%s3497_s21 + $0xd0] sm:$0xff] %v2825_v3   ;;  %v1939_v7 = vadd.f32 %v3650_v25, %v1868_v4  ;;  %v1869_v8 = vmul.f32 %v3638_v51, %v1772_v5 }
 0x1f8   : > { %v1940_v9 = vadd.f32 %v3650_v25, %v1869_v8  ;;  %v2003_v13 = vmax.f32 %v1939_v7, 0.0 }
 0x1f9   : > { %v1487_v10 = vpop.f32.mrb[112].mxu1  ;;  %v1776_v11 = vpop.f32.mrb[112].mxu0 }
 0x1fa   : > { %v1489_v12 = vpop.f32.mrb[113].mxu1  ;;  %v2004_v14 = vmax.f32 %v1940_v9, 0.0  ;;  %v1777_v15 = vadd.f32 %v1776_v11, %v1487_v10  ;;  %v1778_v16 = vpop.f32.mrb[113].mxu0 }
 0x1fb   : > { %v1490_v18 = vpop.f32.mrb[114].mxu1  ;;  %v1779_v19 = vpop.f32.mrb[114].mxu0 }
 0x1fc   : > { %v1492_v20 = vpop.f32.mrb[115].mxu1  ;;  %v2830_v21 = vpack.c.bf16 %v2004_v14, %v2003_v13  ;;  %v1870_v22 = vmul.f32 %v3638_v51, %v1777_v15  ;;  %v1780_v23 = vadd.f32 %v1779_v19, %v1490_v18  ;;  %v1781_v24 = vpop.f32.mrb[115].mxu0 }
 0x1fe   : > { %2878 = vst [vmem:[%s3497_s21 + $0xd8] sm:$0xff] %v2830_v21   ;;  %v1941_v26 = vadd.f32 %v3650_v25, %v1870_v22  ;;  %v1871_v27 = vmul.f32 %v3638_v51, %v1780_v23 }
 0x200   : > { %v1942_v28 = vadd.f32 %v3650_v25, %v1871_v27  ;;  %v2005_v32 = vmax.f32 %v1941_v26, 0.0 }
 0x201   : > { %v1495_v29 = vpop.f32.mrb[116].mxu1  ;;  %v1784_v30 = vpop.f32.mrb[116].mxu0 }
 0x202   : > { %v1497_v31 = vpop.f32.mrb[117].mxu1  ;;  %v2006_v33 = vmax.f32 %v1942_v28, 0.0  ;;  %v1785_v34 = vadd.f32 %v1784_v30, %v1495_v29  ;;  %v1786_v35 = vpop.f32.mrb[117].mxu0 }
 0x203   : > { %v1498_v36 = vpop.f32.mrb[118].mxu1  ;;  %v1787_v37 = vpop.f32.mrb[118].mxu0 }
 0x204   : > { %v1500_v38 = vpop.f32.mrb[119].mxu1  ;;  %v2835_v39 = vpack.c.bf16 %v2006_v33, %v2005_v32  ;;  %v1872_v40 = vmul.f32 %v3638_v51, %v1785_v34  ;;  %v1788_v41 = vadd.f32 %v1787_v37, %v1498_v36  ;;  %v1789_v42 = vpop.f32.mrb[119].mxu0 }
 0x206   : > { %2879 = vst [vmem:[%s3497_s21 + $0xe0] sm:$0xff] %v2835_v39   ;;  %v1943_v43 = vadd.f32 %v3650_v25, %v1872_v40  ;;  %v1873_v44 = vmul.f32 %v3638_v51, %v1788_v41 }
 0x208   : > { %v1944_v45 = vadd.f32 %v3650_v25, %v1873_v44  ;;  %v2007_v49 = vmax.f32 %v1943_v43, 0.0 }
 0x209   : > { %v1503_v46 = vpop.f32.mrb[120].mxu1  ;;  %v1792_v47 = vpop.f32.mrb[120].mxu0 }
 0x20a   : > { %v1505_v48 = vpop.f32.mrb[121].mxu1  ;;  %v2008_v50 = vmax.f32 %v1944_v45, 0.0  ;;  %v1793_v17 = vadd.f32 %v1792_v47, %v1503_v46  ;;  %v1794_v52 = vpop.f32.mrb[121].mxu0 }
 0x20b   : > { %v1506_v53 = vpop.f32.mrb[122].mxu1  ;;  %v1795_v54 = vpop.f32.mrb[122].mxu0 }
 0x20c   : > { %v1508_v55 = vpop.f32.mrb[123].mxu1  ;;  %v2840_v56 = vpack.c.bf16 %v2008_v50, %v2007_v49  ;;  %v1874_v57 = vmul.f32 %v3638_v51, %v1793_v17  ;;  %v1796_v58 = vadd.f32 %v1795_v54, %v1506_v53  ;;  %v1797_v59 = vpop.f32.mrb[123].mxu0 }
 0x20e   : > { %2880 = vst [vmem:[%s3497_s21 + $0xe8] sm:$0xff] %v2840_v56   ;;  %v1945_v60 = vadd.f32 %v3650_v25, %v1874_v57  ;;  %v1875_v61 = vmul.f32 %v3638_v51, %v1796_v58 }
 0x210   : > { %v1946_v62 = vadd.f32 %v3650_v25, %v1875_v61  ;;  %v2009_v2 = vmax.f32 %v1945_v60, 0.0 }
 0x211   : > { %v1511_v63 = vpop.f32.mrb[124].mxu1  ;;  %v1800_v0 = vpop.f32.mrb[124].mxu0 }
 0x212   : > { %v1513_v1 = vpop.f32.mrb[125].mxu1  ;;  %v2010_v3 = vmax.f32 %v1946_v62, 0.0  ;;  %v1801_v4 = vadd.f32 %v1800_v0, %v1511_v63  ;;  %v1802_v5 = vpop.f32.mrb[125].mxu0 }
 0x213   : > { %v1514_v6 = vpop.f32.mrb[126].mxu1  ;;  %v1803_v7 = vpop.f32.mrb[126].mxu0 }
 0x214   : > { %v1516_v8 = vpop.f32.mrb[127].mxu1  ;;  %v2845_v9 = vpack.c.bf16 %v2010_v3, %v2009_v2  ;;  %v1876_v10 = vmul.f32 %v3638_v51, %v1801_v4  ;;  %v1804_v11 = vadd.f32 %v1803_v7, %v1514_v6  ;;  %v1805_v12 = vpop.f32.mrb[127].mxu0 }
 0x216   : > { %2881 = vst [vmem:[%s3497_s21 + $0xf0] sm:$0xff] %v2845_v9   ;;  %v1947_v13 = vadd.f32 %v3650_v25, %v1876_v10  ;;  %v1877_v14 = vmul.f32 %v3638_v51, %v1804_v11 }
 0x218   : > { %v1948_v15 = vadd.f32 %v3650_v25, %v1877_v14  ;;  %v2011_v16 = vmax.f32 %v1947_v13, 0.0 }
 0x21a   : > { %v2012_v18 = vmax.f32 %v1948_v15, 0.0 }
 0x21c   : > { %v2850_v19 = vpack.c.bf16 %v2012_v18, %v2011_v16 }
 0x21e   : > { %2882 = vst [vmem:[%s3497_s21 + $0xf8] sm:$0xff] %v2850_v19  }
 0x21f PF: > { %s14_s15 = sadd.s32 1, %s3188_s15  }
 0x220   : > { %p11_p4 = scmp.ge.s32.totalorder %s14_s15, 4  }
 0x222   :  { %13 = sbr.rel (!%p11_p4) target bundleno = 1 (0x1), region = 66 }

// kernel: fid3dcnn_forward.5
= control target key start
LH: loop header
LB: loop body
LE: loop exit
PB: predicated region body
PF: predicated region fallthrough
CT: control target
= control target key end

     0   :  { %s4983_s15 = smov 0   ;;  %s5838_s0 = inlined_call_operand.vmem [shape: bf16[128,3456], index: 0, kind: input, shape index: {}]   ;;  %s5839_s1 = inlined_call_operand.vmem [shape: bf16[3456,128], index: 1, kind: input, shape index: {}]   ;;  %s5840_s2 = inlined_call_operand.vmem [shape: f32[1,128], index: 2, kind: input, shape index: {}]   ;;  %s5841_s3 = inlined_call_operand.vmem [shape: f32[1,128], index: 3, kind: input, shape index: {}]   ;;  %s5842_s4 = inlined_call_operand.vmem [shape: bf16[128,128], index: 4, kind: output, shape index: {}]  }
   0x1 LB: > { %s3633_s16 = sadd.s32 4294967295, %s4956_s15   ;;  %p3637_p0 = scmp.ge.s32.totalorder %s4956_s15, 1  ;;  %s4956_s15 = sphi %s4983_s15, %s14_s15  }
   0x2   : > { %p164_p1 = scmp.lt.s32.totalorder %s4956_s15, 3 }
   0x4   : > { %p165_p2 = pnand %p3637_p0, %p164_p1 }
   0x5   : > { %v4574_v0 = vld [vmem:[%s5839_s1 + $0x40] sm:$0xff] (!%p165_p2)   ;;  %v4578_v4 = vld [vmem:[%s5839_s1 + $0x48] sm:$0xff] (!%p165_p2)   ;;  %v4582_v8 = vld [vmem:[%s5839_s1 + $0x50] sm:$0xff] (!%p165_p2)   ;;  %s3638_s23 = sshll.u32 (!%p165_p2), %s3633_s16, 3 }
   0x6   : > { %168 = sbr.rel (%p165_p2) target bundleno = 517 (0x205), region = 36  ;;  %v4575_v1 = vld [vmem:[%s5839_s1 + $0xc0] sm:$0xff] (!%p165_p2)   ;;  %4009 = vmatprep.subr.bf16.mxu0 (!%p165_p2), %v4574_v0  ;;  %v4579_v5 = vld [vmem:[%s5839_s1 + $0xc8] sm:$0xff] (!%p165_p2)   ;;  %v4583_v9 = vld [vmem:[%s5839_s1 + $0xd0] sm:$0xff] (!%p165_p2)   ;;  %p192_p3 = scmp.lt.s32.totalorder (!%p165_p2), %s3638_s23, 15 }
   0x7   : > { %v4576_v2 = vld [vmem:[%s5839_s1] sm:$0xff] (!%p165_p2)   ;;  %4049 = vmatprep.subr.bf16.mxu1 (!%p165_p2), %v4575_v1  ;;  %v4580_v6 = vld [vmem:[%s5839_s1 + $0x8] sm:$0xff] (!%p165_p2)   ;;  %v4584_v10 = vld [vmem:[%s5839_s1 + $0x10] sm:$0xff] (!%p165_p2)  }
   0x8   : > { %v4577_v3 = vld [vmem:[%s5839_s1 + $0x80] sm:$0xff] (!%p165_p2)   ;;  %4010 = vmatpush3.bf16.msra.mxu0 (!%p165_p2), %v4576_v2  ;;  %v4581_v7 = vld [vmem:[%s5839_s1 + $0x88] sm:$0xff] (!%p165_p2)   ;;  %v4585_v11 = vld [vmem:[%s5839_s1 + $0x90] sm:$0xff] (!%p165_p2)  }
   0x9   : > { %4050 = vmatpush3.bf16.msra.mxu1 (!%p165_p2), %v4577_v3  ;;  %4011 = vmatprep.subr.bf16.mxu0 (!%p165_p2), %v4578_v4  ;;  %v4586_v12 = vld [vmem:[%s5839_s1 + $0x58] sm:$0xff] (!%p165_p2)   ;;  %v4590_v16 = vld [vmem:[%s5839_s1 + $0x60] sm:$0xff] (!%p165_p2)   ;;  %v4594_v20 = vld [vmem:[%s5839_s1 + $0x68] sm:$0xff] (!%p165_p2)  }
   0xa   : > { %4051 = vmatprep.subr.bf16.mxu1 (!%p165_p2), %v4579_v5  ;;  %v4587_v13 = vld [vmem:[%s5839_s1 + $0xd8] sm:$0xff] (!%p165_p2)   ;;  %v4591_v17 = vld [vmem:[%s5839_s1 + $0xe0] sm:$0xff] (!%p165_p2)   ;;  %v4595_v21 = vld [vmem:[%s5839_s1 + $0xe8] sm:$0xff] (!%p165_p2)  }
   0xb   : > { %v4588_v14 = vld [vmem:[%s5839_s1 + $0x18] sm:$0xff] (!%p165_p2)   ;;  %v4592_v18 = vld [vmem:[%s5839_s1 + $0x20] sm:$0xff] (!%p165_p2)   ;;  %v4596_v22 = vld [vmem:[%s5839_s1 + $0x28] sm:$0xff] (!%p165_p2)  }
   0xc   : > { %4012 = vmatpush3.bf16.msra.mxu0 (!%p165_p2), %v4580_v6  ;;  %v4589_v15 = vld [vmem:[%s5839_s1 + $0x98] sm:$0xff] (!%p165_p2)   ;;  %v4593_v19 = vld [vmem:[%s5839_s1 + $0xa0] sm:$0xff] (!%p165_p2)   ;;  %v4597_v23 = vld [vmem:[%s5839_s1 + $0xa8] sm:$0xff] (!%p165_p2)  }
   0xd   : > { %4052 = vmatpush3.bf16.msra.mxu1 %v4581_v7  ;;  %4013 = vmatprep.subr.bf16.mxu0 %v4582_v8  ;;  %s5844_s23 = smov (!%p192_p3, %s3638_s23), 15  ;;  %v4598_v24 = vld [vmem:[%s5839_s1 + $0x70] sm:$0xff]   ;;  %v4602_v28 = vld [vmem:[%s5839_s1 + $0x78] sm:$0xff]   ;;  %v4612_v36 = vld [vmem:[%s5839_s1 + $0x140] sm:$0xff]  }
   0xe   : > { %4053 = vmatprep.subr.bf16.mxu1 %v4583_v9  ;;  %v4599_v25 = vld [vmem:[%s5839_s1 + $0xf0] sm:$0xff]   ;;  %s4565_s21 = smul.u32 108, %s5844_s23  ;;  %v4603_v29 = vld [vmem:[%s5839_s1 + $0xf8] sm:$0xff]   ;;  %v4613_v37 = vld [vmem:[%s5839_s1 + $0x100] sm:$0xff]   ;;  %s3641_s14 = sshll.u32 %s5844_s23, 2 }
   0xf   : > { %v4600_v26 = vld [vmem:[%s5839_s1 + $0x30] sm:$0xff]   ;;  %v4604_v30 = vld [vmem:[%s5839_s1 + $0x38] sm:$0xff]   ;;  %v4614_v38 = vld [vmem:[%s5839_s1 + $0x1c0] sm:$0xff]   ;;  %s5813_s19 = scalar_lea.vmem %s5842_s4, %s3641_s14 }
  0x10   : > { %4014 = vmatpush3.bf16.msra.mxu0 %v4584_v10  ;;  %v4601_v27 = vld [vmem:[%s5839_s1 + $0xb0] sm:$0xff]   ;;  %s5089_s6 = scalar_lea.vmem %s5838_s0, %s4565_s21  ;;  %v4605_v31 = vld [vmem:[%s5839_s1 + $0xb8] sm:$0xff]   ;;  %v4615_v39 = vld [vmem:[%s5839_s1 + $0x180] sm:$0xff]  }
  0x11   : > { %4054 = vmatpush3.bf16.msra.mxu1 %v4585_v11  ;;  %4015 = vmatprep.subr.bf16.mxu0 %v4586_v12  ;;  %v4606_v32 = vld [vmem:[%s5089_s6] ss:$108 sps:$4 sm:$0xff]   ;;  %v4608_v33 = vld [vmem:[%s5089_s6 + $0x4] ss:$108 sps:$4 sm:$0xff]   ;;  %v4609_v34 = vld [vmem:[%s5089_s6 + $0x8] ss:$108 sps:$4 sm:$0xff]  }
  0x12   : > { %4055 = vmatprep.subr.bf16.mxu1 %v4587_v13  ;;  %v4611_v35 = vld [vmem:[%s5089_s6 + $0xc] ss:$108 sps:$4 sm:$0xff]   ;;  %2621 = vmatprep.mubr.bf16.mxu0 %v4608_v33  ;;  %v4619_v43 = vld [vmem:[%s5089_s6 + $0xdc] ss:$108 sps:$4 sm:$0xff]   ;;  %v4621_v44 = vld [vmem:[%s5089_s6 + $0xe4] ss:$108 sps:$4 sm:$0xff]  }
  0x13   : > { %2686 = vmatprep.mubr.bf16.mxu1 %v4611_v35  ;;  %v4616_v40 = vld [vmem:[%s5839_s1 + $0x148] sm:$0xff]   ;;  %v4624_v46 = vld [vmem:[%s5089_s6 + $0xd8] ss:$108 sps:$4 sm:$0xff]   ;;  %v4626_v48 = vld [vmem:[%s5839_s1 + $0x150] sm:$0xff]  }
  0x14   : > { %4016 = vmatpush3.bf16.msra.mxu0 %v4588_v14  ;;  %v4617_v41 = vld [vmem:[%s5839_s1 + $0x108] sm:$0xff]   ;;  %v4627_v49 = vld [vmem:[%s5839_s1 + $0x110] sm:$0xff]   ;;  %v4630_v52 = vld [vmem:[%s5839_s1 + $0x158] sm:$0xff]  }
  0x15   : > { %4056 = vmatpush3.bf16.msra.mxu1 %v4589_v15  ;;  %4017 = vmatprep.subr.bf16.mxu0 %v4590_v16  ;;  %v4618_v42 = vld [vmem:[%s5839_s1 + $0x1c8] sm:$0xff]   ;;  %v4628_v50 = vld [vmem:[%s5839_s1 + $0x1d0] sm:$0xff]   ;;  %v4631_v53 = vld [vmem:[%s5839_s1 + $0x118] sm:$0xff]  }
  0x16   : > { %4057 = vmatprep.subr.bf16.mxu1 %v4591_v17  ;;  %v4623_v45 = vld [vmem:[%s5839_s1 + $0x188] sm:$0xff]   ;;  %v4629_v51 = vld [vmem:[%s5839_s1 + $0x190] sm:$0xff]   ;;  %v4632_v54 = vld [vmem:[%s5839_s1 + $0x1d8] sm:$0xff]  }
  0x17   : > { %v4625_v47 = vld [vmem:[%s5089_s6 + $0xe0] ss:$108 sps:$4 sm:$0xff]   ;;  %v4635_v56 = vld [vmem:[%s5089_s6 + $0x1bc] ss:$108 sps:$4 sm:$0xff]   ;;  %v4639_v59 = vld [vmem:[%s5089_s6 + $0x1b8] ss:$108 sps:$4 sm:$0xff]  }
  0x18   : > { %4018 = vmatpush3.bf16.msra.mxu0 %v4592_v18  ;;  %v4633_v55 = vld [vmem:[%s5089_s6 + $0x1b4] ss:$108 sps:$4 sm:$0xff]   ;;  %v4637_v57 = vld [vmem:[%s5839_s1 + $0x198] sm:$0xff]   ;;  %v4644_v0 = vld [vmem:[%s5839_s1 + $0x168] sm:$0xff]  }
  0x19   : > { %4058 = vmatpush3.bf16.msra.mxu1 %v4593_v19  ;;  %4019 = vmatprep.subr.bf16.mxu0 %v4594_v20  ;;  %v4638_v58 = vld [vmem:[%s5089_s6 + $0x1b0] ss:$108 sps:$4 sm:$0xff]   ;;  %v4640_v60 = vld [vmem:[%s5839_s1 + $0x160] sm:$0xff]   ;;  %v4645_v1 = vld [vmem:[%s5839_s1 + $0x128] sm:$0xff]  }
  0x1a   : > { %4059 = vmatprep.subr.bf16.mxu1 %v4595_v21  ;;  %v4641_v61 = vld [vmem:[%s5839_s1 + $0x120] sm:$0xff]   ;;  %v4646_v2 = vld [vmem:[%s5839_s1 + $0x1e8] sm:$0xff]   ;;  %v4653_v7 = vld [vmem:[%s5089_s6 + $0x290] ss:$108 sps:$4 sm:$0xff]  }
  0x1b   : > { %v4642_v62 = vld [vmem:[%s5839_s1 + $0x1e0] sm:$0xff]   ;;  %v4647_v3 = vld [vmem:[%s5089_s6 + $0x28c] ss:$108 sps:$4 sm:$0xff]   ;;  %v4652_v6 = vld [vmem:[%s5089_s6 + $0x288] ss:$108 sps:$4 sm:$0xff]  }
  0x1c   : > { %4020 = vmatpush3.bf16.msra.mxu0 %v4596_v22  ;;  %v4643_v63 = vld [vmem:[%s5839_s1 + $0x1a0] sm:$0xff]   ;;  %v4651_v5 = vld [vmem:[%s5839_s1 + $0x1a8] sm:$0xff]   ;;  %v4654_v8 = vld [vmem:[%s5839_s1 + $0x170] sm:$0xff]  }
  0x1d   : > { %4060 = vmatpush3.bf16.msra.mxu1 %v4597_v23  ;;  %4021 = vmatprep.subr.bf16.mxu0 %v4598_v24  ;;  %v4649_v4 = vld [vmem:[%s5089_s6 + $0x294] ss:$108 sps:$4 sm:$0xff]   ;;  %v4658_v12 = vld [vmem:[%s5839_s1 + $0x178] sm:$0xff]   ;;  %v4672_v24 = vld [vmem:[%s5839_s1 + $0x248] sm:$0xff]  }
  0x1e   : > { %4061 = vmatprep.subr.bf16.mxu1 %v4599_v25  ;;  %v4655_v9 = vld [vmem:[%s5839_s1 + $0x130] sm:$0xff]   ;;  %v4659_v13 = vld [vmem:[%s5839_s1 + $0x138] sm:$0xff]   ;;  %v4665_v18 = vld [vmem:[%s5839_s1 + $0x240] sm:$0xff]  }
  0x1f   : > { %v4656_v10 = vld [vmem:[%s5839_s1 + $0x1f0] sm:$0xff]   ;;  %v4660_v14 = vld [vmem:[%s5839_s1 + $0x1f8] sm:$0xff]   ;;  %v4669_v21 = vld [vmem:[%s5839_s1 + $0x200] sm:$0xff]  }
  0x20   : > { %4022 = vmatpush3.bf16.msra.mxu0 %v4600_v26  ;;  %v4657_v11 = vld [vmem:[%s5839_s1 + $0x1b0] sm:$0xff]   ;;  %v4664_v17 = vld [vmem:[%s5839_s1 + $0x1b8] sm:$0xff]   ;;  %v4670_v22 = vld [vmem:[%s5839_s1 + $0x2c0] sm:$0xff]  }
  0x21   : > { %4062 = vmatpush3.bf16.msra.mxu1 %v4601_v27  ;;  %4023 = vmatprep.subr.bf16.mxu0 %v4602_v28  ;;  %v4661_v15 = vld [vmem:[%s5089_s6 + $0x10] ss:$108 sps:$4 sm:$0xff]   ;;  %v4663_v16 = vld [vmem:[%s5089_s6 + $0x14] ss:$108 sps:$4 sm:$0xff]   ;;  %v4666_v19 = vld [vmem:[%s5089_s6 + $0x18] ss:$108 sps:$4 sm:$0xff]  }
  0x22   : > { %4063 = vmatprep.subr.bf16.mxu1 %v4603_v29  ;;  %v4668_v20 = vld [vmem:[%s5089_s6 + $0x1c] ss:$108 sps:$4 sm:$0xff]   ;;  %v4671_v23 = vld [vmem:[%s5839_s1 + $0x280] sm:$0xff]   ;;  %v4675_v27 = vld [vmem:[%s5089_s6 + $0xec] ss:$108 sps:$4 sm:$0xff]  }
  0x23   : > { %v4673_v25 = vld [vmem:[%s5839_s1 + $0x208] sm:$0xff]   ;;  %v4683_v33 = vld [vmem:[%s5089_s6 + $0xf0] ss:$108 sps:$4 sm:$0xff]  }
  0x24   : > { %4024 = vmatpush3.bf16.msra.mxu0 %v4604_v30  ;;  %v4674_v26 = vld [vmem:[%s5839_s1 + $0x2c8] sm:$0xff]   ;;  %v4679_v30 = vld [vmem:[%s5839_s1 + $0x250] sm:$0xff]  }
  0x25   : > { %4064 = vmatpush3.bf16.msra.mxu1 %v4605_v31  ;;  %4089 = vmatprep.subr.bf16.mxu0 %v4612_v36  ;;  %v4677_v28 = vld [vmem:[%s5839_s1 + $0x288] sm:$0xff]   ;;  %v4680_v31 = vld [vmem:[%s5089_s6 + $0xf4] ss:$108 sps:$4 sm:$0xff]   ;;  %v4686_v36 = vld [vmem:[%s5839_s1 + $0x258] sm:$0xff]  }
  0x26   : > { %4129 = vmatprep.subr.bf16.mxu1 %v4614_v38  ;;  %v4678_v29 = vld [vmem:[%s5089_s6 + $0xe8] ss:$108 sps:$4 sm:$0xff]   ;;  %v4688_v38 = vld [vmem:[%s5839_s1 + $0x2d8] sm:$0xff]  }
  0x27   : > { %2622 = vmatmul.mubr.bf16.vlgmr.msra.gmra.mrb[0].mxu0 %v4606_v32  ;;  %v4682_v32 = vld [vmem:[%s5839_s1 + $0x210] sm:$0xff]  }
  0x28   : > { %2687 = vmatmul.mubr.bf16.vlgmr.msra.gmra.mrb[0].mxu1 %v4609_v34  ;;  %4090 = vmatpush3.bf16.msra.mxu0 %v4613_v37  ;;  %v4684_v34 = vld [vmem:[%s5839_s1 + $0x2d0] sm:$0xff]   ;;  %v4687_v37 = vld [vmem:[%s5839_s1 + $0x218] sm:$0xff]  }
  0x29   : > { %4130 = vmatpush3.bf16.msra.mxu1 %v4615_v39  ;;  %4091 = vmatprep.subr.bf16.mxu0 %v4616_v40  ;;  %v4685_v35 = vld [vmem:[%s5839_s1 + $0x290] sm:$0xff]   ;;  %v4691_v40 = vld [vmem:[%s5839_s1 + $0x298] sm:$0xff]  }
  0x2a   : > { %4131 = vmatprep.subr.bf16.mxu1 %v4618_v42  ;;  %2629 = vmatprep.mubr.bf16.mxu0 %v4619_v43  ;;  %v4689_v39 = vld [vmem:[%s5089_s6 + $0x1c4] ss:$108 sps:$4 sm:$0xff]   ;;  %v4694_v43 = vld [vmem:[%s5089_s6 + $0x1cc] ss:$108 sps:$4 sm:$0xff]  }
  0x2b   : > { %2694 = vmatprep.mubr.bf16.mxu1 %v4621_v44  ;;  %v4693_v42 = vld [vmem:[%s5839_s1 + $0x260] sm:$0xff]  }
  0x2c   : > { %4092 = vmatpush3.bf16.msra.mxu0 %v4617_v41  ;;  %v4692_v41 = vld [vmem:[%s5089_s6 + $0x1c0] ss:$108 sps:$4 sm:$0xff]  }
  0x2d   : > { %4132 = vmatpush3.bf16.msra.mxu1 %v4623_v45  ;;  %4093 = vmatprep.subr.bf16.mxu0 %v4626_v48  ;;  %v4696_v44 = vld [vmem:[%s5839_s1 + $0x220] sm:$0xff]   ;;  %v4697_v45 = vld [vmem:[%s5089_s6 + $0x1c8] ss:$108 sps:$4 sm:$0xff]  }
  0x2e   : > { %4133 = vmatprep.subr.bf16.mxu1 %v4628_v50  ;;  %v4700_v48 = vld [vmem:[%s5839_s1 + $0x268] sm:$0xff]  }
  0x2f   : > { %2630 = vmatmul.mubr.bf16.gmra.mrb[4].mxu0 %v4624_v46  ;;  %v4698_v46 = vld [vmem:[%s5839_s1 + $0x2e0] sm:$0xff]   ;;  %v4702_v50 = vld [vmem:[%s5839_s1 + $0x2e8] sm:$0xff]  }
  0x30   : > { %2695 = vmatmul.mubr.bf16.gmra.mrb[4].mxu1 %v4625_v47  ;;  %4094 = vmatpush3.bf16.msra.mxu0 %v4627_v49  ;;  %v4699_v47 = vld [vmem:[%s5839_s1 + $0x2a0] sm:$0xff]   ;;  %v4701_v49 = vld [vmem:[%s5839_s1 + $0x228] sm:$0xff]  }
  0x31   : > { %4134 = vmatpush3.bf16.msra.mxu1 %v4629_v51  ;;  %4095 = vmatprep.subr.bf16.mxu0 %v4630_v52  ;;  %v4703_v51 = vld [vmem:[%s5089_s6 + $0x29c] ss:$108 sps:$4 sm:$0xff]  }
  0x32   : > { %4135 = vmatprep.subr.bf16.mxu1 %v4632_v54  ;;  %2637 = vmatprep.mubr.bf16.mxu0 %v4633_v55  ;;  %v4705_v52 = vld [vmem:[%s5839_s1 + $0x2a8] sm:$0xff]   ;;  %v4707_v54 = vld [vmem:[%s5839_s1 + $0x270] sm:$0xff]  }
  0x33   : > { %2702 = vmatprep.mubr.bf16.mxu1 %v4635_v56  ;;  %v4708_v55 = vld [vmem:[%s5089_s6 + $0x2a4] ss:$108 sps:$4 sm:$0xff]  }
  0x34   : > { %4096 = vmatpush3.bf16.msra.mxu0 %v4631_v53  ;;  %v4706_v53 = vld [vmem:[%s5089_s6 + $0x298] ss:$108 sps:$4 sm:$0xff]   ;;  %v4710_v56 = vld [vmem:[%s5839_s1 + $0x230] sm:$0xff]  }
  0x35   : > { %4136 = vmatpush3.bf16.msra.mxu1 %v4637_v57  ;;  %4097 = vmatprep.subr.bf16.mxu0 %v4640_v60  ;;  %v4711_v57 = vld [vmem:[%s5089_s6 + $0x2a0] ss:$108 sps:$4 sm:$0xff]   ;;  %v4714_v60 = vld [vmem:[%s5839_s1 + $0x278] sm:$0xff]  }
  0x36   : > { %4137 = vmatprep.subr.bf16.mxu1 %v4642_v62  ;;  %v4716_v62 = vld [vmem:[%s5839_s1 + $0x2f8] sm:$0xff]  }
  0x37   : > { %2638 = vmatmul.mubr.bf16.gmra.mrb[8].mxu0 %v4638_v58  ;;  %v4712_v58 = vld [vmem:[%s5839_s1 + $0x2f0] sm:$0xff]  }
  0x38   : > { %2703 = vmatmul.mubr.bf16.gmra.mrb[8].mxu1 %v4639_v59  ;;  %4098 = vmatpush3.bf16.msra.mxu0 %v4641_v61  ;;  %v4713_v59 = vld [vmem:[%s5839_s1 + $0x2b0] sm:$0xff]   ;;  %v4715_v61 = vld [vmem:[%s5839_s1 + $0x238] sm:$0xff]  }
  0x39   : > { %4138 = vmatpush3.bf16.msra.mxu1 %v4643_v63  ;;  %4099 = vmatprep.subr.bf16.mxu0 %v4644_v0  ;;  %v4717_v63 = vld [vmem:[%s5089_s6 + $0x20] ss:$108 sps:$4 sm:$0xff]   ;;  %v4719_v0 = vld [vmem:[%s5089_s6 + $0x24] ss:$108 sps:$4 sm:$0xff]  }
  0x3a   : > { %4139 = vmatprep.subr.bf16.mxu1 %v4646_v2  ;;  %2645 = vmatprep.mubr.bf16.mxu0 %v4647_v3  ;;  %v4721_v2 = vld [vmem:[%s5839_s1 + $0x340] sm:$0xff]   ;;  %v4722_v3 = vld [vmem:[%s5089_s6 + $0x28] ss:$108 sps:$4 sm:$0xff]  }
  0x3b   : > { %2710 = vmatprep.mubr.bf16.mxu1 %v4649_v4  ;;  %v4724_v4 = vld [vmem:[%s5089_s6 + $0x2c] ss:$108 sps:$4 sm:$0xff]  }
  0x3c   : > { %4100 = vmatpush3.bf16.msra.mxu0 %v4645_v1  ;;  %v4720_v1 = vld [vmem:[%s5839_s1 + $0x2b8] sm:$0xff]  }
  0x3d   : > { %4140 = vmatpush3.bf16.msra.mxu1 %v4651_v5  ;;  %4101 = vmatprep.subr.bf16.mxu0 %v4654_v8  ;;  %v4725_v5 = vld [vmem:[%s5839_s1 + $0x300] sm:$0xff]   ;;  %v4728_v8 = vld [vmem:[%s5839_s1 + $0x348] sm:$0xff]  }
  0x3e   : > { %4141 = vmatprep.subr.bf16.mxu1 %v4656_v10  ;;  %v4730_v10 = vld [vmem:[%s5839_s1 + $0x3c8] sm:$0xff]  }
  0x3f   : > { %2646 = vmatmul.mubr.bf16.gmra.mrb[12].mxu0 %v4652_v6  ;;  %v4726_v6 = vld [vmem:[%s5839_s1 + $0x3c0] sm:$0xff]  }
  0x40   : > { %2711 = vmatmul.mubr.bf16.gmra.mrb[12].mxu1 %v4653_v7  ;;  %4102 = vmatpush3.bf16.msra.mxu0 %v4655_v9  ;;  %v4727_v7 = vld [vmem:[%s5839_s1 + $0x380] sm:$0xff]   ;;  %v4729_v9 = vld [vmem:[%s5839_s1 + $0x308] sm:$0xff]  }
  0x41   : > { %4142 = vmatpush3.bf16.msra.mxu1 %v4657_v11  ;;  %4103 = vmatprep.subr.bf16.mxu0 %v4658_v12  ;;  %v4731_v11 = vld [vmem:[%s5089_s6 + $0xfc] ss:$108 sps:$4 sm:$0xff]  }
  0x42   : > { %4143 = vmatprep.subr.bf16.mxu1 %v4660_v14  ;;  %2751 = vmatprep.mubr.bf16.mxu0 %v4663_v16  ;;  %v4733_v12 = vld [vmem:[%s5839_s1 + $0x388] sm:$0xff]   ;;  %v4735_v14 = vld [vmem:[%s5839_s1 + $0x350] sm:$0xff]  }
  0x43   : > { %2816 = vmatprep.mubr.bf16.mxu1 %v4668_v20  ;;  %v4738_v16 = vld [vmem:[%s5839_s1 + $0x310] sm:$0xff]   ;;  %v4742_v20 = vld [vmem:[%s5839_s1 + $0x358] sm:$0xff]  }
  0x44   : > { %4104 = vmatpush3.bf16.msra.mxu0 %v4659_v13  ;;  %v4734_v13 = vld [vmem:[%s5089_s6 + $0xf8] ss:$108 sps:$4 sm:$0xff]  }
  0x45   : > { %4144 = vmatpush3.bf16.msra.mxu1 %v4664_v17  ;;  %4169 = vmatprep.subr.bf16.mxu0 %v4665_v18  ;;  %v4739_v17 = vld [vmem:[%s5089_s6 + $0x100] ss:$108 sps:$4 sm:$0xff]   ;;  %v4740_v18 = vld [vmem:[%s5839_s1 + $0x3d0] sm:$0xff]  }
  0x46   : > { %4209 = vmatprep.subr.bf16.mxu1 %v4670_v22  ;;  %v4744_v22 = vld [vmem:[%s5839_s1 + $0x3d8] sm:$0xff]  }
  0x47   : > { %2752 = vmatmul.mubr.bf16.vlgmr.msra.gmra.mrb[16].mxu0 %v4661_v15  ;;  %v4736_v15 = vld [vmem:[%s5089_s6 + $0x104] ss:$108 sps:$4 sm:$0xff]  }
  0x48   : > { %4170 = vmatpush3.bf16.msra.mxu0 %v4669_v21  ;;  %2817 = vmatmul.mubr.bf16.vlgmr.msra.gmra.mrb[16].mxu1 %v4666_v19  ;;  %v4741_v19 = vld [vmem:[%s5839_s1 + $0x390] sm:$0xff]   ;;  %v4743_v21 = vld [vmem:[%s5839_s1 + $0x318] sm:$0xff]  }
  0x49   : > { %4210 = vmatpush3.bf16.msra.mxu1 %v4671_v23  ;;  %4171 = vmatprep.subr.bf16.mxu0 %v4672_v24  ;;  %v4745_v23 = vld [vmem:[%s5089_s6 + $0x1d4] ss:$108 sps:$4 sm:$0xff]   ;;  %v4747_v24 = vld [vmem:[%s5839_s1 + $0x398] sm:$0xff]  }
  0x4a   : > { %4211 = vmatprep.subr.bf16.mxu1 %v4674_v26  ;;  %2759 = vmatprep.mubr.bf16.mxu0 %v4675_v27  ;;  %v4749_v26 = vld [vmem:[%s5839_s1 + $0x360] sm:$0xff]   ;;  %v4750_v27 = vld [vmem:[%s5089_s6 + $0x1dc] ss:$108 sps:$4 sm:$0xff]  }
  0x4b   : > { %2824 = vmatprep.mubr.bf16.mxu1 %v4680_v31  ;;  %v4755_v31 = vld [vmem:[%s5839_s1 + $0x3a0] sm:$0xff]  }
  0x4c   : > { %4172 = vmatpush3.bf16.msra.mxu0 %v4673_v25  ;;  %v4748_v25 = vld [vmem:[%s5089_s6 + $0x1d0] ss:$108 sps:$4 sm:$0xff]  }
  0x4d   : > { %4212 = vmatpush3.bf16.msra.mxu1 %v4677_v28  ;;  %4173 = vmatprep.subr.bf16.mxu0 %v4679_v30  ;;  %v4752_v28 = vld [vmem:[%s5839_s1 + $0x320] sm:$0xff]  }
  0x4e   : > { %4213 = vmatprep.subr.bf16.mxu1 %v4684_v34  ;;  %v4754_v30 = vld [vmem:[%s5839_s1 + $0x3e0] sm:$0xff]   ;;  %v4758_v34 = vld [vmem:[%s5839_s1 + $0x3e8] sm:$0xff]  }
  0x4f   : > { %2760 = vmatmul.mubr.bf16.gmra.mrb[20].mxu0 %v4678_v29  ;;  %v4753_v29 = vld [vmem:[%s5089_s6 + $0x1d8] ss:$108 sps:$4 sm:$0xff]  }
  0x50   : > { %4174 = vmatpush3.bf16.msra.mxu0 %v4682_v32  ;;  %2825 = vmatmul.mubr.bf16.gmra.mrb[20].mxu1 %v4683_v33  ;;  %v4756_v32 = vld [vmem:[%s5839_s1 + $0x368] sm:$0xff]  }
  0x51   : > { %4214 = vmatpush3.bf16.msra.mxu1 %v4685_v35  ;;  %4175 = vmatprep.subr.bf16.mxu0 %v4686_v36  ;;  %v4757_v33 = vld [vmem:[%s5839_s1 + $0x328] sm:$0xff]  }
  0x52   : > { %4215 = vmatprep.subr.bf16.mxu1 %v4688_v38  ;;  %2767 = vmatprep.mubr.bf16.mxu0 %v4689_v39  ;;  %v4759_v35 = vld [vmem:[%s5089_s6 + $0x2ac] ss:$108 sps:$4 sm:$0xff]   ;;  %v4763_v38 = vld [vmem:[%s5839_s1 + $0x370] sm:$0xff]  }
  0x53   : > { %2832 = vmatprep.mubr.bf16.mxu1 %v4694_v43  ;;  %v4761_v36 = vld [vmem:[%s5839_s1 + $0x3a8] sm:$0xff]   ;;  %v4764_v39 = vld [vmem:[%s5089_s6 + $0x2b4] ss:$108 sps:$4 sm:$0xff]  }
  0x54   : > { %4176 = vmatpush3.bf16.msra.mxu0 %v4687_v37  ;;  %v4762_v37 = vld [vmem:[%s5089_s6 + $0x2a8] ss:$108 sps:$4 sm:$0xff]  }
  0x55   : > { %4216 = vmatpush3.bf16.msra.mxu1 %v4691_v40  ;;  %4177 = vmatprep.subr.bf16.mxu0 %v4693_v42  ;;  %v4766_v40 = vld [vmem:[%s5839_s1 + $0x330] sm:$0xff]  }
  0x56   : > { %4217 = vmatprep.subr.bf16.mxu1 %v4698_v46  ;;  %v4768_v42 = vld [vmem:[%s5839_s1 + $0x3f0] sm:$0xff]   ;;  %v4772_v46 = vld [vmem:[%s5839_s1 + $0x3f8] sm:$0xff]  }
  0x57   : > { %2768 = vmatmul.mubr.bf16.gmra.mrb[24].mxu0 %v4692_v41  ;;  %v4767_v41 = vld [vmem:[%s5089_s6 + $0x2b0] ss:$108 sps:$4 sm:$0xff]  }
  0x58   : > { %4178 = vmatpush3.bf16.msra.mxu0 %v4696_v44  ;;  %2833 = vmatmul.mubr.bf16.gmra.mrb[24].mxu1 %v4697_v45  ;;  %v4769_v43 = vld [vmem:[%s5839_s1 + $0x3b0] sm:$0xff]   ;;  %v4770_v44 = vld [vmem:[%s5839_s1 + $0x378] sm:$0xff]  }
  0x59   : > { %4218 = vmatpush3.bf16.msra.mxu1 %v4699_v47  ;;  %4179 = vmatprep.subr.bf16.mxu0 %v4700_v48  ;;  %v4771_v45 = vld [vmem:[%s5839_s1 + $0x338] sm:$0xff]   ;;  %v4775_v48 = vld [vmem:[%s5089_s6 + $0x34] ss:$108 sps:$4 sm:$0xff]  }
  0x5a   : > { %4219 = vmatprep.subr.bf16.mxu1 %v4702_v50  ;;  %2775 = vmatprep.mubr.bf16.mxu0 %v4703_v51  ;;  %v4773_v47 = vld [vmem:[%s5089_s6 + $0x30] ss:$108 sps:$4 sm:$0xff]   ;;  %v4777_v50 = vld [vmem:[%s5839_s1 + $0x440] sm:$0xff]  }
  0x5b   : > { %2840 = vmatprep.mubr.bf16.mxu1 %v4708_v55  ;;  %v4778_v51 = vld [vmem:[%s5089_s6 + $0x38] ss:$108 sps:$4 sm:$0xff]  }
  0x5c   : > { %4180 = vmatpush3.bf16.msra.mxu0 %v4701_v49  ;;  %v4776_v49 = vld [vmem:[%s5839_s1 + $0x3b8] sm:$0xff]   ;;  %v4783_v55 = vld [vmem:[%s5839_s1 + $0x480] sm:$0xff]  }
  0x5d   : > { %4220 = vmatpush3.bf16.msra.mxu1 %v4705_v52  ;;  %4181 = vmatprep.subr.bf16.mxu0 %v4707_v54  ;;  %v4780_v52 = vld [vmem:[%s5089_s6 + $0x3c] ss:$108 sps:$4 sm:$0xff]   ;;  %v4782_v54 = vld [vmem:[%s5839_s1 + $0x4c0] sm:$0xff]  }
  0x5e   : > { %4221 = vmatprep.subr.bf16.mxu1 %v4712_v58  ;;  %v4786_v58 = vld [vmem:[%s5839_s1 + $0x4c8] sm:$0xff]  }
  0x5f   : > { %2776 = vmatmul.mubr.bf16.gmra.mrb[28].mxu0 %v4706_v53  ;;  %v4781_v53 = vld [vmem:[%s5839_s1 + $0x400] sm:$0xff]  }
  0x60   : > { %4182 = vmatpush3.bf16.msra.mxu0 %v4710_v56  ;;  %2841 = vmatmul.mubr.bf16.gmra.mrb[28].mxu1 %v4711_v57  ;;  %v4784_v56 = vld [vmem:[%s5839_s1 + $0x448] sm:$0xff]  }
  0x61   : > { %4222 = vmatpush3.bf16.msra.mxu1 %v4713_v59  ;;  %4183 = vmatprep.subr.bf16.mxu0 %v4714_v60  ;;  %v4785_v57 = vld [vmem:[%s5839_s1 + $0x408] sm:$0xff]  }
  0x62   : > { %4223 = vmatprep.subr.bf16.mxu1 %v4716_v62  ;;  %2881 = vmatprep.mubr.bf16.mxu0 %v4719_v0  ;;  %v4787_v59 = vld [vmem:[%s5089_s6 + $0x10c] ss:$108 sps:$4 sm:$0xff]   ;;  %v4791_v62 = vld [vmem:[%s5839_s1 + $0x450] sm:$0xff]  }
  0x63   : > { %2946 = vmatprep.mubr.bf16.mxu1 %v4724_v4  ;;  %v4789_v60 = vld [vmem:[%s5839_s1 + $0x488] sm:$0xff]   ;;  %v4794_v0 = vld [vmem:[%s5839_s1 + $0x410] sm:$0xff]   ;;  %v4798_v4 = vld [vmem:[%s5839_s1 + $0x458] sm:$0xff]  }
  0x64   : > { %4184 = vmatpush3.bf16.msra.mxu0 %v4715_v61  ;;  %v4790_v61 = vld [vmem:[%s5089_s6 + $0x108] ss:$108 sps:$4 sm:$0xff]  }
  0x65   : > { %4224 = vmatpush3.bf16.msra.mxu1 %v4720_v1  ;;  %4249 = vmatprep.subr.bf16.mxu0 %v4721_v2  ;;  %v4795_v1 = vld [vmem:[%s5089_s6 + $0x110] ss:$108 sps:$4 sm:$0xff]  }
  0x66   : > { %4289 = vmatprep.subr.bf16.mxu1 %v4726_v6  ;;  %v4796_v2 = vld [vmem:[%s5839_s1 + $0x4d0] sm:$0xff]   ;;  %v4800_v6 = vld [vmem:[%s5839_s1 + $0x4d8] sm:$0xff]  }
  0x67   : > { %2882 = vmatmul.mubr.bf16.vlgmr.msra.gmra.mrb[32].mxu0 %v4717_v63  ;;  %v4792_v63 = vld [vmem:[%s5089_s6 + $0x114] ss:$108 sps:$4 sm:$0xff]  }
  0x68   : > { %4250 = vmatpush3.bf16.msra.mxu0 %v4725_v5  ;;  %2947 = vmatmul.mubr.bf16.vlgmr.msra.gmra.mrb[32].mxu1 %v4722_v3  ;;  %v4797_v3 = vld [vmem:[%s5839_s1 + $0x490] sm:$0xff]   ;;  %v4799_v5 = vld [vmem:[%s5839_s1 + $0x418] sm:$0xff]  }
  0x69   : > { %4290 = vmatpush3.bf16.msra.mxu1 %v4727_v7  ;;  %4251 = vmatprep.subr.bf16.mxu0 %v4728_v8  ;;  %v4801_v7 = vld [vmem:[%s5089_s6 + $0x1e4] ss:$108 sps:$4 sm:$0xff]   ;;  %v4803_v8 = vld [vmem:[%s5839_s1 + $0x498] sm:$0xff]  }
  0x6a   : > { %4291 = vmatprep.subr.bf16.mxu1 %v4730_v10  ;;  %2889 = vmatprep.mubr.bf16.mxu0 %v4731_v11  ;;  %v4805_v10 = vld [vmem:[%s5839_s1 + $0x460] sm:$0xff]   ;;  %v4806_v11 = vld [vmem:[%s5089_s6 + $0x1ec] ss:$108 sps:$4 sm:$0xff]  }
  0x6b   : > { %2954 = vmatprep.mubr.bf16.mxu1 %v4736_v15  ;;  %v4811_v15 = vld [vmem:[%s5839_s1 + $0x4a0] sm:$0xff]  }
  0x6c   : > { %4252 = vmatpush3.bf16.msra.mxu0 %v4729_v9  ;;  %v4804_v9 = vld [vmem:[%s5089_s6 + $0x1e0] ss:$108 sps:$4 sm:$0xff]  }
  0x6d   : > { %4292 = vmatpush3.bf16.msra.mxu1 %v4733_v12  ;;  %4253 = vmatprep.subr.bf16.mxu0 %v4735_v14  ;;  %v4808_v12 = vld [vmem:[%s5839_s1 + $0x420] sm:$0xff]  }
  0x6e   : > { %4293 = vmatprep.subr.bf16.mxu1 %v4740_v18  ;;  %v4810_v14 = vld [vmem:[%s5839_s1 + $0x4e0] sm:$0xff]   ;;  %v4814_v18 = vld [vmem:[%s5839_s1 + $0x4e8] sm:$0xff]  }
  0x6f   : > { %2890 = vmatmul.mubr.bf16.gmra.mrb[36].mxu0 %v4734_v13  ;;  %v4809_v13 = vld [vmem:[%s5089_s6 + $0x1e8] ss:$108 sps:$4 sm:$0xff]  }
  0x70   : > { %4254 = vmatpush3.bf16.msra.mxu0 %v4738_v16  ;;  %2955 = vmatmul.mubr.bf16.gmra.mrb[36].mxu1 %v4739_v17  ;;  %v4812_v16 = vld [vmem:[%s5839_s1 + $0x468] sm:$0xff]  }
  0x71   : > { %4294 = vmatpush3.bf16.msra.mxu1 %v4741_v19  ;;  %4255 = vmatprep.subr.bf16.mxu0 %v4742_v20  ;;  %v4813_v17 = vld [vmem:[%s5839_s1 + $0x428] sm:$0xff]  }
  0x72   : > { %4295 = vmatprep.subr.bf16.mxu1 %v4744_v22  ;;  %2897 = vmatprep.mubr.bf16.mxu0 %v4745_v23  ;;  %v4815_v19 = vld [vmem:[%s5089_s6 + $0x2bc] ss:$108 sps:$4 sm:$0xff]   ;;  %v4819_v22 = vld [vmem:[%s5839_s1 + $0x470] sm:$0xff]  }
  0x73   : > { %2962 = vmatprep.mubr.bf16.mxu1 %v4750_v27  ;;  %v4817_v20 = vld [vmem:[%s5839_s1 + $0x4a8] sm:$0xff]   ;;  %v4820_v23 = vld [vmem:[%s5089_s6 + $0x2c4] ss:$108 sps:$4 sm:$0xff]  }
  0x74   : > { %4256 = vmatpush3.bf16.msra.mxu0 %v4743_v21  ;;  %v4818_v21 = vld [vmem:[%s5089_s6 + $0x2b8] ss:$108 sps:$4 sm:$0xff]   ;;  %v4825_v27 = vld [vmem:[%s5839_s1 + $0x4b0] sm:$0xff]  }
  0x75   : > { %4296 = vmatpush3.bf16.msra.mxu1 %v4747_v24  ;;  %4257 = vmatprep.subr.bf16.mxu0 %v4749_v26  ;;  %v4822_v24 = vld [vmem:[%s5839_s1 + $0x430] sm:$0xff]  }
  0x76   : > { %4297 = vmatprep.subr.bf16.mxu1 %v4754_v30  ;;  %v4824_v26 = vld [vmem:[%s5839_s1 + $0x4f0] sm:$0xff]   ;;  %v4828_v30 = vld [vmem:[%s5839_s1 + $0x4f8] sm:$0xff]  }
  0x77   : > { %2898 = vmatmul.mubr.bf16.gmra.mrb[40].mxu0 %v4748_v25  ;;  %v4823_v25 = vld [vmem:[%s5089_s6 + $0x2c0] ss:$108 sps:$4 sm:$0xff]  }
  0x78   : > { %4258 = vmatpush3.bf16.msra.mxu0 %v4752_v28  ;;  %2963 = vmatmul.mubr.bf16.gmra.mrb[40].mxu1 %v4753_v29  ;;  %v4826_v28 = vld [vmem:[%s5839_s1 + $0x478] sm:$0xff]  }
  0x79   : > { %4298 = vmatpush3.bf16.msra.mxu1 %v4755_v31  ;;  %4259 = vmatprep.subr.bf16.mxu0 %v4756_v32  ;;  %v4827_v29 = vld [vmem:[%s5839_s1 + $0x438] sm:$0xff]   ;;  %v4829_v31 = vld [vmem:[%s5089_s6 + $0x40] ss:$108 sps:$4 sm:$0xff]   ;;  %v4831_v32 = vld [vmem:[%s5089_s6 + $0x44] ss:$108 sps:$4 sm:$0xff]  }
  0x7a   : > { %4299 = vmatprep.subr.bf16.mxu1 %v4758_v34  ;;  %2905 = vmatprep.mubr.bf16.mxu0 %v4759_v35  ;;  %v4833_v34 = vld [vmem:[%s5839_s1 + $0x540] sm:$0xff]   ;;  %v4834_v35 = vld [vmem:[%s5089_s6 + $0x48] ss:$108 sps:$4 sm:$0xff]  }
  0x7b   : > { %2970 = vmatprep.mubr.bf16.mxu1 %v4764_v39  ;;  %v4839_v39 = vld [vmem:[%s5839_s1 + $0x580] sm:$0xff]  }
  0x7c   : > { %4260 = vmatpush3.bf16.msra.mxu0 %v4757_v33  ;;  %v4832_v33 = vld [vmem:[%s5839_s1 + $0x4b8] sm:$0xff]  }
  0x7d   : > { %4300 = vmatpush3.bf16.msra.mxu1 %v4761_v36  ;;  %4261 = vmatprep.subr.bf16.mxu0 %v4763_v38  ;;  %v4836_v36 = vld [vmem:[%s5089_s6 + $0x4c] ss:$108 sps:$4 sm:$0xff]   ;;  %v4838_v38 = vld [vmem:[%s5839_s1 + $0x5c0] sm:$0xff]  }
  0x7e   : > { %4301 = vmatprep.subr.bf16.mxu1 %v4768_v42  ;;  %v4842_v42 = vld [vmem:[%s5839_s1 + $0x5c8] sm:$0xff]  }
  0x7f   : > { %2906 = vmatmul.mubr.bf16.gmra.mrb[44].mxu0 %v4762_v37  ;;  %v4837_v37 = vld [vmem:[%s5839_s1 + $0x500] sm:$0xff]  }
  0x80   : > { %4262 = vmatpush3.bf16.msra.mxu0 %v4766_v40  ;;  %2971 = vmatmul.mubr.bf16.gmra.mrb[44].mxu1 %v4767_v41  ;;  %v4840_v40 = vld [vmem:[%s5839_s1 + $0x548] sm:$0xff]  }
  0x81   : > { %4302 = vmatpush3.bf16.msra.mxu1 %v4769_v43  ;;  %4263 = vmatprep.subr.bf16.mxu0 %v4770_v44  ;;  %v4841_v41 = vld [vmem:[%s5839_s1 + $0x508] sm:$0xff]  }
  0x82   : > { %4303 = vmatprep.subr.bf16.mxu1 %v4772_v46  ;;  %3011 = vmatprep.mubr.bf16.mxu0 %v4775_v48  ;;  %v4843_v43 = vld [vmem:[%s5089_s6 + $0x11c] ss:$108 sps:$4 sm:$0xff]   ;;  %v4847_v46 = vld [vmem:[%s5839_s1 + $0x550] sm:$0xff]  }
  0x83   : > { %3076 = vmatprep.mubr.bf16.mxu1 %v4780_v52  ;;  %v4845_v44 = vld [vmem:[%s5839_s1 + $0x588] sm:$0xff]   ;;  %v4850_v48 = vld [vmem:[%s5839_s1 + $0x510] sm:$0xff]   ;;  %v4854_v52 = vld [vmem:[%s5839_s1 + $0x558] sm:$0xff]  }
  0x84   : > { %4264 = vmatpush3.bf16.msra.mxu0 %v4771_v45  ;;  %v4846_v45 = vld [vmem:[%s5089_s6 + $0x118] ss:$108 sps:$4 sm:$0xff]  }
  0x85   : > { %4304 = vmatpush3.bf16.msra.mxu1 %v4776_v49  ;;  %4329 = vmatprep.subr.bf16.mxu0 %v4777_v50  ;;  %v4851_v49 = vld [vmem:[%s5089_s6 + $0x120] ss:$108 sps:$4 sm:$0xff]   ;;  %v4852_v50 = vld [vmem:[%s5839_s1 + $0x5d0] sm:$0xff]  }
  0x86   : > { %4369 = vmatprep.subr.bf16.mxu1 %v4782_v54  ;;  %v4856_v54 = vld [vmem:[%s5839_s1 + $0x5d8] sm:$0xff]  }
  0x87   : > { %3012 = vmatmul.mubr.bf16.vlgmr.msra.gmra.mrb[48].mxu0 %v4773_v47  ;;  %v4848_v47 = vld [vmem:[%s5089_s6 + $0x124] ss:$108 sps:$4 sm:$0xff]  }
  0x88   : > { %4330 = vmatpush3.bf16.msra.mxu0 %v4781_v53  ;;  %3077 = vmatmul.mubr.bf16.vlgmr.msra.gmra.mrb[48].mxu1 %v4778_v51  ;;  %v4853_v51 = vld [vmem:[%s5839_s1 + $0x590] sm:$0xff]   ;;  %v4855_v53 = vld [vmem:[%s5839_s1 + $0x518] sm:$0xff]  }
  0x89   : > { %4370 = vmatpush3.bf16.msra.mxu1 %v4783_v55  ;;  %4331 = vmatprep.subr.bf16.mxu0 %v4784_v56  ;;  %v4857_v55 = vld [vmem:[%s5089_s6 + $0x1f4] ss:$108 sps:$4 sm:$0xff]   ;;  %v4859_v56 = vld [vmem:[%s5839_s1 + $0x598] sm:$0xff]  }
  0x8a   : > { %4371 = vmatprep.subr.bf16.mxu1 %v4786_v58  ;;  %3019 = vmatprep.mubr.bf16.mxu0 %v4787_v59  ;;  %v4861_v58 = vld [vmem:[%s5839_s1 + $0x560] sm:$0xff]   ;;  %v4862_v59 = vld [vmem:[%s5089_s6 + $0x1fc] ss:$108 sps:$4 sm:$0xff]  }
  0x8b   : > { %3084 = vmatprep.mubr.bf16.mxu1 %v4792_v63  ;;  %v4867_v63 = vld [vmem:[%s5839_s1 + $0x5a0] sm:$0xff]  }
  0x8c   : > { %4332 = vmatpush3.bf16.msra.mxu0 %v4785_v57  ;;  %v4860_v57 = vld [vmem:[%s5089_s6 + $0x1f0] ss:$108 sps:$4 sm:$0xff]  }
  0x8d   : > { %4372 = vmatpush3.bf16.msra.mxu1 %v4789_v60  ;;  %4333 = vmatprep.subr.bf16.mxu0 %v4791_v62  ;;  %v4864_v60 = vld [vmem:[%s5839_s1 + $0x520] sm:$0xff]  }
  0x8e   : > { %4373 = vmatprep.subr.bf16.mxu1 %v4796_v2  ;;  %v4866_v62 = vld [vmem:[%s5839_s1 + $0x5e0] sm:$0xff]   ;;  %v4870_v2 = vld [vmem:[%s5839_s1 + $0x5e8] sm:$0xff]  }
  0x8f   : > { %3020 = vmatmul.mubr.bf16.gmra.mrb[52].mxu0 %v4790_v61  ;;  %v4865_v61 = vld [vmem:[%s5089_s6 + $0x1f8] ss:$108 sps:$4 sm:$0xff]  }
  0x90   : > { %4334 = vmatpush3.bf16.msra.mxu0 %v4794_v0  ;;  %3085 = vmatmul.mubr.bf16.gmra.mrb[52].mxu1 %v4795_v1  ;;  %v4868_v0 = vld [vmem:[%s5839_s1 + $0x568] sm:$0xff]  }
  0x91   : > { %4374 = vmatpush3.bf16.msra.mxu1 %v4797_v3  ;;  %4335 = vmatprep.subr.bf16.mxu0 %v4798_v4  ;;  %v4869_v1 = vld [vmem:[%s5839_s1 + $0x528] sm:$0xff]  }
  0x92   : > { %4375 = vmatprep.subr.bf16.mxu1 %v4800_v6  ;;  %3027 = vmatprep.mubr.bf16.mxu0 %v4801_v7  ;;  %v4871_v3 = vld [vmem:[%s5089_s6 + $0x2cc] ss:$108 sps:$4 sm:$0xff]   ;;  %v4875_v6 = vld [vmem:[%s5839_s1 + $0x570] sm:$0xff]  }
  0x93   : > { %3092 = vmatprep.mubr.bf16.mxu1 %v4806_v11  ;;  %v4873_v4 = vld [vmem:[%s5839_s1 + $0x5a8] sm:$0xff]   ;;  %v4876_v7 = vld [vmem:[%s5089_s6 + $0x2d4] ss:$108 sps:$4 sm:$0xff]  }
  0x94   : > { %4336 = vmatpush3.bf16.msra.mxu0 %v4799_v5  ;;  %v4874_v5 = vld [vmem:[%s5089_s6 + $0x2c8] ss:$108 sps:$4 sm:$0xff]  }
  0x95   : > { %4376 = vmatpush3.bf16.msra.mxu1 %v4803_v8  ;;  %4337 = vmatprep.subr.bf16.mxu0 %v4805_v10  ;;  %v4878_v8 = vld [vmem:[%s5839_s1 + $0x530] sm:$0xff]  }
  0x96   : > { %4377 = vmatprep.subr.bf16.mxu1 %v4810_v14  ;;  %v4880_v10 = vld [vmem:[%s5839_s1 + $0x5f0] sm:$0xff]   ;;  %v4884_v14 = vld [vmem:[%s5839_s1 + $0x5f8] sm:$0xff]  }
  0x97   : > { %3028 = vmatmul.mubr.bf16.gmra.mrb[56].mxu0 %v4804_v9  ;;  %v4879_v9 = vld [vmem:[%s5089_s6 + $0x2d0] ss:$108 sps:$4 sm:$0xff]  }
  0x98   : > { %4338 = vmatpush3.bf16.msra.mxu0 %v4808_v12  ;;  %3093 = vmatmul.mubr.bf16.gmra.mrb[56].mxu1 %v4809_v13  ;;  %v4881_v11 = vld [vmem:[%s5839_s1 + $0x5b0] sm:$0xff]   ;;  %v4882_v12 = vld [vmem:[%s5839_s1 + $0x578] sm:$0xff]  }
  0x99   : > { %4378 = vmatpush3.bf16.msra.mxu1 %v4811_v15  ;;  %4339 = vmatprep.subr.bf16.mxu0 %v4812_v16  ;;  %v4883_v13 = vld [vmem:[%s5839_s1 + $0x538] sm:$0xff]   ;;  %v4887_v16 = vld [vmem:[%s5089_s6 + $0x54] ss:$108 sps:$4 sm:$0xff]  }
  0x9a   : > { %4379 = vmatprep.subr.bf16.mxu1 %v4814_v18  ;;  %3035 = vmatprep.mubr.bf16.mxu0 %v4815_v19  ;;  %v4885_v15 = vld [vmem:[%s5089_s6 + $0x50] ss:$108 sps:$4 sm:$0xff]   ;;  %v4889_v18 = vld [vmem:[%s5839_s1 + $0x640] sm:$0xff]  }
  0x9b   : > { %3100 = vmatprep.mubr.bf16.mxu1 %v4820_v23  ;;  %v4893_v23 = vld [vmem:[%s5839_s1 + $0x600] sm:$0xff]  }
  0x9c   : > { %4340 = vmatpush3.bf16.msra.mxu0 %v4813_v17  ;;  %v4888_v17 = vld [vmem:[%s5839_s1 + $0x5b8] sm:$0xff]  }
  0x9d   : > { %4380 = vmatpush3.bf16.msra.mxu1 %v4817_v20  ;;  %4341 = vmatprep.subr.bf16.mxu0 %v4819_v22  ;;  %v4890_v20 = vld [vmem:[%s5089_s6 + $0x58] ss:$108 sps:$4 sm:$0xff]  }
  0x9e   : > { %4381 = vmatprep.subr.bf16.mxu1 %v4824_v26 }
  0x9f   : > { %3036 = vmatmul.mubr.bf16.gmra.mrb[60].mxu0 %v4818_v21  ;;  %v4892_v21 = vld [vmem:[%s5089_s6 + $0x5c] ss:$108 sps:$4 sm:$0xff]  }
  0xa0   : > { %4342 = vmatpush3.bf16.msra.mxu0 %v4822_v24  ;;  %3101 = vmatmul.mubr.bf16.gmra.mrb[60].mxu1 %v4823_v25  ;;  %v4894_v25 = vld [vmem:[%s5839_s1 + $0x648] sm:$0xff]  }
  0xa1   : > { %4382 = vmatpush3.bf16.msra.mxu1 %v4825_v27  ;;  %4343 = vmatprep.subr.bf16.mxu0 %v4826_v28  ;;  %v4895_v28 = vld [vmem:[%s5839_s1 + $0x680] sm:$0xff]  }
  0xa2   : > { %4383 = vmatprep.subr.bf16.mxu1 %v4828_v30  ;;  %3141 = vmatprep.mubr.bf16.mxu0 %v4831_v32 }
  0xa3   : > { %3206 = vmatprep.mubr.bf16.mxu1 %v4836_v36 }
  0xa4   : > { %4344 = vmatpush3.bf16.msra.mxu0 %v4827_v29 }
  0xa5   : > { %4384 = vmatpush3.bf16.msra.mxu1 %v4832_v33  ;;  %4409 = vmatprep.subr.bf16.mxu0 %v4833_v34  ;;  %v4897_v33 = vld [vmem:[%s5089_s6 + $0x12c] ss:$108 sps:$4 sm:$0xff]  }
  0xa6   : > { %4449 = vmatprep.subr.bf16.mxu1 %v4838_v38 }
  0xa7   : > { %3142 = vmatmul.mubr.bf16.vlgmr.msra.gmra.mrb[64].mxu0 %v4829_v31  ;;  %v4896_v31 = vld [vmem:[%s5839_s1 + $0x608] sm:$0xff]  }
  0xa8   : > { %4410 = vmatpush3.bf16.msra.mxu0 %v4837_v37  ;;  %3207 = vmatmul.mubr.bf16.vlgmr.msra.gmra.mrb[64].mxu1 %v4834_v35  ;;  %v4899_v37 = vld [vmem:[%s5089_s6 + $0x128] ss:$108 sps:$4 sm:$0xff]  }
  0xa9   : > { %4450 = vmatpush3.bf16.msra.mxu1 %v4839_v39  ;;  %4411 = vmatprep.subr.bf16.mxu0 %v4840_v40  ;;  %v4900_v40 = vld [vmem:[%s5839_s1 + $0x650] sm:$0xff]  }
  0xaa   : > { %4451 = vmatprep.subr.bf16.mxu1 %v4842_v42  ;;  %3149 = vmatprep.mubr.bf16.mxu0 %v4843_v43  ;;  %v4902_v43 = vld [vmem:[%s5089_s6 + $0x134] ss:$108 sps:$4 sm:$0xff]  }
  0xab   : > { %3214 = vmatprep.mubr.bf16.mxu1 %v4848_v47  ;;  %v4906_v47 = vld [vmem:[%s5839_s1 + $0x658] sm:$0xff]  }
  0xac   : > { %4412 = vmatpush3.bf16.msra.mxu0 %v4841_v41  ;;  %v4901_v41 = vld [vmem:[%s5839_s1 + $0x688] sm:$0xff]  }
  0xad   : > { %4452 = vmatpush3.bf16.msra.mxu1 %v4845_v44  ;;  %4413 = vmatprep.subr.bf16.mxu0 %v4847_v46  ;;  %v4904_v44 = vld [vmem:[%s5839_s1 + $0x610] sm:$0xff]  }
  0xae   : > { %4453 = vmatprep.subr.bf16.mxu1 %v4852_v50 }
  0xaf   : > { %3150 = vmatmul.mubr.bf16.gmra.mrb[68].mxu0 %v4846_v45  ;;  %v4905_v45 = vld [vmem:[%s5089_s6 + $0x130] ss:$108 sps:$4 sm:$0xff]  }
  0xb0   : > { %4414 = vmatpush3.bf16.msra.mxu0 %v4850_v48  ;;  %3215 = vmatmul.mubr.bf16.gmra.mrb[68].mxu1 %v4851_v49  ;;  %v4907_v49 = vld [vmem:[%s5839_s1 + $0x690] sm:$0xff]  }
  0xb1   : > { %4454 = vmatpush3.bf16.msra.mxu1 %v4853_v51  ;;  %4415 = vmatprep.subr.bf16.mxu0 %v4854_v52  ;;  %v4908_v51 = vld [vmem:[%s5839_s1 + $0x618] sm:$0xff]  }
  0xb2   : > { %4455 = vmatprep.subr.bf16.mxu1 %v4856_v54  ;;  %3157 = vmatprep.mubr.bf16.mxu0 %v4857_v55  ;;  %v4909_v55 = vld [vmem:[%s5089_s6 + $0x204] ss:$108 sps:$4 sm:$0xff]  }
  0xb3   : > { %3222 = vmatprep.mubr.bf16.mxu1 %v4862_v59  ;;  %v4912_v59 = vld [vmem:[%s5839_s1 + $0x660] sm:$0xff]  }
  0xb4   : > { %4416 = vmatpush3.bf16.msra.mxu0 %v4855_v53 }
  0xb5   : > { %4456 = vmatpush3.bf16.msra.mxu1 %v4859_v56  ;;  %4417 = vmatprep.subr.bf16.mxu0 %v4861_v58  ;;  %v4911_v56 = vld [vmem:[%s5089_s6 + $0x200] ss:$108 sps:$4 sm:$0xff]  }
  0xb6   : > { %4457 = vmatprep.subr.bf16.mxu1 %v4866_v62 }
  0xb7   : > { %3158 = vmatmul.mubr.bf16.gmra.mrb[72].mxu0 %v4860_v57 }
  0xb8   : > { %4418 = vmatpush3.bf16.msra.mxu0 %v4864_v60  ;;  %3223 = vmatmul.mubr.bf16.gmra.mrb[72].mxu1 %v4865_v61  ;;  %v4913_v61 = vld [vmem:[%s5839_s1 + $0x698] sm:$0xff]  }
  0xb9   : > { %4458 = vmatpush3.bf16.msra.mxu1 %v4867_v63  ;;  %4419 = vmatprep.subr.bf16.mxu0 %v4868_v0 }
  0xba   : > { %4459 = vmatprep.subr.bf16.mxu1 %v4870_v2  ;;  %3165 = vmatprep.mubr.bf16.mxu0 %v4871_v3  ;;  %v4916_v3 = vld [vmem:[%s5839_s1 + $0x620] sm:$0xff]  }
  0xbb   : > { %3230 = vmatprep.mubr.bf16.mxu1 %v4876_v7 }
  0xbc   : > { %4420 = vmatpush3.bf16.msra.mxu0 %v4869_v1  ;;  %v4914_v1 = vld [vmem:[%s5089_s6 + $0x20c] ss:$108 sps:$4 sm:$0xff]  }
  0xbd   : > { %4460 = vmatpush3.bf16.msra.mxu1 %v4873_v4  ;;  %4421 = vmatprep.subr.bf16.mxu0 %v4875_v6  ;;  %v4917_v4 = vld [vmem:[%s5089_s6 + $0x208] ss:$108 sps:$4 sm:$0xff]  }
  0xbe   : > { %4461 = vmatprep.subr.bf16.mxu1 %v4880_v10  ;;  %v4918_v6 = vld [vmem:[%s5839_s1 + $0x668] sm:$0xff]  }
  0xbf   : > { %3166 = vmatmul.mubr.bf16.gmra.mrb[76].mxu0 %v4874_v5  ;;  %v4920_v10 = vld [vmem:[%s5839_s1 + $0x628] sm:$0xff]  }
  0xc0   : > { %4422 = vmatpush3.bf16.msra.mxu0 %v4878_v8  ;;  %3231 = vmatmul.mubr.bf16.gmra.mrb[76].mxu1 %v4879_v9  ;;  %v4919_v8 = vld [vmem:[%s5839_s1 + $0x6a0] sm:$0xff]  }
  0xc1   : > { %4462 = vmatpush3.bf16.msra.mxu1 %v4881_v11  ;;  %4423 = vmatprep.subr.bf16.mxu0 %v4882_v12 }
  0xc2   : > { %4463 = vmatprep.subr.bf16.mxu1 %v4884_v14  ;;  %3271 = vmatprep.mubr.bf16.mxu0 %v4887_v16  ;;  %v4923_v14 = vld [vmem:[%s5089_s6 + $0x2d8] ss:$108 sps:$4 sm:$0xff]  }
  0xc3   : > { %3336 = vmatprep.mubr.bf16.mxu1 %v4892_v21 }
  0xc4   : > { %4424 = vmatpush3.bf16.msra.mxu0 %v4883_v13  ;;  %v4921_v13 = vld [vmem:[%s5089_s6 + $0x2dc] ss:$108 sps:$4 sm:$0xff]  }
  0xc5   : > { %4464 = vmatpush3.bf16.msra.mxu1 %v4888_v17  ;;  %4489 = vmatprep.subr.bf16.mxu0 %v4889_v18  ;;  %v4924_v17 = vld [vmem:[%s5839_s1 + $0x670] sm:$0xff]  }
  0xc6   : > { %4541 = vmatprep.subr.bf16.mxu1 %v4895_v28 }
  0xc7   : > { %3272 = vmatmul.mubr.bf16.vlgmr.msra.gmra.mrb[80].mxu0 %v4885_v15 }
  0xc8   : > { %4490 = vmatpush3.bf16.msra.mxu0 %v4893_v23  ;;  %3337 = vmatmul.mubr.bf16.vlgmr.msra.gmra.mrb[80].mxu1 %v4890_v20  ;;  %v4926_v23 = vld [vmem:[%s5089_s6 + $0x2e4] ss:$108 sps:$4 sm:$0xff]  }
  0xc9   : > { %4491 = vmatprep.subr.bf16.mxu0 %v4894_v25  ;;  %4542 = vmatpush3.bf16.msra.mxu1 %v4895_v28 }
  0xca   : > { %3279 = vmatprep.mubr.bf16.mxu0 %v4897_v33  ;;  %4543 = vmatprep.subr.bf16.mxu1 %v4901_v41  ;;  %v4933_v33 = vld [vmem:[%s5089_s6 + $0x60] ss:$108 sps:$4 sm:$0xff]  }
  0xcb   : > { %3344 = vmatprep.mubr.bf16.mxu1 %v4902_v43  ;;  %v4938_v43 = vld [vmem:[%s5089_s6 + $0x140] ss:$108 sps:$4 sm:$0xff]  }
  0xcc   : > { %4492 = vmatpush3.bf16.msra.mxu0 %v4896_v31 }
  0xcd   : > { %4493 = vmatprep.subr.bf16.mxu0 %v4900_v40  ;;  %4544 = vmatpush3.bf16.msra.mxu1 %v4901_v41  ;;  %v4937_v40 = vld [vmem:[%s5089_s6 + $0x68] ss:$108 sps:$4 sm:$0xff]  }
  0xce   : > { %4545 = vmatprep.subr.bf16.mxu1 %v4907_v49 }
  0xcf   : > { %3280 = vmatmul.mubr.bf16.gmra.mrb[84].mxu0 %v4899_v37  ;;  %v4935_v37 = vld [vmem:[%s5089_s6 + $0x64] ss:$108 sps:$4 sm:$0xff]  }
  0xd0   : > { %4494 = vmatpush3.bf16.msra.mxu0 %v4904_v44  ;;  %3345 = vmatmul.mubr.bf16.gmra.mrb[84].mxu1 %v4905_v45 }
  0xd1   : > { %4495 = vmatprep.subr.bf16.mxu0 %v4906_v47  ;;  %4546 = vmatpush3.bf16.msra.mxu1 %v4907_v49 }
  0xd2   : > { %3287 = vmatprep.mubr.bf16.mxu0 %v4909_v55  ;;  %4547 = vmatprep.subr.bf16.mxu1 %v4913_v61 }
  0xd3   : > { %3352 = vmatprep.mubr.bf16.mxu1 %v4914_v1 }
  0xd4   : > { %4496 = vmatpush3.bf16.msra.mxu0 %v4908_v51 }
  0xd5   : > { %4497 = vmatprep.subr.bf16.mxu0 %v4912_v59  ;;  %4548 = vmatpush3.bf16.msra.mxu1 %v4913_v61  ;;  %v4946_v61 = vld [vmem:[%s5089_s6 + $0x2f0] ss:$108 sps:$4 sm:$0xff]  }
  0xd6   : > { %4549 = vmatprep.subr.bf16.mxu1 %v4919_v8 }
  0xd7   : > { %3288 = vmatmul.mubr.bf16.gmra.mrb[88].mxu0 %v4911_v56  ;;  %v4942_v56 = vld [vmem:[%s5089_s6 + $0x214] ss:$108 sps:$4 sm:$0xff]  }
  0xd8   : > { %4498 = vmatpush3.bf16.msra.mxu0 %v4916_v3  ;;  %3353 = vmatmul.mubr.bf16.gmra.mrb[88].mxu1 %v4917_v4 }
  0xd9   : > { %4499 = vmatprep.subr.bf16.mxu0 %v4918_v6  ;;  %4550 = vmatpush3.bf16.msra.mxu1 %v4919_v8 }
  0xda   : > { %3295 = vmatprep.mubr.bf16.mxu0 %v4921_v13  ;;  %3360 = vmatprep.mubr.bf16.mxu1 %v4926_v23  ;;  %v4947_v13 = vld [vmem:[%s5089_s6 + $0x2ec] ss:$108 sps:$4 sm:$0xff]   ;;  %v4949_v23 = vld [vmem:[%s5089_s6 + $0x2e8] ss:$108 sps:$4 sm:$0xff]  }
  0xdc   : > { %4500 = vmatpush3.bf16.msra.mxu0 %v4920_v10  ;;  %v4944_v10 = vld [vmem:[%s5089_s6 + $0x210] ss:$108 sps:$4 sm:$0xff]  }
  0xdd   : > { %4501 = vmatprep.subr.bf16.mxu0 %v4924_v17 }
  0xdf   : > { %3296 = vmatmul.mubr.bf16.gmra.mrb[92].mxu0 %v4923_v14 }
  0xe0   : > { %3401 = vmatprep.mubr.bf16.mxu0 %v4935_v37 }
  0xfa   : > { %v4025_v19 = vpop.f32.mrb[0].mxu0 }
  0xfb   : > { %v4065_v22 = vpop.f32.mrb[0].mxu1  ;;  %v4026_v24 = vpop.f32.mrb[1].mxu0 }
  0xfc   : > { %v4027_v26 = vadd.f32 %v4026_v24, %v4025_v19  ;;  %v4066_v27 = vpop.f32.mrb[1].mxu1  ;;  %v4028_v30 = vpop.f32.mrb[2].mxu0  ;;  %v4925_v19 = vld [vmem:[%s5839_s1 + $0x6a8] sm:$0xff]  }
  0xfd   : > { %v4067_v29 = vadd.f32 %v4066_v27, %v4065_v22  ;;  %v4068_v32 = vpop.f32.mrb[2].mxu1  ;;  %v4029_v35 = vpop.f32.mrb[3].mxu0  ;;  %4551 = vmatprep.subr.bf16.mxu1 %v4925_v19  ;;  %v4929_v27 = vld [vmem:[%s5089_s6 + $0x2e0] ss:$108 sps:$4 sm:$0xff]  }
  0xfe   : > { %v4069_v36 = vpop.f32.mrb[3].mxu1  ;;  %v4030_v38 = vadd.f32 %v4029_v35, %v4028_v30  ;;  %4552 = vmatpush3.bf16.msra.mxu1 %v4925_v19  ;;  %v4931_v30 = vld [vmem:[%s5839_s1 + $0x6b0] sm:$0xff]  }
  0xff   : > { %v5677_v34 = vadd.f32 %v4067_v29, %v4027_v26  ;;  %v4070_v39 = vadd.f32 %v4069_v36, %v4068_v32  ;;  %v4928_v26 = vld [vmem:[%s5839_s1 + $0x630] sm:$0xff]   ;;  %v4930_v29 = vld [vmem:[%s5839_s1 + $0x678] sm:$0xff]   ;;  %3361 = vmatmul.mubr.bf16.gmra.mrb[92].mxu1 %v4929_v27  ;;  %4553 = vmatprep.subr.bf16.mxu1 %v4931_v30 }
 0x100   : > { %4502 = vmatpush3.bf16.msra.mxu0 %v4928_v26  ;;  %v4932_v32 = vld [vmem:[%s5839_s1 + $0x638] sm:$0xff]   ;;  %4557 = vmatprep.mubr.bf16.mxu1 %v4937_v40 }
 0x101   : > { %v5686_v42 = vadd.f32 %v4070_v39, %v4030_v38  ;;  %4503 = vmatprep.subr.bf16.mxu0 %v4930_v29  ;;  %v4936_v38 = vld [vmem:[%s5839_s1 + $0x6b8] sm:$0xff]  }
 0x102   : > { %v4031_v46 = vpop.f32.mrb[4].mxu0  ;;  %4554 = vmatpush3.bf16.msra.mxu1 %v4931_v30 }
 0x103   : > { %v4071_v48 = vpop.f32.mrb[4].mxu1  ;;  %v4032_v50 = vpop.f32.mrb[5].mxu0  ;;  %4555 = vmatprep.subr.bf16.mxu1 %v4936_v38 }
 0x104   : > { %v4033_v52 = vadd.f32 %v4032_v50, %v4031_v46  ;;  %v4072_v53 = vpop.f32.mrb[5].mxu1  ;;  %v4034_v54 = vpop.f32.mrb[6].mxu0  ;;  %4504 = vmatpush3.bf16.msra.mxu0 %v4932_v32  ;;  %v4939_v46 = vld [vmem:[%s5089_s6 + $0x13c] ss:$108 sps:$4 sm:$0xff]   ;;  %v4945_v50 = vld [vmem:[%s5089_s6 + $0x218] ss:$108 sps:$4 sm:$0xff]  }
 0x105   : > { %v4073_v57 = vadd.f32 %v4072_v53, %v4071_v48  ;;  %v4074_v58 = vpop.f32.mrb[6].mxu1  ;;  %v4035_v60 = vpop.f32.mrb[7].mxu0  ;;  %v4941_v53 = vld [vmem:[%s5089_s6 + $0x138] ss:$108 sps:$4 sm:$0xff]  }
 0x106   : > { %v4036_v63 = vadd.f32 %v4035_v60, %v4034_v54  ;;  %v4075_v0 = vpop.f32.mrb[7].mxu1  ;;  %4556 = vmatpush3.bf16.msra.mxu1 %v4936_v38 }
 0x107   : > { %v5710_v62 = vadd.f32 %v4073_v57, %v4033_v52  ;;  %v4076_v2 = vadd.f32 %v4075_v0, %v4074_v58  ;;  %3402 = vmatmul.mubr.bf16.vlgmr.msra.gmra.mrb[96].mxu0 %v4933_v33 }
 0x108   : > { %3409 = vmatprep.mubr.bf16.mxu0 %v4939_v46 }
 0x109   : > { %v5717_v5 = vadd.f32 %v4076_v2, %v4036_v63  ;;  %4558 = vmatmul.mubr.bf16.vlgmr.msra.gmra.mrb[96].mxu1 %v4938_v43 }
 0x10a   : > { %v4037_v7 = vpop.f32.mrb[8].mxu0  ;;  %4561 = vmatprep.mubr.bf16.mxu1 %v4945_v50 }
 0x10b   : > { %v4077_v9 = vpop.f32.mrb[8].mxu1  ;;  %v4038_v11 = vpop.f32.mrb[9].mxu0 }
 0x10c   : > { %v4078_v12 = vpop.f32.mrb[9].mxu1  ;;  %v4039_v15 = vadd.f32 %v4038_v11, %v4037_v7  ;;  %v4040_v18 = vpop.f32.mrb[10].mxu0 }
 0x10d   : > { %v4079_v16 = vadd.f32 %v4078_v12, %v4077_v9  ;;  %v4080_v21 = vpop.f32.mrb[10].mxu1  ;;  %v4041_v22 = vpop.f32.mrb[11].mxu0 }
 0x10e   : > { %v4042_v24 = vadd.f32 %v4041_v22, %v4040_v18  ;;  %v4081_v25 = vpop.f32.mrb[11].mxu1 }
 0x10f   : > { %v5736_v20 = vadd.f32 %v4079_v16, %v4039_v15  ;;  %v4082_v28 = vadd.f32 %v4081_v25, %v4080_v21  ;;  %3410 = vmatmul.mubr.bf16.gmra.mrb[100].mxu0 %v4941_v53 }
 0x110   : > { %3417 = vmatprep.mubr.bf16.mxu0 %v4942_v56 }
 0x111   : > { %v5749_v31 = vadd.f32 %v4082_v28, %v4042_v24  ;;  %4562 = vmatmul.mubr.bf16.gmra.mrb[100].mxu1 %v4946_v61 }
 0x112   : > { %v4043_v35 = vpop.f32.mrb[12].mxu0 }
 0x113   : > { %v4083_v36 = vpop.f32.mrb[12].mxu1  ;;  %v4044_v39 = vpop.f32.mrb[13].mxu0 }
 0x114   : > { %v4045_v41 = vadd.f32 %v4044_v39, %v4043_v35  ;;  %v4084_v44 = vpop.f32.mrb[13].mxu1  ;;  %v4046_v45 = vpop.f32.mrb[14].mxu0 }
 0x115   : > { %v4085_v47 = vadd.f32 %v4084_v44, %v4083_v36  ;;  %v4086_v48 = vpop.f32.mrb[14].mxu1  ;;  %v4047_v49 = vpop.f32.mrb[15].mxu0 }
 0x116   : > { %v4048_v52 = vadd.f32 %v4047_v49, %v4046_v45  ;;  %v4087_v54 = vpop.f32.mrb[15].mxu1 }
 0x117   : > { %v5763_v51 = vadd.f32 %v4085_v47, %v4045_v41  ;;  %v4088_v57 = vadd.f32 %v4087_v54, %v4086_v48  ;;  %3418 = vmatmul.mubr.bf16.gmra.mrb[104].mxu0 %v4944_v10 }
 0x118   : > { %3425 = vmatprep.mubr.bf16.mxu0 %v4947_v13 }
 0x119   : > { %v5768_v63 = vadd.f32 %v4088_v57, %v4048_v52 }
 0x11a   : > { %v4105_v55 = vpop.f32.mrb[16].mxu0 }
 0x11b   : > { %v4106_v58 = vpop.f32.mrb[17].mxu0  ;;  %v4145_v2 = vpop.f32.mrb[16].mxu1 }
 0x11c   : > { %v4107_v59 = vadd.f32 %v4106_v58, %v4105_v55  ;;  %v4108_v60 = vpop.f32.mrb[18].mxu0  ;;  %v4146_v4 = vpop.f32.mrb[17].mxu1 }
 0x11d   : > { %v4109_v0 = vpop.f32.mrb[19].mxu0  ;;  %v4147_v7 = vadd.f32 %v4146_v4, %v4145_v2  ;;  %v4148_v8 = vpop.f32.mrb[18].mxu1 }
 0x11e   : > { %v2754_v1 = vadd.f32 %v4107_v59, %v5677_v34  ;;  %v4110_v3 = vadd.f32 %v4109_v0, %v4108_v60  ;;  %v4149_v9 = vpop.f32.mrb[19].mxu1 }
 0x11f   : > { %v4150_v12 = vadd.f32 %v4149_v9, %v4148_v8  ;;  %3426 = vmatmul.mubr.bf16.gmra.mrb[108].mxu0 %v4949_v23 }
 0x120   : > { %v2757_v6 = vadd.f32 %v4110_v3, %v5686_v42  ;;  %v2819_v11 = vadd.f32 %v4147_v7, %v2754_v1 }
 0x122   : > { %v5774_v14 = vadd.f32 %v4150_v12, %v2757_v6  ;;  %v4111_v15 = vpop.f32.mrb[20].mxu0 }
 0x123   : > { %v4112_v34 = vpop.f32.mrb[21].mxu0  ;;  %v4151_v18 = vpop.f32.mrb[20].mxu1 }
 0x124   : > { %v4113_v16 = vadd.f32 %v4112_v34, %v4111_v15  ;;  %v4114_v17 = vpop.f32.mrb[22].mxu0  ;;  %v4152_v22 = vpop.f32.mrb[21].mxu1 }
 0x125   : > { %v4115_v19 = vpop.f32.mrb[23].mxu0  ;;  %v4153_v24 = vadd.f32 %v4152_v22, %v4151_v18  ;;  %v4154_v25 = vpop.f32.mrb[22].mxu1 }
 0x126   : > { %v2762_v42 = vadd.f32 %v4113_v16, %v5710_v62  ;;  %v4116_v21 = vadd.f32 %v4115_v19, %v4114_v17  ;;  %v4155_v27 = vpop.f32.mrb[23].mxu1 }
 0x127   : > { %v4156_v29 = vadd.f32 %v4155_v27, %v4154_v25 }
 0x128   : > { %v2765_v26 = vadd.f32 %v4116_v21, %v5717_v5  ;;  %v2827_v28 = vadd.f32 %v4153_v24, %v2762_v42 }
 0x12a   : > { %v2830_v30 = vadd.f32 %v4156_v29, %v2765_v26  ;;  %v4117_v32 = vpop.f32.mrb[24].mxu0 }
 0x12b   : > { %v4118_v33 = vpop.f32.mrb[25].mxu0  ;;  %v4157_v37 = vpop.f32.mrb[24].mxu1 }
 0x12c   : > { %v4119_v35 = vadd.f32 %v4118_v33, %v4117_v32  ;;  %v4120_v36 = vpop.f32.mrb[26].mxu0  ;;  %v4158_v40 = vpop.f32.mrb[25].mxu1 }
 0x12d   : > { %v4121_v38 = vpop.f32.mrb[27].mxu0  ;;  %v4159_v41 = vadd.f32 %v4158_v40, %v4157_v37  ;;  %v4160_v43 = vpop.f32.mrb[26].mxu1 }
 0x12e   : > { %v2770_v62 = vadd.f32 %v4119_v35, %v5736_v20  ;;  %v4122_v39 = vadd.f32 %v4121_v38, %v4120_v36  ;;  %v4161_v5 = vpop.f32.mrb[27].mxu1 }
 0x12f   : > { %v4162_v46 = vadd.f32 %v4161_v5, %v4160_v43 }
 0x130   : > { %v2773_v44 = vadd.f32 %v4122_v39, %v5749_v31  ;;  %v2835_v45 = vadd.f32 %v4159_v41, %v2770_v62 }
 0x132   : > { %v2838_v47 = vadd.f32 %v4162_v46, %v2773_v44  ;;  %v4123_v48 = vpop.f32.mrb[28].mxu0 }
 0x133   : > { %v4124_v49 = vpop.f32.mrb[29].mxu0  ;;  %v4163_v55 = vpop.f32.mrb[28].mxu1 }
 0x134   : > { %v4125_v50 = vadd.f32 %v4124_v49, %v4123_v48  ;;  %v4126_v52 = vpop.f32.mrb[30].mxu0  ;;  %v4164_v20 = vpop.f32.mrb[29].mxu1 }
 0x135   : > { %v4127_v53 = vpop.f32.mrb[31].mxu0  ;;  %v4165_v58 = vadd.f32 %v4164_v20, %v4163_v55  ;;  %v4166_v59 = vpop.f32.mrb[30].mxu1 }
 0x136   : > { %v2778_v54 = vadd.f32 %v4125_v50, %v5763_v51  ;;  %v4128_v56 = vadd.f32 %v4127_v53, %v4126_v52  ;;  %v4167_v60 = vpop.f32.mrb[31].mxu1 }
 0x137   : > { %v4168_v61 = vadd.f32 %v4167_v60, %v4166_v59 }
 0x138   : > { %v2781_v57 = vadd.f32 %v4128_v56, %v5768_v63  ;;  %v2843_v31 = vadd.f32 %v4165_v58, %v2778_v54 }
 0x13a   : > { %v2846_v0 = vadd.f32 %v4168_v61, %v2781_v57  ;;  %v4185_v1 = vpop.f32.mrb[32].mxu0 }
 0x13b   : > { %v4186_v2 = vpop.f32.mrb[33].mxu0  ;;  %v4225_v6 = vpop.f32.mrb[32].mxu1 }
 0x13c   : > { %v4187_v3 = vadd.f32 %v4186_v2, %v4185_v1  ;;  %v4188_v4 = vpop.f32.mrb[34].mxu0  ;;  %v4226_v51 = vpop.f32.mrb[33].mxu1 }
 0x13d   : > { %v4189_v7 = vpop.f32.mrb[35].mxu0  ;;  %v4227_v10 = vadd.f32 %v4226_v51, %v4225_v6  ;;  %v4228_v12 = vpop.f32.mrb[34].mxu1 }
 0x13e   : > { %v2884_v8 = vadd.f32 %v4187_v3, %v2819_v11  ;;  %v4190_v9 = vadd.f32 %v4189_v7, %v4188_v4  ;;  %v4229_v63 = vpop.f32.mrb[35].mxu1 }
 0x13f   : > { %v4230_v34 = vadd.f32 %v4229_v63, %v4228_v12 }
 0x140   : > { %v2887_v13 = vadd.f32 %v4190_v9, %v5774_v14  ;;  %v2949_v15 = vadd.f32 %v4227_v10, %v2884_v8 }
 0x142   : > { %v2952_v16 = vadd.f32 %v4230_v34, %v2887_v13  ;;  %v4191_v17 = vpop.f32.mrb[36].mxu0 }
 0x143   : > { %v4192_v18 = vpop.f32.mrb[37].mxu0  ;;  %v4231_v21 = vpop.f32.mrb[36].mxu1 }
 0x144   : > { %v4193_v19 = vadd.f32 %v4192_v18, %v4191_v17  ;;  %v4194_v42 = vpop.f32.mrb[38].mxu0  ;;  %v4232_v25 = vpop.f32.mrb[37].mxu1 }
 0x145   : > { %v4195_v22 = vpop.f32.mrb[39].mxu0  ;;  %v4233_v11 = vadd.f32 %v4232_v25, %v4231_v21  ;;  %v4234_v26 = vpop.f32.mrb[38].mxu1 }
 0x146   : > { %v2892_v23 = vadd.f32 %v4193_v19, %v2827_v28  ;;  %v4196_v24 = vadd.f32 %v4195_v22, %v4194_v42  ;;  %v4235_v29 = vpop.f32.mrb[39].mxu1 }
 0x147   : > { %v4236_v33 = vadd.f32 %v4235_v29, %v4234_v26 }
 0x148   : > { %v2895_v27 = vadd.f32 %v4196_v24, %v2830_v30  ;;  %v2957_v32 = vadd.f32 %v4233_v11, %v2892_v23 }
 0x14a   : > { %v2960_v14 = vadd.f32 %v4236_v33, %v2895_v27  ;;  %v4197_v35 = vpop.f32.mrb[40].mxu0 }
 0x14b   : > { %v4198_v36 = vpop.f32.mrb[41].mxu0  ;;  %v4237_v40 = vpop.f32.mrb[40].mxu1 }
 0x14c   : > { %v4199_v37 = vadd.f32 %v4198_v36, %v4197_v35  ;;  %v4200_v38 = vpop.f32.mrb[42].mxu0  ;;  %v4238_v43 = vpop.f32.mrb[41].mxu1 }
 0x14d   : > { %v4201_v62 = vpop.f32.mrb[43].mxu0  ;;  %v4239_v28 = vadd.f32 %v4238_v43, %v4237_v40  ;;  %v4240_v5 = vpop.f32.mrb[42].mxu1 }
 0x14e   : > { %v2900_v39 = vadd.f32 %v4199_v37, %v2835_v45  ;;  %v4202_v41 = vadd.f32 %v4201_v62, %v4200_v38  ;;  %v4241_v46 = vpop.f32.mrb[43].mxu1 }
 0x14f   : > { %v4242_v49 = vadd.f32 %v4241_v46, %v4240_v5 }
 0x150   : > { %v2903_v44 = vadd.f32 %v4202_v41, %v2838_v47  ;;  %v2965_v48 = vadd.f32 %v4239_v28, %v2900_v39 }
 0x152   : > { %v2968_v30 = vadd.f32 %v4242_v49, %v2903_v44  ;;  %v4203_v50 = vpop.f32.mrb[44].mxu0 }
 0x153   : > { %v4204_v52 = vpop.f32.mrb[45].mxu0  ;;  %v4243_v55 = vpop.f32.mrb[44].mxu1 }
 0x154   : > { %v4205_v53 = vadd.f32 %v4204_v52, %v4203_v50  ;;  %v4206_v54 = vpop.f32.mrb[46].mxu0  ;;  %v4244_v58 = vpop.f32.mrb[45].mxu1 }
 0x155   : > { %v4207_v56 = vpop.f32.mrb[47].mxu0  ;;  %v4245_v45 = vadd.f32 %v4244_v58, %v4243_v55  ;;  %v4246_v59 = vpop.f32.mrb[46].mxu1 }
 0x156   : > { %v2908_v20 = vadd.f32 %v4205_v53, %v2843_v31  ;;  %v4208_v57 = vadd.f32 %v4207_v56, %v4206_v54  ;;  %v4247_v61 = vpop.f32.mrb[47].mxu1 }
 0x157   : > { %v4248_v1 = vadd.f32 %v4247_v61, %v4246_v59 }
 0x158   : > { %v2911_v60 = vadd.f32 %v4208_v57, %v2846_v0  ;;  %v2973_v47 = vadd.f32 %v4245_v45, %v2908_v20 }
 0x15a   : > { %v2976_v2 = vadd.f32 %v4248_v1, %v2911_v60  ;;  %v4265_v3 = vpop.f32.mrb[48].mxu0 }
 0x15b   : > { %v4266_v4 = vpop.f32.mrb[49].mxu0  ;;  %v4305_v8 = vpop.f32.mrb[48].mxu1 }
 0x15c   : > { %v4267_v6 = vadd.f32 %v4266_v4, %v4265_v3  ;;  %v4268_v7 = vpop.f32.mrb[50].mxu0  ;;  %v4306_v12 = vpop.f32.mrb[49].mxu1 }
 0x15d   : > { %v4269_v9 = vpop.f32.mrb[51].mxu0  ;;  %v4307_v13 = vadd.f32 %v4306_v12, %v4305_v8  ;;  %v4308_v31 = vpop.f32.mrb[50].mxu1 }
 0x15e   : > { %v3014_v51 = vadd.f32 %v4267_v6, %v2949_v15  ;;  %v4270_v10 = vadd.f32 %v4269_v9, %v4268_v7  ;;  %v4309_v34 = vpop.f32.mrb[51].mxu1 }
 0x15f   : > { %v4310_v18 = vadd.f32 %v4309_v34, %v4308_v31 }
 0x160   : > { %v3017_v63 = vadd.f32 %v4270_v10, %v2952_v16  ;;  %v3079_v17 = vadd.f32 %v4307_v13, %v3014_v51 }
 0x162   : > { %v3082_v0 = vadd.f32 %v4310_v18, %v3017_v63  ;;  %v4271_v19 = vpop.f32.mrb[52].mxu0 }
 0x163   : > { %v4272_v42 = vpop.f32.mrb[53].mxu0  ;;  %v4311_v25 = vpop.f32.mrb[52].mxu1 }
 0x164   : > { %v4273_v21 = vadd.f32 %v4272_v42, %v4271_v19  ;;  %v4274_v22 = vpop.f32.mrb[54].mxu0  ;;  %v4312_v26 = vpop.f32.mrb[53].mxu1 }
 0x165   : > { %v4275_v23 = vpop.f32.mrb[55].mxu0  ;;  %v4313_v15 = vadd.f32 %v4312_v26, %v4311_v25  ;;  %v4314_v29 = vpop.f32.mrb[54].mxu1 }
 0x166   : > { %v3022_v24 = vadd.f32 %v4273_v21, %v2957_v32  ;;  %v4276_v11 = vadd.f32 %v4275_v23, %v4274_v22  ;;  %v4315_v33 = vpop.f32.mrb[55].mxu1 }
 0x167   : > { %v4316_v36 = vadd.f32 %v4315_v33, %v4314_v29 }
 0x168   : > { %v3025_v27 = vadd.f32 %v4276_v11, %v2960_v14  ;;  %v3087_v35 = vadd.f32 %v4313_v15, %v3022_v24 }
 0x16a   : > { %v3090_v16 = vadd.f32 %v4316_v36, %v3025_v27  ;;  %v4277_v37 = vpop.f32.mrb[56].mxu0 }
 0x16b   : > { %v4278_v38 = vpop.f32.mrb[57].mxu0  ;;  %v4317_v40 = vpop.f32.mrb[56].mxu1 }
 0x16c   : > { %v4279_v62 = vadd.f32 %v4278_v38, %v4277_v37  ;;  %v4280_v39 = vpop.f32.mrb[58].mxu0  ;;  %v4318_v28 = vpop.f32.mrb[57].mxu1 }
 0x16d   : > { %v4281_v41 = vpop.f32.mrb[59].mxu0  ;;  %v4319_v32 = vadd.f32 %v4318_v28, %v4317_v40  ;;  %v4320_v5 = vpop.f32.mrb[58].mxu1 }
 0x16e   : > { %v3030_v43 = vadd.f32 %v4279_v62, %v2965_v48  ;;  %v4282_v44 = vadd.f32 %v4281_v41, %v4280_v39  ;;  %v4321_v49 = vpop.f32.mrb[59].mxu1 }
 0x16f   : > { %v4322_v50 = vadd.f32 %v4321_v49, %v4320_v5 }
 0x170   : > { %v3033_v46 = vadd.f32 %v4282_v44, %v2968_v30  ;;  %v3095_v14 = vadd.f32 %v4319_v32, %v3030_v43 }
 0x172   : > { %v3098_v52 = vadd.f32 %v4322_v50, %v3033_v46  ;;  %v4283_v53 = vpop.f32.mrb[60].mxu0 }
 0x173   : > { %v4284_v54 = vpop.f32.mrb[61].mxu0  ;;  %v4323_v20 = vpop.f32.mrb[60].mxu1 }
 0x174   : > { %v4285_v55 = vadd.f32 %v4284_v54, %v4283_v53  ;;  %v4286_v56 = vpop.f32.mrb[62].mxu0  ;;  %v4324_v59 = vpop.f32.mrb[61].mxu1 }
 0x175   : > { %v4287_v57 = vpop.f32.mrb[63].mxu0  ;;  %v4325_v60 = vadd.f32 %v4324_v59, %v4323_v20  ;;  %v4326_v48 = vpop.f32.mrb[62].mxu1 }
 0x176   : > { %v3038_v58 = vadd.f32 %v4285_v55, %v2973_v47  ;;  %v4288_v45 = vadd.f32 %v4287_v57, %v4286_v56  ;;  %v4327_v1 = vpop.f32.mrb[63].mxu1 }
 0x177   : > { %v4328_v4 = vadd.f32 %v4327_v1, %v4326_v48 }
 0x178   : > { %v3041_v61 = vadd.f32 %v4288_v45, %v2976_v2  ;;  %v3103_v3 = vadd.f32 %v4325_v60, %v3038_v58 }
 0x17a   : > { %v3106_v30 = vadd.f32 %v4328_v4, %v3041_v61  ;;  %v4345_v6 = vpop.f32.mrb[64].mxu0 }
 0x17b   : > { %v4346_v7 = vpop.f32.mrb[65].mxu0  ;;  %v4385_v12 = vpop.f32.mrb[64].mxu1 }
 0x17c   : > { %v4347_v8 = vadd.f32 %v4346_v7, %v4345_v6  ;;  %v4348_v9 = vpop.f32.mrb[66].mxu0  ;;  %v4386_v31 = vpop.f32.mrb[65].mxu1 }
 0x17d   : > { %v4349_v51 = vpop.f32.mrb[67].mxu0  ;;  %v4387_v47 = vadd.f32 %v4386_v31, %v4385_v12  ;;  %v4388_v34 = vpop.f32.mrb[66].mxu1 }
 0x17e   : > { %v3144_v10 = vadd.f32 %v4347_v8, %v3079_v17  ;;  %v4350_v13 = vadd.f32 %v4349_v51, %v4348_v9  ;;  %v4389_v18 = vpop.f32.mrb[67].mxu1 }
 0x17f   : > { %v4390_v42 = vadd.f32 %v4389_v18, %v4388_v34 }
 0x180   : > { %v3147_v63 = vadd.f32 %v4350_v13, %v3082_v0  ;;  %v3209_v19 = vadd.f32 %v4387_v47, %v3144_v10 }
 0x182   : > { %v3212_v2 = vadd.f32 %v4390_v42, %v3147_v63  ;;  %v4351_v21 = vpop.f32.mrb[68].mxu0 }
 0x183   : > { %v4352_v22 = vpop.f32.mrb[69].mxu0  ;;  %v4391_v25 = vpop.f32.mrb[68].mxu1 }
 0x184   : > { %v4353_v23 = vadd.f32 %v4352_v22, %v4351_v21  ;;  %v4354_v24 = vpop.f32.mrb[70].mxu0  ;;  %v4392_v15 = vpop.f32.mrb[69].mxu1 }
 0x185   : > { %v4355_v11 = vpop.f32.mrb[71].mxu0  ;;  %v4393_v17 = vadd.f32 %v4392_v15, %v4391_v25  ;;  %v4394_v29 = vpop.f32.mrb[70].mxu1 }
 0x186   : > { %v3152_v26 = vadd.f32 %v4353_v23, %v3087_v35  ;;  %v4356_v27 = vadd.f32 %v4355_v11, %v4354_v24  ;;  %v4395_v36 = vpop.f32.mrb[71].mxu1 }
 0x187   : > { %v4396_v37 = vadd.f32 %v4395_v36, %v4394_v29 }
 0x188   : > { %v3155_v33 = vadd.f32 %v4356_v27, %v3090_v16  ;;  %v3217_v0 = vadd.f32 %v4393_v17, %v3152_v26 }
 0x18a   : > { %v3220_v38 = vadd.f32 %v4396_v37, %v3155_v33  ;;  %v4357_v62 = vpop.f32.mrb[72].mxu0 }
 0x18b   : > { %v4358_v39 = vpop.f32.mrb[73].mxu0  ;;  %v4397_v43 = vpop.f32.mrb[72].mxu1 }
 0x18c   : > { %v4359_v40 = vadd.f32 %v4358_v39, %v4357_v62  ;;  %v4360_v41 = vpop.f32.mrb[74].mxu0  ;;  %v4398_v5 = vpop.f32.mrb[73].mxu1 }
 0x18d   : > { %v4361_v44 = vpop.f32.mrb[75].mxu0  ;;  %v4399_v46 = vadd.f32 %v4398_v5, %v4397_v43  ;;  %v4400_v35 = vpop.f32.mrb[74].mxu1 }
 0x18e   : > { %v3160_v28 = vadd.f32 %v4359_v40, %v3095_v14  ;;  %v4362_v32 = vadd.f32 %v4361_v44, %v4360_v41  ;;  %v4401_v50 = vpop.f32.mrb[75].mxu1 }
 0x18f   : > { %v4402_v54 = vadd.f32 %v4401_v50, %v4400_v35 }
 0x190   : > { %v3163_v49 = vadd.f32 %v4362_v32, %v3098_v52  ;;  %v3225_v53 = vadd.f32 %v4399_v46, %v3160_v28 }
 0x192   : > { %v3228_v16 = vadd.f32 %v4402_v54, %v3163_v49  ;;  %v4363_v55 = vpop.f32.mrb[76].mxu0 }
 0x193   : > { %v4364_v56 = vpop.f32.mrb[77].mxu0  ;;  %v4403_v59 = vpop.f32.mrb[76].mxu1 }
 0x194   : > { %v4365_v20 = vadd.f32 %v4364_v56, %v4363_v55  ;;  %v4366_v57 = vpop.f32.mrb[78].mxu0  ;;  %v4404_v48 = vpop.f32.mrb[77].mxu1 }
 0x195   : > { %v4367_v58 = vpop.f32.mrb[79].mxu0  ;;  %v4405_v14 = vadd.f32 %v4404_v48, %v4403_v59  ;;  %v4406_v1 = vpop.f32.mrb[78].mxu1 }
 0x196   : > { %v3168_v45 = vadd.f32 %v4365_v20, %v3103_v3  ;;  %v4368_v60 = vadd.f32 %v4367_v58, %v4366_v57  ;;  %v4407_v4 = vpop.f32.mrb[79].mxu1 }
 0x197   : > { %v4408_v7 = vadd.f32 %v4407_v4, %v4406_v1 }
 0x198   : > { %v3171_v61 = vadd.f32 %v4368_v60, %v3106_v30  ;;  %v3233_v6 = vadd.f32 %v4405_v14, %v3168_v45 }
 0x19a   : > { %v3236_v52 = vadd.f32 %v4408_v7, %v3171_v61  ;;  %v4425_v8 = vpop.f32.mrb[80].mxu0 }
 0x19b   : > { %v4426_v9 = vpop.f32.mrb[81].mxu0  ;;  %v4465_v12 = vpop.f32.mrb[80].mxu1 }
 0x19c   : > { %v4427_v51 = vadd.f32 %v4426_v9, %v4425_v8  ;;  %v4428_v10 = vpop.f32.mrb[82].mxu0  ;;  %v4466_v47 = vpop.f32.mrb[81].mxu1 }
 0x19d   : > { %v4429_v13 = vpop.f32.mrb[83].mxu0  ;;  %v4467_v3 = vadd.f32 %v4466_v47, %v4465_v12  ;;  %v4468_v34 = vpop.f32.mrb[82].mxu1 }
 0x19e   : > { %v3274_v31 = vadd.f32 %v4427_v51, %v3209_v19  ;;  %v4430_v63 = vadd.f32 %v4429_v13, %v4428_v10  ;;  %v4469_v42 = vpop.f32.mrb[83].mxu1 }
 0x19f   : > { %v4470_v21 = vadd.f32 %v4469_v42, %v4468_v34  ;;  %v5797_v34 = vld [vmem:[%s5840_s2] ss:$0 sm:$0xff] }
 0x1a0   : > { %v3277_v18 = vadd.f32 %v4430_v63, %v3212_v2  ;;  %v3339_v30 = vadd.f32 %v4467_v3, %v3274_v31 }
 0x1a2   : > { %v4431_v22 = vpop.f32.mrb[84].mxu0  ;;  %v3342_v23 = vadd.f32 %v4470_v21, %v3277_v18 }
 0x1a3   : > { %v4432_v24 = vpop.f32.mrb[85].mxu0  ;;  %v4471_v15 = vpop.f32.mrb[84].mxu1 }
 0x1a4   : > { %v4433_v25 = vadd.f32 %v4432_v24, %v4431_v22  ;;  %v4434_v11 = vpop.f32.mrb[86].mxu0  ;;  %v4472_v29 = vpop.f32.mrb[85].mxu1  ;;  %v5802_v22 = vld [vmem:[%s5841_s3] ss:$0 sm:$0xff] }
 0x1a5   : > { %v4435_v26 = vpop.f32.mrb[87].mxu0  ;;  %v4473_v19 = vadd.f32 %v4472_v29, %v4471_v15  ;;  %v4474_v36 = vpop.f32.mrb[86].mxu1 }
 0x1a6   : > { %v3282_v27 = vadd.f32 %v4433_v25, %v3217_v0  ;;  %v4436_v17 = vadd.f32 %v4435_v26, %v4434_v11  ;;  %v4475_v37 = vpop.f32.mrb[87].mxu1 }
 0x1a7   : > { %v4476_v39 = vadd.f32 %v4475_v37, %v4474_v36 }
 0x1a8   : > { %v3285_v33 = vadd.f32 %v4436_v17, %v3220_v38  ;;  %v3347_v62 = vadd.f32 %v4473_v19, %v3282_v27 }
 0x1aa   : > { %v4437_v2 = vpop.f32.mrb[88].mxu0  ;;  %v5784_v40 = vadd.f32 %v4476_v39, %v3285_v33 }
 0x1ab   : > { %v4438_v41 = vpop.f32.mrb[89].mxu0  ;;  %v4477_v5 = vpop.f32.mrb[88].mxu1 }
 0x1ac   : > { %v4439_v43 = vadd.f32 %v4438_v41, %v4437_v2  ;;  %v4440_v44 = vpop.f32.mrb[90].mxu0  ;;  %v4478_v0 = vpop.f32.mrb[89].mxu1 }
 0x1ad   : > { %v4441_v28 = vpop.f32.mrb[91].mxu0  ;;  %v4479_v49 = vadd.f32 %v4478_v0, %v4477_v5  ;;  %v4480_v50 = vpop.f32.mrb[90].mxu1 }
 0x1ae   : > { %v3290_v32 = vadd.f32 %v4439_v43, %v3225_v53  ;;  %v4442_v46 = vadd.f32 %v4441_v28, %v4440_v44  ;;  %v4481_v38 = vpop.f32.mrb[91].mxu1 }
 0x1af   : > { %v4482_v55 = vadd.f32 %v4481_v38, %v4480_v50 }
 0x1b0   : > { %v3293_v35 = vadd.f32 %v4442_v46, %v3228_v16  ;;  %v5786_v54 = vadd.f32 %v4479_v49, %v3290_v32 }
 0x1b2   : > { %v4443_v56 = vpop.f32.mrb[92].mxu0  ;;  %v5788_v20 = vadd.f32 %v4482_v55, %v3293_v35 }
 0x1b3   : > { %v4444_v57 = vpop.f32.mrb[93].mxu0 }
 0x1b4   : > { %v4445_v58 = vadd.f32 %v4444_v57, %v4443_v56  ;;  %v4446_v45 = vpop.f32.mrb[94].mxu0 }
 0x1b5   : > { %v4447_v60 = vpop.f32.mrb[95].mxu0 }
 0x1b6   : > { %v3298_v48 = vadd.f32 %v4445_v58, %v3233_v6  ;;  %v4448_v53 = vadd.f32 %v4447_v60, %v4446_v45 }
 0x1b8   : > { %v3301_v16 = vadd.f32 %v4448_v53, %v3236_v52 }
 0x1d2   : > { %v4483_v59 = vpop.f32.mrb[92].mxu1 }
 0x1d3   : > { %v4484_v61 = vpop.f32.mrb[93].mxu1 }
 0x1d4   : > { %v4485_v14 = vadd.f32 %v4484_v61, %v4483_v59  ;;  %v4486_v1 = vpop.f32.mrb[94].mxu1 }
 0x1d5   : > { %v4487_v4 = vpop.f32.mrb[95].mxu1 }
 0x1d6   : > { %v5790_v7 = vadd.f32 %v4485_v14, %v3298_v48  ;;  %v4488_v8 = vadd.f32 %v4487_v4, %v4486_v1 }
 0x1d8   : > { %v5792_v9 = vadd.f32 %v4488_v8, %v3301_v16 }
 0x1da   : > { %v4505_v51 = vpop.f32.mrb[96].mxu0 }
 0x1db   : > { %v4506_v10 = vpop.f32.mrb[97].mxu0 }
 0x1dc   : > { %v4507_v12 = vadd.f32 %v4506_v10, %v4505_v51  ;;  %v4508_v13 = vpop.f32.mrb[98].mxu0  ;;  %v4559_v63 = vpop.f32.mrb[96].mxu1 }
 0x1dd   : > { %v4509_v31 = vpop.f32.mrb[99].mxu0  ;;  %v3468_v6 = vpop.f32.mrb[97].mxu1 }
 0x1de   : > { %v4510_v47 = vadd.f32 %v4509_v31, %v4508_v13  ;;  %v3404_v3 = vadd.f32 %v4507_v12, %v3339_v30  ;;  %v4560_v52 = vpop.f32.mrb[98].mxu1 }
 0x1df   : > { %v3471_v21 = vpop.f32.mrb[99].mxu1 }
 0x1e0   : > { %v3469_v18 = vadd.f32 %v3468_v6, %v3404_v3  ;;  %v3407_v42 = vadd.f32 %v4510_v47, %v3342_v23 }
 0x1e2   : > { %v3506_v24 = vmul.f32 %v5797_v34, %v3469_v18  ;;  %v3472_v25 = vadd.f32 %v3471_v21, %v3407_v42  ;;  %v4511_v30 = vpop.f32.mrb[100].mxu0 }
 0x1e3   : > { %v4512_v11 = vpop.f32.mrb[101].mxu0 }
 0x1e4   : > { %v3521_v26 = vadd.f32 %v5802_v22, %v3506_v24  ;;  %v3507_v27 = vmul.f32 %v5797_v34, %v3472_v25  ;;  %v4513_v15 = vadd.f32 %v4512_v11, %v4511_v30  ;;  %v4514_v17 = vpop.f32.mrb[102].mxu0  ;;  %v4563_v33 = vpop.f32.mrb[100].mxu1 }
 0x1e5   : > { %v4515_v29 = vpop.f32.mrb[103].mxu0  ;;  %v3484_v37 = vpop.f32.mrb[101].mxu1 }
 0x1e6   : > { %v3522_v23 = vadd.f32 %v5802_v22, %v3507_v27  ;;  %v3412_v19 = vadd.f32 %v4513_v15, %v3347_v62  ;;  %v4516_v36 = vadd.f32 %v4515_v29, %v4514_v17  ;;  %v4564_v39 = vpop.f32.mrb[102].mxu1  ;;  %v3529_v2 = vmax.f32 %v3521_v26, 0.0 }
 0x1e7   : > { %v3487_v28 = vpop.f32.mrb[103].mxu1 }
 0x1e8   : > { %v3530_v41 = vmax.f32 %v3522_v23, 0.0  ;;  %v3477_v43 = vadd.f32 %v4559_v63, %v3412_v19  ;;  %v3415_v44 = vadd.f32 %v4516_v36, %v5784_v40 }
 0x1ea   : > { %v3989_v32 = vpack.c.bf16 %v3530_v41, %v3529_v2  ;;  %v3508_v5 = vmul.f32 %v5797_v34, %v3477_v43  ;;  %v3480_v46 = vadd.f32 %v4560_v52, %v3415_v44  ;;  %v4517_v62 = vpop.f32.mrb[104].mxu0 }
 0x1eb   : > { %v4518_v0 = vpop.f32.mrb[105].mxu0 }
 0x1ec   : > { %3990 = vst [vmem:[%s5813_s19] sm:$0xff] %v3989_v32   ;;  %v3523_v35 = vadd.f32 %v5802_v22, %v3508_v5  ;;  %v3509_v49 = vmul.f32 %v5797_v34, %v3480_v46  ;;  %v4519_v40 = vadd.f32 %v4518_v0, %v4517_v62  ;;  %v4520_v50 = vpop.f32.mrb[106].mxu0 }
 0x1ed   : > { %v4521_v38 = vpop.f32.mrb[107].mxu0 }
 0x1ee   : > { %v3524_v55 = vadd.f32 %v5802_v22, %v3509_v49  ;;  %v4522_v56 = vadd.f32 %v4521_v38, %v4520_v50  ;;  %v3420_v57 = vadd.f32 %v4519_v40, %v5786_v54  ;;  %v3531_v58 = vmax.f32 %v3523_v35, 0.0 }
 0x1f0   : > { %v3532_v45 = vmax.f32 %v3524_v55, 0.0  ;;  %v3485_v59 = vadd.f32 %v3484_v37, %v3420_v57  ;;  %v3423_v60 = vadd.f32 %v4522_v56, %v5788_v20 }
 0x1f2   : > { %v3994_v48 = vpack.c.bf16 %v3532_v45, %v3531_v58  ;;  %v3510_v53 = vmul.f32 %v5797_v34, %v3485_v59  ;;  %v3488_v61 = vadd.f32 %v3487_v28, %v3423_v60  ;;  %v4523_v14 = vpop.f32.mrb[108].mxu0 }
 0x1f3   : > { %v4524_v1 = vpop.f32.mrb[109].mxu0 }
 0x1f4   : > { %4006 = vst [vmem:[%s5813_s19 + $0x8] sm:$0xff] %v3994_v48   ;;  %v3525_v16 = vadd.f32 %v5802_v22, %v3510_v53  ;;  %v3511_v4 = vmul.f32 %v5797_v34, %v3488_v61  ;;  %v4525_v8 = vadd.f32 %v4524_v1, %v4523_v14  ;;  %v4526_v51 = vpop.f32.mrb[110].mxu0 }
 0x1f5   : > { %v4527_v54 = vpop.f32.mrb[111].mxu0 }
 0x1f6   : > { %v3526_v10 = vadd.f32 %v5802_v22, %v3511_v4  ;;  %v3428_v12 = vadd.f32 %v4525_v8, %v5790_v7  ;;  %v4528_v20 = vadd.f32 %v4527_v54, %v4526_v51  ;;  %v3533_v13 = vmax.f32 %v3525_v16, 0.0 }
 0x1f8   : > { %v3534_v31 = vmax.f32 %v3526_v10, 0.0  ;;  %v3493_v63 = vadd.f32 %v4563_v33, %v3428_v12  ;;  %v3431_v47 = vadd.f32 %v4528_v20, %v5792_v9 }
 0x1fa   : > { %v3999_v3 = vpack.c.bf16 %v3534_v31, %v3533_v13  ;;  %v3512_v6 = vmul.f32 %v5797_v34, %v3493_v63  ;;  %v3496_v52 = vadd.f32 %v4564_v39, %v3431_v47 }
 0x1fc   : > { %4007 = vst [vmem:[%s5813_s19 + $0x10] sm:$0xff] %v3999_v3   ;;  %v3527_v18 = vadd.f32 %v5802_v22, %v3512_v6  ;;  %v3513_v42 = vmul.f32 %v5797_v34, %v3496_v52 }
 0x1fe   : > { %v3528_v21 = vadd.f32 %v5802_v22, %v3513_v42  ;;  %v3535_v24 = vmax.f32 %v3527_v18, 0.0 }
 0x200   : > { %v3536_v7 = vmax.f32 %v3528_v21, 0.0 }
 0x202   : > { %v4004_v25 = vpack.c.bf16 %v3536_v7, %v3535_v24 }
 0x204   : > { %4008 = vst [vmem:[%s5813_s19 + $0x18] sm:$0xff] %v4004_v25  }
 0x205 PF: > { %s14_s15 = sadd.s32 1, %s4956_s15  }
 0x206   : > { %p11_p4 = scmp.ge.s32.totalorder %s14_s15, 4  }
 0x208   :  { %13 = sbr.rel (!%p11_p4) target bundleno = 1 (0x1), region = 66 }

// kernel: fid3dcnn_forward.6
= control target key start
LH: loop header
LB: loop body
LE: loop exit
PB: predicated region body
PF: predicated region fallthrough
CT: control target
= control target key end

     0   :  { %s5174_s18 = smov 0   ;;  %s6042_s0 = inlined_call_operand.vmem [shape: bf16[128,3456], index: 0, kind: input, shape index: {}]   ;;  %s6043_s1 = inlined_call_operand.vmem [shape: bf16[3456,128], index: 1, kind: input, shape index: {}]   ;;  %s6044_s2 = inlined_call_operand.vmem [shape: f32[1,128], index: 2, kind: input, shape index: {}]   ;;  %s6045_s3 = inlined_call_operand.vmem [shape: f32[1,128], index: 3, kind: input, shape index: {}]   ;;  %s6046_s4 = inlined_call_operand.vmem [shape: bf16[128,128], index: 4, kind: input, shape index: {}]   ;;  %s6047_s5 = inlined_call_operand.vmem [shape: bf16[128,128], index: 5, kind: output, shape index: {}]  }
   0x1 LB: > { %s3758_s19 = sadd.s32 4294967295, %s5142_s18   ;;  %p3762_p0 = scmp.ge.s32.totalorder %s5142_s18, 1  ;;  %s5142_s18 = sphi %s5174_s18, %s15_s18  }
   0x2   : > { %p200_p1 = scmp.lt.s32.totalorder %s5142_s18, 3 }
   0x4   : > { %p201_p2 = pnand %p3762_p0, %p200_p1 }
   0x5   : > { %v4728_v0 = vld [vmem:[%s6043_s1 + $0x40] sm:$0xff] (!%p201_p2)   ;;  %v4732_v4 = vld [vmem:[%s6043_s1 + $0x48] sm:$0xff] (!%p201_p2)   ;;  %v4736_v8 = vld [vmem:[%s6043_s1 + $0x50] sm:$0xff] (!%p201_p2)   ;;  %s3763_s27 = sshll.u32 (!%p201_p2), %s3758_s19, 3 }
   0x6   : > { %204 = sbr.rel (%p201_p2) target bundleno = 543 (0x21f), region = 40  ;;  %v4729_v1 = vld [vmem:[%s6043_s1 + $0xc0] sm:$0xff] (!%p201_p2)   ;;  %4163 = vmatprep.subr.bf16.mxu0 (!%p201_p2), %v4728_v0  ;;  %v4733_v5 = vld [vmem:[%s6043_s1 + $0xc8] sm:$0xff] (!%p201_p2)   ;;  %v4737_v9 = vld [vmem:[%s6043_s1 + $0xd0] sm:$0xff] (!%p201_p2)   ;;  %p235_p3 = scmp.lt.s32.totalorder (!%p201_p2), %s3763_s27, 15 }
   0x7   : > { %v4730_v2 = vld [vmem:[%s6043_s1] sm:$0xff] (!%p201_p2)   ;;  %4203 = vmatprep.subr.bf16.mxu1 (!%p201_p2), %v4729_v1  ;;  %v4734_v6 = vld [vmem:[%s6043_s1 + $0x8] sm:$0xff] (!%p201_p2)   ;;  %v4738_v10 = vld [vmem:[%s6043_s1 + $0x10] sm:$0xff] (!%p201_p2)  }
   0x8   : > { %v4731_v3 = vld [vmem:[%s6043_s1 + $0x80] sm:$0xff] (!%p201_p2)   ;;  %4164 = vmatpush3.bf16.msra.mxu0 (!%p201_p2), %v4730_v2  ;;  %v4735_v7 = vld [vmem:[%s6043_s1 + $0x88] sm:$0xff] (!%p201_p2)   ;;  %v4739_v11 = vld [vmem:[%s6043_s1 + $0x90] sm:$0xff] (!%p201_p2)  }
   0x9   : > { %4204 = vmatpush3.bf16.msra.mxu1 (!%p201_p2), %v4731_v3  ;;  %4165 = vmatprep.subr.bf16.mxu0 (!%p201_p2), %v4732_v4  ;;  %v4740_v12 = vld [vmem:[%s6043_s1 + $0x58] sm:$0xff] (!%p201_p2)   ;;  %v4744_v16 = vld [vmem:[%s6043_s1 + $0x60] sm:$0xff] (!%p201_p2)   ;;  %v4748_v20 = vld [vmem:[%s6043_s1 + $0x68] sm:$0xff] (!%p201_p2)  }
   0xa   : > { %4205 = vmatprep.subr.bf16.mxu1 (!%p201_p2), %v4733_v5  ;;  %v4741_v13 = vld [vmem:[%s6043_s1 + $0xd8] sm:$0xff] (!%p201_p2)   ;;  %v4745_v17 = vld [vmem:[%s6043_s1 + $0xe0] sm:$0xff] (!%p201_p2)   ;;  %v4749_v21 = vld [vmem:[%s6043_s1 + $0xe8] sm:$0xff] (!%p201_p2)  }
   0xb   : > { %v4742_v14 = vld [vmem:[%s6043_s1 + $0x18] sm:$0xff] (!%p201_p2)   ;;  %v4746_v18 = vld [vmem:[%s6043_s1 + $0x20] sm:$0xff] (!%p201_p2)   ;;  %v4750_v22 = vld [vmem:[%s6043_s1 + $0x28] sm:$0xff] (!%p201_p2)  }
   0xc   : > { %4166 = vmatpush3.bf16.msra.mxu0 (!%p201_p2), %v4734_v6  ;;  %v4743_v15 = vld [vmem:[%s6043_s1 + $0x98] sm:$0xff] (!%p201_p2)   ;;  %v4747_v19 = vld [vmem:[%s6043_s1 + $0xa0] sm:$0xff] (!%p201_p2)   ;;  %v4751_v23 = vld [vmem:[%s6043_s1 + $0xa8] sm:$0xff] (!%p201_p2)  }
   0xd   : > { %4206 = vmatpush3.bf16.msra.mxu1 %v4735_v7  ;;  %4167 = vmatprep.subr.bf16.mxu0 %v4736_v8  ;;  %s6049_s27 = smov (!%p235_p3, %s3763_s27), 15  ;;  %v4752_v24 = vld [vmem:[%s6043_s1 + $0x70] sm:$0xff]   ;;  %v4756_v28 = vld [vmem:[%s6043_s1 + $0x78] sm:$0xff]   ;;  %v4766_v36 = vld [vmem:[%s6043_s1 + $0x140] sm:$0xff]  }
   0xe   : > { %4207 = vmatprep.subr.bf16.mxu1 %v4737_v9  ;;  %v4753_v25 = vld [vmem:[%s6043_s1 + $0xf0] sm:$0xff]   ;;  %s4719_s26 = smul.u32 108, %s6049_s27  ;;  %v4757_v29 = vld [vmem:[%s6043_s1 + $0xf8] sm:$0xff]   ;;  %v4767_v37 = vld [vmem:[%s6043_s1 + $0x100] sm:$0xff]   ;;  %s3766_s14 = sshll.u32 %s6049_s27, 2 }
   0xf   : > { %v4754_v26 = vld [vmem:[%s6043_s1 + $0x30] sm:$0xff]   ;;  %v4758_v30 = vld [vmem:[%s6043_s1 + $0x38] sm:$0xff]   ;;  %v4768_v38 = vld [vmem:[%s6043_s1 + $0x1c0] sm:$0xff]   ;;  %s6017_s17 = scalar_lea.vmem %s6046_s4, %s3766_s14  ;;  %s6030_s22 = scalar_lea.vmem %s6047_s5, %s3766_s14 }
  0x10   : > { %4168 = vmatpush3.bf16.msra.mxu0 %v4738_v10  ;;  %v4755_v27 = vld [vmem:[%s6043_s1 + $0xb0] sm:$0xff]   ;;  %s5280_s12 = scalar_lea.vmem %s6042_s0, %s4719_s26  ;;  %v4759_v31 = vld [vmem:[%s6043_s1 + $0xb8] sm:$0xff]   ;;  %v4769_v39 = vld [vmem:[%s6043_s1 + $0x180] sm:$0xff]  }
  0x11   : > { %4208 = vmatpush3.bf16.msra.mxu1 %v4739_v11  ;;  %4169 = vmatprep.subr.bf16.mxu0 %v4740_v12  ;;  %v4760_v32 = vld [vmem:[%s5280_s12] ss:$108 sps:$4 sm:$0xff]   ;;  %v4762_v33 = vld [vmem:[%s5280_s12 + $0x4] ss:$108 sps:$4 sm:$0xff]   ;;  %v4763_v34 = vld [vmem:[%s5280_s12 + $0x8] ss:$108 sps:$4 sm:$0xff]  }
  0x12   : > { %4209 = vmatprep.subr.bf16.mxu1 %v4741_v13  ;;  %v4765_v35 = vld [vmem:[%s5280_s12 + $0xc] ss:$108 sps:$4 sm:$0xff]   ;;  %2670 = vmatprep.mubr.bf16.mxu0 %v4762_v33  ;;  %v4773_v43 = vld [vmem:[%s5280_s12 + $0xdc] ss:$108 sps:$4 sm:$0xff]   ;;  %v4775_v44 = vld [vmem:[%s5280_s12 + $0xe4] ss:$108 sps:$4 sm:$0xff]  }
  0x13   : > { %2735 = vmatprep.mubr.bf16.mxu1 %v4765_v35  ;;  %v4770_v40 = vld [vmem:[%s6043_s1 + $0x148] sm:$0xff]   ;;  %v4778_v46 = vld [vmem:[%s5280_s12 + $0xd8] ss:$108 sps:$4 sm:$0xff]   ;;  %v4780_v48 = vld [vmem:[%s6043_s1 + $0x150] sm:$0xff]  }
  0x14   : > { %4170 = vmatpush3.bf16.msra.mxu0 %v4742_v14  ;;  %v4771_v41 = vld [vmem:[%s6043_s1 + $0x108] sm:$0xff]   ;;  %v4781_v49 = vld [vmem:[%s6043_s1 + $0x110] sm:$0xff]   ;;  %v4784_v52 = vld [vmem:[%s6043_s1 + $0x158] sm:$0xff]  }
  0x15   : > { %4210 = vmatpush3.bf16.msra.mxu1 %v4743_v15  ;;  %4171 = vmatprep.subr.bf16.mxu0 %v4744_v16  ;;  %v4772_v42 = vld [vmem:[%s6043_s1 + $0x1c8] sm:$0xff]   ;;  %v4782_v50 = vld [vmem:[%s6043_s1 + $0x1d0] sm:$0xff]   ;;  %v4785_v53 = vld [vmem:[%s6043_s1 + $0x118] sm:$0xff]  }
  0x16   : > { %4211 = vmatprep.subr.bf16.mxu1 %v4745_v17  ;;  %v4777_v45 = vld [vmem:[%s6043_s1 + $0x188] sm:$0xff]   ;;  %v4783_v51 = vld [vmem:[%s6043_s1 + $0x190] sm:$0xff]   ;;  %v4786_v54 = vld [vmem:[%s6043_s1 + $0x1d8] sm:$0xff]  }
  0x17   : > { %v4779_v47 = vld [vmem:[%s5280_s12 + $0xe0] ss:$108 sps:$4 sm:$0xff]   ;;  %v4789_v56 = vld [vmem:[%s5280_s12 + $0x1bc] ss:$108 sps:$4 sm:$0xff]   ;;  %v4793_v59 = vld [vmem:[%s5280_s12 + $0x1b8] ss:$108 sps:$4 sm:$0xff]  }
  0x18   : > { %4172 = vmatpush3.bf16.msra.mxu0 %v4746_v18  ;;  %v4787_v55 = vld [vmem:[%s5280_s12 + $0x1b4] ss:$108 sps:$4 sm:$0xff]   ;;  %v4791_v57 = vld [vmem:[%s6043_s1 + $0x198] sm:$0xff]   ;;  %v4798_v0 = vld [vmem:[%s6043_s1 + $0x168] sm:$0xff]  }
  0x19   : > { %4212 = vmatpush3.bf16.msra.mxu1 %v4747_v19  ;;  %4173 = vmatprep.subr.bf16.mxu0 %v4748_v20  ;;  %v4792_v58 = vld [vmem:[%s5280_s12 + $0x1b0] ss:$108 sps:$4 sm:$0xff]   ;;  %v4794_v60 = vld [vmem:[%s6043_s1 + $0x160] sm:$0xff]   ;;  %v4799_v1 = vld [vmem:[%s6043_s1 + $0x128] sm:$0xff]  }
  0x1a   : > { %4213 = vmatprep.subr.bf16.mxu1 %v4749_v21  ;;  %v4795_v61 = vld [vmem:[%s6043_s1 + $0x120] sm:$0xff]   ;;  %v4800_v2 = vld [vmem:[%s6043_s1 + $0x1e8] sm:$0xff]   ;;  %v4807_v7 = vld [vmem:[%s5280_s12 + $0x290] ss:$108 sps:$4 sm:$0xff]  }
  0x1b   : > { %v4796_v62 = vld [vmem:[%s6043_s1 + $0x1e0] sm:$0xff]   ;;  %v4801_v3 = vld [vmem:[%s5280_s12 + $0x28c] ss:$108 sps:$4 sm:$0xff]   ;;  %v4806_v6 = vld [vmem:[%s5280_s12 + $0x288] ss:$108 sps:$4 sm:$0xff]  }
  0x1c   : > { %4174 = vmatpush3.bf16.msra.mxu0 %v4750_v22  ;;  %v4797_v63 = vld [vmem:[%s6043_s1 + $0x1a0] sm:$0xff]   ;;  %v4805_v5 = vld [vmem:[%s6043_s1 + $0x1a8] sm:$0xff]   ;;  %v4808_v8 = vld [vmem:[%s6043_s1 + $0x170] sm:$0xff]  }
  0x1d   : > { %4214 = vmatpush3.bf16.msra.mxu1 %v4751_v23  ;;  %4175 = vmatprep.subr.bf16.mxu0 %v4752_v24  ;;  %v4803_v4 = vld [vmem:[%s5280_s12 + $0x294] ss:$108 sps:$4 sm:$0xff]   ;;  %v4812_v12 = vld [vmem:[%s6043_s1 + $0x178] sm:$0xff]   ;;  %v4826_v24 = vld [vmem:[%s6043_s1 + $0x248] sm:$0xff]  }
  0x1e   : > { %4215 = vmatprep.subr.bf16.mxu1 %v4753_v25  ;;  %v4809_v9 = vld [vmem:[%s6043_s1 + $0x130] sm:$0xff]   ;;  %v4813_v13 = vld [vmem:[%s6043_s1 + $0x138] sm:$0xff]   ;;  %v4819_v18 = vld [vmem:[%s6043_s1 + $0x240] sm:$0xff]  }
  0x1f   : > { %v4810_v10 = vld [vmem:[%s6043_s1 + $0x1f0] sm:$0xff]   ;;  %v4814_v14 = vld [vmem:[%s6043_s1 + $0x1f8] sm:$0xff]   ;;  %v4823_v21 = vld [vmem:[%s6043_s1 + $0x200] sm:$0xff]  }
  0x20   : > { %4176 = vmatpush3.bf16.msra.mxu0 %v4754_v26  ;;  %v4811_v11 = vld [vmem:[%s6043_s1 + $0x1b0] sm:$0xff]   ;;  %v4818_v17 = vld [vmem:[%s6043_s1 + $0x1b8] sm:$0xff]   ;;  %v4824_v22 = vld [vmem:[%s6043_s1 + $0x2c0] sm:$0xff]  }
  0x21   : > { %4216 = vmatpush3.bf16.msra.mxu1 %v4755_v27  ;;  %4177 = vmatprep.subr.bf16.mxu0 %v4756_v28  ;;  %v4815_v15 = vld [vmem:[%s5280_s12 + $0x10] ss:$108 sps:$4 sm:$0xff]   ;;  %v4817_v16 = vld [vmem:[%s5280_s12 + $0x14] ss:$108 sps:$4 sm:$0xff]   ;;  %v4820_v19 = vld [vmem:[%s5280_s12 + $0x18] ss:$108 sps:$4 sm:$0xff]  }
  0x22   : > { %4217 = vmatprep.subr.bf16.mxu1 %v4757_v29  ;;  %v4822_v20 = vld [vmem:[%s5280_s12 + $0x1c] ss:$108 sps:$4 sm:$0xff]   ;;  %v4825_v23 = vld [vmem:[%s6043_s1 + $0x280] sm:$0xff]   ;;  %v4829_v27 = vld [vmem:[%s5280_s12 + $0xec] ss:$108 sps:$4 sm:$0xff]  }
  0x23   : > { %v4827_v25 = vld [vmem:[%s6043_s1 + $0x208] sm:$0xff]   ;;  %v4837_v33 = vld [vmem:[%s5280_s12 + $0xf0] ss:$108 sps:$4 sm:$0xff]  }
  0x24   : > { %4178 = vmatpush3.bf16.msra.mxu0 %v4758_v30  ;;  %v4828_v26 = vld [vmem:[%s6043_s1 + $0x2c8] sm:$0xff]   ;;  %v4833_v30 = vld [vmem:[%s6043_s1 + $0x250] sm:$0xff]  }
  0x25   : > { %4218 = vmatpush3.bf16.msra.mxu1 %v4759_v31  ;;  %4243 = vmatprep.subr.bf16.mxu0 %v4766_v36  ;;  %v4831_v28 = vld [vmem:[%s6043_s1 + $0x288] sm:$0xff]   ;;  %v4834_v31 = vld [vmem:[%s5280_s12 + $0xf4] ss:$108 sps:$4 sm:$0xff]   ;;  %v4840_v36 = vld [vmem:[%s6043_s1 + $0x258] sm:$0xff]  }
  0x26   : > { %4283 = vmatprep.subr.bf16.mxu1 %v4768_v38  ;;  %v4832_v29 = vld [vmem:[%s5280_s12 + $0xe8] ss:$108 sps:$4 sm:$0xff]   ;;  %v4842_v38 = vld [vmem:[%s6043_s1 + $0x2d8] sm:$0xff]  }
  0x27   : > { %2671 = vmatmul.mubr.bf16.vlgmr.msra.gmra.mrb[0].mxu0 %v4760_v32  ;;  %v4836_v32 = vld [vmem:[%s6043_s1 + $0x210] sm:$0xff]  }
  0x28   : > { %2736 = vmatmul.mubr.bf16.vlgmr.msra.gmra.mrb[0].mxu1 %v4763_v34  ;;  %4244 = vmatpush3.bf16.msra.mxu0 %v4767_v37  ;;  %v4838_v34 = vld [vmem:[%s6043_s1 + $0x2d0] sm:$0xff]   ;;  %v4841_v37 = vld [vmem:[%s6043_s1 + $0x218] sm:$0xff]  }
  0x29   : > { %4284 = vmatpush3.bf16.msra.mxu1 %v4769_v39  ;;  %4245 = vmatprep.subr.bf16.mxu0 %v4770_v40  ;;  %v4839_v35 = vld [vmem:[%s6043_s1 + $0x290] sm:$0xff]   ;;  %v4845_v40 = vld [vmem:[%s6043_s1 + $0x298] sm:$0xff]  }
  0x2a   : > { %4285 = vmatprep.subr.bf16.mxu1 %v4772_v42  ;;  %2678 = vmatprep.mubr.bf16.mxu0 %v4773_v43  ;;  %v4843_v39 = vld [vmem:[%s5280_s12 + $0x1c4] ss:$108 sps:$4 sm:$0xff]   ;;  %v4848_v43 = vld [vmem:[%s5280_s12 + $0x1cc] ss:$108 sps:$4 sm:$0xff]  }
  0x2b   : > { %2743 = vmatprep.mubr.bf16.mxu1 %v4775_v44  ;;  %v4847_v42 = vld [vmem:[%s6043_s1 + $0x260] sm:$0xff]  }
  0x2c   : > { %4246 = vmatpush3.bf16.msra.mxu0 %v4771_v41  ;;  %v4846_v41 = vld [vmem:[%s5280_s12 + $0x1c0] ss:$108 sps:$4 sm:$0xff]  }
  0x2d   : > { %4286 = vmatpush3.bf16.msra.mxu1 %v4777_v45  ;;  %4247 = vmatprep.subr.bf16.mxu0 %v4780_v48  ;;  %v4850_v44 = vld [vmem:[%s6043_s1 + $0x220] sm:$0xff]   ;;  %v4851_v45 = vld [vmem:[%s5280_s12 + $0x1c8] ss:$108 sps:$4 sm:$0xff]  }
  0x2e   : > { %4287 = vmatprep.subr.bf16.mxu1 %v4782_v50  ;;  %v4854_v48 = vld [vmem:[%s6043_s1 + $0x268] sm:$0xff]  }
  0x2f   : > { %2679 = vmatmul.mubr.bf16.gmra.mrb[4].mxu0 %v4778_v46  ;;  %v4852_v46 = vld [vmem:[%s6043_s1 + $0x2e0] sm:$0xff]   ;;  %v4856_v50 = vld [vmem:[%s6043_s1 + $0x2e8] sm:$0xff]  }
  0x30   : > { %2744 = vmatmul.mubr.bf16.gmra.mrb[4].mxu1 %v4779_v47  ;;  %4248 = vmatpush3.bf16.msra.mxu0 %v4781_v49  ;;  %v4853_v47 = vld [vmem:[%s6043_s1 + $0x2a0] sm:$0xff]   ;;  %v4855_v49 = vld [vmem:[%s6043_s1 + $0x228] sm:$0xff]  }
  0x31   : > { %4288 = vmatpush3.bf16.msra.mxu1 %v4783_v51  ;;  %4249 = vmatprep.subr.bf16.mxu0 %v4784_v52  ;;  %v4857_v51 = vld [vmem:[%s5280_s12 + $0x29c] ss:$108 sps:$4 sm:$0xff]  }
  0x32   : > { %4289 = vmatprep.subr.bf16.mxu1 %v4786_v54  ;;  %2686 = vmatprep.mubr.bf16.mxu0 %v4787_v55  ;;  %v4859_v52 = vld [vmem:[%s6043_s1 + $0x2a8] sm:$0xff]   ;;  %v4861_v54 = vld [vmem:[%s6043_s1 + $0x270] sm:$0xff]  }
  0x33   : > { %2751 = vmatprep.mubr.bf16.mxu1 %v4789_v56  ;;  %v4862_v55 = vld [vmem:[%s5280_s12 + $0x2a4] ss:$108 sps:$4 sm:$0xff]  }
  0x34   : > { %4250 = vmatpush3.bf16.msra.mxu0 %v4785_v53  ;;  %v4860_v53 = vld [vmem:[%s5280_s12 + $0x298] ss:$108 sps:$4 sm:$0xff]   ;;  %v4864_v56 = vld [vmem:[%s6043_s1 + $0x230] sm:$0xff]  }
  0x35   : > { %4290 = vmatpush3.bf16.msra.mxu1 %v4791_v57  ;;  %4251 = vmatprep.subr.bf16.mxu0 %v4794_v60  ;;  %v4865_v57 = vld [vmem:[%s5280_s12 + $0x2a0] ss:$108 sps:$4 sm:$0xff]   ;;  %v4868_v60 = vld [vmem:[%s6043_s1 + $0x278] sm:$0xff]  }
  0x36   : > { %4291 = vmatprep.subr.bf16.mxu1 %v4796_v62  ;;  %v4870_v62 = vld [vmem:[%s6043_s1 + $0x2f8] sm:$0xff]  }
  0x37   : > { %2687 = vmatmul.mubr.bf16.gmra.mrb[8].mxu0 %v4792_v58  ;;  %v4866_v58 = vld [vmem:[%s6043_s1 + $0x2f0] sm:$0xff]  }
  0x38   : > { %2752 = vmatmul.mubr.bf16.gmra.mrb[8].mxu1 %v4793_v59  ;;  %4252 = vmatpush3.bf16.msra.mxu0 %v4795_v61  ;;  %v4867_v59 = vld [vmem:[%s6043_s1 + $0x2b0] sm:$0xff]   ;;  %v4869_v61 = vld [vmem:[%s6043_s1 + $0x238] sm:$0xff]  }
  0x39   : > { %4292 = vmatpush3.bf16.msra.mxu1 %v4797_v63  ;;  %4253 = vmatprep.subr.bf16.mxu0 %v4798_v0  ;;  %v4871_v63 = vld [vmem:[%s5280_s12 + $0x20] ss:$108 sps:$4 sm:$0xff]   ;;  %v4873_v0 = vld [vmem:[%s5280_s12 + $0x24] ss:$108 sps:$4 sm:$0xff]  }
  0x3a   : > { %4293 = vmatprep.subr.bf16.mxu1 %v4800_v2  ;;  %2694 = vmatprep.mubr.bf16.mxu0 %v4801_v3  ;;  %v4875_v2 = vld [vmem:[%s6043_s1 + $0x340] sm:$0xff]   ;;  %v4876_v3 = vld [vmem:[%s5280_s12 + $0x28] ss:$108 sps:$4 sm:$0xff]  }
  0x3b   : > { %2759 = vmatprep.mubr.bf16.mxu1 %v4803_v4  ;;  %v4878_v4 = vld [vmem:[%s5280_s12 + $0x2c] ss:$108 sps:$4 sm:$0xff]  }
  0x3c   : > { %4254 = vmatpush3.bf16.msra.mxu0 %v4799_v1  ;;  %v4874_v1 = vld [vmem:[%s6043_s1 + $0x2b8] sm:$0xff]  }
  0x3d   : > { %4294 = vmatpush3.bf16.msra.mxu1 %v4805_v5  ;;  %4255 = vmatprep.subr.bf16.mxu0 %v4808_v8  ;;  %v4879_v5 = vld [vmem:[%s6043_s1 + $0x300] sm:$0xff]   ;;  %v4882_v8 = vld [vmem:[%s6043_s1 + $0x348] sm:$0xff]  }
  0x3e   : > { %4295 = vmatprep.subr.bf16.mxu1 %v4810_v10  ;;  %v4884_v10 = vld [vmem:[%s6043_s1 + $0x3c8] sm:$0xff]  }
  0x3f   : > { %2695 = vmatmul.mubr.bf16.gmra.mrb[12].mxu0 %v4806_v6  ;;  %v4880_v6 = vld [vmem:[%s6043_s1 + $0x3c0] sm:$0xff]  }
  0x40   : > { %2760 = vmatmul.mubr.bf16.gmra.mrb[12].mxu1 %v4807_v7  ;;  %4256 = vmatpush3.bf16.msra.mxu0 %v4809_v9  ;;  %v4881_v7 = vld [vmem:[%s6043_s1 + $0x380] sm:$0xff]   ;;  %v4883_v9 = vld [vmem:[%s6043_s1 + $0x308] sm:$0xff]  }
  0x41   : > { %4296 = vmatpush3.bf16.msra.mxu1 %v4811_v11  ;;  %4257 = vmatprep.subr.bf16.mxu0 %v4812_v12  ;;  %v4885_v11 = vld [vmem:[%s5280_s12 + $0xfc] ss:$108 sps:$4 sm:$0xff]  }
  0x42   : > { %4297 = vmatprep.subr.bf16.mxu1 %v4814_v14  ;;  %2800 = vmatprep.mubr.bf16.mxu0 %v4817_v16  ;;  %v4887_v12 = vld [vmem:[%s6043_s1 + $0x388] sm:$0xff]   ;;  %v4889_v14 = vld [vmem:[%s6043_s1 + $0x350] sm:$0xff]  }
  0x43   : > { %2865 = vmatprep.mubr.bf16.mxu1 %v4822_v20  ;;  %v4892_v16 = vld [vmem:[%s6043_s1 + $0x310] sm:$0xff]   ;;  %v4896_v20 = vld [vmem:[%s6043_s1 + $0x358] sm:$0xff]  }
  0x44   : > { %4258 = vmatpush3.bf16.msra.mxu0 %v4813_v13  ;;  %v4888_v13 = vld [vmem:[%s5280_s12 + $0xf8] ss:$108 sps:$4 sm:$0xff]  }
  0x45   : > { %4298 = vmatpush3.bf16.msra.mxu1 %v4818_v17  ;;  %4323 = vmatprep.subr.bf16.mxu0 %v4819_v18  ;;  %v4893_v17 = vld [vmem:[%s5280_s12 + $0x100] ss:$108 sps:$4 sm:$0xff]   ;;  %v4894_v18 = vld [vmem:[%s6043_s1 + $0x3d0] sm:$0xff]  }
  0x46   : > { %4363 = vmatprep.subr.bf16.mxu1 %v4824_v22  ;;  %v4898_v22 = vld [vmem:[%s6043_s1 + $0x3d8] sm:$0xff]  }
  0x47   : > { %2801 = vmatmul.mubr.bf16.vlgmr.msra.gmra.mrb[16].mxu0 %v4815_v15  ;;  %v4890_v15 = vld [vmem:[%s5280_s12 + $0x104] ss:$108 sps:$4 sm:$0xff]  }
  0x48   : > { %4324 = vmatpush3.bf16.msra.mxu0 %v4823_v21  ;;  %2866 = vmatmul.mubr.bf16.vlgmr.msra.gmra.mrb[16].mxu1 %v4820_v19  ;;  %v4895_v19 = vld [vmem:[%s6043_s1 + $0x390] sm:$0xff]   ;;  %v4897_v21 = vld [vmem:[%s6043_s1 + $0x318] sm:$0xff]  }
  0x49   : > { %4364 = vmatpush3.bf16.msra.mxu1 %v4825_v23  ;;  %4325 = vmatprep.subr.bf16.mxu0 %v4826_v24  ;;  %v4899_v23 = vld [vmem:[%s5280_s12 + $0x1d4] ss:$108 sps:$4 sm:$0xff]   ;;  %v4901_v24 = vld [vmem:[%s6043_s1 + $0x398] sm:$0xff]  }
  0x4a   : > { %4365 = vmatprep.subr.bf16.mxu1 %v4828_v26  ;;  %2808 = vmatprep.mubr.bf16.mxu0 %v4829_v27  ;;  %v4903_v26 = vld [vmem:[%s6043_s1 + $0x360] sm:$0xff]   ;;  %v4904_v27 = vld [vmem:[%s5280_s12 + $0x1dc] ss:$108 sps:$4 sm:$0xff]  }
  0x4b   : > { %2873 = vmatprep.mubr.bf16.mxu1 %v4834_v31  ;;  %v4909_v31 = vld [vmem:[%s6043_s1 + $0x3a0] sm:$0xff]  }
  0x4c   : > { %4326 = vmatpush3.bf16.msra.mxu0 %v4827_v25  ;;  %v4902_v25 = vld [vmem:[%s5280_s12 + $0x1d0] ss:$108 sps:$4 sm:$0xff]  }
  0x4d   : > { %4366 = vmatpush3.bf16.msra.mxu1 %v4831_v28  ;;  %4327 = vmatprep.subr.bf16.mxu0 %v4833_v30  ;;  %v4906_v28 = vld [vmem:[%s6043_s1 + $0x320] sm:$0xff]  }
  0x4e   : > { %4367 = vmatprep.subr.bf16.mxu1 %v4838_v34  ;;  %v4908_v30 = vld [vmem:[%s6043_s1 + $0x3e0] sm:$0xff]   ;;  %v4912_v34 = vld [vmem:[%s6043_s1 + $0x3e8] sm:$0xff]  }
  0x4f   : > { %2809 = vmatmul.mubr.bf16.gmra.mrb[20].mxu0 %v4832_v29  ;;  %v4907_v29 = vld [vmem:[%s5280_s12 + $0x1d8] ss:$108 sps:$4 sm:$0xff]  }
  0x50   : > { %4328 = vmatpush3.bf16.msra.mxu0 %v4836_v32  ;;  %2874 = vmatmul.mubr.bf16.gmra.mrb[20].mxu1 %v4837_v33  ;;  %v4910_v32 = vld [vmem:[%s6043_s1 + $0x368] sm:$0xff]  }
  0x51   : > { %4368 = vmatpush3.bf16.msra.mxu1 %v4839_v35  ;;  %4329 = vmatprep.subr.bf16.mxu0 %v4840_v36  ;;  %v4911_v33 = vld [vmem:[%s6043_s1 + $0x328] sm:$0xff]  }
  0x52   : > { %4369 = vmatprep.subr.bf16.mxu1 %v4842_v38  ;;  %2816 = vmatprep.mubr.bf16.mxu0 %v4843_v39  ;;  %v4913_v35 = vld [vmem:[%s5280_s12 + $0x2ac] ss:$108 sps:$4 sm:$0xff]   ;;  %v4917_v38 = vld [vmem:[%s6043_s1 + $0x370] sm:$0xff]  }
  0x53   : > { %2881 = vmatprep.mubr.bf16.mxu1 %v4848_v43  ;;  %v4915_v36 = vld [vmem:[%s6043_s1 + $0x3a8] sm:$0xff]   ;;  %v4918_v39 = vld [vmem:[%s5280_s12 + $0x2b4] ss:$108 sps:$4 sm:$0xff]  }
  0x54   : > { %4330 = vmatpush3.bf16.msra.mxu0 %v4841_v37  ;;  %v4916_v37 = vld [vmem:[%s5280_s12 + $0x2a8] ss:$108 sps:$4 sm:$0xff]  }
  0x55   : > { %4370 = vmatpush3.bf16.msra.mxu1 %v4845_v40  ;;  %4331 = vmatprep.subr.bf16.mxu0 %v4847_v42  ;;  %v4920_v40 = vld [vmem:[%s6043_s1 + $0x330] sm:$0xff]  }
  0x56   : > { %4371 = vmatprep.subr.bf16.mxu1 %v4852_v46  ;;  %v4922_v42 = vld [vmem:[%s6043_s1 + $0x3f0] sm:$0xff]   ;;  %v4926_v46 = vld [vmem:[%s6043_s1 + $0x3f8] sm:$0xff]  }
  0x57   : > { %2817 = vmatmul.mubr.bf16.gmra.mrb[24].mxu0 %v4846_v41  ;;  %v4921_v41 = vld [vmem:[%s5280_s12 + $0x2b0] ss:$108 sps:$4 sm:$0xff]  }
  0x58   : > { %4332 = vmatpush3.bf16.msra.mxu0 %v4850_v44  ;;  %2882 = vmatmul.mubr.bf16.gmra.mrb[24].mxu1 %v4851_v45  ;;  %v4923_v43 = vld [vmem:[%s6043_s1 + $0x3b0] sm:$0xff]   ;;  %v4924_v44 = vld [vmem:[%s6043_s1 + $0x378] sm:$0xff]  }
  0x59   : > { %4372 = vmatpush3.bf16.msra.mxu1 %v4853_v47  ;;  %4333 = vmatprep.subr.bf16.mxu0 %v4854_v48  ;;  %v4925_v45 = vld [vmem:[%s6043_s1 + $0x338] sm:$0xff]   ;;  %v4929_v48 = vld [vmem:[%s5280_s12 + $0x34] ss:$108 sps:$4 sm:$0xff]  }
  0x5a   : > { %4373 = vmatprep.subr.bf16.mxu1 %v4856_v50  ;;  %2824 = vmatprep.mubr.bf16.mxu0 %v4857_v51  ;;  %v4927_v47 = vld [vmem:[%s5280_s12 + $0x30] ss:$108 sps:$4 sm:$0xff]   ;;  %v4931_v50 = vld [vmem:[%s6043_s1 + $0x440] sm:$0xff]  }
  0x5b   : > { %2889 = vmatprep.mubr.bf16.mxu1 %v4862_v55  ;;  %v4932_v51 = vld [vmem:[%s5280_s12 + $0x38] ss:$108 sps:$4 sm:$0xff]  }
  0x5c   : > { %4334 = vmatpush3.bf16.msra.mxu0 %v4855_v49  ;;  %v4930_v49 = vld [vmem:[%s6043_s1 + $0x3b8] sm:$0xff]   ;;  %v4937_v55 = vld [vmem:[%s6043_s1 + $0x480] sm:$0xff]  }
  0x5d   : > { %4374 = vmatpush3.bf16.msra.mxu1 %v4859_v52  ;;  %4335 = vmatprep.subr.bf16.mxu0 %v4861_v54  ;;  %v4934_v52 = vld [vmem:[%s5280_s12 + $0x3c] ss:$108 sps:$4 sm:$0xff]   ;;  %v4936_v54 = vld [vmem:[%s6043_s1 + $0x4c0] sm:$0xff]  }
  0x5e   : > { %4375 = vmatprep.subr.bf16.mxu1 %v4866_v58  ;;  %v4940_v58 = vld [vmem:[%s6043_s1 + $0x4c8] sm:$0xff]  }
  0x5f   : > { %2825 = vmatmul.mubr.bf16.gmra.mrb[28].mxu0 %v4860_v53  ;;  %v4935_v53 = vld [vmem:[%s6043_s1 + $0x400] sm:$0xff]  }
  0x60   : > { %4336 = vmatpush3.bf16.msra.mxu0 %v4864_v56  ;;  %2890 = vmatmul.mubr.bf16.gmra.mrb[28].mxu1 %v4865_v57  ;;  %v4938_v56 = vld [vmem:[%s6043_s1 + $0x448] sm:$0xff]  }
  0x61   : > { %4376 = vmatpush3.bf16.msra.mxu1 %v4867_v59  ;;  %4337 = vmatprep.subr.bf16.mxu0 %v4868_v60  ;;  %v4939_v57 = vld [vmem:[%s6043_s1 + $0x408] sm:$0xff]  }
  0x62   : > { %4377 = vmatprep.subr.bf16.mxu1 %v4870_v62  ;;  %2930 = vmatprep.mubr.bf16.mxu0 %v4873_v0  ;;  %v4941_v59 = vld [vmem:[%s5280_s12 + $0x10c] ss:$108 sps:$4 sm:$0xff]   ;;  %v4945_v62 = vld [vmem:[%s6043_s1 + $0x450] sm:$0xff]  }
  0x63   : > { %2995 = vmatprep.mubr.bf16.mxu1 %v4878_v4  ;;  %v4943_v60 = vld [vmem:[%s6043_s1 + $0x488] sm:$0xff]   ;;  %v4948_v0 = vld [vmem:[%s6043_s1 + $0x410] sm:$0xff]   ;;  %v4952_v4 = vld [vmem:[%s6043_s1 + $0x458] sm:$0xff]  }
  0x64   : > { %4338 = vmatpush3.bf16.msra.mxu0 %v4869_v61  ;;  %v4944_v61 = vld [vmem:[%s5280_s12 + $0x108] ss:$108 sps:$4 sm:$0xff]  }
  0x65   : > { %4378 = vmatpush3.bf16.msra.mxu1 %v4874_v1  ;;  %4403 = vmatprep.subr.bf16.mxu0 %v4875_v2  ;;  %v4949_v1 = vld [vmem:[%s5280_s12 + $0x110] ss:$108 sps:$4 sm:$0xff]  }
  0x66   : > { %4443 = vmatprep.subr.bf16.mxu1 %v4880_v6  ;;  %v4950_v2 = vld [vmem:[%s6043_s1 + $0x4d0] sm:$0xff]   ;;  %v4954_v6 = vld [vmem:[%s6043_s1 + $0x4d8] sm:$0xff]  }
  0x67   : > { %2931 = vmatmul.mubr.bf16.vlgmr.msra.gmra.mrb[32].mxu0 %v4871_v63  ;;  %v4946_v63 = vld [vmem:[%s5280_s12 + $0x114] ss:$108 sps:$4 sm:$0xff]  }
  0x68   : > { %4404 = vmatpush3.bf16.msra.mxu0 %v4879_v5  ;;  %2996 = vmatmul.mubr.bf16.vlgmr.msra.gmra.mrb[32].mxu1 %v4876_v3  ;;  %v4951_v3 = vld [vmem:[%s6043_s1 + $0x490] sm:$0xff]   ;;  %v4953_v5 = vld [vmem:[%s6043_s1 + $0x418] sm:$0xff]  }
  0x69   : > { %4444 = vmatpush3.bf16.msra.mxu1 %v4881_v7  ;;  %4405 = vmatprep.subr.bf16.mxu0 %v4882_v8  ;;  %v4955_v7 = vld [vmem:[%s5280_s12 + $0x1e4] ss:$108 sps:$4 sm:$0xff]   ;;  %v4957_v8 = vld [vmem:[%s6043_s1 + $0x498] sm:$0xff]  }
  0x6a   : > { %4445 = vmatprep.subr.bf16.mxu1 %v4884_v10  ;;  %2938 = vmatprep.mubr.bf16.mxu0 %v4885_v11  ;;  %v4959_v10 = vld [vmem:[%s6043_s1 + $0x460] sm:$0xff]   ;;  %v4960_v11 = vld [vmem:[%s5280_s12 + $0x1ec] ss:$108 sps:$4 sm:$0xff]  }
  0x6b   : > { %3003 = vmatprep.mubr.bf16.mxu1 %v4890_v15  ;;  %v4965_v15 = vld [vmem:[%s6043_s1 + $0x4a0] sm:$0xff]  }
  0x6c   : > { %4406 = vmatpush3.bf16.msra.mxu0 %v4883_v9  ;;  %v4958_v9 = vld [vmem:[%s5280_s12 + $0x1e0] ss:$108 sps:$4 sm:$0xff]  }
  0x6d   : > { %4446 = vmatpush3.bf16.msra.mxu1 %v4887_v12  ;;  %4407 = vmatprep.subr.bf16.mxu0 %v4889_v14  ;;  %v4962_v12 = vld [vmem:[%s6043_s1 + $0x420] sm:$0xff]  }
  0x6e   : > { %4447 = vmatprep.subr.bf16.mxu1 %v4894_v18  ;;  %v4964_v14 = vld [vmem:[%s6043_s1 + $0x4e0] sm:$0xff]   ;;  %v4968_v18 = vld [vmem:[%s6043_s1 + $0x4e8] sm:$0xff]  }
  0x6f   : > { %2939 = vmatmul.mubr.bf16.gmra.mrb[36].mxu0 %v4888_v13  ;;  %v4963_v13 = vld [vmem:[%s5280_s12 + $0x1e8] ss:$108 sps:$4 sm:$0xff]  }
  0x70   : > { %4408 = vmatpush3.bf16.msra.mxu0 %v4892_v16  ;;  %3004 = vmatmul.mubr.bf16.gmra.mrb[36].mxu1 %v4893_v17  ;;  %v4966_v16 = vld [vmem:[%s6043_s1 + $0x468] sm:$0xff]  }
  0x71   : > { %4448 = vmatpush3.bf16.msra.mxu1 %v4895_v19  ;;  %4409 = vmatprep.subr.bf16.mxu0 %v4896_v20  ;;  %v4967_v17 = vld [vmem:[%s6043_s1 + $0x428] sm:$0xff]  }
  0x72   : > { %4449 = vmatprep.subr.bf16.mxu1 %v4898_v22  ;;  %2946 = vmatprep.mubr.bf16.mxu0 %v4899_v23  ;;  %v4969_v19 = vld [vmem:[%s5280_s12 + $0x2bc] ss:$108 sps:$4 sm:$0xff]   ;;  %v4973_v22 = vld [vmem:[%s6043_s1 + $0x470] sm:$0xff]  }
  0x73   : > { %3011 = vmatprep.mubr.bf16.mxu1 %v4904_v27  ;;  %v4971_v20 = vld [vmem:[%s6043_s1 + $0x4a8] sm:$0xff]   ;;  %v4974_v23 = vld [vmem:[%s5280_s12 + $0x2c4] ss:$108 sps:$4 sm:$0xff]  }
  0x74   : > { %4410 = vmatpush3.bf16.msra.mxu0 %v4897_v21  ;;  %v4972_v21 = vld [vmem:[%s5280_s12 + $0x2b8] ss:$108 sps:$4 sm:$0xff]   ;;  %v4979_v27 = vld [vmem:[%s6043_s1 + $0x4b0] sm:$0xff]  }
  0x75   : > { %4450 = vmatpush3.bf16.msra.mxu1 %v4901_v24  ;;  %4411 = vmatprep.subr.bf16.mxu0 %v4903_v26  ;;  %v4976_v24 = vld [vmem:[%s6043_s1 + $0x430] sm:$0xff]  }
  0x76   : > { %4451 = vmatprep.subr.bf16.mxu1 %v4908_v30  ;;  %v4978_v26 = vld [vmem:[%s6043_s1 + $0x4f0] sm:$0xff]   ;;  %v4982_v30 = vld [vmem:[%s6043_s1 + $0x4f8] sm:$0xff]  }
  0x77   : > { %2947 = vmatmul.mubr.bf16.gmra.mrb[40].mxu0 %v4902_v25  ;;  %v4977_v25 = vld [vmem:[%s5280_s12 + $0x2c0] ss:$108 sps:$4 sm:$0xff]  }
  0x78   : > { %4412 = vmatpush3.bf16.msra.mxu0 %v4906_v28  ;;  %3012 = vmatmul.mubr.bf16.gmra.mrb[40].mxu1 %v4907_v29  ;;  %v4980_v28 = vld [vmem:[%s6043_s1 + $0x478] sm:$0xff]  }
  0x79   : > { %4452 = vmatpush3.bf16.msra.mxu1 %v4909_v31  ;;  %4413 = vmatprep.subr.bf16.mxu0 %v4910_v32  ;;  %v4981_v29 = vld [vmem:[%s6043_s1 + $0x438] sm:$0xff]   ;;  %v4983_v31 = vld [vmem:[%s5280_s12 + $0x40] ss:$108 sps:$4 sm:$0xff]   ;;  %v4985_v32 = vld [vmem:[%s5280_s12 + $0x44] ss:$108 sps:$4 sm:$0xff]  }
  0x7a   : > { %4453 = vmatprep.subr.bf16.mxu1 %v4912_v34  ;;  %2954 = vmatprep.mubr.bf16.mxu0 %v4913_v35  ;;  %v4987_v34 = vld [vmem:[%s6043_s1 + $0x540] sm:$0xff]   ;;  %v4988_v35 = vld [vmem:[%s5280_s12 + $0x48] ss:$108 sps:$4 sm:$0xff]  }
  0x7b   : > { %3019 = vmatprep.mubr.bf16.mxu1 %v4918_v39  ;;  %v4993_v39 = vld [vmem:[%s6043_s1 + $0x580] sm:$0xff]  }
  0x7c   : > { %4414 = vmatpush3.bf16.msra.mxu0 %v4911_v33  ;;  %v4986_v33 = vld [vmem:[%s6043_s1 + $0x4b8] sm:$0xff]  }
  0x7d   : > { %4454 = vmatpush3.bf16.msra.mxu1 %v4915_v36  ;;  %4415 = vmatprep.subr.bf16.mxu0 %v4917_v38  ;;  %v4990_v36 = vld [vmem:[%s5280_s12 + $0x4c] ss:$108 sps:$4 sm:$0xff]   ;;  %v4992_v38 = vld [vmem:[%s6043_s1 + $0x5c0] sm:$0xff]  }
  0x7e   : > { %4455 = vmatprep.subr.bf16.mxu1 %v4922_v42  ;;  %v4996_v42 = vld [vmem:[%s6043_s1 + $0x5c8] sm:$0xff]  }
  0x7f   : > { %2955 = vmatmul.mubr.bf16.gmra.mrb[44].mxu0 %v4916_v37  ;;  %v4991_v37 = vld [vmem:[%s6043_s1 + $0x500] sm:$0xff]  }
  0x80   : > { %4416 = vmatpush3.bf16.msra.mxu0 %v4920_v40  ;;  %3020 = vmatmul.mubr.bf16.gmra.mrb[44].mxu1 %v4921_v41  ;;  %v4994_v40 = vld [vmem:[%s6043_s1 + $0x548] sm:$0xff]  }
  0x81   : > { %4456 = vmatpush3.bf16.msra.mxu1 %v4923_v43  ;;  %4417 = vmatprep.subr.bf16.mxu0 %v4924_v44  ;;  %v4995_v41 = vld [vmem:[%s6043_s1 + $0x508] sm:$0xff]  }
  0x82   : > { %4457 = vmatprep.subr.bf16.mxu1 %v4926_v46  ;;  %3060 = vmatprep.mubr.bf16.mxu0 %v4929_v48  ;;  %v4997_v43 = vld [vmem:[%s5280_s12 + $0x11c] ss:$108 sps:$4 sm:$0xff]   ;;  %v5001_v46 = vld [vmem:[%s6043_s1 + $0x550] sm:$0xff]  }
  0x83   : > { %3125 = vmatprep.mubr.bf16.mxu1 %v4934_v52  ;;  %v4999_v44 = vld [vmem:[%s6043_s1 + $0x588] sm:$0xff]   ;;  %v5004_v48 = vld [vmem:[%s6043_s1 + $0x510] sm:$0xff]   ;;  %v5008_v52 = vld [vmem:[%s6043_s1 + $0x558] sm:$0xff]  }
  0x84   : > { %4418 = vmatpush3.bf16.msra.mxu0 %v4925_v45  ;;  %v5000_v45 = vld [vmem:[%s5280_s12 + $0x118] ss:$108 sps:$4 sm:$0xff]  }
  0x85   : > { %4458 = vmatpush3.bf16.msra.mxu1 %v4930_v49  ;;  %4483 = vmatprep.subr.bf16.mxu0 %v4931_v50  ;;  %v5005_v49 = vld [vmem:[%s5280_s12 + $0x120] ss:$108 sps:$4 sm:$0xff]   ;;  %v5006_v50 = vld [vmem:[%s6043_s1 + $0x5d0] sm:$0xff]  }
  0x86   : > { %4523 = vmatprep.subr.bf16.mxu1 %v4936_v54  ;;  %v5010_v54 = vld [vmem:[%s6043_s1 + $0x5d8] sm:$0xff]  }
  0x87   : > { %3061 = vmatmul.mubr.bf16.vlgmr.msra.gmra.mrb[48].mxu0 %v4927_v47  ;;  %v5002_v47 = vld [vmem:[%s5280_s12 + $0x124] ss:$108 sps:$4 sm:$0xff]  }
  0x88   : > { %4484 = vmatpush3.bf16.msra.mxu0 %v4935_v53  ;;  %3126 = vmatmul.mubr.bf16.vlgmr.msra.gmra.mrb[48].mxu1 %v4932_v51  ;;  %v5007_v51 = vld [vmem:[%s6043_s1 + $0x590] sm:$0xff]   ;;  %v5009_v53 = vld [vmem:[%s6043_s1 + $0x518] sm:$0xff]  }
  0x89   : > { %4524 = vmatpush3.bf16.msra.mxu1 %v4937_v55  ;;  %4485 = vmatprep.subr.bf16.mxu0 %v4938_v56  ;;  %v5011_v55 = vld [vmem:[%s5280_s12 + $0x1f4] ss:$108 sps:$4 sm:$0xff]   ;;  %v5013_v56 = vld [vmem:[%s6043_s1 + $0x598] sm:$0xff]  }
  0x8a   : > { %4525 = vmatprep.subr.bf16.mxu1 %v4940_v58  ;;  %3068 = vmatprep.mubr.bf16.mxu0 %v4941_v59  ;;  %v5015_v58 = vld [vmem:[%s6043_s1 + $0x560] sm:$0xff]   ;;  %v5016_v59 = vld [vmem:[%s5280_s12 + $0x1fc] ss:$108 sps:$4 sm:$0xff]  }
  0x8b   : > { %3133 = vmatprep.mubr.bf16.mxu1 %v4946_v63  ;;  %v5021_v63 = vld [vmem:[%s6043_s1 + $0x5a0] sm:$0xff]  }
  0x8c   : > { %4486 = vmatpush3.bf16.msra.mxu0 %v4939_v57  ;;  %v5014_v57 = vld [vmem:[%s5280_s12 + $0x1f0] ss:$108 sps:$4 sm:$0xff]  }
  0x8d   : > { %4526 = vmatpush3.bf16.msra.mxu1 %v4943_v60  ;;  %4487 = vmatprep.subr.bf16.mxu0 %v4945_v62  ;;  %v5018_v60 = vld [vmem:[%s6043_s1 + $0x520] sm:$0xff]  }
  0x8e   : > { %4527 = vmatprep.subr.bf16.mxu1 %v4950_v2  ;;  %v5020_v62 = vld [vmem:[%s6043_s1 + $0x5e0] sm:$0xff]   ;;  %v5024_v2 = vld [vmem:[%s6043_s1 + $0x5e8] sm:$0xff]  }
  0x8f   : > { %3069 = vmatmul.mubr.bf16.gmra.mrb[52].mxu0 %v4944_v61  ;;  %v5019_v61 = vld [vmem:[%s5280_s12 + $0x1f8] ss:$108 sps:$4 sm:$0xff]  }
  0x90   : > { %4488 = vmatpush3.bf16.msra.mxu0 %v4948_v0  ;;  %3134 = vmatmul.mubr.bf16.gmra.mrb[52].mxu1 %v4949_v1  ;;  %v5022_v0 = vld [vmem:[%s6043_s1 + $0x568] sm:$0xff]  }
  0x91   : > { %4528 = vmatpush3.bf16.msra.mxu1 %v4951_v3  ;;  %4489 = vmatprep.subr.bf16.mxu0 %v4952_v4  ;;  %v5023_v1 = vld [vmem:[%s6043_s1 + $0x528] sm:$0xff]  }
  0x92   : > { %4529 = vmatprep.subr.bf16.mxu1 %v4954_v6  ;;  %3076 = vmatprep.mubr.bf16.mxu0 %v4955_v7  ;;  %v5025_v3 = vld [vmem:[%s5280_s12 + $0x2cc] ss:$108 sps:$4 sm:$0xff]   ;;  %v5029_v6 = vld [vmem:[%s6043_s1 + $0x570] sm:$0xff]  }
  0x93   : > { %3141 = vmatprep.mubr.bf16.mxu1 %v4960_v11  ;;  %v5027_v4 = vld [vmem:[%s6043_s1 + $0x5a8] sm:$0xff]   ;;  %v5030_v7 = vld [vmem:[%s5280_s12 + $0x2d4] ss:$108 sps:$4 sm:$0xff]  }
  0x94   : > { %4490 = vmatpush3.bf16.msra.mxu0 %v4953_v5  ;;  %v5028_v5 = vld [vmem:[%s5280_s12 + $0x2c8] ss:$108 sps:$4 sm:$0xff]  }
  0x95   : > { %4530 = vmatpush3.bf16.msra.mxu1 %v4957_v8  ;;  %4491 = vmatprep.subr.bf16.mxu0 %v4959_v10  ;;  %v5032_v8 = vld [vmem:[%s6043_s1 + $0x530] sm:$0xff]  }
  0x96   : > { %4531 = vmatprep.subr.bf16.mxu1 %v4964_v14  ;;  %v5034_v10 = vld [vmem:[%s6043_s1 + $0x5f0] sm:$0xff]   ;;  %v5038_v14 = vld [vmem:[%s6043_s1 + $0x5f8] sm:$0xff]  }
  0x97   : > { %3077 = vmatmul.mubr.bf16.gmra.mrb[56].mxu0 %v4958_v9  ;;  %v5033_v9 = vld [vmem:[%s5280_s12 + $0x2d0] ss:$108 sps:$4 sm:$0xff]  }
  0x98   : > { %4492 = vmatpush3.bf16.msra.mxu0 %v4962_v12  ;;  %3142 = vmatmul.mubr.bf16.gmra.mrb[56].mxu1 %v4963_v13  ;;  %v5035_v11 = vld [vmem:[%s6043_s1 + $0x5b0] sm:$0xff]   ;;  %v5036_v12 = vld [vmem:[%s6043_s1 + $0x578] sm:$0xff]  }
  0x99   : > { %4532 = vmatpush3.bf16.msra.mxu1 %v4965_v15  ;;  %4493 = vmatprep.subr.bf16.mxu0 %v4966_v16  ;;  %v5037_v13 = vld [vmem:[%s6043_s1 + $0x538] sm:$0xff]   ;;  %v5041_v16 = vld [vmem:[%s5280_s12 + $0x54] ss:$108 sps:$4 sm:$0xff]  }
  0x9a   : > { %4533 = vmatprep.subr.bf16.mxu1 %v4968_v18  ;;  %3084 = vmatprep.mubr.bf16.mxu0 %v4969_v19  ;;  %v5039_v15 = vld [vmem:[%s5280_s12 + $0x50] ss:$108 sps:$4 sm:$0xff]   ;;  %v5043_v18 = vld [vmem:[%s6043_s1 + $0x640] sm:$0xff]  }
  0x9b   : > { %3149 = vmatprep.mubr.bf16.mxu1 %v4974_v23  ;;  %v5047_v23 = vld [vmem:[%s6043_s1 + $0x600] sm:$0xff]  }
  0x9c   : > { %4494 = vmatpush3.bf16.msra.mxu0 %v4967_v17  ;;  %v5042_v17 = vld [vmem:[%s6043_s1 + $0x5b8] sm:$0xff]  }
  0x9d   : > { %4534 = vmatpush3.bf16.msra.mxu1 %v4971_v20  ;;  %4495 = vmatprep.subr.bf16.mxu0 %v4973_v22  ;;  %v5044_v20 = vld [vmem:[%s5280_s12 + $0x58] ss:$108 sps:$4 sm:$0xff]  }
  0x9e   : > { %4535 = vmatprep.subr.bf16.mxu1 %v4978_v26 }
  0x9f   : > { %3085 = vmatmul.mubr.bf16.gmra.mrb[60].mxu0 %v4972_v21  ;;  %v5046_v21 = vld [vmem:[%s5280_s12 + $0x5c] ss:$108 sps:$4 sm:$0xff]  }
  0xa0   : > { %4496 = vmatpush3.bf16.msra.mxu0 %v4976_v24  ;;  %3150 = vmatmul.mubr.bf16.gmra.mrb[60].mxu1 %v4977_v25  ;;  %v5048_v25 = vld [vmem:[%s6043_s1 + $0x648] sm:$0xff]  }
  0xa1   : > { %4536 = vmatpush3.bf16.msra.mxu1 %v4979_v27  ;;  %4497 = vmatprep.subr.bf16.mxu0 %v4980_v28  ;;  %v5049_v28 = vld [vmem:[%s6043_s1 + $0x680] sm:$0xff]  }
  0xa2   : > { %4537 = vmatprep.subr.bf16.mxu1 %v4982_v30  ;;  %3190 = vmatprep.mubr.bf16.mxu0 %v4985_v32 }
  0xa3   : > { %3255 = vmatprep.mubr.bf16.mxu1 %v4990_v36 }
  0xa4   : > { %4498 = vmatpush3.bf16.msra.mxu0 %v4981_v29 }
  0xa5   : > { %4538 = vmatpush3.bf16.msra.mxu1 %v4986_v33  ;;  %4563 = vmatprep.subr.bf16.mxu0 %v4987_v34  ;;  %v5051_v33 = vld [vmem:[%s5280_s12 + $0x12c] ss:$108 sps:$4 sm:$0xff]  }
  0xa6   : > { %4603 = vmatprep.subr.bf16.mxu1 %v4992_v38 }
  0xa7   : > { %3191 = vmatmul.mubr.bf16.vlgmr.msra.gmra.mrb[64].mxu0 %v4983_v31  ;;  %v5050_v31 = vld [vmem:[%s6043_s1 + $0x608] sm:$0xff]  }
  0xa8   : > { %4564 = vmatpush3.bf16.msra.mxu0 %v4991_v37  ;;  %3256 = vmatmul.mubr.bf16.vlgmr.msra.gmra.mrb[64].mxu1 %v4988_v35  ;;  %v5053_v37 = vld [vmem:[%s5280_s12 + $0x128] ss:$108 sps:$4 sm:$0xff]  }
  0xa9   : > { %4604 = vmatpush3.bf16.msra.mxu1 %v4993_v39  ;;  %4565 = vmatprep.subr.bf16.mxu0 %v4994_v40  ;;  %v5054_v40 = vld [vmem:[%s6043_s1 + $0x650] sm:$0xff]  }
  0xaa   : > { %4605 = vmatprep.subr.bf16.mxu1 %v4996_v42  ;;  %3198 = vmatprep.mubr.bf16.mxu0 %v4997_v43  ;;  %v5056_v43 = vld [vmem:[%s5280_s12 + $0x134] ss:$108 sps:$4 sm:$0xff]  }
  0xab   : > { %3263 = vmatprep.mubr.bf16.mxu1 %v5002_v47  ;;  %v5060_v47 = vld [vmem:[%s6043_s1 + $0x658] sm:$0xff]  }
  0xac   : > { %4566 = vmatpush3.bf16.msra.mxu0 %v4995_v41  ;;  %v5055_v41 = vld [vmem:[%s6043_s1 + $0x688] sm:$0xff]  }
  0xad   : > { %4606 = vmatpush3.bf16.msra.mxu1 %v4999_v44  ;;  %4567 = vmatprep.subr.bf16.mxu0 %v5001_v46  ;;  %v5058_v44 = vld [vmem:[%s6043_s1 + $0x610] sm:$0xff]  }
  0xae   : > { %4607 = vmatprep.subr.bf16.mxu1 %v5006_v50 }
  0xaf   : > { %3199 = vmatmul.mubr.bf16.gmra.mrb[68].mxu0 %v5000_v45  ;;  %v5059_v45 = vld [vmem:[%s5280_s12 + $0x130] ss:$108 sps:$4 sm:$0xff]  }
  0xb0   : > { %4568 = vmatpush3.bf16.msra.mxu0 %v5004_v48  ;;  %3264 = vmatmul.mubr.bf16.gmra.mrb[68].mxu1 %v5005_v49  ;;  %v5061_v49 = vld [vmem:[%s6043_s1 + $0x690] sm:$0xff]  }
  0xb1   : > { %4608 = vmatpush3.bf16.msra.mxu1 %v5007_v51  ;;  %4569 = vmatprep.subr.bf16.mxu0 %v5008_v52  ;;  %v5062_v51 = vld [vmem:[%s6043_s1 + $0x618] sm:$0xff]  }
  0xb2   : > { %4609 = vmatprep.subr.bf16.mxu1 %v5010_v54  ;;  %3206 = vmatprep.mubr.bf16.mxu0 %v5011_v55  ;;  %v5063_v55 = vld [vmem:[%s5280_s12 + $0x204] ss:$108 sps:$4 sm:$0xff]  }
  0xb3   : > { %3271 = vmatprep.mubr.bf16.mxu1 %v5016_v59  ;;  %v5066_v59 = vld [vmem:[%s6043_s1 + $0x660] sm:$0xff]  }
  0xb4   : > { %4570 = vmatpush3.bf16.msra.mxu0 %v5009_v53 }
  0xb5   : > { %4610 = vmatpush3.bf16.msra.mxu1 %v5013_v56  ;;  %4571 = vmatprep.subr.bf16.mxu0 %v5015_v58  ;;  %v5065_v56 = vld [vmem:[%s5280_s12 + $0x200] ss:$108 sps:$4 sm:$0xff]  }
  0xb6   : > { %4611 = vmatprep.subr.bf16.mxu1 %v5020_v62 }
  0xb7   : > { %3207 = vmatmul.mubr.bf16.gmra.mrb[72].mxu0 %v5014_v57 }
  0xb8   : > { %4572 = vmatpush3.bf16.msra.mxu0 %v5018_v60  ;;  %3272 = vmatmul.mubr.bf16.gmra.mrb[72].mxu1 %v5019_v61  ;;  %v5067_v61 = vld [vmem:[%s6043_s1 + $0x698] sm:$0xff]  }
  0xb9   : > { %4612 = vmatpush3.bf16.msra.mxu1 %v5021_v63  ;;  %4573 = vmatprep.subr.bf16.mxu0 %v5022_v0 }
  0xba   : > { %4613 = vmatprep.subr.bf16.mxu1 %v5024_v2  ;;  %3214 = vmatprep.mubr.bf16.mxu0 %v5025_v3  ;;  %v5070_v3 = vld [vmem:[%s6043_s1 + $0x620] sm:$0xff]  }
  0xbb   : > { %3279 = vmatprep.mubr.bf16.mxu1 %v5030_v7 }
  0xbc   : > { %4574 = vmatpush3.bf16.msra.mxu0 %v5023_v1  ;;  %v5068_v1 = vld [vmem:[%s5280_s12 + $0x20c] ss:$108 sps:$4 sm:$0xff]  }
  0xbd   : > { %4614 = vmatpush3.bf16.msra.mxu1 %v5027_v4  ;;  %4575 = vmatprep.subr.bf16.mxu0 %v5029_v6  ;;  %v5071_v4 = vld [vmem:[%s5280_s12 + $0x208] ss:$108 sps:$4 sm:$0xff]  }
  0xbe   : > { %4615 = vmatprep.subr.bf16.mxu1 %v5034_v10  ;;  %v5072_v6 = vld [vmem:[%s6043_s1 + $0x668] sm:$0xff]  }
  0xbf   : > { %3215 = vmatmul.mubr.bf16.gmra.mrb[76].mxu0 %v5028_v5  ;;  %v5074_v10 = vld [vmem:[%s6043_s1 + $0x628] sm:$0xff]  }
  0xc0   : > { %4576 = vmatpush3.bf16.msra.mxu0 %v5032_v8  ;;  %3280 = vmatmul.mubr.bf16.gmra.mrb[76].mxu1 %v5033_v9  ;;  %v5073_v8 = vld [vmem:[%s6043_s1 + $0x6a0] sm:$0xff]  }
  0xc1   : > { %4616 = vmatpush3.bf16.msra.mxu1 %v5035_v11  ;;  %4577 = vmatprep.subr.bf16.mxu0 %v5036_v12 }
  0xc2   : > { %4617 = vmatprep.subr.bf16.mxu1 %v5038_v14  ;;  %3320 = vmatprep.mubr.bf16.mxu0 %v5041_v16  ;;  %v5077_v14 = vld [vmem:[%s5280_s12 + $0x2d8] ss:$108 sps:$4 sm:$0xff]  }
  0xc3   : > { %3385 = vmatprep.mubr.bf16.mxu1 %v5046_v21 }
  0xc4   : > { %4578 = vmatpush3.bf16.msra.mxu0 %v5037_v13  ;;  %v5075_v13 = vld [vmem:[%s5280_s12 + $0x2dc] ss:$108 sps:$4 sm:$0xff]  }
  0xc5   : > { %4618 = vmatpush3.bf16.msra.mxu1 %v5042_v17  ;;  %4643 = vmatprep.subr.bf16.mxu0 %v5043_v18  ;;  %v5078_v17 = vld [vmem:[%s6043_s1 + $0x670] sm:$0xff]  }
  0xc6   : > { %4695 = vmatprep.subr.bf16.mxu1 %v5049_v28 }
  0xc7   : > { %3321 = vmatmul.mubr.bf16.vlgmr.msra.gmra.mrb[80].mxu0 %v5039_v15 }
  0xc8   : > { %4644 = vmatpush3.bf16.msra.mxu0 %v5047_v23  ;;  %3386 = vmatmul.mubr.bf16.vlgmr.msra.gmra.mrb[80].mxu1 %v5044_v20  ;;  %v5080_v23 = vld [vmem:[%s5280_s12 + $0x2e4] ss:$108 sps:$4 sm:$0xff]  }
  0xc9   : > { %4645 = vmatprep.subr.bf16.mxu0 %v5048_v25  ;;  %4696 = vmatpush3.bf16.msra.mxu1 %v5049_v28 }
  0xca   : > { %3328 = vmatprep.mubr.bf16.mxu0 %v5051_v33  ;;  %4697 = vmatprep.subr.bf16.mxu1 %v5055_v41  ;;  %v5087_v33 = vld [vmem:[%s5280_s12 + $0x60] ss:$108 sps:$4 sm:$0xff]  }
  0xcb   : > { %3393 = vmatprep.mubr.bf16.mxu1 %v5056_v43  ;;  %v5092_v43 = vld [vmem:[%s5280_s12 + $0x140] ss:$108 sps:$4 sm:$0xff]  }
  0xcc   : > { %4646 = vmatpush3.bf16.msra.mxu0 %v5050_v31 }
  0xcd   : > { %4647 = vmatprep.subr.bf16.mxu0 %v5054_v40  ;;  %4698 = vmatpush3.bf16.msra.mxu1 %v5055_v41  ;;  %v5091_v40 = vld [vmem:[%s5280_s12 + $0x68] ss:$108 sps:$4 sm:$0xff]  }
  0xce   : > { %4699 = vmatprep.subr.bf16.mxu1 %v5061_v49 }
  0xcf   : > { %3329 = vmatmul.mubr.bf16.gmra.mrb[84].mxu0 %v5053_v37  ;;  %v5089_v37 = vld [vmem:[%s5280_s12 + $0x64] ss:$108 sps:$4 sm:$0xff]  }
  0xd0   : > { %4648 = vmatpush3.bf16.msra.mxu0 %v5058_v44  ;;  %3394 = vmatmul.mubr.bf16.gmra.mrb[84].mxu1 %v5059_v45 }
  0xd1   : > { %4649 = vmatprep.subr.bf16.mxu0 %v5060_v47  ;;  %4700 = vmatpush3.bf16.msra.mxu1 %v5061_v49 }
  0xd2   : > { %3336 = vmatprep.mubr.bf16.mxu0 %v5063_v55  ;;  %4701 = vmatprep.subr.bf16.mxu1 %v5067_v61 }
  0xd3   : > { %3401 = vmatprep.mubr.bf16.mxu1 %v5068_v1 }
  0xd4   : > { %4650 = vmatpush3.bf16.msra.mxu0 %v5062_v51 }
  0xd5   : > { %4651 = vmatprep.subr.bf16.mxu0 %v5066_v59  ;;  %4702 = vmatpush3.bf16.msra.mxu1 %v5067_v61  ;;  %v5100_v61 = vld [vmem:[%s5280_s12 + $0x2f0] ss:$108 sps:$4 sm:$0xff]  }
  0xd6   : > { %4703 = vmatprep.subr.bf16.mxu1 %v5073_v8 }
  0xd7   : > { %3337 = vmatmul.mubr.bf16.gmra.mrb[88].mxu0 %v5065_v56  ;;  %v5096_v56 = vld [vmem:[%s5280_s12 + $0x214] ss:$108 sps:$4 sm:$0xff]  }
  0xd8   : > { %4652 = vmatpush3.bf16.msra.mxu0 %v5070_v3  ;;  %3402 = vmatmul.mubr.bf16.gmra.mrb[88].mxu1 %v5071_v4 }
  0xd9   : > { %4653 = vmatprep.subr.bf16.mxu0 %v5072_v6  ;;  %4704 = vmatpush3.bf16.msra.mxu1 %v5073_v8 }
  0xda   : > { %3344 = vmatprep.mubr.bf16.mxu0 %v5075_v13  ;;  %3409 = vmatprep.mubr.bf16.mxu1 %v5080_v23  ;;  %v5101_v13 = vld [vmem:[%s5280_s12 + $0x2ec] ss:$108 sps:$4 sm:$0xff]   ;;  %v5103_v23 = vld [vmem:[%s5280_s12 + $0x2e8] ss:$108 sps:$4 sm:$0xff]  }
  0xdc   : > { %4654 = vmatpush3.bf16.msra.mxu0 %v5074_v10  ;;  %v5098_v10 = vld [vmem:[%s5280_s12 + $0x210] ss:$108 sps:$4 sm:$0xff]  }
  0xdd   : > { %4655 = vmatprep.subr.bf16.mxu0 %v5078_v17 }
  0xdf   : > { %3345 = vmatmul.mubr.bf16.gmra.mrb[92].mxu0 %v5077_v14 }
  0xe0   : > { %3450 = vmatprep.mubr.bf16.mxu0 %v5089_v37 }
  0xfa   : > { %v4179_v19 = vpop.f32.mrb[0].mxu0 }
  0xfb   : > { %v4219_v22 = vpop.f32.mrb[0].mxu1  ;;  %v4180_v24 = vpop.f32.mrb[1].mxu0 }
  0xfc   : > { %v4181_v26 = vadd.f32 %v4180_v24, %v4179_v19  ;;  %v4220_v27 = vpop.f32.mrb[1].mxu1  ;;  %v4182_v30 = vpop.f32.mrb[2].mxu0  ;;  %v5079_v19 = vld [vmem:[%s6043_s1 + $0x6a8] sm:$0xff]  }
  0xfd   : > { %v4221_v29 = vadd.f32 %v4220_v27, %v4219_v22  ;;  %v4222_v32 = vpop.f32.mrb[2].mxu1  ;;  %v4183_v35 = vpop.f32.mrb[3].mxu0  ;;  %4705 = vmatprep.subr.bf16.mxu1 %v5079_v19  ;;  %v5083_v27 = vld [vmem:[%s5280_s12 + $0x2e0] ss:$108 sps:$4 sm:$0xff]  }
  0xfe   : > { %v4223_v36 = vpop.f32.mrb[3].mxu1  ;;  %v4184_v38 = vadd.f32 %v4183_v35, %v4182_v30  ;;  %4706 = vmatpush3.bf16.msra.mxu1 %v5079_v19  ;;  %v5085_v30 = vld [vmem:[%s6043_s1 + $0x6b0] sm:$0xff]  }
  0xff   : > { %v5868_v34 = vadd.f32 %v4221_v29, %v4181_v26  ;;  %v4224_v39 = vadd.f32 %v4223_v36, %v4222_v32  ;;  %v5082_v26 = vld [vmem:[%s6043_s1 + $0x630] sm:$0xff]   ;;  %v5084_v29 = vld [vmem:[%s6043_s1 + $0x678] sm:$0xff]   ;;  %3410 = vmatmul.mubr.bf16.gmra.mrb[92].mxu1 %v5083_v27  ;;  %4707 = vmatprep.subr.bf16.mxu1 %v5085_v30 }
 0x100   : > { %4656 = vmatpush3.bf16.msra.mxu0 %v5082_v26  ;;  %v5086_v32 = vld [vmem:[%s6043_s1 + $0x638] sm:$0xff]   ;;  %4711 = vmatprep.mubr.bf16.mxu1 %v5091_v40 }
 0x101   : > { %v5877_v42 = vadd.f32 %v4224_v39, %v4184_v38  ;;  %4657 = vmatprep.subr.bf16.mxu0 %v5084_v29  ;;  %v5090_v38 = vld [vmem:[%s6043_s1 + $0x6b8] sm:$0xff]  }
 0x102   : > { %v4185_v46 = vpop.f32.mrb[4].mxu0  ;;  %4708 = vmatpush3.bf16.msra.mxu1 %v5085_v30 }
 0x103   : > { %v4225_v48 = vpop.f32.mrb[4].mxu1  ;;  %v4186_v50 = vpop.f32.mrb[5].mxu0  ;;  %4709 = vmatprep.subr.bf16.mxu1 %v5090_v38 }
 0x104   : > { %v4187_v52 = vadd.f32 %v4186_v50, %v4185_v46  ;;  %v4226_v53 = vpop.f32.mrb[5].mxu1  ;;  %v4188_v54 = vpop.f32.mrb[6].mxu0  ;;  %4658 = vmatpush3.bf16.msra.mxu0 %v5086_v32  ;;  %v5093_v46 = vld [vmem:[%s5280_s12 + $0x13c] ss:$108 sps:$4 sm:$0xff]   ;;  %v5099_v50 = vld [vmem:[%s5280_s12 + $0x218] ss:$108 sps:$4 sm:$0xff]  }
 0x105   : > { %v4227_v57 = vadd.f32 %v4226_v53, %v4225_v48  ;;  %v4228_v58 = vpop.f32.mrb[6].mxu1  ;;  %v4189_v60 = vpop.f32.mrb[7].mxu0  ;;  %v5095_v53 = vld [vmem:[%s5280_s12 + $0x138] ss:$108 sps:$4 sm:$0xff]  }
 0x106   : > { %v4190_v63 = vadd.f32 %v4189_v60, %v4188_v54  ;;  %v4229_v0 = vpop.f32.mrb[7].mxu1  ;;  %4710 = vmatpush3.bf16.msra.mxu1 %v5090_v38 }
 0x107   : > { %v5901_v62 = vadd.f32 %v4227_v57, %v4187_v52  ;;  %v4230_v2 = vadd.f32 %v4229_v0, %v4228_v58  ;;  %3451 = vmatmul.mubr.bf16.vlgmr.msra.gmra.mrb[96].mxu0 %v5087_v33 }
 0x108   : > { %3458 = vmatprep.mubr.bf16.mxu0 %v5093_v46 }
 0x109   : > { %v5908_v5 = vadd.f32 %v4230_v2, %v4190_v63  ;;  %4712 = vmatmul.mubr.bf16.vlgmr.msra.gmra.mrb[96].mxu1 %v5092_v43 }
 0x10a   : > { %v4191_v7 = vpop.f32.mrb[8].mxu0  ;;  %4715 = vmatprep.mubr.bf16.mxu1 %v5099_v50 }
 0x10b   : > { %v4231_v9 = vpop.f32.mrb[8].mxu1  ;;  %v4192_v11 = vpop.f32.mrb[9].mxu0 }
 0x10c   : > { %v4232_v12 = vpop.f32.mrb[9].mxu1  ;;  %v4193_v15 = vadd.f32 %v4192_v11, %v4191_v7  ;;  %v4194_v18 = vpop.f32.mrb[10].mxu0 }
 0x10d   : > { %v4233_v16 = vadd.f32 %v4232_v12, %v4231_v9  ;;  %v4234_v21 = vpop.f32.mrb[10].mxu1  ;;  %v4195_v22 = vpop.f32.mrb[11].mxu0 }
 0x10e   : > { %v4196_v24 = vadd.f32 %v4195_v22, %v4194_v18  ;;  %v4235_v25 = vpop.f32.mrb[11].mxu1 }
 0x10f   : > { %v5927_v20 = vadd.f32 %v4233_v16, %v4193_v15  ;;  %v4236_v28 = vadd.f32 %v4235_v25, %v4234_v21  ;;  %3459 = vmatmul.mubr.bf16.gmra.mrb[100].mxu0 %v5095_v53 }
 0x110   : > { %3466 = vmatprep.mubr.bf16.mxu0 %v5096_v56 }
 0x111   : > { %v5940_v31 = vadd.f32 %v4236_v28, %v4196_v24  ;;  %4716 = vmatmul.mubr.bf16.gmra.mrb[100].mxu1 %v5100_v61 }
 0x112   : > { %v4197_v35 = vpop.f32.mrb[12].mxu0 }
 0x113   : > { %v4237_v36 = vpop.f32.mrb[12].mxu1  ;;  %v4198_v39 = vpop.f32.mrb[13].mxu0 }
 0x114   : > { %v4199_v41 = vadd.f32 %v4198_v39, %v4197_v35  ;;  %v4238_v44 = vpop.f32.mrb[13].mxu1  ;;  %v4200_v45 = vpop.f32.mrb[14].mxu0 }
 0x115   : > { %v4239_v47 = vadd.f32 %v4238_v44, %v4237_v36  ;;  %v4240_v48 = vpop.f32.mrb[14].mxu1  ;;  %v4201_v49 = vpop.f32.mrb[15].mxu0 }
 0x116   : > { %v4202_v52 = vadd.f32 %v4201_v49, %v4200_v45  ;;  %v4241_v54 = vpop.f32.mrb[15].mxu1 }
 0x117   : > { %v5954_v51 = vadd.f32 %v4239_v47, %v4199_v41  ;;  %v4242_v57 = vadd.f32 %v4241_v54, %v4240_v48  ;;  %3467 = vmatmul.mubr.bf16.gmra.mrb[104].mxu0 %v5098_v10 }
 0x118   : > { %3474 = vmatprep.mubr.bf16.mxu0 %v5101_v13 }
 0x119   : > { %v5959_v63 = vadd.f32 %v4242_v57, %v4202_v52 }
 0x11a   : > { %v4259_v55 = vpop.f32.mrb[16].mxu0 }
 0x11b   : > { %v4260_v58 = vpop.f32.mrb[17].mxu0  ;;  %v4299_v2 = vpop.f32.mrb[16].mxu1 }
 0x11c   : > { %v4261_v59 = vadd.f32 %v4260_v58, %v4259_v55  ;;  %v4262_v60 = vpop.f32.mrb[18].mxu0  ;;  %v4300_v4 = vpop.f32.mrb[17].mxu1 }
 0x11d   : > { %v4263_v0 = vpop.f32.mrb[19].mxu0  ;;  %v4301_v7 = vadd.f32 %v4300_v4, %v4299_v2  ;;  %v4302_v8 = vpop.f32.mrb[18].mxu1 }
 0x11e   : > { %v2803_v1 = vadd.f32 %v4261_v59, %v5868_v34  ;;  %v4264_v3 = vadd.f32 %v4263_v0, %v4262_v60  ;;  %v4303_v9 = vpop.f32.mrb[19].mxu1 }
 0x11f   : > { %v4304_v12 = vadd.f32 %v4303_v9, %v4302_v8  ;;  %3475 = vmatmul.mubr.bf16.gmra.mrb[108].mxu0 %v5103_v23 }
 0x120   : > { %v2806_v6 = vadd.f32 %v4264_v3, %v5877_v42  ;;  %v2868_v11 = vadd.f32 %v4301_v7, %v2803_v1 }
 0x122   : > { %v5965_v14 = vadd.f32 %v4304_v12, %v2806_v6  ;;  %v4265_v15 = vpop.f32.mrb[20].mxu0 }
 0x123   : > { %v4266_v34 = vpop.f32.mrb[21].mxu0  ;;  %v4305_v18 = vpop.f32.mrb[20].mxu1 }
 0x124   : > { %v4267_v16 = vadd.f32 %v4266_v34, %v4265_v15  ;;  %v4268_v17 = vpop.f32.mrb[22].mxu0  ;;  %v4306_v22 = vpop.f32.mrb[21].mxu1 }
 0x125   : > { %v4269_v19 = vpop.f32.mrb[23].mxu0  ;;  %v4307_v24 = vadd.f32 %v4306_v22, %v4305_v18  ;;  %v4308_v25 = vpop.f32.mrb[22].mxu1 }
 0x126   : > { %v2811_v42 = vadd.f32 %v4267_v16, %v5901_v62  ;;  %v4270_v21 = vadd.f32 %v4269_v19, %v4268_v17  ;;  %v4309_v27 = vpop.f32.mrb[23].mxu1 }
 0x127   : > { %v4310_v29 = vadd.f32 %v4309_v27, %v4308_v25 }
 0x128   : > { %v2814_v26 = vadd.f32 %v4270_v21, %v5908_v5  ;;  %v2876_v28 = vadd.f32 %v4307_v24, %v2811_v42 }
 0x12a   : > { %v2879_v30 = vadd.f32 %v4310_v29, %v2814_v26  ;;  %v4271_v32 = vpop.f32.mrb[24].mxu0 }
 0x12b   : > { %v4272_v33 = vpop.f32.mrb[25].mxu0  ;;  %v4311_v37 = vpop.f32.mrb[24].mxu1 }
 0x12c   : > { %v4273_v35 = vadd.f32 %v4272_v33, %v4271_v32  ;;  %v4274_v36 = vpop.f32.mrb[26].mxu0  ;;  %v4312_v40 = vpop.f32.mrb[25].mxu1 }
 0x12d   : > { %v4275_v38 = vpop.f32.mrb[27].mxu0  ;;  %v4313_v41 = vadd.f32 %v4312_v40, %v4311_v37  ;;  %v4314_v43 = vpop.f32.mrb[26].mxu1 }
 0x12e   : > { %v2819_v62 = vadd.f32 %v4273_v35, %v5927_v20  ;;  %v4276_v39 = vadd.f32 %v4275_v38, %v4274_v36  ;;  %v4315_v5 = vpop.f32.mrb[27].mxu1 }
 0x12f   : > { %v4316_v46 = vadd.f32 %v4315_v5, %v4314_v43 }
 0x130   : > { %v2822_v44 = vadd.f32 %v4276_v39, %v5940_v31  ;;  %v2884_v45 = vadd.f32 %v4313_v41, %v2819_v62 }
 0x132   : > { %v2887_v47 = vadd.f32 %v4316_v46, %v2822_v44  ;;  %v4277_v48 = vpop.f32.mrb[28].mxu0 }
 0x133   : > { %v4278_v49 = vpop.f32.mrb[29].mxu0  ;;  %v4317_v55 = vpop.f32.mrb[28].mxu1 }
 0x134   : > { %v4279_v50 = vadd.f32 %v4278_v49, %v4277_v48  ;;  %v4280_v52 = vpop.f32.mrb[30].mxu0  ;;  %v4318_v20 = vpop.f32.mrb[29].mxu1 }
 0x135   : > { %v4281_v53 = vpop.f32.mrb[31].mxu0  ;;  %v4319_v58 = vadd.f32 %v4318_v20, %v4317_v55  ;;  %v4320_v59 = vpop.f32.mrb[30].mxu1 }
 0x136   : > { %v2827_v54 = vadd.f32 %v4279_v50, %v5954_v51  ;;  %v4282_v56 = vadd.f32 %v4281_v53, %v4280_v52  ;;  %v4321_v60 = vpop.f32.mrb[31].mxu1 }
 0x137   : > { %v4322_v61 = vadd.f32 %v4321_v60, %v4320_v59 }
 0x138   : > { %v2830_v57 = vadd.f32 %v4282_v56, %v5959_v63  ;;  %v2892_v31 = vadd.f32 %v4319_v58, %v2827_v54 }
 0x13a   : > { %v2895_v0 = vadd.f32 %v4322_v61, %v2830_v57  ;;  %v4339_v1 = vpop.f32.mrb[32].mxu0 }
 0x13b   : > { %v4340_v2 = vpop.f32.mrb[33].mxu0  ;;  %v4379_v6 = vpop.f32.mrb[32].mxu1 }
 0x13c   : > { %v4341_v3 = vadd.f32 %v4340_v2, %v4339_v1  ;;  %v4342_v4 = vpop.f32.mrb[34].mxu0  ;;  %v4380_v51 = vpop.f32.mrb[33].mxu1 }
 0x13d   : > { %v4343_v7 = vpop.f32.mrb[35].mxu0  ;;  %v4381_v10 = vadd.f32 %v4380_v51, %v4379_v6  ;;  %v4382_v12 = vpop.f32.mrb[34].mxu1 }
 0x13e   : > { %v2933_v8 = vadd.f32 %v4341_v3, %v2868_v11  ;;  %v4344_v9 = vadd.f32 %v4343_v7, %v4342_v4  ;;  %v4383_v63 = vpop.f32.mrb[35].mxu1 }
 0x13f   : > { %v4384_v34 = vadd.f32 %v4383_v63, %v4382_v12 }
 0x140   : > { %v2936_v13 = vadd.f32 %v4344_v9, %v5965_v14  ;;  %v2998_v15 = vadd.f32 %v4381_v10, %v2933_v8 }
 0x142   : > { %v3001_v16 = vadd.f32 %v4384_v34, %v2936_v13  ;;  %v4345_v17 = vpop.f32.mrb[36].mxu0 }
 0x143   : > { %v4346_v18 = vpop.f32.mrb[37].mxu0  ;;  %v4385_v21 = vpop.f32.mrb[36].mxu1 }
 0x144   : > { %v4347_v19 = vadd.f32 %v4346_v18, %v4345_v17  ;;  %v4348_v42 = vpop.f32.mrb[38].mxu0  ;;  %v4386_v25 = vpop.f32.mrb[37].mxu1 }
 0x145   : > { %v4349_v22 = vpop.f32.mrb[39].mxu0  ;;  %v4387_v11 = vadd.f32 %v4386_v25, %v4385_v21  ;;  %v4388_v26 = vpop.f32.mrb[38].mxu1 }
 0x146   : > { %v2941_v23 = vadd.f32 %v4347_v19, %v2876_v28  ;;  %v4350_v24 = vadd.f32 %v4349_v22, %v4348_v42  ;;  %v4389_v29 = vpop.f32.mrb[39].mxu1 }
 0x147   : > { %v4390_v33 = vadd.f32 %v4389_v29, %v4388_v26 }
 0x148   : > { %v2944_v27 = vadd.f32 %v4350_v24, %v2879_v30  ;;  %v3006_v32 = vadd.f32 %v4387_v11, %v2941_v23 }
 0x14a   : > { %v3009_v14 = vadd.f32 %v4390_v33, %v2944_v27  ;;  %v4351_v35 = vpop.f32.mrb[40].mxu0 }
 0x14b   : > { %v4352_v36 = vpop.f32.mrb[41].mxu0  ;;  %v4391_v40 = vpop.f32.mrb[40].mxu1 }
 0x14c   : > { %v4353_v37 = vadd.f32 %v4352_v36, %v4351_v35  ;;  %v4354_v38 = vpop.f32.mrb[42].mxu0  ;;  %v4392_v43 = vpop.f32.mrb[41].mxu1 }
 0x14d   : > { %v4355_v62 = vpop.f32.mrb[43].mxu0  ;;  %v4393_v28 = vadd.f32 %v4392_v43, %v4391_v40  ;;  %v4394_v5 = vpop.f32.mrb[42].mxu1 }
 0x14e   : > { %v2949_v39 = vadd.f32 %v4353_v37, %v2884_v45  ;;  %v4356_v41 = vadd.f32 %v4355_v62, %v4354_v38  ;;  %v4395_v46 = vpop.f32.mrb[43].mxu1 }
 0x14f   : > { %v4396_v49 = vadd.f32 %v4395_v46, %v4394_v5 }
 0x150   : > { %v2952_v44 = vadd.f32 %v4356_v41, %v2887_v47  ;;  %v3014_v48 = vadd.f32 %v4393_v28, %v2949_v39 }
 0x152   : > { %v3017_v30 = vadd.f32 %v4396_v49, %v2952_v44  ;;  %v4357_v50 = vpop.f32.mrb[44].mxu0 }
 0x153   : > { %v4358_v52 = vpop.f32.mrb[45].mxu0  ;;  %v4397_v55 = vpop.f32.mrb[44].mxu1 }
 0x154   : > { %v4359_v53 = vadd.f32 %v4358_v52, %v4357_v50  ;;  %v4360_v54 = vpop.f32.mrb[46].mxu0  ;;  %v4398_v58 = vpop.f32.mrb[45].mxu1 }
 0x155   : > { %v4361_v56 = vpop.f32.mrb[47].mxu0  ;;  %v4399_v45 = vadd.f32 %v4398_v58, %v4397_v55  ;;  %v4400_v59 = vpop.f32.mrb[46].mxu1 }
 0x156   : > { %v2957_v20 = vadd.f32 %v4359_v53, %v2892_v31  ;;  %v4362_v57 = vadd.f32 %v4361_v56, %v4360_v54  ;;  %v4401_v61 = vpop.f32.mrb[47].mxu1 }
 0x157   : > { %v4402_v1 = vadd.f32 %v4401_v61, %v4400_v59 }
 0x158   : > { %v2960_v60 = vadd.f32 %v4362_v57, %v2895_v0  ;;  %v3022_v47 = vadd.f32 %v4399_v45, %v2957_v20 }
 0x15a   : > { %v3025_v2 = vadd.f32 %v4402_v1, %v2960_v60  ;;  %v4419_v3 = vpop.f32.mrb[48].mxu0 }
 0x15b   : > { %v4420_v4 = vpop.f32.mrb[49].mxu0  ;;  %v4459_v8 = vpop.f32.mrb[48].mxu1 }
 0x15c   : > { %v4421_v6 = vadd.f32 %v4420_v4, %v4419_v3  ;;  %v4422_v7 = vpop.f32.mrb[50].mxu0  ;;  %v4460_v12 = vpop.f32.mrb[49].mxu1 }
 0x15d   : > { %v4423_v9 = vpop.f32.mrb[51].mxu0  ;;  %v4461_v13 = vadd.f32 %v4460_v12, %v4459_v8  ;;  %v4462_v31 = vpop.f32.mrb[50].mxu1 }
 0x15e   : > { %v3063_v51 = vadd.f32 %v4421_v6, %v2998_v15  ;;  %v4424_v10 = vadd.f32 %v4423_v9, %v4422_v7  ;;  %v4463_v34 = vpop.f32.mrb[51].mxu1 }
 0x15f   : > { %v4464_v18 = vadd.f32 %v4463_v34, %v4462_v31 }
 0x160   : > { %v3066_v63 = vadd.f32 %v4424_v10, %v3001_v16  ;;  %v3128_v17 = vadd.f32 %v4461_v13, %v3063_v51 }
 0x162   : > { %v3131_v0 = vadd.f32 %v4464_v18, %v3066_v63  ;;  %v4425_v19 = vpop.f32.mrb[52].mxu0 }
 0x163   : > { %v4426_v42 = vpop.f32.mrb[53].mxu0  ;;  %v4465_v25 = vpop.f32.mrb[52].mxu1 }
 0x164   : > { %v4427_v21 = vadd.f32 %v4426_v42, %v4425_v19  ;;  %v4428_v22 = vpop.f32.mrb[54].mxu0  ;;  %v4466_v26 = vpop.f32.mrb[53].mxu1 }
 0x165   : > { %v4429_v23 = vpop.f32.mrb[55].mxu0  ;;  %v4467_v15 = vadd.f32 %v4466_v26, %v4465_v25  ;;  %v4468_v29 = vpop.f32.mrb[54].mxu1 }
 0x166   : > { %v3071_v24 = vadd.f32 %v4427_v21, %v3006_v32  ;;  %v4430_v11 = vadd.f32 %v4429_v23, %v4428_v22  ;;  %v4469_v33 = vpop.f32.mrb[55].mxu1 }
 0x167   : > { %v4470_v36 = vadd.f32 %v4469_v33, %v4468_v29 }
 0x168   : > { %v3074_v27 = vadd.f32 %v4430_v11, %v3009_v14  ;;  %v3136_v35 = vadd.f32 %v4467_v15, %v3071_v24 }
 0x16a   : > { %v3139_v16 = vadd.f32 %v4470_v36, %v3074_v27  ;;  %v4431_v37 = vpop.f32.mrb[56].mxu0 }
 0x16b   : > { %v4432_v38 = vpop.f32.mrb[57].mxu0  ;;  %v4471_v40 = vpop.f32.mrb[56].mxu1 }
 0x16c   : > { %v4433_v62 = vadd.f32 %v4432_v38, %v4431_v37  ;;  %v4434_v39 = vpop.f32.mrb[58].mxu0  ;;  %v4472_v28 = vpop.f32.mrb[57].mxu1 }
 0x16d   : > { %v4435_v41 = vpop.f32.mrb[59].mxu0  ;;  %v4473_v32 = vadd.f32 %v4472_v28, %v4471_v40  ;;  %v4474_v5 = vpop.f32.mrb[58].mxu1 }
 0x16e   : > { %v3079_v43 = vadd.f32 %v4433_v62, %v3014_v48  ;;  %v4436_v44 = vadd.f32 %v4435_v41, %v4434_v39  ;;  %v4475_v49 = vpop.f32.mrb[59].mxu1 }
 0x16f   : > { %v4476_v50 = vadd.f32 %v4475_v49, %v4474_v5 }
 0x170   : > { %v3082_v46 = vadd.f32 %v4436_v44, %v3017_v30  ;;  %v3144_v14 = vadd.f32 %v4473_v32, %v3079_v43 }
 0x172   : > { %v3147_v52 = vadd.f32 %v4476_v50, %v3082_v46  ;;  %v4437_v53 = vpop.f32.mrb[60].mxu0 }
 0x173   : > { %v4438_v54 = vpop.f32.mrb[61].mxu0  ;;  %v4477_v20 = vpop.f32.mrb[60].mxu1 }
 0x174   : > { %v4439_v55 = vadd.f32 %v4438_v54, %v4437_v53  ;;  %v4440_v56 = vpop.f32.mrb[62].mxu0  ;;  %v4478_v59 = vpop.f32.mrb[61].mxu1 }
 0x175   : > { %v4441_v57 = vpop.f32.mrb[63].mxu0  ;;  %v4479_v60 = vadd.f32 %v4478_v59, %v4477_v20  ;;  %v4480_v48 = vpop.f32.mrb[62].mxu1 }
 0x176   : > { %v3087_v58 = vadd.f32 %v4439_v55, %v3022_v47  ;;  %v4442_v45 = vadd.f32 %v4441_v57, %v4440_v56  ;;  %v4481_v1 = vpop.f32.mrb[63].mxu1 }
 0x177   : > { %v4482_v4 = vadd.f32 %v4481_v1, %v4480_v48 }
 0x178   : > { %v3090_v61 = vadd.f32 %v4442_v45, %v3025_v2  ;;  %v3152_v3 = vadd.f32 %v4479_v60, %v3087_v58 }
 0x17a   : > { %v3155_v30 = vadd.f32 %v4482_v4, %v3090_v61  ;;  %v4499_v6 = vpop.f32.mrb[64].mxu0 }
 0x17b   : > { %v4500_v7 = vpop.f32.mrb[65].mxu0  ;;  %v4539_v12 = vpop.f32.mrb[64].mxu1 }
 0x17c   : > { %v4501_v8 = vadd.f32 %v4500_v7, %v4499_v6  ;;  %v4502_v9 = vpop.f32.mrb[66].mxu0  ;;  %v4540_v31 = vpop.f32.mrb[65].mxu1 }
 0x17d   : > { %v4503_v51 = vpop.f32.mrb[67].mxu0  ;;  %v4541_v47 = vadd.f32 %v4540_v31, %v4539_v12  ;;  %v4542_v34 = vpop.f32.mrb[66].mxu1 }
 0x17e   : > { %v3193_v10 = vadd.f32 %v4501_v8, %v3128_v17  ;;  %v4504_v13 = vadd.f32 %v4503_v51, %v4502_v9  ;;  %v4543_v18 = vpop.f32.mrb[67].mxu1 }
 0x17f   : > { %v4544_v42 = vadd.f32 %v4543_v18, %v4542_v34 }
 0x180   : > { %v3196_v63 = vadd.f32 %v4504_v13, %v3131_v0  ;;  %v3258_v19 = vadd.f32 %v4541_v47, %v3193_v10 }
 0x182   : > { %v3261_v2 = vadd.f32 %v4544_v42, %v3196_v63  ;;  %v4505_v21 = vpop.f32.mrb[68].mxu0 }
 0x183   : > { %v4506_v22 = vpop.f32.mrb[69].mxu0  ;;  %v4545_v25 = vpop.f32.mrb[68].mxu1 }
 0x184   : > { %v4507_v23 = vadd.f32 %v4506_v22, %v4505_v21  ;;  %v4508_v24 = vpop.f32.mrb[70].mxu0  ;;  %v4546_v15 = vpop.f32.mrb[69].mxu1 }
 0x185   : > { %v4509_v11 = vpop.f32.mrb[71].mxu0  ;;  %v4547_v17 = vadd.f32 %v4546_v15, %v4545_v25  ;;  %v4548_v29 = vpop.f32.mrb[70].mxu1 }
 0x186   : > { %v3201_v26 = vadd.f32 %v4507_v23, %v3136_v35  ;;  %v4510_v27 = vadd.f32 %v4509_v11, %v4508_v24  ;;  %v4549_v36 = vpop.f32.mrb[71].mxu1 }
 0x187   : > { %v4550_v37 = vadd.f32 %v4549_v36, %v4548_v29 }
 0x188   : > { %v3204_v33 = vadd.f32 %v4510_v27, %v3139_v16  ;;  %v3266_v0 = vadd.f32 %v4547_v17, %v3201_v26 }
 0x18a   : > { %v3269_v38 = vadd.f32 %v4550_v37, %v3204_v33  ;;  %v4511_v62 = vpop.f32.mrb[72].mxu0 }
 0x18b   : > { %v4512_v39 = vpop.f32.mrb[73].mxu0  ;;  %v4551_v43 = vpop.f32.mrb[72].mxu1 }
 0x18c   : > { %v4513_v40 = vadd.f32 %v4512_v39, %v4511_v62  ;;  %v4514_v41 = vpop.f32.mrb[74].mxu0  ;;  %v4552_v5 = vpop.f32.mrb[73].mxu1 }
 0x18d   : > { %v4515_v44 = vpop.f32.mrb[75].mxu0  ;;  %v4553_v46 = vadd.f32 %v4552_v5, %v4551_v43  ;;  %v4554_v35 = vpop.f32.mrb[74].mxu1 }
 0x18e   : > { %v3209_v28 = vadd.f32 %v4513_v40, %v3144_v14  ;;  %v4516_v32 = vadd.f32 %v4515_v44, %v4514_v41  ;;  %v4555_v50 = vpop.f32.mrb[75].mxu1 }
 0x18f   : > { %v4556_v54 = vadd.f32 %v4555_v50, %v4554_v35 }
 0x190   : > { %v3212_v49 = vadd.f32 %v4516_v32, %v3147_v52  ;;  %v3274_v53 = vadd.f32 %v4553_v46, %v3209_v28 }
 0x192   : > { %v3277_v16 = vadd.f32 %v4556_v54, %v3212_v49  ;;  %v4517_v55 = vpop.f32.mrb[76].mxu0 }
 0x193   : > { %v4518_v56 = vpop.f32.mrb[77].mxu0  ;;  %v4557_v59 = vpop.f32.mrb[76].mxu1 }
 0x194   : > { %v4519_v20 = vadd.f32 %v4518_v56, %v4517_v55  ;;  %v4520_v57 = vpop.f32.mrb[78].mxu0  ;;  %v4558_v48 = vpop.f32.mrb[77].mxu1 }
 0x195   : > { %v4521_v58 = vpop.f32.mrb[79].mxu0  ;;  %v4559_v14 = vadd.f32 %v4558_v48, %v4557_v59  ;;  %v4560_v1 = vpop.f32.mrb[78].mxu1 }
 0x196   : > { %v3217_v45 = vadd.f32 %v4519_v20, %v3152_v3  ;;  %v4522_v60 = vadd.f32 %v4521_v58, %v4520_v57  ;;  %v4561_v4 = vpop.f32.mrb[79].mxu1 }
 0x197   : > { %v4562_v7 = vadd.f32 %v4561_v4, %v4560_v1 }
 0x198   : > { %v3220_v61 = vadd.f32 %v4522_v60, %v3155_v30  ;;  %v3282_v6 = vadd.f32 %v4559_v14, %v3217_v45 }
 0x19a   : > { %v3285_v52 = vadd.f32 %v4562_v7, %v3220_v61  ;;  %v4579_v8 = vpop.f32.mrb[80].mxu0 }
 0x19b   : > { %v4580_v9 = vpop.f32.mrb[81].mxu0  ;;  %v4619_v12 = vpop.f32.mrb[80].mxu1 }
 0x19c   : > { %v4581_v51 = vadd.f32 %v4580_v9, %v4579_v8  ;;  %v4582_v10 = vpop.f32.mrb[82].mxu0  ;;  %v4620_v47 = vpop.f32.mrb[81].mxu1 }
 0x19d   : > { %v4583_v13 = vpop.f32.mrb[83].mxu0  ;;  %v4621_v3 = vadd.f32 %v4620_v47, %v4619_v12  ;;  %v4622_v34 = vpop.f32.mrb[82].mxu1 }
 0x19e   : > { %v3323_v31 = vadd.f32 %v4581_v51, %v3258_v19  ;;  %v4584_v63 = vadd.f32 %v4583_v13, %v4582_v10  ;;  %v4623_v42 = vpop.f32.mrb[83].mxu1 }
 0x19f   : > { %v4624_v21 = vadd.f32 %v4623_v42, %v4622_v34  ;;  %v5988_v34 = vld [vmem:[%s6044_s2] ss:$0 sm:$0xff] }
 0x1a0   : > { %v3326_v18 = vadd.f32 %v4584_v63, %v3261_v2  ;;  %v3388_v30 = vadd.f32 %v4621_v3, %v3323_v31 }
 0x1a2   : > { %v4585_v22 = vpop.f32.mrb[84].mxu0  ;;  %v3391_v23 = vadd.f32 %v4624_v21, %v3326_v18 }
 0x1a3   : > { %v4586_v24 = vpop.f32.mrb[85].mxu0  ;;  %v4625_v15 = vpop.f32.mrb[84].mxu1 }
 0x1a4   : > { %v4587_v25 = vadd.f32 %v4586_v24, %v4585_v22  ;;  %v4588_v11 = vpop.f32.mrb[86].mxu0  ;;  %v4626_v29 = vpop.f32.mrb[85].mxu1  ;;  %v5993_v22 = vld [vmem:[%s6045_s3] ss:$0 sm:$0xff] }
 0x1a5   : > { %v4589_v26 = vpop.f32.mrb[87].mxu0  ;;  %v4627_v19 = vadd.f32 %v4626_v29, %v4625_v15  ;;  %v4628_v36 = vpop.f32.mrb[86].mxu1 }
 0x1a6   : > { %v3331_v27 = vadd.f32 %v4587_v25, %v3266_v0  ;;  %v4590_v17 = vadd.f32 %v4589_v26, %v4588_v11  ;;  %v4629_v37 = vpop.f32.mrb[87].mxu1 }
 0x1a7   : > { %v4630_v39 = vadd.f32 %v4629_v37, %v4628_v36 }
 0x1a8   : > { %v3334_v33 = vadd.f32 %v4590_v17, %v3269_v38  ;;  %v3396_v62 = vadd.f32 %v4627_v19, %v3331_v27 }
 0x1aa   : > { %v4591_v2 = vpop.f32.mrb[88].mxu0  ;;  %v5975_v40 = vadd.f32 %v4630_v39, %v3334_v33 }
 0x1ab   : > { %v4592_v41 = vpop.f32.mrb[89].mxu0  ;;  %v4631_v5 = vpop.f32.mrb[88].mxu1 }
 0x1ac   : > { %v4593_v43 = vadd.f32 %v4592_v41, %v4591_v2  ;;  %v4594_v44 = vpop.f32.mrb[90].mxu0  ;;  %v4632_v0 = vpop.f32.mrb[89].mxu1 }
 0x1ad   : > { %v4595_v28 = vpop.f32.mrb[91].mxu0  ;;  %v4633_v49 = vadd.f32 %v4632_v0, %v4631_v5  ;;  %v4634_v50 = vpop.f32.mrb[90].mxu1 }
 0x1ae   : > { %v3339_v32 = vadd.f32 %v4593_v43, %v3274_v53  ;;  %v4596_v46 = vadd.f32 %v4595_v28, %v4594_v44  ;;  %v4635_v38 = vpop.f32.mrb[91].mxu1 }
 0x1af   : > { %v4636_v55 = vadd.f32 %v4635_v38, %v4634_v50 }
 0x1b0   : > { %v3342_v35 = vadd.f32 %v4596_v46, %v3277_v16  ;;  %v5977_v54 = vadd.f32 %v4633_v49, %v3339_v32 }
 0x1b2   : > { %v4597_v56 = vpop.f32.mrb[92].mxu0  ;;  %v5979_v20 = vadd.f32 %v4636_v55, %v3342_v35 }
 0x1b3   : > { %v4598_v57 = vpop.f32.mrb[93].mxu0 }
 0x1b4   : > { %v4599_v58 = vadd.f32 %v4598_v57, %v4597_v56  ;;  %v4600_v45 = vpop.f32.mrb[94].mxu0 }
 0x1b5   : > { %v4601_v60 = vpop.f32.mrb[95].mxu0 }
 0x1b6   : > { %v3347_v48 = vadd.f32 %v4599_v58, %v3282_v6  ;;  %v4602_v53 = vadd.f32 %v4601_v60, %v4600_v45 }
 0x1b8   : > { %v3350_v16 = vadd.f32 %v4602_v53, %v3285_v52 }
 0x1d2   : > { %v4637_v59 = vpop.f32.mrb[92].mxu1 }
 0x1d3   : > { %v4638_v61 = vpop.f32.mrb[93].mxu1 }
 0x1d4   : > { %v4639_v14 = vadd.f32 %v4638_v61, %v4637_v59  ;;  %v4640_v1 = vpop.f32.mrb[94].mxu1 }
 0x1d5   : > { %v4641_v4 = vpop.f32.mrb[95].mxu1 }
 0x1d6   : > { %v5981_v7 = vadd.f32 %v4639_v14, %v3347_v48  ;;  %v4642_v8 = vadd.f32 %v4641_v4, %v4640_v1 }
 0x1d8   : > { %v5983_v9 = vadd.f32 %v4642_v8, %v3350_v16 }
 0x1da   : > { %v4659_v51 = vpop.f32.mrb[96].mxu0 }
 0x1db   : > { %v4660_v10 = vpop.f32.mrb[97].mxu0 }
 0x1dc   : > { %v4661_v12 = vadd.f32 %v4660_v10, %v4659_v51  ;;  %v4662_v13 = vpop.f32.mrb[98].mxu0  ;;  %v4713_v63 = vpop.f32.mrb[96].mxu1 }
 0x1dd   : > { %v4663_v31 = vpop.f32.mrb[99].mxu0  ;;  %v3517_v6 = vpop.f32.mrb[97].mxu1 }
 0x1de   : > { %v4664_v47 = vadd.f32 %v4663_v31, %v4662_v13  ;;  %v3453_v3 = vadd.f32 %v4661_v12, %v3388_v30  ;;  %v4714_v52 = vpop.f32.mrb[98].mxu1 }
 0x1df   : > { %v3520_v21 = vpop.f32.mrb[99].mxu1 }
 0x1e0   : > { %v3518_v18 = vadd.f32 %v3517_v6, %v3453_v3  ;;  %v3456_v42 = vadd.f32 %v4664_v47, %v3391_v23 }
 0x1e2   : > { %v3555_v24 = vmul.f32 %v5988_v34, %v3518_v18  ;;  %v3521_v25 = vadd.f32 %v3520_v21, %v3456_v42  ;;  %v4665_v11 = vpop.f32.mrb[100].mxu0 }
 0x1e3   : > { %v4666_v30 = vpop.f32.mrb[101].mxu0 }
 0x1e4   : > { %v3570_v26 = vadd.f32 %v5993_v22, %v3555_v24  ;;  %v3556_v27 = vmul.f32 %v5988_v34, %v3521_v25  ;;  %v4667_v15 = vadd.f32 %v4666_v30, %v4665_v11  ;;  %v4668_v17 = vpop.f32.mrb[102].mxu0  ;;  %v4717_v33 = vpop.f32.mrb[100].mxu1 }
 0x1e5   : > { %v4669_v29 = vpop.f32.mrb[103].mxu0  ;;  %v3533_v39 = vpop.f32.mrb[101].mxu1 }
 0x1e6   : > { %v4095_v23 = vmul.f32 -1.442695, %v3570_v26  ;;  %v3571_v19 = vadd.f32 %v5993_v22, %v3556_v27  ;;  %v3461_v36 = vadd.f32 %v4667_v15, %v3396_v62  ;;  %v4670_v37 = vadd.f32 %v4669_v29, %v4668_v17  ;;  %v4718_v2 = vpop.f32.mrb[102].mxu1 }
 0x1e7   : > { %v3536_v28 = vpop.f32.mrb[103].mxu1 }
 0x1e8   : > { %5104 = vpow2.f32 %v4095_v23  ;;  %v4096_v41 = vmul.f32 -1.442695, %v3571_v19  ;;  %v3526_v43 = vadd.f32 %v4713_v63, %v3461_v36  ;;  %v3464_v44 = vadd.f32 %v4670_v37, %v5975_v40 }
 0x1ea   : > { %5106 = vpow2.f32 %v4096_v41  ;;  %v3557_v32 = vmul.f32 %v5988_v34, %v3526_v43  ;;  %v3529_v5 = vadd.f32 %v4714_v52, %v3464_v44  ;;  %v4671_v46 = vpop.f32.mrb[104].mxu0 }
 0x1eb   : > { %v4672_v0 = vpop.f32.mrb[105].mxu0 }
 0x1ec   : > { %v3572_v35 = vadd.f32 %v5993_v22, %v3557_v32  ;;  %v3558_v49 = vmul.f32 %v5988_v34, %v3529_v5  ;;  %v4673_v62 = vadd.f32 %v4672_v0, %v4671_v46  ;;  %v4674_v50 = vpop.f32.mrb[106].mxu0  ;;  %v4158_v0 = vld [vmem:[%s6017_s17 + $0x10] sm:$0xff]  }
 0x1ed   : > { %v4675_v38 = vpop.f32.mrb[107].mxu0 }
 0x1ee   : > { %v4097_v55 = vmul.f32 -1.442695, %v3572_v35  ;;  %v3573_v56 = vadd.f32 %v5993_v22, %v3558_v49  ;;  %v4676_v57 = vadd.f32 %v4675_v38, %v4674_v50  ;;  %v3469_v40 = vadd.f32 %v4673_v62, %v5977_v54 }
 0x1ef   : > { %v4131_v38 = vunpack.c.l.bf16 %v4158_v0 }
 0x1f0   : > { %5108 = vpow2.f32 %v4097_v55  ;;  %v4098_v58 = vmul.f32 -1.442695, %v3573_v56  ;;  %v3534_v45 = vadd.f32 %v3533_v39, %v3469_v40  ;;  %v3472_v59 = vadd.f32 %v4676_v57, %v5979_v20 }
 0x1f1   : > { %v4132_v55 = vunpack.c.h.bf16 %v4158_v0 }
 0x1f2   : > { %v5105_v60 = vpop.eup %5104  ;;  %5110 = vpow2.f32 %v4098_v58  ;;  %v3559_v48 = vmul.f32 %v5988_v34, %v3534_v45  ;;  %v3537_v53 = vadd.f32 %v3536_v28, %v3472_v59  ;;  %v4677_v61 = vpop.f32.mrb[108].mxu0  ;;  %v4159_v45 = vld [vmem:[%s6017_s17 + $0x18] sm:$0xff]  }
 0x1f3   : > { %v3618_v14 = vadd.f32 1.0, %v5105_v60  ;;  %v4678_v1 = vpop.f32.mrb[109].mxu0  ;;  %v4135_v60 = vunpack.c.l.bf16 %v4159_v45 }
 0x1f4   : > { %v5107_v16 = vpop.eup %5106  ;;  %v3574_v4 = vadd.f32 %v5993_v22, %v3559_v48  ;;  %v3560_v54 = vmul.f32 %v5988_v34, %v3537_v53  ;;  %v4679_v8 = vadd.f32 %v4678_v1, %v4677_v61  ;;  %v4680_v51 = vpop.f32.mrb[110].mxu0  ;;  %v4136_v48 = vunpack.c.h.bf16 %v4159_v45 }
 0x1f5   : > { %5112 = vrcp.f32 %v3618_v14  ;;  %v3619_v10 = vadd.f32 1.0, %v5107_v16  ;;  %v4681_v20 = vpop.f32.mrb[111].mxu0 }
 0x1f6   : > { %v4099_v12 = vmul.f32 -1.442695, %v3574_v4  ;;  %v3575_v13 = vadd.f32 %v5993_v22, %v3560_v54  ;;  %v3477_v31 = vadd.f32 %v4679_v8, %v5981_v7  ;;  %v4682_v63 = vadd.f32 %v4681_v20, %v4680_v51  ;;  %v4122_v7 = vld [vmem:[%s6017_s17] sm:$0xff]  }
 0x1f7   : > { %5114 = vrcp.f32 %v3619_v10  ;;  %v4123_v26 = vunpack.c.l.bf16 %v4122_v7  ;;  %v4124_v27 = vunpack.c.h.bf16 %v4122_v7 }
 0x1f8   : > { %5116 = vpow2.f32 %v4099_v12  ;;  %v4100_v47 = vmul.f32 -1.442695, %v3575_v13  ;;  %v3542_v3 = vadd.f32 %v4717_v33, %v3477_v31  ;;  %v3480_v6 = vadd.f32 %v4682_v63, %v5983_v9 }
 0x1fa   : > { %v5109_v52 = vpop.eup %5108  ;;  %5118 = vpow2.f32 %v4100_v47  ;;  %v3561_v18 = vmul.f32 %v5988_v34, %v3542_v3  ;;  %v3545_v42 = vadd.f32 %v4718_v2, %v3480_v6 }
 0x1fb   : > { %v3620_v21 = vadd.f32 1.0, %v5109_v52 }
 0x1fc   : > { %v5111_v24 = vpop.eup %5110  ;;  %v3576_v25 = vadd.f32 %v5993_v22, %v3561_v18  ;;  %v3562_v11 = vmul.f32 %v5988_v34, %v3545_v42  ;;  %v4157_v34 = vld [vmem:[%s6017_s17 + $0x8] sm:$0xff]  }
 0x1fd   : > { %5120 = vrcp.f32 %v3620_v21  ;;  %v3621_v30 = vadd.f32 1.0, %v5111_v24  ;;  %v4127_v41 = vunpack.c.l.bf16 %v4157_v34  ;;  %v4128_v43 = vunpack.c.h.bf16 %v4157_v34 }
 0x1fe   : > { %v4101_v15 = vmul.f32 -1.442695, %v3576_v25  ;;  %v3577_v9 = vadd.f32 %v5993_v22, %v3562_v11 }
 0x1ff   : > { %v5113_v17 = vpop.eup %5112  ;;  %5122 = vrcp.f32 %v3621_v30 }
 0x200   : > { %5124 = vpow2.f32 %v4101_v15  ;;  %v4102_v29 = vmul.f32 -1.442695, %v3577_v9  ;;  %v3642_v19 = vmul.f32 %v5113_v17, %v4123_v26 }
 0x201   : > { %v5115_v33 = vpop.eup %5114 }
 0x202   : > { %v5117_v23 = vpop.eup %5116  ;;  %v3643_v36 = vmul.f32 %v5115_v33, %v4124_v27  ;;  %5126 = vpow2.f32 %v4102_v29 }
 0x203   : > { %v3622_v37 = vadd.f32 1.0, %v5117_v23 }
 0x204   : > { %v5119_v22 = vpop.eup %5118  ;;  %v4140_v39 = vpack.c.bf16 %v3643_v36, %v3642_v19 }
 0x205   : > { %5128 = vrcp.f32 %v3622_v37  ;;  %v3623_v2 = vadd.f32 1.0, %v5119_v22 }
 0x206   : > { %4141 = vst [vmem:[%s6030_s22] sm:$0xff] %v4140_v39  }
 0x207   : > { %v5121_v44 = vpop.eup %5120  ;;  %5130 = vrcp.f32 %v3623_v2 }
 0x208   : > { %v3644_v5 = vmul.f32 %v5121_v44, %v4127_v41 }
 0x209   : > { %v5123_v28 = vpop.eup %5122 }
 0x20a   : > { %v5125_v32 = vpop.eup %5124  ;;  %v3645_v46 = vmul.f32 %v5123_v28, %v4128_v43 }
 0x20b   : > { %v3624_v35 = vadd.f32 1.0, %v5125_v32 }
 0x20c   : > { %v5127_v49 = vpop.eup %5126  ;;  %v4145_v62 = vpack.c.bf16 %v3645_v46, %v3644_v5 }
 0x20d   : > { %5132 = vrcp.f32 %v3624_v35  ;;  %v3625_v50 = vadd.f32 1.0, %v5127_v49 }
 0x20e   : > { %4160 = vst [vmem:[%s6030_s22 + $0x8] sm:$0xff] %v4145_v62  }
 0x20f   : > { %v5129_v56 = vpop.eup %5128  ;;  %5134 = vrcp.f32 %v3625_v50 }
 0x210   : > { %v3646_v40 = vmul.f32 %v5129_v56, %v4131_v38 }
 0x211   : > { %v5131_v57 = vpop.eup %5130 }
 0x212   : > { %v3647_v58 = vmul.f32 %v5131_v57, %v4132_v55 }
 0x214   : > { %v4150_v59 = vpack.c.bf16 %v3647_v58, %v3646_v40 }
 0x216   : > { %4161 = vst [vmem:[%s6030_s22 + $0x10] sm:$0xff] %v4150_v59  }
 0x217   : > { %v5133_v53 = vpop.eup %5132 }
 0x218   : > { %v3648_v14 = vmul.f32 %v5133_v53, %v4135_v60 }
 0x219   : > { %v5135_v61 = vpop.eup %5134 }
 0x21a   : > { %v3649_v1 = vmul.f32 %v5135_v61, %v4136_v48 }
 0x21c   : > { %v4155_v16 = vpack.c.bf16 %v3649_v1, %v3648_v14 }
 0x21e   : > { %4162 = vst [vmem:[%s6030_s22 + $0x18] sm:$0xff] %v4155_v16  }
 0x21f PF: > { %s15_s18 = sadd.s32 1, %s5142_s18  }
 0x220   : > { %p12_p4 = scmp.ge.s32.totalorder %s15_s18, 4  }
 0x222   :  { %14 = sbr.rel (!%p12_p4) target bundleno = 1 (0x1), region = 73 }

// kernel: fid3dcnn_forward.7
= control target key start
LH: loop header
LB: loop body
LE: loop exit
PB: predicated region body
PF: predicated region fallthrough
CT: control target
= control target key end

     0   :  { %vm3566_vm0 = vmmov 0   ;;  %s4404_s0 = inlined_call_operand.vmem [shape: bf16[16,3456], index: 0, kind: input, shape index: {}]   ;;  %s4405_s1 = inlined_call_operand.vmem [shape: bf16[3456,128], index: 1, kind: input, shape index: {}]   ;;  %s4406_s2 = inlined_call_operand.vmem [shape: f32[1,128], index: 2, kind: input, shape index: {}]   ;;  %s4407_s3 = inlined_call_operand.vmem [shape: f32[1,128], index: 3, kind: input, shape index: {}]   ;;  %s4408_s4 = inlined_call_operand.vmem [shape: f32[128,128], index: 4, kind: input, shape index: {}]   ;;  %s4409_s5 = inlined_call_operand.vmem [shape: f32[1,128], index: 5, kind: input, shape index: {}]   ;;  %s4410_s6 = inlined_call_operand.hbm [shape: f32[2,128], index: 6, kind: output, shape index: {}]  }
   0x1   :  { %v3285_v0 = vld [vmem:[%s4405_s1 + $0x40] sm:$0xff]   ;;  %v3289_v4 = vld [vmem:[%s4405_s1 + $0x48] sm:$0xff]   ;;  %v3293_v8 = vld [vmem:[%s4405_s1 + $0x50] sm:$0xff]  }
   0x2   :  { %v3286_v1 = vld [vmem:[%s4405_s1 + $0xc0] sm:$0xff]   ;;  %2882 = vmatprep.subr.bf16.mxu0 %v3285_v0  ;;  %v3290_v5 = vld [vmem:[%s4405_s1 + $0xc8] sm:$0xff]   ;;  %v3294_v9 = vld [vmem:[%s4405_s1 + $0xd0] sm:$0xff]  }
   0x3   :  { %v3287_v2 = vld [vmem:[%s4405_s1] sm:$0xff]   ;;  %2904 = vmatprep.subr.bf16.mxu1 %v3286_v1  ;;  %v3291_v6 = vld [vmem:[%s4405_s1 + $0x8] sm:$0xff]   ;;  %v3295_v10 = vld [vmem:[%s4405_s1 + $0x10] sm:$0xff]  }
   0x4   :  { %v3288_v3 = vld [vmem:[%s4405_s1 + $0x80] sm:$0xff]   ;;  %2883 = vmatpush3.bf16.msra.mxu0 %v3287_v2  ;;  %v3292_v7 = vld [vmem:[%s4405_s1 + $0x88] sm:$0xff]   ;;  %v3296_v11 = vld [vmem:[%s4405_s1 + $0x90] sm:$0xff]  }
   0x5   :  { %2905 = vmatpush3.bf16.msra.mxu1 %v3288_v3  ;;  %2884 = vmatprep.subr.bf16.mxu0 %v3289_v4  ;;  %v3297_v12 = vld [vmem:[%s4405_s1 + $0x58] sm:$0xff]   ;;  %v3301_v16 = vld [vmem:[%s4405_s1 + $0x60] sm:$0xff]   ;;  %v3305_v20 = vld [vmem:[%s4405_s1 + $0x68] sm:$0xff]  }
   0x6   :  { %2906 = vmatprep.subr.bf16.mxu1 %v3290_v5  ;;  %v3298_v13 = vld [vmem:[%s4405_s1 + $0xd8] sm:$0xff]   ;;  %v3302_v17 = vld [vmem:[%s4405_s1 + $0xe0] sm:$0xff]   ;;  %v3306_v21 = vld [vmem:[%s4405_s1 + $0xe8] sm:$0xff]  }
   0x7   :  { %v3299_v14 = vld [vmem:[%s4405_s1 + $0x18] sm:$0xff]   ;;  %v3303_v18 = vld [vmem:[%s4405_s1 + $0x20] sm:$0xff]   ;;  %v3307_v22 = vld [vmem:[%s4405_s1 + $0x28] sm:$0xff]  }
   0x8   :  { %2885 = vmatpush3.bf16.msra.mxu0 %v3291_v6  ;;  %v3300_v15 = vld [vmem:[%s4405_s1 + $0x98] sm:$0xff]   ;;  %v3304_v19 = vld [vmem:[%s4405_s1 + $0xa0] sm:$0xff]   ;;  %v3308_v23 = vld [vmem:[%s4405_s1 + $0xa8] sm:$0xff]  }
   0x9   :  { %2907 = vmatpush3.bf16.msra.mxu1 %v3292_v7  ;;  %2886 = vmatprep.subr.bf16.mxu0 %v3293_v8  ;;  %v3309_v24 = vld [vmem:[%s4405_s1 + $0x70] sm:$0xff]   ;;  %v3313_v28 = vld [vmem:[%s4405_s1 + $0x78] sm:$0xff]   ;;  %v3317_v32 = vld [vmem:[%s4404_s0] ss:$108 sps:$4 sm:$0xff]  }
   0xa   :  { %2908 = vmatprep.subr.bf16.mxu1 %v3294_v9  ;;  %v3310_v25 = vld [vmem:[%s4405_s1 + $0xf0] sm:$0xff]   ;;  %v3314_v29 = vld [vmem:[%s4405_s1 + $0xf8] sm:$0xff]   ;;  %v3323_v36 = vld [vmem:[%s4405_s1 + $0x140] sm:$0xff]  }
   0xb   :  { %v3311_v26 = vld [vmem:[%s4405_s1 + $0x30] sm:$0xff]   ;;  %v3315_v30 = vld [vmem:[%s4405_s1 + $0x38] sm:$0xff]   ;;  %v3324_v37 = vld [vmem:[%s4405_s1 + $0x100] sm:$0xff]  }
   0xc   :  { %2887 = vmatpush3.bf16.msra.mxu0 %v3295_v10  ;;  %v3312_v27 = vld [vmem:[%s4405_s1 + $0xb0] sm:$0xff]   ;;  %v3316_v31 = vld [vmem:[%s4405_s1 + $0xb8] sm:$0xff]   ;;  %v3325_v38 = vld [vmem:[%s4405_s1 + $0x1c0] sm:$0xff]  }
   0xd   :  { %2909 = vmatpush3.bf16.msra.mxu1 %v3296_v11  ;;  %2888 = vmatprep.subr.bf16.mxu0 %v3297_v12  ;;  %v3319_v33 = vld [vmem:[%s4404_s0 + $0x4] ss:$108 sps:$4 sm:$0xff]   ;;  %v3320_v34 = vld [vmem:[%s4404_s0 + $0x8] ss:$108 sps:$4 sm:$0xff]   ;;  %v3322_v35 = vld [vmem:[%s4404_s0 + $0xc] ss:$108 sps:$4 sm:$0xff]  }
   0xe   :  { %2910 = vmatprep.subr.bf16.mxu1 %v3298_v13  ;;  %1949 = vmatprep.mubr.bf16.mxu0 %v3319_v33  ;;  %v3326_v39 = vld [vmem:[%s4405_s1 + $0x180] sm:$0xff]   ;;  %v3327_v40 = vld [vmem:[%s4405_s1 + $0x148] sm:$0xff]   ;;  %v3331_v44 = vld [vmem:[%s4405_s1 + $0x150] sm:$0xff]  }
   0xf   :  { %1990 = vmatprep.mubr.bf16.mxu1 %v3322_v35  ;;  %v3328_v41 = vld [vmem:[%s4405_s1 + $0x108] sm:$0xff]   ;;  %v3332_v45 = vld [vmem:[%s4405_s1 + $0x110] sm:$0xff]   ;;  %v3335_v48 = vld [vmem:[%s4405_s1 + $0x158] sm:$0xff]  }
  0x10   :  { %2889 = vmatpush3.bf16.msra.mxu0 %v3299_v14  ;;  %v3329_v42 = vld [vmem:[%s4405_s1 + $0x1c8] sm:$0xff]   ;;  %v3333_v46 = vld [vmem:[%s4405_s1 + $0x1d0] sm:$0xff]   ;;  %v3336_v49 = vld [vmem:[%s4405_s1 + $0x118] sm:$0xff]  }
  0x11   :  { %2911 = vmatpush3.bf16.msra.mxu1 %v3300_v15  ;;  %2890 = vmatprep.subr.bf16.mxu0 %v3301_v16  ;;  %v3330_v43 = vld [vmem:[%s4405_s1 + $0x188] sm:$0xff]   ;;  %v3334_v47 = vld [vmem:[%s4405_s1 + $0x190] sm:$0xff]   ;;  %v3337_v50 = vld [vmem:[%s4405_s1 + $0x1d8] sm:$0xff]  }
  0x12   :  { %2912 = vmatprep.subr.bf16.mxu1 %v3302_v17  ;;  %v3338_v51 = vld [vmem:[%s4405_s1 + $0x198] sm:$0xff]   ;;  %v3339_v52 = vld [vmem:[%s4405_s1 + $0x160] sm:$0xff]   ;;  %v3343_v56 = vld [vmem:[%s4405_s1 + $0x168] sm:$0xff]  }
  0x13   :  { %v3340_v53 = vld [vmem:[%s4405_s1 + $0x120] sm:$0xff]   ;;  %v3344_v57 = vld [vmem:[%s4405_s1 + $0x128] sm:$0xff]   ;;  %v3347_v60 = vld [vmem:[%s4405_s1 + $0x170] sm:$0xff]  }
  0x14   :  { %2891 = vmatpush3.bf16.msra.mxu0 %v3303_v18  ;;  %v3341_v54 = vld [vmem:[%s4405_s1 + $0x1e0] sm:$0xff]   ;;  %v3345_v58 = vld [vmem:[%s4405_s1 + $0x1e8] sm:$0xff]   ;;  %v3348_v61 = vld [vmem:[%s4405_s1 + $0x130] sm:$0xff]  }
  0x15   :  { %2913 = vmatpush3.bf16.msra.mxu1 %v3304_v19  ;;  %2892 = vmatprep.subr.bf16.mxu0 %v3305_v20  ;;  %v3342_v55 = vld [vmem:[%s4405_s1 + $0x1a0] sm:$0xff]   ;;  %v3346_v59 = vld [vmem:[%s4405_s1 + $0x1a8] sm:$0xff]   ;;  %v3349_v62 = vld [vmem:[%s4405_s1 + $0x1f0] sm:$0xff]  }
  0x16   :  { %2914 = vmatprep.subr.bf16.mxu1 %v3306_v21  ;;  %v3350_v63 = vld [vmem:[%s4405_s1 + $0x1b0] sm:$0xff]   ;;  %v3351_v0 = vld [vmem:[%s4405_s1 + $0x178] sm:$0xff]   ;;  %v3358_v6 = vld [vmem:[%s4405_s1 + $0x240] sm:$0xff]  }
  0x17   :  { %v3352_v1 = vld [vmem:[%s4405_s1 + $0x138] sm:$0xff]   ;;  %v3356_v4 = vld [vmem:[%s4404_s0 + $0x14] ss:$108 sps:$4 sm:$0xff]   ;;  %v3365_v12 = vld [vmem:[%s4405_s1 + $0x248] sm:$0xff]  }
  0x18   :  { %2893 = vmatpush3.bf16.msra.mxu0 %v3307_v22  ;;  %v3353_v2 = vld [vmem:[%s4405_s1 + $0x1f8] sm:$0xff]   ;;  %v3362_v9 = vld [vmem:[%s4405_s1 + $0x200] sm:$0xff]   ;;  %v3366_v13 = vld [vmem:[%s4405_s1 + $0x208] sm:$0xff]  }
  0x19   :  { %2915 = vmatpush3.bf16.msra.mxu1 %v3308_v23  ;;  %2894 = vmatprep.subr.bf16.mxu0 %v3309_v24  ;;  %v3354_v3 = vld [vmem:[%s4404_s0 + $0x10] ss:$108 sps:$4 sm:$0xff]   ;;  %v3359_v7 = vld [vmem:[%s4404_s0 + $0x18] ss:$108 sps:$4 sm:$0xff]   ;;  %v3367_v14 = vld [vmem:[%s4405_s1 + $0x2c8] sm:$0xff]  }
  0x1a   :  { %2916 = vmatprep.subr.bf16.mxu1 %v3310_v25  ;;  %v3357_v5 = vld [vmem:[%s4405_s1 + $0x1b8] sm:$0xff]   ;;  %v3363_v10 = vld [vmem:[%s4405_s1 + $0x2c0] sm:$0xff]   ;;  %v3368_v15 = vld [vmem:[%s4405_s1 + $0x288] sm:$0xff]  }
  0x1b   :  { %v3361_v8 = vld [vmem:[%s4404_s0 + $0x1c] ss:$108 sps:$4 sm:$0xff]   ;;  %v3364_v11 = vld [vmem:[%s4405_s1 + $0x280] sm:$0xff]   ;;  %v3369_v16 = vld [vmem:[%s4405_s1 + $0x250] sm:$0xff]  }
  0x1c   :  { %2895 = vmatpush3.bf16.msra.mxu0 %v3311_v26  ;;  %v3370_v17 = vld [vmem:[%s4405_s1 + $0x210] sm:$0xff]   ;;  %v3373_v20 = vld [vmem:[%s4405_s1 + $0x258] sm:$0xff]   ;;  %v3377_v24 = vld [vmem:[%s4405_s1 + $0x260] sm:$0xff]  }
  0x1d   :  { %2917 = vmatpush3.bf16.msra.mxu1 %v3312_v27  ;;  %2896 = vmatprep.subr.bf16.mxu0 %v3313_v28  ;;  %v3371_v18 = vld [vmem:[%s4405_s1 + $0x2d0] sm:$0xff]   ;;  %v3374_v21 = vld [vmem:[%s4405_s1 + $0x218] sm:$0xff]   ;;  %v3378_v25 = vld [vmem:[%s4405_s1 + $0x220] sm:$0xff]  }
  0x1e   :  { %2918 = vmatprep.subr.bf16.mxu1 %v3314_v29  ;;  %v3372_v19 = vld [vmem:[%s4405_s1 + $0x290] sm:$0xff]   ;;  %v3375_v22 = vld [vmem:[%s4405_s1 + $0x2d8] sm:$0xff]   ;;  %v3379_v26 = vld [vmem:[%s4405_s1 + $0x2e0] sm:$0xff]  }
  0x1f   :  { %v3376_v23 = vld [vmem:[%s4405_s1 + $0x298] sm:$0xff]   ;;  %v3380_v27 = vld [vmem:[%s4405_s1 + $0x2a0] sm:$0xff]   ;;  %v3381_v28 = vld [vmem:[%s4405_s1 + $0x268] sm:$0xff]  }
  0x20   :  { %2897 = vmatpush3.bf16.msra.mxu0 %v3315_v30  ;;  %v3382_v29 = vld [vmem:[%s4405_s1 + $0x228] sm:$0xff]   ;;  %v3386_v33 = vld [vmem:[%s4405_s1 + $0x230] sm:$0xff]  }
  0x21   :  { %2919 = vmatpush3.bf16.msra.mxu1 %v3316_v31  ;;  %2926 = vmatprep.subr.bf16.mxu0 %v3323_v36  ;;  %v3383_v30 = vld [vmem:[%s4405_s1 + $0x2e8] sm:$0xff]   ;;  %v3388_v35 = vld [vmem:[%s4405_s1 + $0x2b0] sm:$0xff]   ;;  %v3389_v36 = vld [vmem:[%s4405_s1 + $0x278] sm:$0xff]  }
  0x22   :  { %2948 = vmatprep.subr.bf16.mxu1 %v3325_v38  ;;  %v3384_v31 = vld [vmem:[%s4405_s1 + $0x2a8] sm:$0xff]   ;;  %v3391_v38 = vld [vmem:[%s4405_s1 + $0x2f8] sm:$0xff]  }
  0x23   :  { %1950 = vmatmul.mubr.bf16.vlgmr.msra.gmra.mrb[0].mxu0 %v3317_v32  ;;  %v3385_v32 = vld [vmem:[%s4405_s1 + $0x270] sm:$0xff]  }
  0x24   :  { %1991 = vmatmul.mubr.bf16.vlgmr.msra.gmra.mrb[0].mxu1 %v3320_v34  ;;  %2927 = vmatpush3.bf16.msra.mxu0 %v3324_v37  ;;  %v3387_v34 = vld [vmem:[%s4405_s1 + $0x2f0] sm:$0xff]   ;;  %v3390_v37 = vld [vmem:[%s4405_s1 + $0x238] sm:$0xff]  }
  0x25   :  { %2949 = vmatpush3.bf16.msra.mxu1 %v3326_v39  ;;  %2928 = vmatprep.subr.bf16.mxu0 %v3327_v40  ;;  %v3392_v39 = vld [vmem:[%s4404_s0 + $0x20] ss:$108 sps:$4 sm:$0xff]   ;;  %v3394_v40 = vld [vmem:[%s4404_s0 + $0x24] ss:$108 sps:$4 sm:$0xff]  }
  0x26   :  { %2950 = vmatprep.subr.bf16.mxu1 %v3329_v42  ;;  %2031 = vmatprep.mubr.bf16.mxu0 %v3356_v4  ;;  %v3396_v42 = vld [vmem:[%s4405_s1 + $0x340] sm:$0xff]   ;;  %v3423_v4 = vld [vmem:[%s4405_s1 + $0x370] sm:$0xff]  }
  0x27   :  { %2072 = vmatprep.mubr.bf16.mxu1 %v3361_v8  ;;  %v3427_v8 = vld [vmem:[%s4405_s1 + $0x378] sm:$0xff]  }
  0x28   :  { %2929 = vmatpush3.bf16.msra.mxu0 %v3328_v41  ;;  %v3395_v41 = vld [vmem:[%s4405_s1 + $0x2b8] sm:$0xff]  }
  0x29   :  { %2951 = vmatpush3.bf16.msra.mxu1 %v3330_v43  ;;  %2930 = vmatprep.subr.bf16.mxu0 %v3331_v44  ;;  %v3397_v43 = vld [vmem:[%s4404_s0 + $0x28] ss:$108 sps:$4 sm:$0xff]   ;;  %v3399_v44 = vld [vmem:[%s4404_s0 + $0x2c] ss:$108 sps:$4 sm:$0xff]  }
  0x2a   :  { %2952 = vmatprep.subr.bf16.mxu1 %v3333_v46  ;;  %v3401_v46 = vld [vmem:[%s4405_s1 + $0x3c0] sm:$0xff]  }
  0x2c   :  { %2931 = vmatpush3.bf16.msra.mxu0 %v3332_v45  ;;  %v3400_v45 = vld [vmem:[%s4405_s1 + $0x300] sm:$0xff]  }
  0x2d   :  { %2953 = vmatpush3.bf16.msra.mxu1 %v3334_v47  ;;  %2932 = vmatprep.subr.bf16.mxu0 %v3335_v48  ;;  %v3402_v47 = vld [vmem:[%s4405_s1 + $0x380] sm:$0xff]   ;;  %v3403_v48 = vld [vmem:[%s4405_s1 + $0x348] sm:$0xff]  }
  0x2e   :  { %2954 = vmatprep.subr.bf16.mxu1 %v3337_v50  ;;  %v3405_v50 = vld [vmem:[%s4405_s1 + $0x3c8] sm:$0xff]  }
  0x30   :  { %2933 = vmatpush3.bf16.msra.mxu0 %v3336_v49  ;;  %v3404_v49 = vld [vmem:[%s4405_s1 + $0x308] sm:$0xff]  }
  0x31   :  { %2955 = vmatpush3.bf16.msra.mxu1 %v3338_v51  ;;  %2934 = vmatprep.subr.bf16.mxu0 %v3339_v52  ;;  %v3406_v51 = vld [vmem:[%s4405_s1 + $0x388] sm:$0xff]   ;;  %v3407_v52 = vld [vmem:[%s4405_s1 + $0x350] sm:$0xff]  }
  0x32   :  { %2956 = vmatprep.subr.bf16.mxu1 %v3341_v54  ;;  %v3409_v54 = vld [vmem:[%s4405_s1 + $0x3d0] sm:$0xff]  }
  0x34   :  { %2935 = vmatpush3.bf16.msra.mxu0 %v3340_v53  ;;  %v3408_v53 = vld [vmem:[%s4405_s1 + $0x310] sm:$0xff]  }
  0x35   :  { %2957 = vmatpush3.bf16.msra.mxu1 %v3342_v55  ;;  %2936 = vmatprep.subr.bf16.mxu0 %v3343_v56  ;;  %v3410_v55 = vld [vmem:[%s4405_s1 + $0x390] sm:$0xff]   ;;  %v3411_v56 = vld [vmem:[%s4405_s1 + $0x358] sm:$0xff]  }
  0x36   :  { %2958 = vmatprep.subr.bf16.mxu1 %v3345_v58  ;;  %v3413_v58 = vld [vmem:[%s4405_s1 + $0x3d8] sm:$0xff]  }
  0x38   :  { %2937 = vmatpush3.bf16.msra.mxu0 %v3344_v57  ;;  %v3412_v57 = vld [vmem:[%s4405_s1 + $0x318] sm:$0xff]  }
  0x39   :  { %2959 = vmatpush3.bf16.msra.mxu1 %v3346_v59  ;;  %2938 = vmatprep.subr.bf16.mxu0 %v3347_v60  ;;  %v3414_v59 = vld [vmem:[%s4405_s1 + $0x398] sm:$0xff]   ;;  %v3415_v60 = vld [vmem:[%s4405_s1 + $0x360] sm:$0xff]  }
  0x3a   :  { %2960 = vmatprep.subr.bf16.mxu1 %v3349_v62  ;;  %v3417_v62 = vld [vmem:[%s4405_s1 + $0x3e0] sm:$0xff]  }
  0x3c   :  { %2939 = vmatpush3.bf16.msra.mxu0 %v3348_v61  ;;  %v3416_v61 = vld [vmem:[%s4405_s1 + $0x320] sm:$0xff]  }
  0x3d   :  { %2961 = vmatpush3.bf16.msra.mxu1 %v3350_v63  ;;  %2940 = vmatprep.subr.bf16.mxu0 %v3351_v0  ;;  %v3418_v63 = vld [vmem:[%s4405_s1 + $0x3a0] sm:$0xff]   ;;  %v3419_v0 = vld [vmem:[%s4405_s1 + $0x368] sm:$0xff]  }
  0x3e   :  { %2962 = vmatprep.subr.bf16.mxu1 %v3353_v2  ;;  %v3421_v2 = vld [vmem:[%s4405_s1 + $0x3e8] sm:$0xff]  }
  0x40   :  { %2941 = vmatpush3.bf16.msra.mxu0 %v3352_v1  ;;  %v3420_v1 = vld [vmem:[%s4405_s1 + $0x328] sm:$0xff]  }
  0x41   :  { %2963 = vmatpush3.bf16.msra.mxu1 %v3357_v5  ;;  %2970 = vmatprep.subr.bf16.mxu0 %v3358_v6  ;;  %v3424_v5 = vld [vmem:[%s4405_s1 + $0x330] sm:$0xff]  }
  0x42   :  { %2992 = vmatprep.subr.bf16.mxu1 %v3363_v10  ;;  %v3425_v6 = vld [vmem:[%s4405_s1 + $0x3f0] sm:$0xff]   ;;  %v3429_v10 = vld [vmem:[%s4405_s1 + $0x3f8] sm:$0xff]  }
  0x43   :  { %2032 = vmatmul.mubr.bf16.vlgmr.msra.gmra.mrb[4].mxu0 %v3354_v3  ;;  %v3422_v3 = vld [vmem:[%s4405_s1 + $0x3a8] sm:$0xff]  }
  0x44   :  { %2971 = vmatpush3.bf16.msra.mxu0 %v3362_v9  ;;  %2073 = vmatmul.mubr.bf16.vlgmr.msra.gmra.mrb[4].mxu1 %v3359_v7  ;;  %v3426_v7 = vld [vmem:[%s4405_s1 + $0x3b0] sm:$0xff]   ;;  %v3428_v9 = vld [vmem:[%s4405_s1 + $0x338] sm:$0xff]  }
  0x45   :  { %2993 = vmatpush3.bf16.msra.mxu1 %v3364_v11  ;;  %2972 = vmatprep.subr.bf16.mxu0 %v3365_v12  ;;  %v3430_v11 = vld [vmem:[%s4404_s0 + $0x30] ss:$108 sps:$4 sm:$0xff]   ;;  %v3432_v12 = vld [vmem:[%s4404_s0 + $0x34] ss:$108 sps:$4 sm:$0xff]  }
  0x46   :  { %2994 = vmatprep.subr.bf16.mxu1 %v3367_v14  ;;  %2113 = vmatprep.mubr.bf16.mxu0 %v3394_v40  ;;  %v3434_v14 = vld [vmem:[%s4405_s1 + $0x440] sm:$0xff]   ;;  %v3461_v40 = vld [vmem:[%s4405_s1 + $0x470] sm:$0xff]  }
  0x47   :  { %2154 = vmatprep.mubr.bf16.mxu1 %v3399_v44  ;;  %v3465_v44 = vld [vmem:[%s4405_s1 + $0x478] sm:$0xff]  }
  0x48   :  { %2973 = vmatpush3.bf16.msra.mxu0 %v3366_v13  ;;  %v3433_v13 = vld [vmem:[%s4405_s1 + $0x3b8] sm:$0xff]  }
  0x49   :  { %2995 = vmatpush3.bf16.msra.mxu1 %v3368_v15  ;;  %2974 = vmatprep.subr.bf16.mxu0 %v3369_v16  ;;  %v3435_v15 = vld [vmem:[%s4404_s0 + $0x38] ss:$108 sps:$4 sm:$0xff]   ;;  %v3437_v16 = vld [vmem:[%s4404_s0 + $0x3c] ss:$108 sps:$4 sm:$0xff]  }
  0x4a   :  { %2996 = vmatprep.subr.bf16.mxu1 %v3371_v18  ;;  %v3439_v18 = vld [vmem:[%s4405_s1 + $0x4c0] sm:$0xff]  }
  0x4c   :  { %2975 = vmatpush3.bf16.msra.mxu0 %v3370_v17  ;;  %v3438_v17 = vld [vmem:[%s4405_s1 + $0x400] sm:$0xff]  }
  0x4d   :  { %2997 = vmatpush3.bf16.msra.mxu1 %v3372_v19  ;;  %2976 = vmatprep.subr.bf16.mxu0 %v3373_v20  ;;  %v3440_v19 = vld [vmem:[%s4405_s1 + $0x480] sm:$0xff]   ;;  %v3441_v20 = vld [vmem:[%s4405_s1 + $0x448] sm:$0xff]  }
  0x4e   :  { %2998 = vmatprep.subr.bf16.mxu1 %v3375_v22  ;;  %v3443_v22 = vld [vmem:[%s4405_s1 + $0x4c8] sm:$0xff]  }
  0x50   :  { %2977 = vmatpush3.bf16.msra.mxu0 %v3374_v21  ;;  %v3442_v21 = vld [vmem:[%s4405_s1 + $0x408] sm:$0xff]  }
  0x51   :  { %2999 = vmatpush3.bf16.msra.mxu1 %v3376_v23  ;;  %2978 = vmatprep.subr.bf16.mxu0 %v3377_v24  ;;  %v3444_v23 = vld [vmem:[%s4405_s1 + $0x488] sm:$0xff]   ;;  %v3445_v24 = vld [vmem:[%s4405_s1 + $0x450] sm:$0xff]  }
  0x52   :  { %3000 = vmatprep.subr.bf16.mxu1 %v3379_v26  ;;  %v3447_v26 = vld [vmem:[%s4405_s1 + $0x4d0] sm:$0xff]  }
  0x54   :  { %2979 = vmatpush3.bf16.msra.mxu0 %v3378_v25  ;;  %v3446_v25 = vld [vmem:[%s4405_s1 + $0x410] sm:$0xff]  }
  0x55   :  { %3001 = vmatpush3.bf16.msra.mxu1 %v3380_v27  ;;  %2980 = vmatprep.subr.bf16.mxu0 %v3381_v28  ;;  %v3448_v27 = vld [vmem:[%s4405_s1 + $0x490] sm:$0xff]   ;;  %v3449_v28 = vld [vmem:[%s4405_s1 + $0x458] sm:$0xff]  }
  0x56   :  { %3002 = vmatprep.subr.bf16.mxu1 %v3383_v30  ;;  %v3451_v30 = vld [vmem:[%s4405_s1 + $0x4d8] sm:$0xff]  }
  0x58   :  { %2981 = vmatpush3.bf16.msra.mxu0 %v3382_v29  ;;  %v3450_v29 = vld [vmem:[%s4405_s1 + $0x418] sm:$0xff]  }
  0x59   :  { %3003 = vmatpush3.bf16.msra.mxu1 %v3384_v31  ;;  %2982 = vmatprep.subr.bf16.mxu0 %v3385_v32  ;;  %v3452_v31 = vld [vmem:[%s4405_s1 + $0x498] sm:$0xff]   ;;  %v3453_v32 = vld [vmem:[%s4405_s1 + $0x460] sm:$0xff]  }
  0x5a   :  { %3004 = vmatprep.subr.bf16.mxu1 %v3387_v34  ;;  %v3455_v34 = vld [vmem:[%s4405_s1 + $0x4e0] sm:$0xff]  }
  0x5c   :  { %2983 = vmatpush3.bf16.msra.mxu0 %v3386_v33  ;;  %v3454_v33 = vld [vmem:[%s4405_s1 + $0x420] sm:$0xff]  }
  0x5d   :  { %3005 = vmatpush3.bf16.msra.mxu1 %v3388_v35  ;;  %2984 = vmatprep.subr.bf16.mxu0 %v3389_v36  ;;  %v3456_v35 = vld [vmem:[%s4405_s1 + $0x4a0] sm:$0xff]   ;;  %v3457_v36 = vld [vmem:[%s4405_s1 + $0x468] sm:$0xff]  }
  0x5e   :  { %3006 = vmatprep.subr.bf16.mxu1 %v3391_v38  ;;  %v3459_v38 = vld [vmem:[%s4405_s1 + $0x4e8] sm:$0xff]  }
  0x60   :  { %2985 = vmatpush3.bf16.msra.mxu0 %v3390_v37  ;;  %v3458_v37 = vld [vmem:[%s4405_s1 + $0x428] sm:$0xff]  }
  0x61   :  { %3007 = vmatpush3.bf16.msra.mxu1 %v3395_v41  ;;  %3014 = vmatprep.subr.bf16.mxu0 %v3396_v42  ;;  %v3462_v41 = vld [vmem:[%s4405_s1 + $0x430] sm:$0xff]  }
  0x62   :  { %3036 = vmatprep.subr.bf16.mxu1 %v3401_v46  ;;  %v3463_v42 = vld [vmem:[%s4405_s1 + $0x4f0] sm:$0xff]   ;;  %v3467_v46 = vld [vmem:[%s4405_s1 + $0x4f8] sm:$0xff]  }
  0x63   :  { %2114 = vmatmul.mubr.bf16.vlgmr.msra.gmra.mrb[8].mxu0 %v3392_v39  ;;  %v3460_v39 = vld [vmem:[%s4405_s1 + $0x4a8] sm:$0xff]  }
  0x64   :  { %3015 = vmatpush3.bf16.msra.mxu0 %v3400_v45  ;;  %2155 = vmatmul.mubr.bf16.vlgmr.msra.gmra.mrb[8].mxu1 %v3397_v43  ;;  %v3464_v43 = vld [vmem:[%s4405_s1 + $0x4b0] sm:$0xff]   ;;  %v3466_v45 = vld [vmem:[%s4405_s1 + $0x438] sm:$0xff]  }
  0x65   :  { %3037 = vmatpush3.bf16.msra.mxu1 %v3402_v47  ;;  %3016 = vmatprep.subr.bf16.mxu0 %v3403_v48  ;;  %v3468_v47 = vld [vmem:[%s4404_s0 + $0x40] ss:$108 sps:$4 sm:$0xff]   ;;  %v3470_v48 = vld [vmem:[%s4404_s0 + $0x44] ss:$108 sps:$4 sm:$0xff]  }
  0x66   :  { %3038 = vmatprep.subr.bf16.mxu1 %v3405_v50  ;;  %2195 = vmatprep.mubr.bf16.mxu0 %v3432_v12  ;;  %v3472_v50 = vld [vmem:[%s4405_s1 + $0x540] sm:$0xff]   ;;  %v3499_v12 = vld [vmem:[%s4405_s1 + $0x570] sm:$0xff]  }
  0x67   :  { %2236 = vmatprep.mubr.bf16.mxu1 %v3437_v16  ;;  %v3503_v16 = vld [vmem:[%s4405_s1 + $0x578] sm:$0xff]  }
  0x68   :  { %3017 = vmatpush3.bf16.msra.mxu0 %v3404_v49  ;;  %v3471_v49 = vld [vmem:[%s4405_s1 + $0x4b8] sm:$0xff]  }
  0x69   :  { %3039 = vmatpush3.bf16.msra.mxu1 %v3406_v51  ;;  %3018 = vmatprep.subr.bf16.mxu0 %v3407_v52  ;;  %v3473_v51 = vld [vmem:[%s4404_s0 + $0x48] ss:$108 sps:$4 sm:$0xff]   ;;  %v3475_v52 = vld [vmem:[%s4404_s0 + $0x4c] ss:$108 sps:$4 sm:$0xff]  }
  0x6a   :  { %3040 = vmatprep.subr.bf16.mxu1 %v3409_v54  ;;  %v3477_v54 = vld [vmem:[%s4405_s1 + $0x5c0] sm:$0xff]  }
  0x6c   :  { %3019 = vmatpush3.bf16.msra.mxu0 %v3408_v53  ;;  %v3476_v53 = vld [vmem:[%s4405_s1 + $0x500] sm:$0xff]  }
  0x6d   :  { %3041 = vmatpush3.bf16.msra.mxu1 %v3410_v55  ;;  %3020 = vmatprep.subr.bf16.mxu0 %v3411_v56  ;;  %v3478_v55 = vld [vmem:[%s4405_s1 + $0x580] sm:$0xff]   ;;  %v3479_v56 = vld [vmem:[%s4405_s1 + $0x548] sm:$0xff]  }
  0x6e   :  { %3042 = vmatprep.subr.bf16.mxu1 %v3413_v58  ;;  %v3481_v58 = vld [vmem:[%s4405_s1 + $0x5c8] sm:$0xff]  }
  0x70   :  { %3021 = vmatpush3.bf16.msra.mxu0 %v3412_v57  ;;  %v3480_v57 = vld [vmem:[%s4405_s1 + $0x508] sm:$0xff]  }
  0x71   :  { %3043 = vmatpush3.bf16.msra.mxu1 %v3414_v59  ;;  %3022 = vmatprep.subr.bf16.mxu0 %v3415_v60  ;;  %v3482_v59 = vld [vmem:[%s4405_s1 + $0x588] sm:$0xff]   ;;  %v3483_v60 = vld [vmem:[%s4405_s1 + $0x550] sm:$0xff]  }
  0x72   :  { %3044 = vmatprep.subr.bf16.mxu1 %v3417_v62  ;;  %v3485_v62 = vld [vmem:[%s4405_s1 + $0x5d0] sm:$0xff]  }
  0x74   :  { %3023 = vmatpush3.bf16.msra.mxu0 %v3416_v61  ;;  %v3484_v61 = vld [vmem:[%s4405_s1 + $0x510] sm:$0xff]  }
  0x75   :  { %3045 = vmatpush3.bf16.msra.mxu1 %v3418_v63  ;;  %3024 = vmatprep.subr.bf16.mxu0 %v3419_v0  ;;  %v3486_v63 = vld [vmem:[%s4405_s1 + $0x590] sm:$0xff]   ;;  %v3487_v0 = vld [vmem:[%s4405_s1 + $0x558] sm:$0xff]  }
  0x76   :  { %3046 = vmatprep.subr.bf16.mxu1 %v3421_v2  ;;  %v3489_v2 = vld [vmem:[%s4405_s1 + $0x5d8] sm:$0xff]  }
  0x78   :  { %3025 = vmatpush3.bf16.msra.mxu0 %v3420_v1  ;;  %v3488_v1 = vld [vmem:[%s4405_s1 + $0x518] sm:$0xff]  }
  0x79   :  { %3047 = vmatpush3.bf16.msra.mxu1 %v3422_v3  ;;  %3026 = vmatprep.subr.bf16.mxu0 %v3423_v4  ;;  %v3490_v3 = vld [vmem:[%s4405_s1 + $0x598] sm:$0xff]   ;;  %v3491_v4 = vld [vmem:[%s4405_s1 + $0x560] sm:$0xff]  }
  0x7a   :  { %3048 = vmatprep.subr.bf16.mxu1 %v3425_v6  ;;  %v3493_v6 = vld [vmem:[%s4405_s1 + $0x5e0] sm:$0xff]  }
  0x7c   :  { %3027 = vmatpush3.bf16.msra.mxu0 %v3424_v5  ;;  %v3492_v5 = vld [vmem:[%s4405_s1 + $0x520] sm:$0xff]  }
  0x7d   :  { %3049 = vmatpush3.bf16.msra.mxu1 %v3426_v7  ;;  %3028 = vmatprep.subr.bf16.mxu0 %v3427_v8  ;;  %v3494_v7 = vld [vmem:[%s4405_s1 + $0x5a0] sm:$0xff]   ;;  %v3495_v8 = vld [vmem:[%s4405_s1 + $0x568] sm:$0xff]  }
  0x7e   :  { %3050 = vmatprep.subr.bf16.mxu1 %v3429_v10  ;;  %v3497_v10 = vld [vmem:[%s4405_s1 + $0x5e8] sm:$0xff]  }
  0x80   :  { %3029 = vmatpush3.bf16.msra.mxu0 %v3428_v9  ;;  %v3496_v9 = vld [vmem:[%s4405_s1 + $0x528] sm:$0xff]  }
  0x81   :  { %3051 = vmatpush3.bf16.msra.mxu1 %v3433_v13  ;;  %3058 = vmatprep.subr.bf16.mxu0 %v3434_v14  ;;  %v3500_v13 = vld [vmem:[%s4405_s1 + $0x530] sm:$0xff]  }
  0x82   :  { %3080 = vmatprep.subr.bf16.mxu1 %v3439_v18  ;;  %v3501_v14 = vld [vmem:[%s4405_s1 + $0x5f0] sm:$0xff]   ;;  %v3505_v18 = vld [vmem:[%s4405_s1 + $0x5f8] sm:$0xff]  }
  0x83   :  { %2196 = vmatmul.mubr.bf16.vlgmr.msra.gmra.mrb[12].mxu0 %v3430_v11  ;;  %v3498_v11 = vld [vmem:[%s4405_s1 + $0x5a8] sm:$0xff]  }
  0x84   :  { %3059 = vmatpush3.bf16.msra.mxu0 %v3438_v17  ;;  %2237 = vmatmul.mubr.bf16.vlgmr.msra.gmra.mrb[12].mxu1 %v3435_v15  ;;  %v3502_v15 = vld [vmem:[%s4405_s1 + $0x5b0] sm:$0xff]   ;;  %v3504_v17 = vld [vmem:[%s4405_s1 + $0x538] sm:$0xff]  }
  0x85   :  { %3081 = vmatpush3.bf16.msra.mxu1 %v3440_v19  ;;  %3060 = vmatprep.subr.bf16.mxu0 %v3441_v20  ;;  %v3506_v19 = vld [vmem:[%s4404_s0 + $0x50] ss:$108 sps:$4 sm:$0xff]   ;;  %v3508_v20 = vld [vmem:[%s4404_s0 + $0x54] ss:$108 sps:$4 sm:$0xff]  }
  0x86   :  { %3082 = vmatprep.subr.bf16.mxu1 %v3443_v22  ;;  %2277 = vmatprep.mubr.bf16.mxu0 %v3470_v48  ;;  %v3510_v22 = vld [vmem:[%s4405_s1 + $0x640] sm:$0xff]  }
  0x87   :  { %2318 = vmatprep.mubr.bf16.mxu1 %v3475_v52 }
  0x88   :  { %3061 = vmatpush3.bf16.msra.mxu0 %v3442_v21  ;;  %v3509_v21 = vld [vmem:[%s4405_s1 + $0x5b8] sm:$0xff]  }
  0x89   :  { %3083 = vmatpush3.bf16.msra.mxu1 %v3444_v23  ;;  %3062 = vmatprep.subr.bf16.mxu0 %v3445_v24  ;;  %v3511_v23 = vld [vmem:[%s4404_s0 + $0x58] ss:$108 sps:$4 sm:$0xff]   ;;  %v3513_v24 = vld [vmem:[%s4404_s0 + $0x5c] ss:$108 sps:$4 sm:$0xff]  }
  0x8a   :  { %3084 = vmatprep.subr.bf16.mxu1 %v3447_v26  ;;  %v3565_v26 = vmov 0.0  }
  0x8c   :  { %3063 = vmatpush3.bf16.msra.mxu0 %v3446_v25  ;;  %v3514_v25 = vld [vmem:[%s4405_s1 + $0x600] sm:$0xff]  }
  0x8d   :  { %3085 = vmatpush3.bf16.msra.mxu1 %v3448_v27  ;;  %3064 = vmatprep.subr.bf16.mxu0 %v3449_v28  ;;  %v3515_v27 = vld [vmem:[%s4405_s1 + $0x680] sm:$0xff]   ;;  %v3516_v28 = vld [vmem:[%s4405_s1 + $0x648] sm:$0xff]  }
  0x8e   :  { %3086 = vmatprep.subr.bf16.mxu1 %v3451_v30  ;;  %v3518_v30 = vld [vmem:[%s4405_s1 + $0x688] sm:$0xff]  }
  0x90   :  { %3065 = vmatpush3.bf16.msra.mxu0 %v3450_v29  ;;  %v3517_v29 = vld [vmem:[%s4405_s1 + $0x608] sm:$0xff]  }
  0x91   :  { %3087 = vmatpush3.bf16.msra.mxu1 %v3452_v31  ;;  %3066 = vmatprep.subr.bf16.mxu0 %v3453_v32  ;;  %v3519_v31 = vld [vmem:[%s4405_s1 + $0x650] sm:$0xff]  }
  0x92   :  { %3088 = vmatprep.subr.bf16.mxu1 %v3455_v34  ;;  %v3520_v32 = vld [vmem:[%s4405_s1 + $0x610] sm:$0xff]   ;;  %v3522_v34 = vld [vmem:[%s4405_s1 + $0x658] sm:$0xff]  }
  0x94   :  { %3067 = vmatpush3.bf16.msra.mxu0 %v3454_v33  ;;  %v3521_v33 = vld [vmem:[%s4405_s1 + $0x690] sm:$0xff]  }
  0x95   :  { %3089 = vmatpush3.bf16.msra.mxu1 %v3456_v35  ;;  %3068 = vmatprep.subr.bf16.mxu0 %v3457_v36  ;;  %v3523_v35 = vld [vmem:[%s4405_s1 + $0x618] sm:$0xff]  }
  0x96   :  { %3090 = vmatprep.subr.bf16.mxu1 %v3459_v38  ;;  %v3524_v36 = vld [vmem:[%s4405_s1 + $0x698] sm:$0xff]   ;;  %v3526_v38 = vld [vmem:[%s4405_s1 + $0x620] sm:$0xff]  }
  0x98   :  { %3069 = vmatpush3.bf16.msra.mxu0 %v3458_v37  ;;  %v3525_v37 = vld [vmem:[%s4405_s1 + $0x660] sm:$0xff]  }
  0x99   :  { %3091 = vmatpush3.bf16.msra.mxu1 %v3460_v39  ;;  %3070 = vmatprep.subr.bf16.mxu0 %v3461_v40  ;;  %v3527_v39 = vld [vmem:[%s4405_s1 + $0x6a0] sm:$0xff]   ;;  %v3528_v40 = vld [vmem:[%s4405_s1 + $0x668] sm:$0xff]  }
  0x9a   :  { %3092 = vmatprep.subr.bf16.mxu1 %v3463_v42  ;;  %v3530_v42 = vld [vmem:[%s4405_s1 + $0x6a8] sm:$0xff]  }
  0x9c   :  { %3071 = vmatpush3.bf16.msra.mxu0 %v3462_v41  ;;  %v3529_v41 = vld [vmem:[%s4405_s1 + $0x628] sm:$0xff]  }
  0x9d   :  { %3093 = vmatpush3.bf16.msra.mxu1 %v3464_v43  ;;  %3072 = vmatprep.subr.bf16.mxu0 %v3465_v44  ;;  %v3531_v43 = vld [vmem:[%s4405_s1 + $0x670] sm:$0xff]  }
  0x9e   :  { %3094 = vmatprep.subr.bf16.mxu1 %v3467_v46  ;;  %v3532_v44 = vld [vmem:[%s4405_s1 + $0x630] sm:$0xff]   ;;  %v3534_v46 = vld [vmem:[%s4405_s1 + $0x678] sm:$0xff]  }
  0xa0   :  { %3073 = vmatpush3.bf16.msra.mxu0 %v3466_v45  ;;  %v3533_v45 = vld [vmem:[%s4405_s1 + $0x6b0] sm:$0xff]  }
  0xa1   :  { %3095 = vmatpush3.bf16.msra.mxu1 %v3471_v49  ;;  %3102 = vmatprep.subr.bf16.mxu0 %v3472_v50 }
  0xa2   :  { %3124 = vmatprep.subr.bf16.mxu1 %v3477_v54 }
  0xa3   :  { %2278 = vmatmul.mubr.bf16.vlgmr.msra.gmra.mrb[16].mxu0 %v3468_v47  ;;  %v3538_v47 = vld [vmem:[%s4404_s0 + $0x64] ss:$108 sps:$4 sm:$0xff]  }
  0xa4   :  { %3103 = vmatpush3.bf16.msra.mxu0 %v3476_v53  ;;  %2319 = vmatmul.mubr.bf16.vlgmr.msra.gmra.mrb[16].mxu1 %v3473_v51 }
  0xa5   :  { %3125 = vmatpush3.bf16.msra.mxu1 %v3478_v55  ;;  %3104 = vmatprep.subr.bf16.mxu0 %v3479_v56 }
  0xa6   :  { %3126 = vmatprep.subr.bf16.mxu1 %v3481_v58  ;;  %2359 = vmatprep.mubr.bf16.mxu0 %v3508_v20 }
  0xa7   :  { %2400 = vmatprep.mubr.bf16.mxu1 %v3513_v24 }
  0xa8   :  { %3105 = vmatpush3.bf16.msra.mxu0 %v3480_v57 }
  0xa9   :  { %3127 = vmatpush3.bf16.msra.mxu1 %v3482_v59  ;;  %3106 = vmatprep.subr.bf16.mxu0 %v3483_v60 }
  0xaa   :  { %3128 = vmatprep.subr.bf16.mxu1 %v3485_v62 }
  0xac   :  { %3107 = vmatpush3.bf16.msra.mxu0 %v3484_v61 }
  0xad   :  { %3129 = vmatpush3.bf16.msra.mxu1 %v3486_v63  ;;  %3108 = vmatprep.subr.bf16.mxu0 %v3487_v0 }
  0xae   :  { %3130 = vmatprep.subr.bf16.mxu1 %v3489_v2 }
  0xb0   :  { %3109 = vmatpush3.bf16.msra.mxu0 %v3488_v1 }
  0xb1   :  { %3131 = vmatpush3.bf16.msra.mxu1 %v3490_v3  ;;  %3110 = vmatprep.subr.bf16.mxu0 %v3491_v4 }
  0xb2   :  { %3132 = vmatprep.subr.bf16.mxu1 %v3493_v6 }
  0xb4   :  { %3111 = vmatpush3.bf16.msra.mxu0 %v3492_v5 }
  0xb5   :  { %3133 = vmatpush3.bf16.msra.mxu1 %v3494_v7  ;;  %3112 = vmatprep.subr.bf16.mxu0 %v3495_v8 }
  0xb6   :  { %3134 = vmatprep.subr.bf16.mxu1 %v3497_v10 }
  0xb8   :  { %3113 = vmatpush3.bf16.msra.mxu0 %v3496_v9 }
  0xb9   :  { %3135 = vmatpush3.bf16.msra.mxu1 %v3498_v11  ;;  %3114 = vmatprep.subr.bf16.mxu0 %v3499_v12 }
  0xba   :  { %3136 = vmatprep.subr.bf16.mxu1 %v3501_v14 }
  0xbc   :  { %3115 = vmatpush3.bf16.msra.mxu0 %v3500_v13 }
  0xbd   :  { %3137 = vmatpush3.bf16.msra.mxu1 %v3502_v15  ;;  %3116 = vmatprep.subr.bf16.mxu0 %v3503_v16 }
  0xbe   :  { %3138 = vmatprep.subr.bf16.mxu1 %v3505_v18 }
  0xc0   :  { %3117 = vmatpush3.bf16.msra.mxu0 %v3504_v17 }
  0xc1   :  { %3139 = vmatpush3.bf16.msra.mxu1 %v3509_v21  ;;  %3146 = vmatprep.subr.bf16.mxu0 %v3510_v22 }
  0xc2   :  { %3195 = vmatprep.subr.bf16.mxu1 %v3565_v26 }
  0xc3   :  { %2360 = vmatmul.mubr.bf16.vlgmr.msra.gmra.mrb[20].mxu0 %v3506_v19 }
  0xc4   :  { %3147 = vmatpush3.bf16.msra.mxu0 %v3514_v25  ;;  %2401 = vmatmul.mubr.bf16.vlgmr.msra.gmra.mrb[20].mxu1 %v3511_v23 }
  0xc5   :  { %3196 = vmatpush3.bf16.msra.mxu1 %v3515_v27  ;;  %3211 = vmatprep.mubr.msk.bf16.mxu1 %vm3566_vm0, %v3565_v26 }
  0xc6   :  { %3148 = vmatprep.subr.bf16.mxu0 %v3516_v28  ;;  %3197 = vmatprep.subr.bf16.mxu1 %v3565_v26 }
  0xc7   :  { %2441 = vmatprep.mubr.bf16.mxu0 %v3538_v47 }
  0xc8   :  { %3149 = vmatpush3.bf16.msra.mxu0 %v3517_v29 }
  0xc9   :  { %3198 = vmatpush3.bf16.msra.mxu1 %v3518_v30  ;;  %3150 = vmatprep.subr.bf16.mxu0 %v3519_v31 }
  0xca   :  { %3199 = vmatprep.subr.bf16.mxu1 %v3565_v26 }
  0xcc   :  { %3151 = vmatpush3.bf16.msra.mxu0 %v3520_v32 }
  0xcd   :  { %3200 = vmatpush3.bf16.msra.mxu1 %v3521_v33  ;;  %3152 = vmatprep.subr.bf16.mxu0 %v3522_v34 }
  0xce   :  { %3201 = vmatprep.subr.bf16.mxu1 %v3565_v26 }
  0xd0   :  { %3153 = vmatpush3.bf16.msra.mxu0 %v3523_v35 }
  0xd1   :  { %3202 = vmatpush3.bf16.msra.mxu1 %v3524_v36  ;;  %3154 = vmatprep.subr.bf16.mxu0 %v3525_v37 }
  0xd2   :  { %3203 = vmatprep.subr.bf16.mxu1 %v3565_v26 }
  0xd4   :  { %3155 = vmatpush3.bf16.msra.mxu0 %v3526_v38 }
  0xd5   :  { %3204 = vmatpush3.bf16.msra.mxu1 %v3527_v39  ;;  %3156 = vmatprep.subr.bf16.mxu0 %v3528_v40 }
  0xd6   :  { %3205 = vmatprep.subr.bf16.mxu1 %v3565_v26 }
  0xd8   :  { %3157 = vmatpush3.bf16.msra.mxu0 %v3529_v41 }
  0xd9   :  { %3206 = vmatpush3.bf16.msra.mxu1 %v3530_v42  ;;  %3158 = vmatprep.subr.bf16.mxu0 %v3531_v43 }
  0xda   :  { %3207 = vmatprep.subr.bf16.mxu1 %v3565_v26 }
  0xdb   :  { %11 = vsyncpa [#allocation3], 0  ;;  %v3535_v48 = vld [vmem:[%s4405_s1 + $0x638] sm:$0xff]   ;;  %v3536_v50 = vld [vmem:[%s4404_s0 + $0x60] ss:$108 sps:$4 sm:$0xff]   ;;  %s3567_s12 = smov [#allocation2]  }
  0xdc   :  { %3159 = vmatpush3.bf16.msra.mxu0 %v3532_v44  ;;  %v3539_v49 = vld [vmem:[%s4405_s1 + $0x6b8] sm:$0xff]   ;;  %v3540_v51 = vld [vmem:[%s4404_s0 + $0x68] ss:$108 sps:$4 sm:$0xff]   ;;  %v2511_v18 = vld [vmem:[%s4408_s4] sm:$0xff]  ;;  %s2629_s13 = sshll.u32 %s3567_s12, 4  ;;  %s2630_s13 = int_to_ptr.vmem [resolvable:$true] %s2629_s13 }
  0xdd   :  { %3208 = vmatpush3.bf16.msra.mxu1 %v3533_v45  ;;  %3160 = vmatprep.subr.bf16.mxu0 %v3534_v46  ;;  %v2512_v19 = vld [vmem:[%s4408_s4 + $0x8] sm:$0xff]  ;;  %v2513_v20 = vld [vmem:[%s4408_s4 + $0x10] sm:$0xff]  ;;  %v2514_v22 = vld [vmem:[%s4408_s4 + $0x18] sm:$0xff]  ;;  %s3541_s14 = scalar_lea.vmem %s2630_s13, 32  ;;  %p3546_p1 = scmp.lt.s32.totalorder %s2630_s13, %s2630_s13 }
  0xde   :  { %3209 = vmatprep.subr.bf16.mxu1 %v3565_v26  ;;  %v3250_v21 = vpack.c.bf16 %v2512_v19, %v2511_v18  ;;  %v3254_v23 = vpack.c.bf16 %v2514_v22, %v2513_v20  ;;  %v2515_v24 = vld [vmem:[%s4408_s4 + $0x20] sm:$0xff]  ;;  %v2516_v25 = vld [vmem:[%s4408_s4 + $0x28] sm:$0xff]  ;;  %v2517_v27 = vld [vmem:[%s4408_s4 + $0x30] sm:$0xff]  ;;  %p3542_p0 = scmp.ne.s32.totalorder %s2630_s13, %s3541_s14  ;;  %p3547_p2 = scmp.lt.s32.totalorder %s3541_s14, %s3541_s14 }
  0xdf   :  { %v3258_v26 = vpack.c.bf16 %v2516_v25, %v2515_v24  ;;  %v2518_v28 = vld [vmem:[%s4408_s4 + $0x38] sm:$0xff]  ;;  %v2519_v45 = vld [vmem:[%s4408_s4 + $0x40] sm:$0xff]  ;;  %v2520_v46 = vld [vmem:[%s4408_s4 + $0x48] sm:$0xff] }
  0xe0   :  { %3161 = vmatpush3.bf16.msra.mxu0 %v3535_v48  ;;  %v3262_v29 = vpack.c.bf16 %v2518_v28, %v2517_v27  ;;  %v3266_v47 = vpack.c.bf16 %v2520_v46, %v2519_v45  ;;  %p3548_p3 = por %p3547_p2, %p3546_p1 }
  0xe1   :  { %3210 = vmatpush3.bf16.msra.mxu1 %v3539_v49  ;;  %3251 = vmatprep.subr.bf16.mxu0 %v3250_v21  ;;  %v2521_v49 = vld [vmem:[%s4408_s4 + $0x50] sm:$0xff] }
  0xe2   :  { %p3549_p4 = pnand %p3548_p3, %p3542_p0 }
  0xe3   :  { %2442 = vmatmul.mubr.bf16.vlgmr.msra.gmra.mrb[24].mxu0 %v3536_v50  ;;  %v2522_v50 = vld [vmem:[%s4408_s4 + $0x58] sm:$0xff] }
  0xe4   :  { %3212 = vmatmul.mubr.bf16.vlgmr.msra.gmra.mrb[24].mxu1 %v3540_v51  ;;  %3253 = vmatpush3.bf16.msra.mxu0 %v3250_v21  ;;  %v3270_v51 = vpack.c.bf16 %v2522_v50, %v2521_v49 }
  0xe5   :  { %3255 = vmatprep.subr.bf16.mxu0 %v3254_v23 }
  0xe8   :  { %3257 = vmatpush3.bf16.msra.mxu0 %v3254_v23 }
  0xe9   :  { %3259 = vmatprep.subr.bf16.mxu0 %v3258_v26 }
  0xec   :  { %3261 = vmatpush3.bf16.msra.mxu0 %v3258_v26 }
  0xed   :  { %3263 = vmatprep.subr.bf16.mxu0 %v3262_v29 }
  0xf0   :  { %3265 = vmatpush3.bf16.msra.mxu0 %v3262_v29 }
  0xf1   :  { %3267 = vmatprep.subr.bf16.mxu0 %v3266_v47 }
  0xf4   :  { %3269 = vmatpush3.bf16.msra.mxu0 %v3266_v47 }
  0xf5   :  { %3271 = vmatprep.subr.bf16.mxu0 %v3270_v51 }
  0xf6   :  { %v2898_v52 = vpop.f32.mrb[0].mxu0 }
  0xf7   :  { %v2920_v53 = vpop.f32.mrb[0].mxu1  ;;  %v2899_v54 = vpop.f32.mrb[1].mxu0 }
  0xf8   :  { %v2900_v55 = vadd.f32 %v2899_v54, %v2898_v52  ;;  %v2921_v56 = vpop.f32.mrb[1].mxu1  ;;  %v2901_v57 = vpop.f32.mrb[2].mxu0  ;;  %3273 = vmatpush3.bf16.msra.mxu0 %v3270_v51  ;;  %v2523_v52 = vld [vmem:[%s4408_s4 + $0x60] sm:$0xff] }
  0xf9   :  { %v2922_v58 = vadd.f32 %v2921_v56, %v2920_v53  ;;  %v2923_v59 = vpop.f32.mrb[2].mxu1  ;;  %v2902_v60 = vpop.f32.mrb[3].mxu0  ;;  %v2524_v53 = vld [vmem:[%s4408_s4 + $0x68] sm:$0xff]  ;;  %v2526_v56 = vld [vmem:[%s4408_s4 + $0x78] sm:$0xff] }
  0xfa   :  { %v2903_v61 = vadd.f32 %v2902_v60, %v2901_v57  ;;  %v2924_v62 = vpop.f32.mrb[3].mxu1  ;;  %v3274_v54 = vpack.c.bf16 %v2524_v53, %v2523_v52  ;;  %v2880_v53 = vld [vmem:[%s4406_s2] ss:$0 sm:$0xff] }
  0xfb   :  { %v1993_v63 = vadd.f32 %v2922_v58, %v2900_v55  ;;  %v2925_v0 = vadd.f32 %v2924_v62, %v2923_v59  ;;  %v2525_v55 = vld [vmem:[%s4408_s4 + $0x70] sm:$0xff] }
  0xfc   :  { %3275 = vmatprep.subr.bf16.mxu0 %v3274_v54  ;;  %v3278_v57 = vpack.c.bf16 %v2526_v56, %v2525_v55  ;;  %v2881_v56 = vld [vmem:[%s4407_s3] ss:$0 sm:$0xff] }
  0xfd   :  { %v1996_v1 = vadd.f32 %v2925_v0, %v2903_v61  ;;  %3277 = vmatpush3.bf16.msra.mxu0 %v3274_v54 }
  0xfe   :  { %3279 = vmatprep.subr.bf16.mxu0 %v3278_v57 }
 0x101   :  { %3281 = vmatpush3.bf16.msra.mxu0 %v3278_v57 }
 0x116   :  { %v2942_v2 = vpop.f32.mrb[4].mxu0 }
 0x117   :  { %v2943_v3 = vpop.f32.mrb[5].mxu0  ;;  %v2964_v8 = vpop.f32.mrb[4].mxu1 }
 0x118   :  { %v2944_v4 = vadd.f32 %v2943_v3, %v2942_v2  ;;  %v2945_v5 = vpop.f32.mrb[6].mxu0  ;;  %v2965_v10 = vpop.f32.mrb[5].mxu1 }
 0x119   :  { %v2946_v6 = vpop.f32.mrb[7].mxu0  ;;  %v2966_v12 = vadd.f32 %v2965_v10, %v2964_v8  ;;  %v2967_v13 = vpop.f32.mrb[6].mxu1 }
 0x11a   :  { %v2034_v7 = vadd.f32 %v2944_v4, %v1993_v63  ;;  %v2947_v9 = vadd.f32 %v2946_v6, %v2945_v5  ;;  %v2968_v14 = vpop.f32.mrb[7].mxu1 }
 0x11b   :  { %v2969_v16 = vadd.f32 %v2968_v14, %v2967_v13 }
 0x11c   :  { %v2037_v11 = vadd.f32 %v2947_v9, %v1996_v1  ;;  %v2075_v15 = vadd.f32 %v2966_v12, %v2034_v7 }
 0x11e   :  { %v2078_v17 = vadd.f32 %v2969_v16, %v2037_v11 }
 0x136   :  { %v2986_v30 = vpop.f32.mrb[8].mxu0 }
 0x137   :  { %v2987_v31 = vpop.f32.mrb[9].mxu0  ;;  %v3008_v34 = vpop.f32.mrb[8].mxu1 }
 0x138   :  { %v2988_v32 = vadd.f32 %v2987_v31, %v2986_v30  ;;  %v2989_v33 = vpop.f32.mrb[10].mxu0  ;;  %v3009_v38 = vpop.f32.mrb[9].mxu1 }
 0x139   :  { %v2990_v35 = vpop.f32.mrb[11].mxu0  ;;  %v3010_v39 = vadd.f32 %v3009_v38, %v3008_v34  ;;  %v3011_v40 = vpop.f32.mrb[10].mxu1 }
 0x13a   :  { %v2116_v36 = vadd.f32 %v2988_v32, %v2075_v15  ;;  %v2991_v37 = vadd.f32 %v2990_v35, %v2989_v33  ;;  %v3012_v42 = vpop.f32.mrb[11].mxu1 }
 0x13b   :  { %v3013_v44 = vadd.f32 %v3012_v42, %v3011_v40 }
 0x13c   :  { %v2119_v41 = vadd.f32 %v2991_v37, %v2078_v17  ;;  %v2157_v43 = vadd.f32 %v3010_v39, %v2116_v36 }
 0x13e   :  { %v2160_v48 = vadd.f32 %v3013_v44, %v2119_v41 }
 0x156   :  { %v3030_v58 = vpop.f32.mrb[12].mxu0 }
 0x157   :  { %v3031_v59 = vpop.f32.mrb[13].mxu0  ;;  %v3052_v62 = vpop.f32.mrb[12].mxu1 }
 0x158   :  { %v3032_v60 = vadd.f32 %v3031_v59, %v3030_v58  ;;  %v3033_v61 = vpop.f32.mrb[14].mxu0  ;;  %v3053_v2 = vpop.f32.mrb[13].mxu1 }
 0x159   :  { %v3034_v63 = vpop.f32.mrb[15].mxu0  ;;  %v3054_v3 = vadd.f32 %v3053_v2, %v3052_v62  ;;  %v3055_v4 = vpop.f32.mrb[14].mxu1 }
 0x15a   :  { %v2198_v0 = vadd.f32 %v3032_v60, %v2157_v43  ;;  %v3035_v1 = vadd.f32 %v3034_v63, %v3033_v61  ;;  %v3056_v6 = vpop.f32.mrb[15].mxu1 }
 0x15b   :  { %v3057_v8 = vadd.f32 %v3056_v6, %v3055_v4 }
 0x15c   :  { %v2201_v5 = vadd.f32 %v3035_v1, %v2160_v48  ;;  %v2239_v7 = vadd.f32 %v3054_v3, %v2198_v0 }
 0x15e   :  { %v2242_v9 = vadd.f32 %v3057_v8, %v2201_v5 }
 0x176   :  { %v3074_v10 = vpop.f32.mrb[16].mxu0 }
 0x177   :  { %v3075_v11 = vpop.f32.mrb[17].mxu0  ;;  %v3096_v16 = vpop.f32.mrb[16].mxu1 }
 0x178   :  { %v3076_v12 = vadd.f32 %v3075_v11, %v3074_v10  ;;  %v3077_v13 = vpop.f32.mrb[18].mxu0  ;;  %v3097_v18 = vpop.f32.mrb[17].mxu1 }
 0x179   :  { %v3078_v14 = vpop.f32.mrb[19].mxu0  ;;  %v3098_v20 = vadd.f32 %v3097_v18, %v3096_v16  ;;  %v3099_v21 = vpop.f32.mrb[18].mxu1 }
 0x17a   :  { %v2280_v15 = vadd.f32 %v3076_v12, %v2239_v7  ;;  %v3079_v17 = vadd.f32 %v3078_v14, %v3077_v13  ;;  %v3100_v22 = vpop.f32.mrb[19].mxu1  ;;  %v2620_v14 = vld [vmem:[%s4409_s5] sm:$0x1] }
 0x17b   :  { %v3101_v24 = vadd.f32 %v3100_v22, %v3099_v21 }
 0x17c   :  { %v2283_v19 = vadd.f32 %v3079_v17, %v2242_v9  ;;  %v2321_v23 = vadd.f32 %v3098_v20, %v2280_v15  ;;  %v2610_v15 = vld [vmem:[%s4409_s5] sm:$0x1] }
 0x17e   :  { %v2324_v25 = vadd.f32 %v3101_v24, %v2283_v19 }
 0x196   :  { %v3118_v26 = vpop.f32.mrb[20].mxu0 }
 0x197   :  { %v3119_v27 = vpop.f32.mrb[21].mxu0  ;;  %v3140_v30 = vpop.f32.mrb[20].mxu1 }
 0x198   :  { %v3120_v28 = vadd.f32 %v3119_v27, %v3118_v26  ;;  %v3121_v29 = vpop.f32.mrb[22].mxu0  ;;  %v3141_v34 = vpop.f32.mrb[21].mxu1 }
 0x199   :  { %v3122_v31 = vpop.f32.mrb[23].mxu0  ;;  %v3142_v35 = vadd.f32 %v3141_v34, %v3140_v30  ;;  %v3143_v36 = vpop.f32.mrb[22].mxu1 }
 0x19a   :  { %v2362_v32 = vadd.f32 %v3120_v28, %v2321_v23  ;;  %v3123_v33 = vadd.f32 %v3122_v31, %v3121_v29  ;;  %v3144_v38 = vpop.f32.mrb[23].mxu1 }
 0x19b   :  { %v3145_v40 = vadd.f32 %v3144_v38, %v3143_v36 }
 0x19c   :  { %v2365_v37 = vadd.f32 %v3123_v33, %v2324_v25  ;;  %v2403_v39 = vadd.f32 %v3142_v35, %v2362_v32 }
 0x19e   :  { %v2406_v41 = vadd.f32 %v3145_v40, %v2365_v37 }
 0x1b6   :  { %v3162_v42 = vpop.f32.mrb[24].mxu0 }
 0x1b7   :  { %v3163_v43 = vpop.f32.mrb[25].mxu0  ;;  %v2484_v44 = vpop.f32.mrb[24].mxu1 }
 0x1b8   :  { %v3164_v45 = vadd.f32 %v3163_v43, %v3162_v42  ;;  %v3165_v46 = vpop.f32.mrb[26].mxu0  ;;  %v3213_v47 = vpop.f32.mrb[25].mxu1 }
 0x1b9   :  { %v3166_v48 = vpop.f32.mrb[27].mxu0  ;;  %v2487_v49 = vpop.f32.mrb[26].mxu1 }
 0x1ba   :  { %v2444_v50 = vadd.f32 %v3164_v45, %v2403_v39  ;;  %v3167_v51 = vadd.f32 %v3166_v48, %v3165_v46  ;;  %v3214_v52 = vpop.f32.mrb[27].mxu1 }
 0x1bc   :  { %v2485_v54 = vadd.f32 %v2484_v44, %v2444_v50  ;;  %v2447_v55 = vadd.f32 %v3167_v51, %v2406_v41 }
 0x1be   :  { %v2498_v57 = vmul.f32 %v2880_v53, %v2485_v54  ;;  %v2488_v58 = vadd.f32 %v2487_v49, %v2447_v55 }
 0x1c0   :  { %v2499_v59 = vmul.f32 %v2880_v53, %v2488_v58  ;;  %v2507_v60 = vadd.f32 %v2881_v56, %v2498_v57 }
 0x1c2   :  { %v2508_v61 = vadd.f32 %v2881_v56, %v2499_v59  ;;  %v2509_v62 = vmax.f32 %v2507_v60, 0.0 }
 0x1c4   :  { %v2510_v63 = vmax.f32 %v2508_v61, 0.0  ;;  %3247 = vmatprep.mubr.f32.mxu0 %v2509_v62 }
 0x1c6   :  { %3248 = vmatmul.mubr.f32.vlgmr.msra.gmra.mrb[28].mxu0 %v2510_v63 }
 0x299   :  { %v3249_v0 = vpop.f32.mrb[28].mxu0 }
 0x29a   :  { %v2613_v1 = vrot.slane %v3249_v0, 4  ;;  %v2593_v2 = vpop.f32.mrb[29].mxu0 }
 0x29b   :  { %v2602_v3 = vrot.slane %v2593_v2, 4 }
 0x29c   :  { %v2614_v4 = vadd.f32 %v3249_v0, %v2613_v1 }
 0x29d   :  { %v2603_v5 = vadd.f32 %v2602_v3, %v2593_v2 }
 0x29e   :  { %v2615_v6 = vrot.slane %v2614_v4, 2 }
 0x29f   :  { %v2604_v7 = vrot.slane %v2603_v5, 2 }
 0x2a0   :  { %v2616_v8 = vadd.f32 %v2615_v6, %v2614_v4 }
 0x2a1   :  { %v2605_v9 = vadd.f32 %v2604_v7, %v2603_v5 }
 0x2a2   :  { %v2617_v10 = vrot.slane %v2616_v8, 1 }
 0x2a3   :  { %v2606_v11 = vrot.slane %v2605_v9, 1 }
 0x2a4   :  { %v2618_v12 = vadd.f32 %v2617_v10, %v2616_v8 }
 0x2a5   :  { %v2607_v13 = vadd.f32 %v2606_v11, %v2605_v9 }
 0x2a6   :  { %v2619_v16 = vmul.f32 0.125, %v2618_v12 }
 0x2a7   :  { %v2609_v17 = vmul.f32 0.125, %v2607_v13 }
 0x2a8   :  { %v2621_v18 = vadd.f32 %v2620_v14, %v2619_v16 }
 0x2a9   :  { %v2611_v19 = vadd.f32 %v2610_v15, %v2609_v17 }
 0x2aa   :  { %2622 = vst [vmem:[#allocation2 + $0x1] sm:$0x1] %v2621_v18 }
 0x2ab   :  { %2612 = vst [vmem:[#allocation2] sm:$0x1] %v2611_v19 }
 0x2ac   :  { %3552 = shalt.err (!%p3549_p4)
}
 0x2ad   :  { %s3553_s5 = scalar_lea.hbm %s4410_s6, 32 }
 0x2ae   :  { %p3554_p5 = scmp.ne.s32.totalorder %s4410_s6, %s3553_s5  ;;  %p3557_p6 = scmp.lt.u32.totalorder %s3553_s5, %s4410_s6 }
 0x2b0   :  { %p3559_p7 = pnand %p3557_p6, %p3554_p5 }
 0x2b2   :  { %3562 = shalt.err (!%p3559_p7)
}
 0x2b3   :  { %2632 = dma.vmem_to_hbm [thread:$0]  %s2630_s13, 32, %s4410_s6, [#allocation3]  }
 0x2b4   :  { %3563 = dma.done.wait [#allocation3], 32  }
 0x2b5   :  { %3564 = vsyncadd [#allocation3], 4294967264 }
 0x2b6   :  { %2636 = vsyncpa [#allocation3], 1 }

</bundles_post_ra>
